<compile_context>
chip_gen: v6e
topology: v6e:2x2x1
jax: 0.10.0
libtpu: 0.0.40
codegen_flags: <defaults>
</compile_context>

<pallas_src>
import jax
import jax.numpy as jnp
import numpy as np
from jax.experimental import pallas as pl
from jax.experimental.pallas import tpu as pltpu


# ----------------------------------------------------------------------------
# Fused kernel: one sample per grid step, both views, full core in VMEM.
# ----------------------------------------------------------------------------
def _fused_two_view_kernel(x_ref, w1_ref, b1_ref, w2_ref, b2_ref,
                           wf_ref, bf_ref, o_ref, pad1_ref, pad2_ref):
    # x_ref : (1, 2, H, W, 3)  one sample, both 3-channel views, HWC layout
    # w1/w2 : im2col-reshaped conv weights (9*Cin, Cout); b1/b2: (1, Cout)
    # wf/bf : final linear (C2, D) / (1, D)
    # o_ref : (1, 2, D)        per-view features (flattened to (1, 2D) outside)
    # pad1/pad2: VMEM scratch for zero-padded activations (SAME-conv halo)
    _, V, H, W, Cin = x_ref.shape
    C1 = w1_ref.shape[1]

    # Zero the padded scratch once per grid step; only interiors are rewritten
    # below, so the halo border stays zero for every view.
    pad1_ref[...] = jnp.zeros_like(pad1_ref)
    pad2_ref[...] = jnp.zeros_like(pad2_ref)

    def conv3x3_relu(x_hwc, pad_ref, w_ref, b_ref):
        # SAME 3x3 conv + bias + ReLU as one im2col matmul on the MXU.
        h, w, cin = x_hwc.shape
        # Pad W (sublane dim) in-value, pad H via a row-offset store into the
        # pre-zeroed scratch buffer.
        zc = jnp.zeros((h, 1, cin), jnp.float32)
        pad_ref[1:h + 1, :, :] = jnp.concatenate([zc, x_hwc, zc], axis=1)
        # 9 shifted windows -> (H*W, 9*Cin) patch matrix, single matmul.
        cols = [pad_ref[dy:dy + h, dx:dx + w, :]
                for dy in range(3) for dx in range(3)]
        patches = jnp.concatenate(cols, axis=-1).reshape(h * w, 9 * cin)
        y = jnp.dot(patches, w_ref[...],
                    preferred_element_type=jnp.float32) + b_ref[...]
        return jnp.maximum(y, 0.0)                       # (h*w, Cout)

    pooled = []
    for v in range(V):                                   # weight-tied views
        h1 = conv3x3_relu(x_ref[0, v], pad1_ref, w1_ref, b1_ref)       # (HW,C1)
        h2 = conv3x3_relu(h1.reshape(H, W, C1), pad2_ref, w2_ref, b2_ref)
        pooled.append(jnp.mean(h2, axis=0, keepdims=True))             # (1,C2)

    p = jnp.concatenate(pooled, axis=0)                  # (V, C2)
    feats = jnp.maximum(
        jnp.dot(p, wf_ref[...], preferred_element_type=jnp.float32)
        + bf_ref[...], 0.0)                              # (V, D)
    o_ref[...] = feats.reshape(1, V, -1)


def fused_two_view_core(x_nvhwc, params):
    # x_nvhwc: (N, 2, H, W, 3) float32
    N, V, H, W, Cin = x_nvhwc.shape
    C1 = params["w1"].shape[-1]
    C2 = params["w2"].shape[-1]
    D = params["wf"].shape[-1]

    # Weight prep (trace-time, tiny): HWIO (3,3,Cin,Cout) -> (9*Cin, Cout),
    # row order (ky, kx, cin) matching the im2col column order in the kernel.
    w1 = params["w1"].reshape(9 * Cin, C1)
    w2 = params["w2"].reshape(9 * C1, C2)
    b1 = params["b1"].reshape(1, C1)
    b2 = params["b2"].reshape(1, C2)
    wf = params["wf"]
    bf = params["bf"].reshape(1, D)

    return pl.pallas_call(
        _fused_two_view_kernel,
        out_shape=jax.ShapeDtypeStruct((N, V, D), jnp.float32),
        grid=(N,),
        in_specs=[
            pl.BlockSpec((1, V, H, W, Cin), lambda n: (n, 0, 0, 0, 0)),
            pl.BlockSpec((9 * Cin, C1), lambda n: (0, 0)),
            pl.BlockSpec((1, C1), lambda n: (0, 0)),
            pl.BlockSpec((9 * C1, C2), lambda n: (0, 0)),
            pl.BlockSpec((1, C2), lambda n: (0, 0)),
            pl.BlockSpec((C2, D), lambda n: (0, 0)),
            pl.BlockSpec((1, D), lambda n: (0, 0)),
        ],
        out_specs=pl.BlockSpec((1, V, D), lambda n: (n, 0, 0)),
        scratch_shapes=[
            pltpu.VMEM((H + 2, W + 2, Cin), jnp.float32),   # padded view input
            pltpu.VMEM((H + 2, W + 2, C1), jnp.float32),    # padded conv1 out
        ],
        compiler_params=pltpu.CompilerParams(
            dimension_semantics=("parallel",)),             # v7x: 2 TCs
    )(x_nvhwc, w1, b1, w2, b2, wf, bf)


def two_views_forward(x, params):
    # x: (N, 6, H, W) float32 NCHW; channels 0:3 = view 1, 3:6 = view 2.
    N, _, H, W = x.shape
    # Zero-copy view split + one NCHW->NHWC layout transpose (single XLA op).
    xv = jnp.transpose(x.reshape(N, 2, 3, H, W), (0, 1, 3, 4, 2))
    feats = fused_two_view_core(xv, params)              # (N, 2, D)
    return feats.reshape(N, -1)                          # == cat([f1, f2], dim=1)


# ----------------------------------------------------------------------------
# Deterministic synthetic parameters (backbone checkpoint not available).
# ----------------------------------------------------------------------------
def init_params(key, c1=16, c2=32, d=32):
    k1, k2, k3 = jax.random.split(key, 3)
    return dict(
        w1=(jax.random.normal(k1, (3, 3, 3, c1), jnp.float32) * 0.1),
        b1=jnp.zeros((c1,), jnp.float32),
        w2=(jax.random.normal(k2, (3, 3, c1, c2), jnp.float32) * 0.05),
        b2=jnp.zeros((c2,), jnp.float32),
        wf=(jax.random.normal(k3, (c2, d), jnp.float32) * 0.1),
        bf=jnp.zeros((d,), jnp.float32),
    )


# ----------------------------------------------------------------------------
# Pure-JAX reference for correctness checking.
# ----------------------------------------------------------------------------
def _ref_core(x_nchw, p):
    def conv(x, w, b):
        y = jax.lax.conv_general_dilated(
            x, w, (1, 1), "SAME",
            dimension_numbers=("NCHW", "HWIO", "NCHW"))
        return jax.nn.relu(y + b[None, :, None, None])

    h = conv(x_nchw, p["w1"], p["b1"])
    h = conv(h, p["w2"], p["b2"])
    pooled = jnp.mean(h, axis=(2, 3))
    return jax.nn.relu(pooled @ p["wf"] + p["bf"])


def _ref_forward(x, p):
    f1 = _ref_core(x[:, 0:3], p)
    f2 = _ref_core(x[:, 3:6], p)
    return jnp.concatenate([f1, f2], axis=1)


if __name__ == "__main__":
    key = jax.random.PRNGKey(0)
    kx, kp = jax.random.split(key)

    N, H, W = 2, 16, 16
    x = jax.random.normal(kx, (N, 6, H, W), jnp.float32)
    params = init_params(kp)

    fwd = jax.jit(two_views_forward)
    out = jax.block_until_ready(fwd(x, params))

    assert out.shape == (N, 64), out.shape

    ref = jax.block_until_ready(_ref_forward(x, params))
    np.testing.assert_allclose(np.asarray(out), np.asarray(ref),
                               rtol=1e-2, atol=1e-2)

    print("KERNEL_OK")
</pallas_src>

<mosaic_0001>
module attributes {stable_mosaic.version = 11 : i64} {
  func.func @_fused_two_view_kernel(%arg0: i32, %arg1: memref<1x2x16x16x3xf32, #tpu.memory_space<vmem>>, %arg2: memref<27x16xf32, #tpu.memory_space<vmem>>, %arg3: memref<1x16xf32, #tpu.memory_space<vmem>>, %arg4: memref<144x32xf32, #tpu.memory_space<vmem>>, %arg5: memref<1x32xf32, #tpu.memory_space<vmem>>, %arg6: memref<32x32xf32, #tpu.memory_space<vmem>>, %arg7: memref<1x32xf32, #tpu.memory_space<vmem>>, %arg8: memref<1x2x32xf32, #tpu.memory_space<vmem>>, %arg9: memref<18x18x3xf32, #tpu.memory_space<vmem>>, %arg10: memref<18x18x16xf32, #tpu.memory_space<vmem>>) attributes {dimension_semantics = [#tpu.dimension_semantics<parallel>], iteration_bounds = array<i64: 2>, scalar_prefetch = 0 : i64, scratch_operands = 2 : i64, tpu.core_type = #tpu.core_type<tc>, window_params = [{transform_indices = @transform_0, window_bounds = array<i64: 1, 2, 16, 16, 3>}, {pipeline_mode = #tpu.pipeline_mode<synchronous>, transform_indices = @transform_1, window_bounds = array<i64: 27, 16>}, {pipeline_mode = #tpu.pipeline_mode<synchronous>, transform_indices = @transform_2, window_bounds = array<i64: 1, 16>}, {pipeline_mode = #tpu.pipeline_mode<synchronous>, transform_indices = @transform_3, window_bounds = array<i64: 144, 32>}, {pipeline_mode = #tpu.pipeline_mode<synchronous>, transform_indices = @transform_4, window_bounds = array<i64: 1, 32>}, {pipeline_mode = #tpu.pipeline_mode<synchronous>, transform_indices = @transform_5, window_bounds = array<i64: 32, 32>}, {pipeline_mode = #tpu.pipeline_mode<synchronous>, transform_indices = @transform_6, window_bounds = array<i64: 1, 32>}, {transform_indices = @transform_7, window_bounds = array<i64: 1, 2, 32>}]} {
    %cst = arith.constant 0.000000e+00 : f32
    %0 = vector.broadcast %cst : f32 to vector<18x18x3xf32>
    %c0 = arith.constant 0 : index
    %c0_0 = arith.constant 0 : index
    %c0_1 = arith.constant 0 : index
    %1 = vector.load %arg9[%c0, %c0_0, %c0_1] : memref<18x18x3xf32, #tpu.memory_space<vmem>>, vector<18x18x3xf32>
    tpu.vector_store %arg9[%c0, %c0_0, %c0_1], %0 {strides = array<i32>} : memref<18x18x3xf32, #tpu.memory_space<vmem>>, vector<18x18x3xf32>,
    %cst_2 = arith.constant 0.000000e+00 : f32
    %2 = vector.broadcast %cst_2 : f32 to vector<18x18x16xf32>
    %c0_3 = arith.constant 0 : index
    %c0_4 = arith.constant 0 : index
    %c0_5 = arith.constant 0 : index
    %3 = vector.load %arg10[%c0_3, %c0_4, %c0_5] : memref<18x18x16xf32, #tpu.memory_space<vmem>>, vector<18x18x16xf32>
    tpu.vector_store %arg10[%c0_3, %c0_4, %c0_5], %2 {strides = array<i32>} : memref<18x18x16xf32, #tpu.memory_space<vmem>>, vector<18x18x16xf32>,
    %c0_6 = arith.constant 0 : index
    %c0_7 = arith.constant 0 : index
    %c0_8 = arith.constant 0 : index
    %c0_9 = arith.constant 0 : index
    %c0_10 = arith.constant 0 : index
    %4 = vector.load %arg1[%c0_6, %c0_7, %c0_8, %c0_9, %c0_10] : memref<1x2x16x16x3xf32, #tpu.memory_space<vmem>>, vector<1x1x16x16x3xf32>
    %5 = vector.shape_cast %4 : vector<1x1x16x16x3xf32> to vector<16x16x3xf32>
    %cst_11 = arith.constant 0.000000e+00 : f32
    %6 = vector.broadcast %cst_11 : f32 to vector<16x1x3xf32>
    %7 = tpu.concatenate %6, %5, %6 in 1 : vector<16x1x3xf32>, vector<16x16x3xf32>, vector<16x1x3xf32> -> vector<16x18x3xf32>
    %c1 = arith.constant 1 : index
    %c0_12 = arith.constant 0 : index
    %c0_13 = arith.constant 0 : index
    %8 = vector.load %arg9[%c1, %c0_12, %c0_13] : memref<18x18x3xf32, #tpu.memory_space<vmem>>, vector<16x18x3xf32>
    tpu.vector_store %arg9[%c1, %c0_12, %c0_13], %7 {strides = array<i32>} : memref<18x18x3xf32, #tpu.memory_space<vmem>>, vector<16x18x3xf32>,
    %c0_14 = arith.constant 0 : index
    %c0_15 = arith.constant 0 : index
    %c0_16 = arith.constant 0 : index
    %9 = vector.load %arg9[%c0_14, %c0_15, %c0_16] : memref<18x18x3xf32, #tpu.memory_space<vmem>>, vector<16x16x3xf32>
    %c0_17 = arith.constant 0 : index
    %c1_18 = arith.constant 1 : index
    %c0_19 = arith.constant 0 : index
    %10 = vector.load %arg9[%c0_17, %c1_18, %c0_19] : memref<18x18x3xf32, #tpu.memory_space<vmem>>, vector<16x16x3xf32>
    %c0_20 = arith.constant 0 : index
    %c2 = arith.constant 2 : index
    %c0_21 = arith.constant 0 : index
    %11 = vector.load %arg9[%c0_20, %c2, %c0_21] : memref<18x18x3xf32, #tpu.memory_space<vmem>>, vector<16x16x3xf32>
    %c1_22 = arith.constant 1 : index
    %c0_23 = arith.constant 0 : index
    %c0_24 = arith.constant 0 : index
    %12 = vector.load %arg9[%c1_22, %c0_23, %c0_24] : memref<18x18x3xf32, #tpu.memory_space<vmem>>, vector<16x16x3xf32>
    %c1_25 = arith.constant 1 : index
    %c1_26 = arith.constant 1 : index
    %c0_27 = arith.constant 0 : index
    %13 = vector.load %arg9[%c1_25, %c1_26, %c0_27] : memref<18x18x3xf32, #tpu.memory_space<vmem>>, vector<16x16x3xf32>
    %c1_28 = arith.constant 1 : index
    %c2_29 = arith.constant 2 : index
    %c0_30 = arith.constant 0 : index
    %14 = vector.load %arg9[%c1_28, %c2_29, %c0_30] : memref<18x18x3xf32, #tpu.memory_space<vmem>>, vector<16x16x3xf32>
    %c2_31 = arith.constant 2 : index
    %c0_32 = arith.constant 0 : index
    %c0_33 = arith.constant 0 : index
    %15 = vector.load %arg9[%c2_31, %c0_32, %c0_33] : memref<18x18x3xf32, #tpu.memory_space<vmem>>, vector<16x16x3xf32>
    %c2_34 = arith.constant 2 : index
    %c1_35 = arith.constant 1 : index
    %c0_36 = arith.constant 0 : index
    %16 = vector.load %arg9[%c2_34, %c1_35, %c0_36] : memref<18x18x3xf32, #tpu.memory_space<vmem>>, vector<16x16x3xf32>
    %c2_37 = arith.constant 2 : index
    %c2_38 = arith.constant 2 : index
    %c0_39 = arith.constant 0 : index
    %17 = vector.load %arg9[%c2_37, %c2_38, %c0_39] : memref<18x18x3xf32, #tpu.memory_space<vmem>>, vector<16x16x3xf32>
    %18 = tpu.concatenate %9, %10, %11, %12, %13, %14, %15, %16, %17 in 2 : vector<16x16x3xf32>, vector<16x16x3xf32>, vector<16x16x3xf32>, vector<16x16x3xf32>, vector<16x16x3xf32>, vector<16x16x3xf32>, vector<16x16x3xf32>, vector<16x16x3xf32>, vector<16x16x3xf32> -> vector<16x16x27xf32>
    %19 = vector.shape_cast %18 : vector<16x16x27xf32> to vector<256x27xf32>
    %c0_40 = arith.constant 0 : index
    %c0_41 = arith.constant 0 : index
    %20 = vector.load %arg2[%c0_40, %c0_41] : memref<27x16xf32, #tpu.memory_space<vmem>>, vector<27x16xf32>
    %cst_42 = arith.constant dense<0.000000e+00> : vector<256x16xf32>
    %21 = tpu.matmul %19, %20, %cst_42 {dimension_numbers = #tpu.dot_dimension_numbers<[1], [0], [0], [1], [0, 0, 1, 1], [], []>} : vector<256x27xf32>, vector<27x16xf32>, vector<256x16xf32> -> vector<256x16xf32>
    %c0_43 = arith.constant 0 : index
    %c0_44 = arith.constant 0 : index
    %22 = vector.load %arg3[%c0_43, %c0_44] : memref<1x16xf32, #tpu.memory_space<vmem>>, vector<1x16xf32>
    %23 = vector.broadcast %22 : vector<1x16xf32> to vector<256x16xf32>
    %24 = arith.addf %21, %23 : vector<256x16xf32>
    %cst_45 = arith.constant 0.000000e+00 : f32
    %25 = vector.broadcast %cst_45 : f32 to vector<256x16xf32>
    %26 = arith.maximumf %24, %25 : vector<256x16xf32>
    %27 = vector.shape_cast %26 : vector<256x16xf32> to vector<16x16x16xf32>
    %cst_46 = arith.constant 0.000000e+00 : f32
    %28 = vector.broadcast %cst_46 : f32 to vector<16x1x16xf32>
    %29 = tpu.concatenate %28, %27, %28 in 1 : vector<16x1x16xf32>, vector<16x16x16xf32>, vector<16x1x16xf32> -> vector<16x18x16xf32>
    %c1_47 = arith.constant 1 : index
    %c0_48 = arith.constant 0 : index
    %c0_49 = arith.constant 0 : index
    %30 = vector.load %arg10[%c1_47, %c0_48, %c0_49] : memref<18x18x16xf32, #tpu.memory_space<vmem>>, vector<16x18x16xf32>
    tpu.vector_store %arg10[%c1_47, %c0_48, %c0_49], %29 {strides = array<i32>} : memref<18x18x16xf32, #tpu.memory_space<vmem>>, vector<16x18x16xf32>,
    %c0_50 = arith.constant 0 : index
    %c0_51 = arith.constant 0 : index
    %c0_52 = arith.constant 0 : index
    %31 = vector.load %arg10[%c0_50, %c0_51, %c0_52] : memref<18x18x16xf32, #tpu.memory_space<vmem>>, vector<16x16x16xf32>
    %c0_53 = arith.constant 0 : index
    %c1_54 = arith.constant 1 : index
    %c0_55 = arith.constant 0 : index
    %32 = vector.load %arg10[%c0_53, %c1_54, %c0_55] : memref<18x18x16xf32, #tpu.memory_space<vmem>>, vector<16x16x16xf32>
    %c0_56 = arith.constant 0 : index
    %c2_57 = arith.constant 2 : index
    %c0_58 = arith.constant 0 : index
    %33 = vector.load %arg10[%c0_56, %c2_57, %c0_58] : memref<18x18x16xf32, #tpu.memory_space<vmem>>, vector<16x16x16xf32>
    %c1_59 = arith.constant 1 : index
    %c0_60 = arith.constant 0 : index
    %c0_61 = arith.constant 0 : index
    %34 = vector.load %arg10[%c1_59, %c0_60, %c0_61] : memref<18x18x16xf32, #tpu.memory_space<vmem>>, vector<16x16x16xf32>
    %c1_62 = arith.constant 1 : index
    %c1_63 = arith.constant 1 : index
    %c0_64 = arith.constant 0 : index
    %35 = vector.load %arg10[%c1_62, %c1_63, %c0_64] : memref<18x18x16xf32, #tpu.memory_space<vmem>>, vector<16x16x16xf32>
    %c1_65 = arith.constant 1 : index
    %c2_66 = arith.constant 2 : index
    %c0_67 = arith.constant 0 : index
    %36 = vector.load %arg10[%c1_65, %c2_66, %c0_67] : memref<18x18x16xf32, #tpu.memory_space<vmem>>, vector<16x16x16xf32>
    %c2_68 = arith.constant 2 : index
    %c0_69 = arith.constant 0 : index
    %c0_70 = arith.constant 0 : index
    %37 = vector.load %arg10[%c2_68, %c0_69, %c0_70] : memref<18x18x16xf32, #tpu.memory_space<vmem>>, vector<16x16x16xf32>
    %c2_71 = arith.constant 2 : index
    %c1_72 = arith.constant 1 : index
    %c0_73 = arith.constant 0 : index
    %38 = vector.load %arg10[%c2_71, %c1_72, %c0_73] : memref<18x18x16xf32, #tpu.memory_space<vmem>>, vector<16x16x16xf32>
    %c2_74 = arith.constant 2 : index
    %c2_75 = arith.constant 2 : index
    %c0_76 = arith.constant 0 : index
    %39 = vector.load %arg10[%c2_74, %c2_75, %c0_76] : memref<18x18x16xf32, #tpu.memory_space<vmem>>, vector<16x16x16xf32>
    %40 = tpu.concatenate %31, %32, %33, %34, %35, %36, %37, %38, %39 in 2 : vector<16x16x16xf32>, vector<16x16x16xf32>, vector<16x16x16xf32>, vector<16x16x16xf32>, vector<16x16x16xf32>, vector<16x16x16xf32>, vector<16x16x16xf32>, vector<16x16x16xf32>, vector<16x16x16xf32> -> vector<16x16x144xf32>
    %41 = vector.shape_cast %40 : vector<16x16x144xf32> to vector<256x144xf32>
    %c0_77 = arith.constant 0 : index
    %c0_78 = arith.constant 0 : index
    %42 = vector.load %arg4[%c0_77, %c0_78] : memref<144x32xf32, #tpu.memory_space<vmem>>, vector<144x32xf32>
    %cst_79 = arith.constant dense<0.000000e+00> : vector<256x32xf32>
    %43 = tpu.matmul %41, %42, %cst_79 {dimension_numbers = #tpu.dot_dimension_numbers<[1], [0], [0], [1], [0, 0, 1, 1], [], []>} : vector<256x144xf32>, vector<144x32xf32>, vector<256x32xf32> -> vector<256x32xf32>
    %c0_80 = arith.constant 0 : index
    %c0_81 = arith.constant 0 : index
    %44 = vector.load %arg5[%c0_80, %c0_81] : memref<1x32xf32, #tpu.memory_space<vmem>>, vector<1x32xf32>
    %45 = vector.broadcast %44 : vector<1x32xf32> to vector<256x32xf32>
    %46 = arith.addf %43, %45 : vector<256x32xf32>
    %cst_82 = arith.constant 0.000000e+00 : f32
    %47 = vector.broadcast %cst_82 : f32 to vector<256x32xf32>
    %48 = arith.maximumf %46, %47 : vector<256x32xf32>
    %cst_83 = arith.constant dense<0.000000e+00> : vector<32xf32>
    %49 = vector.multi_reduction <add>, %48, %cst_83 [0] : vector<256x32xf32> to vector<32xf32>
    %50 = vector.shape_cast %49 : vector<32xf32> to vector<1x32xf32>
    %cst_84 = arith.constant 2.560000e+02 : f32
    %51 = vector.broadcast %cst_84 : f32 to vector<1x32xf32>
    %52 = arith.divf %50, %51 : vector<1x32xf32>
    %c0_85 = arith.constant 0 : index
    %c1_86 = arith.constant 1 : index
    %c0_87 = arith.constant 0 : index
    %c0_88 = arith.constant 0 : index
    %c0_89 = arith.constant 0 : index
    %53 = vector.load %arg1[%c0_85, %c1_86, %c0_87, %c0_88, %c0_89] : memref<1x2x16x16x3xf32, #tpu.memory_space<vmem>>, vector<1x1x16x16x3xf32>
    %54 = vector.shape_cast %53 : vector<1x1x16x16x3xf32> to vector<16x16x3xf32>
    %cst_90 = arith.constant 0.000000e+00 : f32
    %55 = vector.broadcast %cst_90 : f32 to vector<16x1x3xf32>
    %56 = tpu.concatenate %55, %54, %55 in 1 : vector<16x1x3xf32>, vector<16x16x3xf32>, vector<16x1x3xf32> -> vector<16x18x3xf32>
    %c1_91 = arith.constant 1 : index
    %c0_92 = arith.constant 0 : index
    %c0_93 = arith.constant 0 : index
    %57 = vector.load %arg9[%c1_91, %c0_92, %c0_93] : memref<18x18x3xf32, #tpu.memory_space<vmem>>, vector<16x18x3xf32>
    tpu.vector_store %arg9[%c1_91, %c0_92, %c0_93], %56 {strides = array<i32>} : memref<18x18x3xf32, #tpu.memory_space<vmem>>, vector<16x18x3xf32>,
    %c0_94 = arith.constant 0 : index
    %c0_95 = arith.constant 0 : index
    %c0_96 = arith.constant 0 : index
    %58 = vector.load %arg9[%c0_94, %c0_95, %c0_96] : memref<18x18x3xf32, #tpu.memory_space<vmem>>, vector<16x16x3xf32>
    %c0_97 = arith.constant 0 : index
    %c1_98 = arith.constant 1 : index
    %c0_99 = arith.constant 0 : index
    %59 = vector.load %arg9[%c0_97, %c1_98, %c0_99] : memref<18x18x3xf32, #tpu.memory_space<vmem>>, vector<16x16x3xf32>
    %c0_100 = arith.constant 0 : index
    %c2_101 = arith.constant 2 : index
    %c0_102 = arith.constant 0 : index
    %60 = vector.load %arg9[%c0_100, %c2_101, %c0_102] : memref<18x18x3xf32, #tpu.memory_space<vmem>>, vector<16x16x3xf32>
    %c1_103 = arith.constant 1 : index
    %c0_104 = arith.constant 0 : index
    %c0_105 = arith.constant 0 : index
    %61 = vector.load %arg9[%c1_103, %c0_104, %c0_105] : memref<18x18x3xf32, #tpu.memory_space<vmem>>, vector<16x16x3xf32>
    %c1_106 = arith.constant 1 : index
    %c1_107 = arith.constant 1 : index
    %c0_108 = arith.constant 0 : index
    %62 = vector.load %arg9[%c1_106, %c1_107, %c0_108] : memref<18x18x3xf32, #tpu.memory_space<vmem>>, vector<16x16x3xf32>
    %c1_109 = arith.constant 1 : index
    %c2_110 = arith.constant 2 : index
    %c0_111 = arith.constant 0 : index
    %63 = vector.load %arg9[%c1_109, %c2_110, %c0_111] : memref<18x18x3xf32, #tpu.memory_space<vmem>>, vector<16x16x3xf32>
    %c2_112 = arith.constant 2 : index
    %c0_113 = arith.constant 0 : index
    %c0_114 = arith.constant 0 : index
    %64 = vector.load %arg9[%c2_112, %c0_113, %c0_114] : memref<18x18x3xf32, #tpu.memory_space<vmem>>, vector<16x16x3xf32>
    %c2_115 = arith.constant 2 : index
    %c1_116 = arith.constant 1 : index
    %c0_117 = arith.constant 0 : index
    %65 = vector.load %arg9[%c2_115, %c1_116, %c0_117] : memref<18x18x3xf32, #tpu.memory_space<vmem>>, vector<16x16x3xf32>
    %c2_118 = arith.constant 2 : index
    %c2_119 = arith.constant 2 : index
    %c0_120 = arith.constant 0 : index
    %66 = vector.load %arg9[%c2_118, %c2_119, %c0_120] : memref<18x18x3xf32, #tpu.memory_space<vmem>>, vector<16x16x3xf32>
    %67 = tpu.concatenate %58, %59, %60, %61, %62, %63, %64, %65, %66 in 2 : vector<16x16x3xf32>, vector<16x16x3xf32>, vector<16x16x3xf32>, vector<16x16x3xf32>, vector<16x16x3xf32>, vector<16x16x3xf32>, vector<16x16x3xf32>, vector<16x16x3xf32>, vector<16x16x3xf32> -> vector<16x16x27xf32>
    %68 = vector.shape_cast %67 : vector<16x16x27xf32> to vector<256x27xf32>
    %c0_121 = arith.constant 0 : index
    %c0_122 = arith.constant 0 : index
    %69 = vector.load %arg2[%c0_121, %c0_122] : memref<27x16xf32, #tpu.memory_space<vmem>>, vector<27x16xf32>
    %cst_123 = arith.constant dense<0.000000e+00> : vector<256x16xf32>
    %70 = tpu.matmul %68, %69, %cst_123 {dimension_numbers = #tpu.dot_dimension_numbers<[1], [0], [0], [1], [0, 0, 1, 1], [], []>} : vector<256x27xf32>, vector<27x16xf32>, vector<256x16xf32> -> vector<256x16xf32>
    %c0_124 = arith.constant 0 : index
    %c0_125 = arith.constant 0 : index
    %71 = vector.load %arg3[%c0_124, %c0_125] : memref<1x16xf32, #tpu.memory_space<vmem>>, vector<1x16xf32>
    %72 = vector.broadcast %71 : vector<1x16xf32> to vector<256x16xf32>
    %73 = arith.addf %70, %72 : vector<256x16xf32>
    %cst_126 = arith.constant 0.000000e+00 : f32
    %74 = vector.broadcast %cst_126 : f32 to vector<256x16xf32>
    %75 = arith.maximumf %73, %74 : vector<256x16xf32>
    %76 = vector.shape_cast %75 : vector<256x16xf32> to vector<16x16x16xf32>
    %cst_127 = arith.constant 0.000000e+00 : f32
    %77 = vector.broadcast %cst_127 : f32 to vector<16x1x16xf32>
    %78 = tpu.concatenate %77, %76, %77 in 1 : vector<16x1x16xf32>, vector<16x16x16xf32>, vector<16x1x16xf32> -> vector<16x18x16xf32>
    %c1_128 = arith.constant 1 : index
    %c0_129 = arith.constant 0 : index
    %c0_130 = arith.constant 0 : index
    %79 = vector.load %arg10[%c1_128, %c0_129, %c0_130] : memref<18x18x16xf32, #tpu.memory_space<vmem>>, vector<16x18x16xf32>
    tpu.vector_store %arg10[%c1_128, %c0_129, %c0_130], %78 {strides = array<i32>} : memref<18x18x16xf32, #tpu.memory_space<vmem>>, vector<16x18x16xf32>,
    %c0_131 = arith.constant 0 : index
    %c0_132 = arith.constant 0 : index
    %c0_133 = arith.constant 0 : index
    %80 = vector.load %arg10[%c0_131, %c0_132, %c0_133] : memref<18x18x16xf32, #tpu.memory_space<vmem>>, vector<16x16x16xf32>
    %c0_134 = arith.constant 0 : index
    %c1_135 = arith.constant 1 : index
    %c0_136 = arith.constant 0 : index
    %81 = vector.load %arg10[%c0_134, %c1_135, %c0_136] : memref<18x18x16xf32, #tpu.memory_space<vmem>>, vector<16x16x16xf32>
    %c0_137 = arith.constant 0 : index
    %c2_138 = arith.constant 2 : index
    %c0_139 = arith.constant 0 : index
    %82 = vector.load %arg10[%c0_137, %c2_138, %c0_139] : memref<18x18x16xf32, #tpu.memory_space<vmem>>, vector<16x16x16xf32>
    %c1_140 = arith.constant 1 : index
    %c0_141 = arith.constant 0 : index
    %c0_142 = arith.constant 0 : index
    %83 = vector.load %arg10[%c1_140, %c0_141, %c0_142] : memref<18x18x16xf32, #tpu.memory_space<vmem>>, vector<16x16x16xf32>
    %c1_143 = arith.constant 1 : index
    %c1_144 = arith.constant 1 : index
    %c0_145 = arith.constant 0 : index
    %84 = vector.load %arg10[%c1_143, %c1_144, %c0_145] : memref<18x18x16xf32, #tpu.memory_space<vmem>>, vector<16x16x16xf32>
    %c1_146 = arith.constant 1 : index
    %c2_147 = arith.constant 2 : index
    %c0_148 = arith.constant 0 : index
    %85 = vector.load %arg10[%c1_146, %c2_147, %c0_148] : memref<18x18x16xf32, #tpu.memory_space<vmem>>, vector<16x16x16xf32>
    %c2_149 = arith.constant 2 : index
    %c0_150 = arith.constant 0 : index
    %c0_151 = arith.constant 0 : index
    %86 = vector.load %arg10[%c2_149, %c0_150, %c0_151] : memref<18x18x16xf32, #tpu.memory_space<vmem>>, vector<16x16x16xf32>
    %c2_152 = arith.constant 2 : index
    %c1_153 = arith.constant 1 : index
    %c0_154 = arith.constant 0 : index
    %87 = vector.load %arg10[%c2_152, %c1_153, %c0_154] : memref<18x18x16xf32, #tpu.memory_space<vmem>>, vector<16x16x16xf32>
    %c2_155 = arith.constant 2 : index
    %c2_156 = arith.constant 2 : index
    %c0_157 = arith.constant 0 : index
    %88 = vector.load %arg10[%c2_155, %c2_156, %c0_157] : memref<18x18x16xf32, #tpu.memory_space<vmem>>, vector<16x16x16xf32>
    %89 = tpu.concatenate %80, %81, %82, %83, %84, %85, %86, %87, %88 in 2 : vector<16x16x16xf32>, vector<16x16x16xf32>, vector<16x16x16xf32>, vector<16x16x16xf32>, vector<16x16x16xf32>, vector<16x16x16xf32>, vector<16x16x16xf32>, vector<16x16x16xf32>, vector<16x16x16xf32> -> vector<16x16x144xf32>
    %90 = vector.shape_cast %89 : vector<16x16x144xf32> to vector<256x144xf32>
    %c0_158 = arith.constant 0 : index
    %c0_159 = arith.constant 0 : index
    %91 = vector.load %arg4[%c0_158, %c0_159] : memref<144x32xf32, #tpu.memory_space<vmem>>, vector<144x32xf32>
    %cst_160 = arith.constant dense<0.000000e+00> : vector<256x32xf32>
    %92 = tpu.matmul %90, %91, %cst_160 {dimension_numbers = #tpu.dot_dimension_numbers<[1], [0], [0], [1], [0, 0, 1, 1], [], []>} : vector<256x144xf32>, vector<144x32xf32>, vector<256x32xf32> -> vector<256x32xf32>
    %c0_161 = arith.constant 0 : index
    %c0_162 = arith.constant 0 : index
    %93 = vector.load %arg5[%c0_161, %c0_162] : memref<1x32xf32, #tpu.memory_space<vmem>>, vector<1x32xf32>
    %94 = vector.broadcast %93 : vector<1x32xf32> to vector<256x32xf32>
    %95 = arith.addf %92, %94 : vector<256x32xf32>
    %cst_163 = arith.constant 0.000000e+00 : f32
    %96 = vector.broadcast %cst_163 : f32 to vector<256x32xf32>
    %97 = arith.maximumf %95, %96 : vector<256x32xf32>
    %cst_164 = arith.constant dense<0.000000e+00> : vector<32xf32>
    %98 = vector.multi_reduction <add>, %97, %cst_164 [0] : vector<256x32xf32> to vector<32xf32>
    %99 = vector.shape_cast %98 : vector<32xf32> to vector<1x32xf32>
    %cst_165 = arith.constant 2.560000e+02 : f32
    %100 = vector.broadcast %cst_165 : f32 to vector<1x32xf32>
    %101 = arith.divf %99, %100 : vector<1x32xf32>
    %102 = tpu.concatenate %52, %101 in 0 : vector<1x32xf32>, vector<1x32xf32> -> vector<2x32xf32>
    %c0_166 = arith.constant 0 : index
    %c0_167 = arith.constant 0 : index
    %103 = vector.load %arg6[%c0_166, %c0_167] : memref<32x32xf32, #tpu.memory_space<vmem>>, vector<32x32xf32>
    %cst_168 = arith.constant dense<0.000000e+00> : vector<2x32xf32>
    %104 = tpu.matmul %102, %103, %cst_168 {dimension_numbers = #tpu.dot_dimension_numbers<[1], [0], [0], [1], [0, 0, 1, 1], [], []>} : vector<2x32xf32>, vector<32x32xf32>, vector<2x32xf32> -> vector<2x32xf32>
    %c0_169 = arith.constant 0 : index
    %c0_170 = arith.constant 0 : index
    %105 = vector.load %arg7[%c0_169, %c0_170] : memref<1x32xf32, #tpu.memory_space<vmem>>, vector<1x32xf32>
    %106 = vector.broadcast %105 : vector<1x32xf32> to vector<2x32xf32>
    %107 = arith.addf %104, %106 : vector<2x32xf32>
    %cst_171 = arith.constant 0.000000e+00 : f32
    %108 = vector.broadcast %cst_171 : f32 to vector<2x32xf32>
    %109 = arith.maximumf %107, %108 : vector<2x32xf32>
    %110 = vector.shape_cast %109 : vector<2x32xf32> to vector<1x2x32xf32>
    %c0_172 = arith.constant 0 : index
    %c0_173 = arith.constant 0 : index
    %c0_174 = arith.constant 0 : index
    %111 = vector.load %arg8[%c0_172, %c0_173, %c0_174] : memref<1x2x32xf32, #tpu.memory_space<vmem>>, vector<1x2x32xf32>
    tpu.vector_store %arg8[%c0_172, %c0_173, %c0_174], %110 {strides = array<i32>} : memref<1x2x32xf32, #tpu.memory_space<vmem>>, vector<1x2x32xf32>,
    return
  }
  func.func @transform_0(%arg0: i32) -> (i32, i32, i32, i32, i32) {
    %c0_i32 = arith.constant 0 : i32
    %c0_i32_0 = arith.constant 0 : i32
    %c0_i32_1 = arith.constant 0 : i32
    %c0_i32_2 = arith.constant 0 : i32
    %c0_i32_3 = arith.constant 0 : i32
    return %arg0, %c0_i32, %c0_i32_0, %c0_i32_1, %c0_i32_2 : i32, i32, i32, i32, i32
  }
  func.func @transform_1(%arg0: i32) -> (i32, i32) {
    %c0_i32 = arith.constant 0 : i32
    %c0_i32_0 = arith.constant 0 : i32
    %c0_i32_1 = arith.constant 0 : i32
    return %c0_i32, %c0_i32_0 : i32, i32
  }
  func.func @transform_2(%arg0: i32) -> (i32, i32) {
    %c0_i32 = arith.constant 0 : i32
    %c0_i32_0 = arith.constant 0 : i32
    %c0_i32_1 = arith.constant 0 : i32
    return %c0_i32, %c0_i32_0 : i32, i32
  }
  func.func @transform_3(%arg0: i32) -> (i32, i32) {
    %c0_i32 = arith.constant 0 : i32
    %c0_i32_0 = arith.constant 0 : i32
    %c0_i32_1 = arith.constant 0 : i32
    return %c0_i32, %c0_i32_0 : i32, i32
  }
  func.func @transform_4(%arg0: i32) -> (i32, i32) {
    %c0_i32 = arith.constant 0 : i32
    %c0_i32_0 = arith.constant 0 : i32
    %c0_i32_1 = arith.constant 0 : i32
    return %c0_i32, %c0_i32_0 : i32, i32
  }
  func.func @transform_5(%arg0: i32) -> (i32, i32) {
    %c0_i32 = arith.constant 0 : i32
    %c0_i32_0 = arith.constant 0 : i32
    %c0_i32_1 = arith.constant 0 : i32
    return %c0_i32, %c0_i32_0 : i32, i32
  }
  func.func @transform_6(%arg0: i32) -> (i32, i32) {
    %c0_i32 = arith.constant 0 : i32
    %c0_i32_0 = arith.constant 0 : i32
    %c0_i32_1 = arith.constant 0 : i32
    return %c0_i32, %c0_i32_0 : i32, i32
  }
  func.func @transform_7(%arg0: i32) -> (i32, i32, i32) {
    %c0_i32 = arith.constant 0 : i32
    %c0_i32_0 = arith.constant 0 : i32
    %c0_i32_1 = arith.constant 0 : i32
    return %arg0, %c0_i32, %c0_i32_0 : i32, i32, i32
  }
}

</mosaic_0001>

<bundles_post_ra>
// kernel: two_views_forward.1
= control target key start
LH: loop header
LB: loop body
LE: loop exit
PB: predicated region body
PF: predicated region fallthrough
CT: control target
= control target key end

     0   :  { %s10652_s24 = smov 0   ;;  %s16160_s0 = inlined_call_operand.vmem [shape: f32[2,2,16,16,3], index: 0, kind: input, shape index: {}]   ;;  %s16161_s1 = inlined_call_operand.vmem [shape: f32[27,16], index: 1, kind: input, shape index: {}]   ;;  %s16162_s2 = inlined_call_operand.vmem [shape: f32[1,16], index: 2, kind: input, shape index: {}]   ;;  %s16163_s3 = inlined_call_operand.vmem [shape: f32[144,32], index: 3, kind: input, shape index: {}]   ;;  %s16164_s4 = inlined_call_operand.vmem [shape: f32[1,32], index: 4, kind: input, shape index: {}]   ;;  %s16165_s5 = inlined_call_operand.vmem [shape: f32[32,32], index: 5, kind: input, shape index: {}]   ;;  %s16166_s6 = inlined_call_operand.vmem [shape: f32[1,32], index: 6, kind: input, shape index: {}]   ;;  %s16167_s7 = inlined_call_operand.vmem [shape: f32[2,2,32], index: 7, kind: output, shape index: {}]  }
   0x1 LB: > { %s9030_s25 = sadd.s32 4294967295, %s10593_s24   ;;  %p9034_p0 = scmp.ge.s32.totalorder %s10593_s24, 1  ;;  %s10593_s24 = sphi %s10652_s24, %s17_s24  }
   0x2   : > { %p237_p1 = scmp.lt.s32.totalorder %s10593_s24, 3 }
   0x4   : > { %p238_p2 = pnand %p9034_p0, %p237_p1 }
   0x6   : > { %241 = sbr.rel (%p238_p2) target bundleno = 2465 (0x9a1), region = 48 }
   0xb   : > { %vm277_vm0 = vcmask 23552   ;;  %vm280_vm1 = vcmask 17408   ;;  %p10662_p3 = scmp.lt.s32.totalorder %s9030_s25, 1  ;;  %v16168_v0 = vmov 0.0   ;;  %vm16298_vm2 = vcmask 1040384   ;;  %s10596_s8 = smov 3  }
   0xc   : > { %278 = vst.msk [vmem:[#allocation2] sm:$0xff] %vm277_vm0, %v16168_v0  ;;  %279 = vst.msk [vmem:[#allocation2 + $0x8] sm:$0xff] %vm277_vm0, %v16168_v0  ;;  %s10597_s9 = smov 6   ;;  %s10598_s10 = smov 9   ;;  %vm2315_vm3 = vcmask 1042432   ;;  %vm16295_vm4 = vcmask 123904  }
   0xd   : > { %282 = vst.msk [vmem:[#allocation2 + $0x18] sm:$0xff] %vm277_vm0, %v16168_v0  ;;  %283 = vst.msk [vmem:[#allocation2 + $0x20] sm:$0xff] %vm277_vm0, %v16168_v0  ;;  %s17136_s25 = smov (!%p10662_p3, %s9030_s25), 1  ;;  %s10599_s11 = smov 12   ;;  %vm1976_vm5 = vcmask 48128   ;;  %vm2009_vm6 = vcmask 72704  }
   0xe   : > { %285 = vst.msk [vmem:[#allocation2 + $0x30] sm:$0xff] %vm277_vm0, %v16168_v0  ;;  %286 = vst.msk [vmem:[#allocation2 + $0x38] sm:$0xff] %vm277_vm0, %v16168_v0  ;;  %s9208_s27 = sshll.u32 %s17136_s25, 9  ;;  %s10600_s12 = smov 15   ;;  %vm2042_vm7 = vcmask 97280   ;;  %vm2075_vm8 = vcmask 121856  }
   0xf   : > { %288 = vst.msk [vmem:[#allocation2 + $0x48] sm:$0xff] %vm277_vm0, %v16168_v0  ;;  %289 = vst.msk [vmem:[#allocation2 + $0x50] sm:$0xff] %vm277_vm0, %v16168_v0  ;;  %s10784_s30 = scalar_lea.vmem %s16160_s0, %s9208_s27  ;;  %s10601_s13 = smov 18   ;;  %vm2108_vm9 = vcmask 146432   ;;  %vm2141_vm10 = vcmask 171008   ;;  %vm2174_vm11 = vcmask 195584  }
  0x10   : > { %291 = vst.msk [vmem:[#allocation2 + $0x60] sm:$0xff] %vm277_vm0, %v16168_v0  ;;  %292 = vst.msk [vmem:[#allocation2 + $0x68] sm:$0xff] %vm277_vm0, %v16168_v0  ;;  %v391_v1 = vld [vmem:[%s10784_s30 + $0x10] sm:$0xff]  ;;  %v392_v2 = vld [vmem:[%s10784_s30 + $0x18] sm:$0xff]  ;;  %s10602_s14 = smov 21   ;;  %s10603_s23 = smov 24  }
  0x11   : > { %294 = vst.msk [vmem:[#allocation2 + $0x78] sm:$0xff] %vm277_vm0, %v16168_v0  ;;  %295 = vst.msk [vmem:[#allocation2 + $0x80] sm:$0xff] %vm277_vm0, %v16168_v0  ;;  %v389_v3 = vld [vmem:[%s10784_s30] sm:$0xff]  ;;  %v457_v4 = vrot.slane %v391_v1, 7  ;;  %v458_v5 = vrot.slane %v392_v2, 7  ;;  %v390_v6 = vld [vmem:[%s10784_s30 + $0x8] sm:$0xff] }
  0x12   : > { %297 = vst.msk [vmem:[#allocation2 + $0x90] sm:$0xff] %vm277_vm0, %v16168_v0  ;;  %298 = vst.msk [vmem:[#allocation2 + $0x98] sm:$0xff] %vm277_vm0, %v16168_v0  ;;  %v454_v7 = vrot.slane %v389_v3, 7  ;;  %v393_v8 = vld [vmem:[%s10784_s30 + $0x20] sm:$0xff]  ;;  %v394_v9 = vld [vmem:[%s10784_s30 + $0x28] sm:$0xff]  ;;  %v455_v12 = vrot.slane %v390_v6, 7 }
  0x13   : > { %300 = vst.msk [vmem:[#allocation2 + $0xa8] sm:$0xff] %vm277_vm0, %v16168_v0  ;;  %301 = vst.msk [vmem:[#allocation2 + $0xb0] sm:$0xff] %vm277_vm0, %v16168_v0  ;;  %v663_v10 = vld [vmem:[#allocation2 + $0x1] sm:$0xff]  ;;  %v460_v13 = vrot.slane %v393_v8, 7  ;;  %v461_v14 = vrot.slane %v394_v9, 7  ;;  %v395_v15 = vld [vmem:[%s10784_s30 + $0x30] sm:$0xff]  ;;  %v459_v16 = vsel %vm16298_vm2, %v457_v4, %v458_v5 }
  0x14   : > { %303 = vst.msk [vmem:[#allocation2 + $0xc0] sm:$0xff] %vm277_vm0, %v16168_v0  ;;  %304 = vst.msk [vmem:[#allocation2 + $0xc8] sm:$0xff] %vm277_vm0, %v16168_v0  ;;  %952 = vrot.lane.b32.xlu0 %v663_v10, %s10596_s8  ;;  %v551_v17 = vsel %vm16298_vm2, 0.0, %v457_v4  ;;  %v550_v18 = vsel %vm16298_vm2, 0.0, %v454_v7  ;;  %v396_v19 = vld [vmem:[%s10784_s30 + $0x38] sm:$0xff]  ;;  %v463_v20 = vrot.slane %v395_v15, 7  ;;  %v456_v23 = vsel %vm16298_vm2, %v454_v7, %v455_v12 }
  0x15   : > { %306 = vst.msk [vmem:[#allocation2 + $0xd8] sm:$0xff] %vm277_vm0, %v16168_v0  ;;  %307 = vst.msk [vmem:[#allocation2 + $0xe0] sm:$0xff] %vm277_vm0, %v16168_v0  ;;  %v397_v21 = vld [vmem:[%s10784_s30 + $0x40] sm:$0xff]  ;;  %v398_v22 = vld [vmem:[%s10784_s30 + $0x48] sm:$0xff]  ;;  %v462_v24 = vsel %vm16298_vm2, %v460_v13, %v461_v14  ;;  %v552_v25 = vsel %vm16298_vm2, 0.0, %v460_v13  ;;  %v566_v26 = vsel %vm16298_vm2, %v455_v12, 0.0 }
  0x16   : > { %309 = vst.msk [vmem:[#allocation2 + $0xf0] sm:$0xff] %vm277_vm0, %v16168_v0  ;;  %310 = vst.msk [vmem:[#allocation2 + $0xf8] sm:$0xff] %vm277_vm0, %v16168_v0  ;;  %v399_v27 = vld [vmem:[%s10784_s30 + $0x50] sm:$0xff]  ;;  %v400_v28 = vld [vmem:[%s10784_s30 + $0x58] sm:$0xff]  ;;  %v464_v30 = vrot.slane %v396_v19, 7  ;;  %v553_v31 = vsel %vm16298_vm2, 0.0, %v463_v20 }
  0x17   : > { %312 = vst.msk [vmem:[#allocation2 + $0x108] sm:$0xff] %vm277_vm0, %v16168_v0  ;;  %313 = vst.msk [vmem:[#allocation2 + $0x110] sm:$0xff] %vm277_vm0, %v16168_v0  ;;  %v401_v29 = vld [vmem:[%s10784_s30 + $0x60] sm:$0xff]  ;;  %v567_v32 = vsel %vm16298_vm2, %v458_v5, 0.0  ;;  %v466_v33 = vrot.slane %v397_v21, 7  ;;  %v402_v34 = vld [vmem:[%s10784_s30 + $0x68] sm:$0xff] }
  0x18   : > { %315 = vst.msk [vmem:[#allocation2 + $0x120] sm:$0xff] %vm277_vm0, %v16168_v0  ;;  %316 = vst.msk [vmem:[#allocation2 + $0x128] sm:$0xff] %vm277_vm0, %v16168_v0  ;;  %v467_v35 = vrot.slane %v398_v22, 7  ;;  %v568_v36 = vsel %vm16298_vm2, %v461_v14, 0.0  ;;  %v469_v37 = vrot.slane %v399_v27, 7  ;;  %v470_v38 = vrot.slane %v400_v28, 7 }
  0x19   : > { %318 = vst.msk [vmem:[#allocation2 + $0x138] sm:$0xff] %vm277_vm0, %v16168_v0  ;;  %319 = vst.msk [vmem:[#allocation2 + $0x140] sm:$0xff] %vm277_vm0, %v16168_v0  ;;  %v403_v39 = vld [vmem:[%s10784_s30 + $0x70] sm:$0xff]  ;;  %v404_v40 = vld [vmem:[%s10784_s30 + $0x78] sm:$0xff]  ;;  %v465_v41 = vsel %vm16298_vm2, %v463_v20, %v464_v30  ;;  %v554_v42 = vsel %vm16298_vm2, 0.0, %v466_v33  ;;  %v569_v43 = vsel %vm16298_vm2, %v464_v30, 0.0 }
  0x1a   : > { %321 = vst.msk [vmem:[#allocation2 + $0x150] sm:$0xff] %vm277_vm0, %v16168_v0  ;;  %322 = vst.msk [vmem:[#allocation2 + $0x158] sm:$0xff] %vm277_vm0, %v16168_v0  ;;  %v472_v44 = vrot.slane %v401_v29, 7  ;;  %v405_v45 = vld [vmem:[%s10784_s30 + $0x80] sm:$0xff]  ;;  %v406_v46 = vld [vmem:[%s10784_s30 + $0x88] sm:$0xff]  ;;  %v468_v47 = vsel %vm16298_vm2, %v466_v33, %v467_v35  ;;  %v471_v48 = vsel %vm16298_vm2, %v469_v37, %v470_v38  ;;  %v555_v49 = vsel %vm16298_vm2, 0.0, %v469_v37 }
  0x1b   : > { %324 = vst.msk [vmem:[#allocation2 + $0x168] sm:$0xff] %vm277_vm0, %v16168_v0  ;;  %325 = vst.msk [vmem:[#allocation2 + $0x170] sm:$0xff] %vm277_vm0, %v16168_v0  ;;  %v473_v50 = vrot.slane %v402_v34, 7  ;;  %v407_v51 = vld [vmem:[%s10784_s30 + $0x90] sm:$0xff]  ;;  %v570_v53 = vsel %vm16298_vm2, %v467_v35, 0.0  ;;  %v475_v54 = vrot.slane %v403_v39, 7 }
  0x1c   : > { %327 = vst.msk [vmem:[#allocation2 + $0x180] sm:$0xff] %vm277_vm0, %v16168_v0  ;;  %328 = vst.msk [vmem:[#allocation2 + $0x188] sm:$0xff] %vm277_vm0, %v16168_v0  ;;  %v556_v52 = vsel %vm16298_vm2, 0.0, %v472_v44  ;;  %v476_v55 = vrot.slane %v404_v40, 7  ;;  %v408_v56 = vld [vmem:[%s10784_s30 + $0x98] sm:$0xff]  ;;  %v571_v58 = vsel %vm16298_vm2, %v470_v38, 0.0 }
  0x1d   : > { %330 = vst.msk [vmem:[#allocation2 + $0x198] sm:$0xff] %vm277_vm0, %v16168_v0  ;;  %331 = vst.msk [vmem:[#allocation2 + $0x1a0] sm:$0xff] %vm277_vm0, %v16168_v0  ;;  %v474_v57 = vsel %vm16298_vm2, %v472_v44, %v473_v50  ;;  %v478_v59 = vrot.slane %v405_v45, 7  ;;  %v479_v60 = vrot.slane %v406_v46, 7  ;;  %v409_v61 = vld [vmem:[%s10784_s30 + $0xa0] sm:$0xff]  ;;  %v410_v62 = vld [vmem:[%s10784_s30 + $0xa8] sm:$0xff] }
  0x1e   : > { %281 = vst.msk [vmem:[#allocation2 + $0x10] sm:$0x3] %vm280_vm1, %v16168_v0  ;;  %284 = vst.msk [vmem:[#allocation2 + $0x28] sm:$0x3] %vm280_vm1, %v16168_v0  ;;  %v477_v1 = vsel %vm16298_vm2, %v475_v54, %v476_v55  ;;  %v557_v2 = vsel %vm16298_vm2, 0.0, %v475_v54  ;;  %v572_v3 = vsel %vm16298_vm2, %v473_v50, 0.0 }
  0x1f   : > { %287 = vst.msk [vmem:[#allocation2 + $0x40] sm:$0x3] %vm280_vm1, %v16168_v0  ;;  %290 = vst.msk [vmem:[#allocation2 + $0x58] sm:$0x3] %vm280_vm1, %v16168_v0  ;;  %v481_v4 = vrot.slane %v407_v51, 7  ;;  %v411_v5 = vld [vmem:[%s10784_s30 + $0xb0] sm:$0xff]  ;;  %v480_v8 = vsel %vm16298_vm2, %v478_v59, %v479_v60 }
  0x20   : > { %293 = vst.msk [vmem:[#allocation2 + $0x70] sm:$0x3] %vm280_vm1, %v16168_v0  ;;  %296 = vst.msk [vmem:[#allocation2 + $0x88] sm:$0x3] %vm280_vm1, %v16168_v0  ;;  %v412_v6 = vld [vmem:[%s10784_s30 + $0xb8] sm:$0xff]  ;;  %v558_v9 = vsel %vm16298_vm2, 0.0, %v478_v59 }
  0x21   : > { %299 = vst.msk [vmem:[#allocation2 + $0xa0] sm:$0x3] %vm280_vm1, %v16168_v0  ;;  %302 = vst.msk [vmem:[#allocation2 + $0xb8] sm:$0x3] %vm280_vm1, %v16168_v0  ;;  %v482_v10 = vrot.slane %v408_v56, 7  ;;  %v413_v12 = vld [vmem:[%s10784_s30 + $0xc0] sm:$0xff] }
  0x22   : > { %305 = vst.msk [vmem:[#allocation2 + $0xd0] sm:$0x3] %vm280_vm1, %v16168_v0  ;;  %308 = vst.msk [vmem:[#allocation2 + $0xe8] sm:$0x3] %vm280_vm1, %v16168_v0  ;;  %v414_v13 = vld [vmem:[%s10784_s30 + $0xc8] sm:$0xff]  ;;  %v559_v15 = vsel %vm16298_vm2, 0.0, %v481_v4 }
  0x23   : > { %311 = vst.msk [vmem:[#allocation2 + $0x100] sm:$0x3] %vm280_vm1, %v16168_v0  ;;  %314 = vst.msk [vmem:[#allocation2 + $0x118] sm:$0x3] %vm280_vm1, %v16168_v0  ;;  %v415_v19 = vld [vmem:[%s10784_s30 + $0xd0] sm:$0xff]  ;;  %v483_v21 = vsel %vm16298_vm2, %v481_v4, %v482_v10  ;;  %v487_v22 = vrot.slane %v411_v5, 7 }
  0x24   : > { %317 = vst.msk [vmem:[#allocation2 + $0x130] sm:$0x3] %vm280_vm1, %v16168_v0  ;;  %320 = vst.msk [vmem:[#allocation2 + $0x148] sm:$0x3] %vm280_vm1, %v16168_v0  ;;  %v490_v28 = vrot.slane %v413_v12, 7  ;;  %v491_v29 = vrot.slane %v414_v13, 7 }
  0x25   : > { %323 = vst.msk [vmem:[#allocation2 + $0x160] sm:$0x3] %vm280_vm1, %v16168_v0  ;;  %326 = vst.msk [vmem:[#allocation2 + $0x178] sm:$0x3] %vm280_vm1, %v16168_v0  ;;  %v664_v11 = vld [vmem:[#allocation2 + $0x9] sm:$0xff]  ;;  %v417_v30 = vld [vmem:[%s10784_s30 + $0xe0] sm:$0xff] }
  0x26   : > { %329 = vst.msk [vmem:[#allocation2 + $0x190] sm:$0x3] %vm280_vm1, %v16168_v0  ;;  %332 = vst.msk [vmem:[#allocation2 + $0x1a8] sm:$0x3] %vm280_vm1, %v16168_v0  ;;  %954 = vrot.lane.b32.xlu0 %v664_v11, %s10596_s8  ;;  %v573_v11 = vsel %vm16298_vm2, %v476_v55, 0.0  ;;  %v561_v33 = vsel %vm16298_vm2, 0.0, %v487_v22  ;;  %v492_v37 = vsel %vm16298_vm2, %v490_v28, %v491_v29 }
  0x27   : > { %586 = vst.msk [vmem:[#allocation2 + $0x30] sm:$0xff] %vm277_vm0, %v551_v17  ;;  %587 = vst.msk [vmem:[#allocation2 + $0x38] sm:$0xff] %vm277_vm0, %v459_v16  ;;  %v484_v16 = vrot.slane %v409_v61, 7  ;;  %v485_v17 = vrot.slane %v410_v62, 7  ;;  %v493_v35 = vrot.slane %v415_v19, 7  ;;  %v562_v38 = vsel %vm16298_vm2, 0.0, %v490_v28 }
  0x28   : > { %583 = vst.msk [vmem:[#allocation2 + $0x18] sm:$0xff] %vm277_vm0, %v550_v18  ;;  %584 = vst.msk [vmem:[#allocation2 + $0x20] sm:$0xff] %vm277_vm0, %v456_v23  ;;  %v574_v18 = vsel %vm16298_vm2, %v479_v60, 0.0  ;;  %v488_v23 = vrot.slane %v412_v6, 7  ;;  %v578_v45 = vsel %vm16298_vm2, %v491_v29, 0.0  ;;  %v419_v6 = vld [vmem:[%s10784_s30 + $0xf0] sm:$0xff] }
  0x29   : > { %589 = vst.msk [vmem:[#allocation2 + $0x48] sm:$0xff] %vm277_vm0, %v552_v25  ;;  %590 = vst.msk [vmem:[#allocation2 + $0x50] sm:$0xff] %vm277_vm0, %v462_v24  ;;  %v575_v24 = vsel %vm16298_vm2, %v482_v10, 0.0  ;;  %v416_v25 = vld [vmem:[%s10784_s30 + $0xd8] sm:$0xff]  ;;  %v560_v27 = vsel %vm16298_vm2, 0.0, %v484_v16  ;;  %v576_v34 = vsel %vm16298_vm2, %v485_v17, 0.0 }
  0x2a   : > { %585 = vst.msk [vmem:[#allocation2 + $0x28] sm:$0x3] %vm280_vm1, %v566_v26  ;;  %588 = vst.msk [vmem:[#allocation2 + $0x40] sm:$0x3] %vm280_vm1, %v567_v32  ;;  %v486_v26 = vsel %vm16298_vm2, %v484_v16, %v485_v17  ;;  %v489_v32 = vsel %vm16298_vm2, %v487_v22, %v488_v23  ;;  %v494_v39 = vrot.slane %v416_v25, 7  ;;  %v577_v40 = vsel %vm16298_vm2, %v488_v23, 0.0 }
  0x2b   : > { %592 = vst.msk [vmem:[#allocation2 + $0x60] sm:$0xff] %vm277_vm0, %v553_v31  ;;  %593 = vst.msk [vmem:[#allocation2 + $0x68] sm:$0xff] %vm277_vm0, %v465_v41  ;;  %v418_v31 = vld [vmem:[%s10784_s30 + $0xe8] sm:$0xff]  ;;  %vm16302_vm12 = vcmask 220160   ;;  %vm333_vm13 = vcmask 130048   ;;  %s10604_s26 = smov 16  }
  0x2c   : > { %591 = vst.msk [vmem:[#allocation2 + $0x58] sm:$0x3] %vm280_vm1, %v568_v36  ;;  %594 = vst.msk [vmem:[#allocation2 + $0x70] sm:$0x3] %vm280_vm1, %v569_v43  ;;  %v496_v43 = vrot.slane %v417_v30, 7  ;;  %v497_v44 = vrot.slane %v418_v31, 7  ;;  %v495_v46 = vsel %vm16298_vm2, %v493_v35, %v494_v39 }
  0x2d   : > { %595 = vst.msk [vmem:[#allocation2 + $0x78] sm:$0xff] %vm277_vm0, %v554_v42  ;;  %596 = vst.msk [vmem:[#allocation2 + $0x80] sm:$0xff] %vm277_vm0, %v468_v47  ;;  %v563_v42 = vsel %vm16298_vm2, 0.0, %v493_v35  ;;  %v579_v47 = vsel %vm16298_vm2, %v494_v39, 0.0  ;;  %v695_v19 = vld [vmem:[#allocation2 + $0x2] sm:$0xff]  ;;  %v696_v25 = vld [vmem:[#allocation2 + $0xa] sm:$0xff] }
  0x2e   : > { %598 = vst.msk [vmem:[#allocation2 + $0x90] sm:$0xff] %vm277_vm0, %v555_v49  ;;  %599 = vst.msk [vmem:[#allocation2 + $0x98] sm:$0xff] %vm277_vm0, %v471_v48  ;;  %v10848_v63 = vld [vmem:[#allocation2 + $0x31] sm:$0xff]  ;;  %v498_v48 = vsel %vm16298_vm2, %v496_v43, %v497_v44  ;;  %v564_v49 = vsel %vm16298_vm2, 0.0, %v496_v43  ;;  %v580_v50 = vsel %vm16298_vm2, %v497_v44, 0.0  ;;  %s10605_s29 = smov 32  }
  0x2f   : > { %601 = vst.msk [vmem:[#allocation2 + $0xa8] sm:$0xff] %vm277_vm0, %v556_v52  ;;  %602 = vst.msk [vmem:[#allocation2 + $0xb0] sm:$0xff] %vm277_vm0, %v474_v57  ;;  %960 = vrot.lane.b32.xlu0 %v10848_v63, %s10596_s8  ;;  %v10859_v7 = vld [vmem:[#allocation2 + $0x19] sm:$0xff]  ;;  %s10607_s15 = smov 64   ;;  %s10608_s16 = smov 80   ;;  %vm4002_vm14 = vcmask 261120  }
  0x30   : > { %597 = vst.msk [vmem:[#allocation2 + $0x88] sm:$0x3] %vm280_vm1, %v570_v53  ;;  %600 = vst.msk [vmem:[#allocation2 + $0xa0] sm:$0x3] %vm280_vm1, %v571_v58  ;;  %956 = vrot.lane.b32.xlu1 %v10859_v7, %s10596_s8  ;;  %v10871_v14 = vld [vmem:[#allocation2 + $0x49] sm:$0xff]  ;;  %v11036_v22 = vld [vmem:[#allocation2 + $0x1a] sm:$0xff] }
  0x31   : > { %604 = vst.msk [vmem:[#allocation2 + $0xc0] sm:$0xff] %vm277_vm0, %v557_v2  ;;  %605 = vst.msk [vmem:[#allocation2 + $0xc8] sm:$0xff] %vm277_vm0, %v477_v1  ;;  %v10879_v20 = vld [vmem:[#allocation2 + $0x21] sm:$0xff]  ;;  %v10909_v41 = vld [vmem:[#allocation2 + $0x39] sm:$0xff]  ;;  %s10609_s21 = smov 96   ;;  %s10610_s17 = smov 112  }
  0x32   : > { %603 = vst.msk [vmem:[#allocation2 + $0xb8] sm:$0x3] %vm280_vm1, %v572_v3  ;;  %606 = vst.msk [vmem:[#allocation2 + $0xd0] sm:$0x3] %vm280_vm1, %v573_v11  ;;  %v10901_v36 = vld [vmem:[#allocation2 + $0x61] sm:$0xff]  ;;  %vm4035_vm15 = vcmask 392192  }
  0x33   : > { %607 = vst.msk [vmem:[#allocation2 + $0xd8] sm:$0xff] %vm277_vm0, %v558_v9  ;;  %608 = vst.msk [vmem:[#allocation2 + $0xe0] sm:$0xff] %vm277_vm0, %v480_v8  ;;  %964 = vrot.lane.b32.xlu0 %v10871_v14, %s10596_s8  ;;  %v10934_v52 = vld [vmem:[#allocation2 + $0x51] sm:$0xff]  ;;  %v10942_v54 = vld [vmem:[#allocation2 + $0x69] sm:$0xff]  ;;  %v499_v9 = vrot.slane %v419_v6, 7  ;;  %s9037_s27 = sshll.u32 %s17136_s25, 1 }
  0x34   : > { %610 = vst.msk [vmem:[#allocation2 + $0xf0] sm:$0xff] %vm277_vm0, %v559_v15  ;;  %611 = vst.msk [vmem:[#allocation2 + $0xf8] sm:$0xff] %vm277_vm0, %v483_v21  ;;  %958 = vrot.lane.b32.xlu1 %v10879_v20, %s10596_s8  ;;  %v10929_v51 = vld [vmem:[#allocation2 + $0x79] sm:$0xff]  ;;  %v11057_v28 = vld [vmem:[#allocation2 + $0x62] sm:$0xff] }
  0x35   : > { %609 = vst.msk [vmem:[#allocation2 + $0xe8] sm:$0x3] %vm280_vm1, %v574_v18  ;;  %612 = vst.msk [vmem:[#allocation2 + $0x100] sm:$0x3] %vm280_vm1, %v575_v24  ;;  %v10940_v53 = vld [vmem:[#allocation2 + $0x91] sm:$0xff]  ;;  %v565_v10 = vsel %vm16298_vm2, 0.0, %v499_v9 }
  0x36   : > { %613 = vst.msk [vmem:[#allocation2 + $0x108] sm:$0xff] %vm277_vm0, %v560_v27  ;;  %614 = vst.msk [vmem:[#allocation2 + $0x110] sm:$0xff] %vm277_vm0, %v486_v26  ;;  %v10948_v55 = vld [vmem:[#allocation2 + $0xa9] sm:$0xff]  ;;  %v11018_v15 = vld [vmem:[%s10784_s30 + $0xf8] sm:$0xff] }
  0x37   : > { %616 = vst.msk [vmem:[#allocation2 + $0x120] sm:$0xff] %vm277_vm0, %v561_v33  ;;  %617 = vst.msk [vmem:[#allocation2 + $0x128] sm:$0xff] %vm277_vm0, %v489_v32  ;;  %968 = vrot.lane.b32.xlu0 %v10901_v36, %s10596_s8  ;;  %v10950_v56 = vld [vmem:[#allocation2 + $0x81] sm:$0xff]  ;;  %v10958_v58 = vld [vmem:[#allocation2 + $0x99] sm:$0xff]  ;;  %v500_v17 = vrot.slane %v11018_v15, 7 }
  0x38   : > { %615 = vst.msk [vmem:[#allocation2 + $0x118] sm:$0x3] %vm280_vm1, %v576_v34  ;;  %618 = vst.msk [vmem:[#allocation2 + $0x130] sm:$0x3] %vm280_vm1, %v577_v40  ;;  %962 = vrot.lane.b32.xlu1 %v10909_v41, %s10596_s8  ;;  %v10956_v57 = vld [vmem:[#allocation2 + $0xc1] sm:$0xff]  ;;  %v11044_v24 = vld [vmem:[#allocation2 + $0x32] sm:$0xff] }
  0x39   : > { %619 = vst.msk [vmem:[#allocation2 + $0x138] sm:$0xff] %vm277_vm0, %v562_v38  ;;  %620 = vst.msk [vmem:[#allocation2 + $0x140] sm:$0xff] %vm277_vm0, %v492_v37  ;;  %v10966_v60 = vld [vmem:[#allocation2 + $0xb1] sm:$0xff]  ;;  %v10974_v62 = vld [vmem:[#allocation2 + $0xc9] sm:$0xff]  ;;  %v501_v18 = vsel %vm16298_vm2, %v499_v9, %v500_v17 }
  0x3a   : > { %622 = vst.msk [vmem:[#allocation2 + $0x150] sm:$0xff] %vm277_vm0, %v563_v42  ;;  %623 = vst.msk [vmem:[#allocation2 + $0x158] sm:$0xff] %vm277_vm0, %v495_v46  ;;  %v10964_v59 = vld [vmem:[#allocation2 + $0xd9] sm:$0xff]  ;;  %v11049_v26 = vld [vmem:[#allocation2 + $0x4a] sm:$0xff] }
  0x3b   : > { %621 = vst.msk [vmem:[#allocation2 + $0x148] sm:$0x3] %vm280_vm1, %v578_v45  ;;  %624 = vst.msk [vmem:[#allocation2 + $0x160] sm:$0x3] %vm280_vm1, %v579_v47  ;;  %972 = vrot.lane.b32.xlu0 %v10929_v51, %s10596_s8  ;;  %v10972_v61 = vld [vmem:[#allocation2 + $0xf1] sm:$0xff]  ;;  %v11051_v27 = vld [vmem:[#allocation2 + $0x22] sm:$0xff] }
  0x3c   : > { %625 = vst.msk [vmem:[#allocation2 + $0x168] sm:$0xff] %vm277_vm0, %v564_v49  ;;  %626 = vst.msk [vmem:[#allocation2 + $0x170] sm:$0xff] %vm277_vm0, %v498_v48  ;;  %966 = vrot.lane.b32.xlu1 %v10934_v52, %s10596_s8  ;;  %v10982_v2 = vld [vmem:[#allocation2 + $0xe1] sm:$0xff]  ;;  %v10990_v4 = vld [vmem:[#allocation2 + $0xf9] sm:$0xff] }
  0x3d   : > { %627 = vst.msk [vmem:[#allocation2 + $0x178] sm:$0x3] %vm280_vm1, %v580_v50  ;;  %v10980_v1 = vld [vmem:[#allocation2 + $0x109] sm:$0xff]  ;;  %v11059_v29 = vld [vmem:[#allocation2 + $0x3a] sm:$0xff]  ;;  %v11067_v31 = vld [vmem:[#allocation2 + $0x52] sm:$0xff] }
  0x3e   : > { %v10988_v3 = vld [vmem:[#allocation2 + $0x121] sm:$0xff]  ;;  %628 = vst.msk [vmem:[#allocation2 + $0x180] sm:$0xff] %vm277_vm0, %v565_v10  ;;  %629 = vst.msk [vmem:[#allocation2 + $0x188] sm:$0xff] %vm277_vm0, %v501_v18  ;;  %v11073_v32 = vld [vmem:[#allocation2 + $0x92] sm:$0xff] }
  0x3f   : > { %976 = vrot.lane.b32.xlu0 %v10940_v53, %s10596_s8  ;;  %v10999_v8 = vld [vmem:[#allocation2 + $0x111] sm:$0xff]  ;;  %v11009_v12 = vld [vmem:[#allocation2 + $0x129] sm:$0xff]  ;;  %v11065_v30 = vld [vmem:[#allocation2 + $0x7a] sm:$0xff] }
  0x40   : > { %970 = vrot.lane.b32.xlu1 %v10942_v54, %s10596_s8  ;;  %v10996_v5 = vld [vmem:[#allocation2 + $0x139] sm:$0xff]  ;;  %v11075_v33 = vld [vmem:[#allocation2 + $0x6a] sm:$0xff]  ;;  %v11083_v35 = vld [vmem:[#allocation2 + $0x82] sm:$0xff] }
  0x41   : > { %v11006_v11 = vld [vmem:[#allocation2 + $0x151] sm:$0xff]  ;;  %v11089_v37 = vld [vmem:[#allocation2 + $0xc2] sm:$0xff]  ;;  %v11091_v38 = vld [vmem:[#allocation2 + $0x9a] sm:$0xff] }
  0x42   : > { %v11020_v16 = vld [vmem:[#allocation2 + $0x141] sm:$0xff]  ;;  %v11031_v21 = vld [vmem:[#allocation2 + $0x159] sm:$0xff]  ;;  %v11081_v34 = vld [vmem:[#allocation2 + $0xaa] sm:$0xff] }
  0x43   : > { %980 = vrot.lane.b32.xlu0 %v10948_v55, %s10596_s8  ;;  %v11015_v13 = vld [vmem:[#allocation2 + $0x169] sm:$0xff]  ;;  %v11097_v39 = vld [vmem:[#allocation2 + $0xda] sm:$0xff]  ;;  %v11099_v40 = vld [vmem:[#allocation2 + $0xb2] sm:$0xff] }
  0x44   : > { %974 = vrot.lane.b32.xlu1 %v10950_v56, %s10596_s8  ;;  %v11038_v23 = vld [vmem:[#allocation2 + $0x171] sm:$0xff]  ;;  %v11115_v45 = vld [vmem:[#allocation2 + $0xe2] sm:$0xff]  ;;  %v11123_v47 = vld [vmem:[#allocation2 + $0xfa] sm:$0xff] }
  0x45   : > { %v11105_v42 = vld [vmem:[#allocation2 + $0xf2] sm:$0xff]  ;;  %v11107_v43 = vld [vmem:[#allocation2 + $0xca] sm:$0xff]  ;;  %v11121_v46 = vld [vmem:[#allocation2 + $0x122] sm:$0xff] }
  0x46   : > { %v11113_v44 = vld [vmem:[#allocation2 + $0x10a] sm:$0xff]  ;;  %v11131_v49 = vld [vmem:[#allocation2 + $0x13a] sm:$0xff]  ;;  %v11133_v50 = vld [vmem:[#allocation2 + $0x112] sm:$0xff] }
  0x47   : > { %984 = vrot.lane.b32.xlu0 %v10956_v57, %s10596_s8  ;;  %16316 = vst [vmem:[#allocation5_spill] sm:$0xff] %v11133_v50  ;;  %v11141_v9 = vld [vmem:[#allocation2 + $0x152] sm:$0xff]  ;;  %v11143_v10 = vld [vmem:[#allocation2 + $0x12a] sm:$0xff]  ;;  %v9105_v15 = vld [vmem:[%s10784_s30 + $0x100] sm:$0xff] }
  0x48   : > { %978 = vrot.lane.b32.xlu1 %v10958_v58, %s10596_s8  ;;  %16318 = vst [vmem:[#allocation7_spill] sm:$0xff] %v11141_v9  ;;  %16319 = vst [vmem:[#allocation8_spill] sm:$0xff] %v11143_v10  ;;  %v11149_v18 = vld [vmem:[#allocation2 + $0x16a] sm:$0xff] }
  0x49   : > { %16320 = vst [vmem:[#allocation9_spill] sm:$0xff] %v11149_v18 }
  0x4b   : > { %988 = vrot.lane.b32.xlu0 %v10964_v59, %s10596_s8 }
  0x4c   : > { %982 = vrot.lane.b32.xlu1 %v10966_v60, %s10596_s8 }
  0x4f   : > { %992 = vrot.lane.b32.xlu0 %v10972_v61, %s10596_s8 }
  0x50   : > { %986 = vrot.lane.b32.xlu1 %v10974_v62, %s10596_s8 }
  0x53   : > { %996 = vrot.lane.b32.xlu0 %v10980_v1, %s10596_s8 }
  0x54   : > { %990 = vrot.lane.b32.xlu1 %v10982_v2, %s10596_s8 }
  0x57   : > { %1000 = vrot.lane.b32.xlu0 %v10988_v3, %s10596_s8 }
  0x58   : > { %994 = vrot.lane.b32.xlu1 %v10990_v4, %s10596_s8 }
  0x5b   : > { %1004 = vrot.lane.b32.xlu0 %v10996_v5, %s10596_s8 }
  0x5c   : > { %998 = vrot.lane.b32.xlu1 %v10999_v8, %s10596_s8 }
  0x5f   : > { %1008 = vrot.lane.b32.xlu0 %v11006_v11, %s10596_s8 }
  0x60   : > { %1002 = vrot.lane.b32.xlu1 %v11009_v12, %s10596_s8 }
  0x63   : > { %1012 = vrot.lane.b32.xlu0 %v11015_v13, %s10596_s8 }
  0x64   : > { %1006 = vrot.lane.b32.xlu1 %v11020_v16, %s10596_s8 }
  0x67   : > { %1080 = vrot.lane.b32.xlu0 %v695_v19, %s10597_s9 }
  0x68   : > { %1010 = vrot.lane.b32.xlu1 %v11031_v21, %s10596_s8 }
  0x6b   : > { %1084 = vrot.lane.b32.xlu0 %v11036_v22, %s10597_s9 }
  0x6c   : > { %1014 = vrot.lane.b32.xlu1 %v11038_v23, %s10596_s8 }
  0x6f   : > { %1088 = vrot.lane.b32.xlu0 %v11044_v24, %s10597_s9 }
  0x70   : > { %1082 = vrot.lane.b32.xlu1 %v696_v25, %s10597_s9  ;;  %v11153_v25 = vld [vmem:[#allocation2 + $0x142] sm:$0xff] }
  0x71   : > { %16322 = vst [vmem:[#allocation11_spill] sm:$0xff] %v11153_v25 }
  0x73   : > { %1092 = vrot.lane.b32.xlu0 %v11049_v26, %s10597_s9 }
  0x74   : > { %1086 = vrot.lane.b32.xlu1 %v11051_v27, %s10597_s9 }
  0x77   : > { %1096 = vrot.lane.b32.xlu0 %v11057_v28, %s10597_s9 }
  0x78   : > { %1090 = vrot.lane.b32.xlu1 %v11059_v29, %s10597_s9 }
  0x7b   : > { %1100 = vrot.lane.b32.xlu0 %v11065_v30, %s10597_s9 }
  0x7c   : > { %1094 = vrot.lane.b32.xlu1 %v11067_v31, %s10597_s9 }
  0x7f   : > { %1104 = vrot.lane.b32.xlu0 %v11073_v32, %s10597_s9 }
  0x80   : > { %1098 = vrot.lane.b32.xlu1 %v11075_v33, %s10597_s9 }
  0x83   : > { %1108 = vrot.lane.b32.xlu0 %v11081_v34, %s10597_s9 }
  0x84   : > { %1102 = vrot.lane.b32.xlu1 %v11083_v35, %s10597_s9 }
  0x86   : > { %v11129_v48 = vpop.permute.xlu0 %952 }
  0x87   : > { %1112 = vrot.lane.b32.xlu0 %v11089_v37, %s10597_s9  ;;  %16315 = vst [vmem:[#allocation4_spill] sm:$0xff] %v11129_v48 }
  0x88   : > { %1106 = vrot.lane.b32.xlu1 %v11091_v38, %s10597_s9 }
  0x8b   : > { %1116 = vrot.lane.b32.xlu0 %v11097_v39, %s10597_s9 }
  0x8c   : > { %1110 = vrot.lane.b32.xlu1 %v11099_v40, %s10597_s9 }
  0x8f   : > { %1120 = vrot.lane.b32.xlu0 %v11105_v42, %s10597_s9 }
  0x90   : > { %1114 = vrot.lane.b32.xlu1 %v11107_v43, %s10597_s9 }
  0x93   : > { %1124 = vrot.lane.b32.xlu0 %v11113_v44, %s10597_s9 }
  0x94   : > { %1118 = vrot.lane.b32.xlu1 %v11115_v45, %s10597_s9 }
  0x97   : > { %1128 = vrot.lane.b32.xlu0 %v11121_v46, %s10597_s9 }
  0x98   : > { %1122 = vrot.lane.b32.xlu1 %v11123_v47, %s10597_s9  ;;  %v11139_v6 = vpop.permute.xlu0 %954 }
  0x99   : > { %16317 = vst [vmem:[#allocation6_spill] sm:$0xff] %v11139_v6  ;;  %v581_v6 = vsel %vm16298_vm2, %v500_v17, 0.0  ;;  %v4714_v17 = vrot.slane %v9105_v15, 7  ;;  %v11194_v15 = vld [vmem:[#allocation2 + $0x48] sm:$0xff] }
  0x9a   : > { %630 = vst.msk [vmem:[#allocation2 + $0x190] sm:$0x3] %vm280_vm1, %v581_v6  ;;  %v11180_v6 = vld [vmem:[#allocation2 + $0x172] sm:$0xff]  ;;  %16333 = vst [vmem:[#allocation22_spill] sm:$0xff] %v11194_v15 }
  0x9b   : > { %1132 = vrot.lane.b32.xlu0 %v11131_v49, %s10597_s9  ;;  %16329 = vst [vmem:[#allocation18_spill] sm:$0xff] %v11180_v6 }
  0x9c   : > { %1126 = vrot.lane.b32.xlu1 %v11133_v50, %s10597_s9  ;;  %v11213_v50 = vld [vmem:[#allocation2 + $0x38] sm:$0xff] }
  0x9d   : > { %16339 = vst [vmem:[#allocation28_spill] sm:$0xff] %v11213_v50 }
  0x9f   : > { %1136 = vrot.lane.b32.xlu0 %v11141_v9, %s10597_s9 }
  0xa0   : > { %1130 = vrot.lane.b32.xlu1 %v11143_v10, %s10597_s9  ;;  %v11167_v10 = vld [vmem:[#allocation2 + $0x15a] sm:$0xff] }
  0xa1   : > { %v11151_v19 = vpop.permute.xlu0 %960  ;;  %16325 = vst [vmem:[#allocation14_spill] sm:$0xff] %v11167_v10 }
  0xa2   : > { %16321 = vst [vmem:[#allocation10_spill] sm:$0xff] %v11151_v19  ;;  %v11155_v0 = vpop.permute.xlu1 %956  ;;  %v11169_v19 = vld [vmem:[#allocation2 + $0x18] sm:$0xff] }
  0xa3   : > { %16323 = vst [vmem:[#allocation12_spill] sm:$0xff] %v11155_v0  ;;  %1140 = vrot.lane.b32.xlu0 %v11149_v18, %s10597_s9  ;;  %16326 = vst [vmem:[#allocation15_spill] sm:$0xff] %v11169_v19  ;;  %v11207_v18 = vld [vmem:[#allocation2 + $0x60] sm:$0xff] }
  0xa4   : > { %1134 = vrot.lane.b32.xlu1 %v11153_v25, %s10597_s9  ;;  %16337 = vst [vmem:[#allocation26_spill] sm:$0xff] %v11207_v18 }
  0xa5   : > { %v11165_v48 = vpop.permute.xlu0 %964 }
  0xa6   : > { %16324 = vst [vmem:[#allocation13_spill] sm:$0xff] %v11165_v48  ;;  %v11171_v9 = vpop.permute.xlu1 %958  ;;  %v11182_v48 = vld [vmem:[#allocation2 + $0x30] sm:$0xff] }
  0xa7   : > { %16327 = vst [vmem:[#allocation16_spill] sm:$0xff] %v11171_v9  ;;  %1208 = vrot.lane.b32.xlu0 %v11169_v19, %s10598_s10  ;;  %16330 = vst [vmem:[#allocation19_spill] sm:$0xff] %v11182_v48  ;;  %v4810_v9 = vsel %vm16298_vm2, 0.0, %v4714_v17 }
  0xa8   : > { %1138 = vrot.lane.b32.xlu1 %v11167_v10, %s10597_s9  ;;  %4842 = vst.msk [vmem:[#allocation2 + $0x18] sm:$0xff] %vm277_vm0, %v4810_v9  ;;  %v11198_v10 = vld [vmem:[#allocation2 + $0x20] sm:$0xff] }
  0xa9   : > { %v11178_v0 = vpop.permute.xlu0 %968  ;;  %16335 = vst [vmem:[#allocation24_spill] sm:$0xff] %v11198_v10 }
  0xaa   : > { %16328 = vst [vmem:[#allocation17_spill] sm:$0xff] %v11178_v0  ;;  %v11184_v25 = vpop.permute.xlu1 %962 }
  0xab   : > { %16331 = vst [vmem:[#allocation20_spill] sm:$0xff] %v11184_v25  ;;  %1212 = vrot.lane.b32.xlu0 %v11182_v48, %s10598_s10  ;;  %v9106_v25 = vld [vmem:[%s10784_s30 + $0x108] sm:$0xff] }
  0xac   : > { %1142 = vrot.lane.b32.xlu1 %v11180_v6, %s10597_s9  ;;  %v4715_v48 = vrot.slane %v9106_v25, 7 }
  0xad   : > { %v11192_v19 = vpop.permute.xlu0 %972 }
  0xae   : > { %16332 = vst [vmem:[#allocation21_spill] sm:$0xff] %v11192_v19  ;;  %v11196_v0 = vpop.permute.xlu1 %966  ;;  %v4716_v19 = vsel %vm16298_vm2, %v4714_v17, %v4715_v48  ;;  %v11227_v17 = vld [vmem:[#allocation2 + $0x50] sm:$0xff] }
  0xaf   : > { %16334 = vst [vmem:[#allocation23_spill] sm:$0xff] %v11196_v0  ;;  %1216 = vrot.lane.b32.xlu0 %v11194_v15, %s10598_s10  ;;  %v4826_v0 = vsel %vm16298_vm2, %v4715_v48, 0.0  ;;  %4843 = vst.msk [vmem:[#allocation2 + $0x20] sm:$0xff] %vm277_vm0, %v4716_v19  ;;  %v11235_v48 = vld [vmem:[#allocation2 + $0x90] sm:$0xff] }
  0xb0   : > { %1210 = vrot.lane.b32.xlu1 %v11198_v10, %s10598_s10  ;;  %4844 = vst.msk [vmem:[#allocation2 + $0x28] sm:$0x3] %vm280_vm1, %v4826_v0  ;;  %16343 = vst [vmem:[#allocation32_spill] sm:$0xff] %v11227_v17  ;;  %v11239_v10 = vld [vmem:[#allocation2 + $0x68] sm:$0xff] }
  0xb1   : > { %v11205_v9 = vpop.permute.xlu0 %976  ;;  %16345 = vst [vmem:[#allocation34_spill] sm:$0xff] %v11235_v48  ;;  %16347 = vst [vmem:[#allocation36_spill] sm:$0xff] %v11239_v10 }
  0xb2   : > { %16336 = vst [vmem:[#allocation25_spill] sm:$0xff] %v11205_v9  ;;  %v11209_v6 = vpop.permute.xlu1 %970  ;;  %v11223_v9 = vld [vmem:[#allocation2 + $0x78] sm:$0xff] }
  0xb3   : > { %16338 = vst [vmem:[#allocation27_spill] sm:$0xff] %v11209_v6  ;;  %1220 = vrot.lane.b32.xlu0 %v11207_v18, %s10598_s10  ;;  %16341 = vst [vmem:[#allocation30_spill] sm:$0xff] %v11223_v9 }
  0xb4   : > { %1214 = vrot.lane.b32.xlu1 %v11213_v50, %s10598_s10 }
  0xb5   : > { %v11221_v25 = vpop.permute.xlu0 %980 }
  0xb6   : > { %16340 = vst [vmem:[#allocation29_spill] sm:$0xff] %v11221_v25  ;;  %v11225_v6 = vpop.permute.xlu1 %974 }
  0xb7   : > { %16342 = vst [vmem:[#allocation31_spill] sm:$0xff] %v11225_v6  ;;  %1224 = vrot.lane.b32.xlu0 %v11223_v9, %s10598_s10  ;;  %v11247_v6 = vld [vmem:[#allocation2 + $0xa8] sm:$0xff] }
  0xb8   : > { %1218 = vrot.lane.b32.xlu1 %v11227_v17, %s10598_s10  ;;  %16349 = vst [vmem:[#allocation38_spill] sm:$0xff] %v11247_v6  ;;  %v11251_v17 = vld [vmem:[#allocation2 + $0x80] sm:$0xff] }
  0xb9   : > { %v11233_v0 = vpop.permute.xlu0 %984  ;;  %16351 = vst [vmem:[#allocation40_spill] sm:$0xff] %v11251_v17 }
  0xba   : > { %16344 = vst [vmem:[#allocation33_spill] sm:$0xff] %v11233_v0  ;;  %v11237_v19 = vpop.permute.xlu1 %978 }
  0xbb   : > { %16346 = vst [vmem:[#allocation35_spill] sm:$0xff] %v11237_v19  ;;  %1228 = vrot.lane.b32.xlu0 %v11235_v48, %s10598_s10  ;;  %v11259_v19 = vld [vmem:[#allocation2 + $0xc0] sm:$0xff] }
  0xbc   : > { %1222 = vrot.lane.b32.xlu1 %v11239_v10, %s10598_s10  ;;  %16353 = vst [vmem:[#allocation42_spill] sm:$0xff] %v11259_v19  ;;  %v11263_v10 = vld [vmem:[#allocation2 + $0x98] sm:$0xff] }
  0xbd   : > { %v11245_v25 = vpop.permute.xlu0 %988  ;;  %16355 = vst [vmem:[#allocation44_spill] sm:$0xff] %v11263_v10 }
  0xbe   : > { %16348 = vst [vmem:[#allocation37_spill] sm:$0xff] %v11245_v25  ;;  %v11249_v9 = vpop.permute.xlu1 %982 }
  0xbf   : > { %16350 = vst [vmem:[#allocation39_spill] sm:$0xff] %v11249_v9  ;;  %1232 = vrot.lane.b32.xlu0 %v11247_v6, %s10598_s10  ;;  %v11271_v9 = vld [vmem:[#allocation2 + $0xd8] sm:$0xff] }
  0xc0   : > { %1226 = vrot.lane.b32.xlu1 %v11251_v17, %s10598_s10  ;;  %16357 = vst [vmem:[#allocation46_spill] sm:$0xff] %v11271_v9  ;;  %v11275_v17 = vld [vmem:[#allocation2 + $0xb0] sm:$0xff] }
  0xc1   : > { %v11257_v0 = vpop.permute.xlu0 %992  ;;  %16359 = vst [vmem:[#allocation48_spill] sm:$0xff] %v11275_v17 }
  0xc2   : > { %16352 = vst [vmem:[#allocation41_spill] sm:$0xff] %v11257_v0  ;;  %v11261_v48 = vpop.permute.xlu1 %986 }
  0xc3   : > { %16354 = vst [vmem:[#allocation43_spill] sm:$0xff] %v11261_v48  ;;  %1236 = vrot.lane.b32.xlu0 %v11259_v19, %s10598_s10  ;;  %v11283_v48 = vld [vmem:[#allocation2 + $0xf0] sm:$0xff] }
  0xc4   : > { %1230 = vrot.lane.b32.xlu1 %v11263_v10, %s10598_s10  ;;  %16361 = vst [vmem:[#allocation50_spill] sm:$0xff] %v11283_v48  ;;  %v11287_v10 = vld [vmem:[#allocation2 + $0xc8] sm:$0xff] }
  0xc5   : > { %v11269_v25 = vpop.permute.xlu0 %996  ;;  %16363 = vst [vmem:[#allocation52_spill] sm:$0xff] %v11287_v10 }
  0xc6   : > { %16356 = vst [vmem:[#allocation45_spill] sm:$0xff] %v11269_v25  ;;  %v11273_v6 = vpop.permute.xlu1 %990 }
  0xc7   : > { %16358 = vst [vmem:[#allocation47_spill] sm:$0xff] %v11273_v6  ;;  %1240 = vrot.lane.b32.xlu0 %v11271_v9, %s10598_s10  ;;  %v11295_v6 = vld [vmem:[#allocation2 + $0x108] sm:$0xff] }
  0xc8   : > { %1234 = vrot.lane.b32.xlu1 %v11275_v17, %s10598_s10  ;;  %16365 = vst [vmem:[#allocation54_spill] sm:$0xff] %v11295_v6  ;;  %v11299_v17 = vld [vmem:[#allocation2 + $0xe0] sm:$0xff] }
  0xc9   : > { %v11281_v0 = vpop.permute.xlu0 %1000  ;;  %16367 = vst [vmem:[#allocation56_spill] sm:$0xff] %v11299_v17 }
  0xca   : > { %16360 = vst [vmem:[#allocation49_spill] sm:$0xff] %v11281_v0  ;;  %v11285_v19 = vpop.permute.xlu1 %994 }
  0xcb   : > { %16362 = vst [vmem:[#allocation51_spill] sm:$0xff] %v11285_v19  ;;  %1244 = vrot.lane.b32.xlu0 %v11283_v48, %s10598_s10  ;;  %v11307_v19 = vld [vmem:[#allocation2 + $0x120] sm:$0xff] }
  0xcc   : > { %1238 = vrot.lane.b32.xlu1 %v11287_v10, %s10598_s10  ;;  %16369 = vst [vmem:[#allocation58_spill] sm:$0xff] %v11307_v19  ;;  %v11311_v10 = vld [vmem:[#allocation2 + $0xf8] sm:$0xff] }
  0xcd   : > { %v11293_v25 = vpop.permute.xlu0 %1004  ;;  %16371 = vst [vmem:[#allocation60_spill] sm:$0xff] %v11311_v10 }
  0xce   : > { %16364 = vst [vmem:[#allocation53_spill] sm:$0xff] %v11293_v25  ;;  %v11297_v9 = vpop.permute.xlu1 %998 }
  0xcf   : > { %16366 = vst [vmem:[#allocation55_spill] sm:$0xff] %v11297_v9  ;;  %1248 = vrot.lane.b32.xlu0 %v11295_v6, %s10598_s10  ;;  %v11319_v9 = vld [vmem:[#allocation2 + $0x138] sm:$0xff] }
  0xd0   : > { %1242 = vrot.lane.b32.xlu1 %v11299_v17, %s10598_s10  ;;  %16373 = vst [vmem:[#allocation62_spill] sm:$0xff] %v11319_v9  ;;  %v11323_v17 = vld [vmem:[#allocation2 + $0x110] sm:$0xff] }
  0xd1   : > { %v11305_v0 = vpop.permute.xlu0 %1008  ;;  %16375 = vst [vmem:[#allocation64_spill] sm:$0xff] %v11323_v17 }
  0xd2   : > { %16368 = vst [vmem:[#allocation57_spill] sm:$0xff] %v11305_v0  ;;  %v11309_v48 = vpop.permute.xlu1 %1002 }
  0xd3   : > { %16370 = vst [vmem:[#allocation59_spill] sm:$0xff] %v11309_v48  ;;  %1252 = vrot.lane.b32.xlu0 %v11307_v19, %s10598_s10  ;;  %v11331_v48 = vld [vmem:[#allocation2 + $0x150] sm:$0xff] }
  0xd4   : > { %1246 = vrot.lane.b32.xlu1 %v11311_v10, %s10598_s10  ;;  %16377 = vst [vmem:[#allocation66_spill] sm:$0xff] %v11331_v48  ;;  %v11335_v10 = vld [vmem:[#allocation2 + $0x128] sm:$0xff] }
  0xd5   : > { %v11317_v25 = vpop.permute.xlu0 %1012  ;;  %16379 = vst [vmem:[#allocation68_spill] sm:$0xff] %v11335_v10 }
  0xd6   : > { %16372 = vst [vmem:[#allocation61_spill] sm:$0xff] %v11317_v25  ;;  %v11321_v6 = vpop.permute.xlu1 %1006 }
  0xd7   : > { %16374 = vst [vmem:[#allocation63_spill] sm:$0xff] %v11321_v6  ;;  %1256 = vrot.lane.b32.xlu0 %v11319_v9, %s10598_s10  ;;  %v11343_v6 = vld [vmem:[#allocation2 + $0x168] sm:$0xff] }
  0xd8   : > { %1250 = vrot.lane.b32.xlu1 %v11323_v17, %s10598_s10  ;;  %16381 = vst [vmem:[#allocation70_spill] sm:$0xff] %v11343_v6  ;;  %v11347_v17 = vld [vmem:[#allocation2 + $0x140] sm:$0xff] }
  0xd9   : > { %v11329_v0 = vpop.permute.xlu0 %1080  ;;  %16383 = vst [vmem:[#allocation72_spill] sm:$0xff] %v11347_v17 }
  0xda   : > { %16376 = vst [vmem:[#allocation65_spill] sm:$0xff] %v11329_v0  ;;  %v11333_v19 = vpop.permute.xlu1 %1010 }
  0xdb   : > { %16378 = vst [vmem:[#allocation67_spill] sm:$0xff] %v11333_v19  ;;  %1260 = vrot.lane.b32.xlu0 %v11331_v48, %s10598_s10  ;;  %v11353_v19 = vld [vmem:[#allocation2 + $0x180] sm:$0xff] }
  0xdc   : > { %1254 = vrot.lane.b32.xlu1 %v11335_v10, %s10598_s10  ;;  %16384 = vst [vmem:[#allocation73_spill] sm:$0xff] %v11353_v19  ;;  %v11359_v10 = vld [vmem:[#allocation2 + $0x158] sm:$0xff] }
  0xdd   : > { %v11341_v25 = vpop.permute.xlu0 %1084  ;;  %16387 = vst [vmem:[#allocation76_spill] sm:$0xff] %v11359_v10 }
  0xde   : > { %16380 = vst [vmem:[#allocation69_spill] sm:$0xff] %v11341_v25  ;;  %v11345_v9 = vpop.permute.xlu1 %1014 }
  0xdf   : > { %16382 = vst [vmem:[#allocation71_spill] sm:$0xff] %v11345_v9  ;;  %1264 = vrot.lane.b32.xlu0 %v11343_v6, %s10598_s10  ;;  %v11369_v6 = vld [vmem:[#allocation2 + $0x170] sm:$0xff] }
  0xe0   : > { %1258 = vrot.lane.b32.xlu1 %v11347_v17, %s10598_s10  ;;  %16390 = vst [vmem:[#allocation79_spill] sm:$0xff] %v11369_v6 }
  0xe1   : > { %v11355_v0 = vpop.permute.xlu0 %1088 }
  0xe2   : > { %16385 = vst [vmem:[#allocation74_spill] sm:$0xff] %v11355_v0  ;;  %v11357_v48 = vpop.permute.xlu1 %1082 }
  0xe3   : > { %16386 = vst [vmem:[#allocation75_spill] sm:$0xff] %v11357_v48  ;;  %1268 = vrot.lane.b32.xlu0 %v11353_v19, %s10598_s10  ;;  %v11377_v48 = vld [vmem:[#allocation2 + $0x188] sm:$0xff] }
  0xe4   : > { %1262 = vrot.lane.b32.xlu1 %v11359_v10, %s10598_s10 }
  0xe5   : > { %v11365_v9 = vpop.permute.xlu0 %1092 }
  0xe6   : > { %16388 = vst [vmem:[#allocation77_spill] sm:$0xff] %v11365_v9  ;;  %v11367_v25 = vpop.permute.xlu1 %1086 }
  0xe7   : > { %16389 = vst [vmem:[#allocation78_spill] sm:$0xff] %v11367_v25  ;;  %1336 = vrot.lane.b32.xlu0 %v10859_v7, %s10599_s11 }
  0xe8   : > { %1266 = vrot.lane.b32.xlu1 %v11369_v6, %s10598_s10 }
  0xe9   : > { %v11375_v0 = vpop.permute.xlu0 %1096 }
  0xea   : > { %16391 = vst [vmem:[#allocation80_spill] sm:$0xff] %v11375_v0  ;;  %v11379_v19 = vpop.permute.xlu1 %1090 }
  0xeb   : > { %16392 = vst [vmem:[#allocation81_spill] sm:$0xff] %v11379_v19  ;;  %1340 = vrot.lane.b32.xlu0 %v10848_v63, %s10599_s11 }
  0xec   : > { %1270 = vrot.lane.b32.xlu1 %v11377_v48, %s10598_s10 }
  0xed   : > { %v11385_v9 = vpop.permute.xlu0 %1100 }
  0xee   : > { %16393 = vst [vmem:[#allocation82_spill] sm:$0xff] %v11385_v9  ;;  %v11387_v25 = vpop.permute.xlu1 %1094 }
  0xef   : > { %16394 = vst [vmem:[#allocation83_spill] sm:$0xff] %v11387_v25  ;;  %1344 = vrot.lane.b32.xlu0 %v10871_v14, %s10599_s11 }
  0xf0   : > { %1338 = vrot.lane.b32.xlu1 %v10879_v20, %s10599_s11 }
  0xf1   : > { %v11393_v7 = vpop.permute.xlu0 %1104 }
  0xf2   : > { %16395 = vst [vmem:[#allocation84_spill] sm:$0xff] %v11393_v7  ;;  %v11395_v0 = vpop.permute.xlu1 %1098 }
  0xf3   : > { %16396 = vst [vmem:[#allocation85_spill] sm:$0xff] %v11395_v0  ;;  %1348 = vrot.lane.b32.xlu0 %v10901_v36, %s10599_s11 }
  0xf4   : > { %1342 = vrot.lane.b32.xlu1 %v10909_v41, %s10599_s11 }
  0xf5   : > { %v11401_v63 = vpop.permute.xlu0 %1108 }
  0xf6   : > { %16397 = vst [vmem:[#allocation86_spill] sm:$0xff] %v11401_v63  ;;  %v11403_v9 = vpop.permute.xlu1 %1102 }
  0xf7   : > { %16398 = vst [vmem:[#allocation87_spill] sm:$0xff] %v11403_v9  ;;  %1352 = vrot.lane.b32.xlu0 %v10929_v51, %s10599_s11 }
  0xf8   : > { %1346 = vrot.lane.b32.xlu1 %v10934_v52, %s10599_s11 }
  0xf9   : > { %v11409_v14 = vpop.permute.xlu0 %1112 }
  0xfa   : > { %16399 = vst [vmem:[#allocation88_spill] sm:$0xff] %v11409_v14  ;;  %v11411_v20 = vpop.permute.xlu1 %1106  ;;  %v16474_v14 = vld [vmem:[#allocation34_spill] sm:$0xff] }
  0xfb   : > { %16400 = vst [vmem:[#allocation89_spill] sm:$0xff] %v11411_v20  ;;  %1356 = vrot.lane.b32.xlu0 %v10940_v53, %s10599_s11 }
  0xfc   : > { %1350 = vrot.lane.b32.xlu1 %v10942_v54, %s10599_s11 }
  0xfd   : > { %v11417_v36 = vpop.permute.xlu0 %1116 }
  0xfe   : > { %16401 = vst [vmem:[#allocation90_spill] sm:$0xff] %v11417_v36  ;;  %v11419_v41 = vpop.permute.xlu1 %1110 }
  0xff   : > { %16402 = vst [vmem:[#allocation91_spill] sm:$0xff] %v11419_v41  ;;  %1360 = vrot.lane.b32.xlu0 %v10948_v55, %s10599_s11 }
 0x100   : > { %1354 = vrot.lane.b32.xlu1 %v10950_v56, %s10599_s11 }
 0x101   : > { %v11425_v51 = vpop.permute.xlu0 %1120 }
 0x102   : > { %16403 = vst [vmem:[#allocation92_spill] sm:$0xff] %v11425_v51  ;;  %v11427_v52 = vpop.permute.xlu1 %1114  ;;  %v11669_v51 = vld [vmem:[#allocation2 + $0x3a] sm:$0xff] }
 0x103   : > { %16404 = vst [vmem:[#allocation93_spill] sm:$0xff] %v11427_v52  ;;  %1364 = vrot.lane.b32.xlu0 %v10956_v57, %s10599_s11 }
 0x104   : > { %1358 = vrot.lane.b32.xlu1 %v10958_v58, %s10599_s11 }
 0x105   : > { %v11433_v53 = vpop.permute.xlu0 %1124 }
 0x106   : > { %16405 = vst [vmem:[#allocation94_spill] sm:$0xff] %v11433_v53  ;;  %v11435_v54 = vpop.permute.xlu1 %1118  ;;  %v11662_v53 = vld [vmem:[#allocation2 + $0x32] sm:$0xff] }
 0x107   : > { %16406 = vst [vmem:[#allocation95_spill] sm:$0xff] %v11435_v54  ;;  %1368 = vrot.lane.b32.xlu0 %v10964_v59, %s10599_s11 }
 0x108   : > { %1362 = vrot.lane.b32.xlu1 %v10966_v60, %s10599_s11 }
 0x109   : > { %v11441_v55 = vpop.permute.xlu0 %1128 }
 0x10a   : > { %16407 = vst [vmem:[#allocation96_spill] sm:$0xff] %v11441_v55  ;;  %v11443_v56 = vpop.permute.xlu1 %1122 }
 0x10b   : > { %16408 = vst [vmem:[#allocation97_spill] sm:$0xff] %v11443_v56  ;;  %1372 = vrot.lane.b32.xlu0 %v10972_v61, %s10599_s11 }
 0x10c   : > { %1366 = vrot.lane.b32.xlu1 %v10974_v62, %s10599_s11 }
 0x10d   : > { %v11449_v57 = vpop.permute.xlu0 %1132 }
 0x10e   : > { %16409 = vst [vmem:[#allocation98_spill] sm:$0xff] %v11449_v57  ;;  %v11451_v58 = vpop.permute.xlu1 %1126  ;;  %v822_v57 = vld [vmem:[#allocation2 + $0x18a] sm:$0xff] }
 0x10f   : > { %16410 = vst [vmem:[#allocation99_spill] sm:$0xff] %v11451_v58  ;;  %1376 = vrot.lane.b32.xlu0 %v10980_v1, %s10599_s11 }
 0x110   : > { %1370 = vrot.lane.b32.xlu1 %v10982_v2, %s10599_s11 }
 0x111   : > { %v11457_v59 = vpop.permute.xlu0 %1136 }
 0x112   : > { %16411 = vst [vmem:[#allocation100_spill] sm:$0xff] %v11457_v59  ;;  %v11459_v60 = vpop.permute.xlu1 %1130 }
 0x113   : > { %16412 = vst [vmem:[#allocation101_spill] sm:$0xff] %v11459_v60  ;;  %1380 = vrot.lane.b32.xlu0 %v10988_v3, %s10599_s11 }
 0x114   : > { %1374 = vrot.lane.b32.xlu1 %v10990_v4, %s10599_s11 }
 0x115   : > { %v11465_v61 = vpop.permute.xlu0 %1140 }
 0x116   : > { %16413 = vst [vmem:[#allocation102_spill] sm:$0xff] %v11465_v61  ;;  %v11467_v62 = vpop.permute.xlu1 %1134 }
 0x117   : > { %16414 = vst [vmem:[#allocation103_spill] sm:$0xff] %v11467_v62  ;;  %1384 = vrot.lane.b32.xlu0 %v10996_v5, %s10599_s11  ;;  %v11489_v5 = vld [vmem:[#allocation2 + $0x181] sm:$0xff]  ;;  %v16450_v62 = vld [vmem:[#allocation7_spill] sm:$0xff] }
 0x118   : > { %1378 = vrot.lane.b32.xlu1 %v10999_v8, %s10599_s11 }
 0x119   : > { %v11473_v1 = vpop.permute.xlu0 %1208 }
 0x11a   : > { %16415 = vst [vmem:[#allocation104_spill] sm:$0xff] %v11473_v1  ;;  %v11475_v2 = vpop.permute.xlu1 %1138 }
 0x11b   : > { %16416 = vst [vmem:[#allocation105_spill] sm:$0xff] %v11475_v2  ;;  %1388 = vrot.lane.b32.xlu0 %v11006_v11, %s10599_s11 }
 0x11c   : > { %1382 = vrot.lane.b32.xlu1 %v11009_v12, %s10599_s11 }
 0x11d   : > { %v11481_v3 = vpop.permute.xlu0 %1212 }
 0x11e   : > { %16417 = vst [vmem:[#allocation106_spill] sm:$0xff] %v11481_v3  ;;  %v11483_v4 = vpop.permute.xlu1 %1142 }
 0x11f   : > { %16418 = vst [vmem:[#allocation107_spill] sm:$0xff] %v11483_v4  ;;  %1392 = vrot.lane.b32.xlu0 %v11015_v13, %s10599_s11 }
 0x120   : > { %1386 = vrot.lane.b32.xlu1 %v11020_v16, %s10599_s11  ;;  %v11509_v16 = vld [vmem:[#allocation2 + $0x189] sm:$0xff] }
 0x121   : > { %v11491_v8 = vpop.permute.xlu0 %1216 }
 0x122   : > { %16419 = vst [vmem:[#allocation108_spill] sm:$0xff] %v11491_v8  ;;  %v11493_v61 = vpop.permute.xlu1 %1210 }
 0x123   : > { %16420 = vst [vmem:[#allocation109_spill] sm:$0xff] %v11493_v61  ;;  %1396 = vrot.lane.b32.xlu0 %v11489_v5, %s10599_s11 }
 0x124   : > { %1390 = vrot.lane.b32.xlu1 %v11031_v21, %s10599_s11 }
 0x125   : > { %v11499_v11 = vpop.permute.xlu0 %1220 }
 0x126   : > { %16421 = vst [vmem:[#allocation110_spill] sm:$0xff] %v11499_v11  ;;  %v11501_v12 = vpop.permute.xlu1 %1214 }
 0x127   : > { %16422 = vst [vmem:[#allocation111_spill] sm:$0xff] %v11501_v12  ;;  %1464 = vrot.lane.b32.xlu0 %v11036_v22, %s10600_s12 }
 0x128   : > { %1394 = vrot.lane.b32.xlu1 %v11038_v23, %s10599_s11 }
 0x129   : > { %v11507_v13 = vpop.permute.xlu0 %1224 }
 0x12a   : > { %16423 = vst [vmem:[#allocation112_spill] sm:$0xff] %v11507_v13  ;;  %v11511_v4 = vpop.permute.xlu1 %1218 }
 0x12b   : > { %16424 = vst [vmem:[#allocation113_spill] sm:$0xff] %v11511_v4  ;;  %1468 = vrot.lane.b32.xlu0 %v11044_v24, %s10600_s12 }
 0x12c   : > { %1398 = vrot.lane.b32.xlu1 %v11509_v16, %s10599_s11 }
 0x12d   : > { %v11517_v21 = vpop.permute.xlu0 %1228 }
 0x12e   : > { %16425 = vst [vmem:[#allocation114_spill] sm:$0xff] %v11517_v21  ;;  %v11519_v2 = vpop.permute.xlu1 %1222 }
 0x12f   : > { %16426 = vst [vmem:[#allocation115_spill] sm:$0xff] %v11519_v2  ;;  %1472 = vrot.lane.b32.xlu0 %v11049_v26, %s10600_s12 }
 0x130   : > { %1466 = vrot.lane.b32.xlu1 %v11051_v27, %s10600_s12 }
 0x131   : > { %v11525_v22 = vpop.permute.xlu0 %1232 }
 0x132   : > { %16427 = vst [vmem:[#allocation116_spill] sm:$0xff] %v11525_v22  ;;  %v11527_v23 = vpop.permute.xlu1 %1226 }
 0x133   : > { %16428 = vst [vmem:[#allocation117_spill] sm:$0xff] %v11527_v23  ;;  %1476 = vrot.lane.b32.xlu0 %v11057_v28, %s10600_s12 }
 0x134   : > { %1470 = vrot.lane.b32.xlu1 %v11059_v29, %s10600_s12 }
 0x135   : > { %v11533_v24 = vpop.permute.xlu0 %1236 }
 0x136   : > { %16429 = vst [vmem:[#allocation118_spill] sm:$0xff] %v11533_v24  ;;  %v11535_v59 = vpop.permute.xlu1 %1230  ;;  %v9112_v24 = vld [vmem:[%s10784_s30 + $0x138] sm:$0xff] }
 0x137   : > { %16430 = vst [vmem:[#allocation119_spill] sm:$0xff] %v11535_v59  ;;  %1480 = vrot.lane.b32.xlu0 %v11065_v30, %s10600_s12  ;;  %v4724_v20 = vrot.slane %v9112_v24, 7  ;;  %v9113_v24 = vld [vmem:[%s10784_s30 + $0x140] sm:$0xff] }
 0x138   : > { %1474 = vrot.lane.b32.xlu1 %v11067_v31, %s10600_s12  ;;  %v4726_v22 = vrot.slane %v9113_v24, 7 }
 0x139   : > { %v11541_v26 = vpop.permute.xlu0 %1240 }
 0x13a   : > { %16431 = vst [vmem:[#allocation120_spill] sm:$0xff] %v11541_v26  ;;  %v11543_v27 = vpop.permute.xlu1 %1234  ;;  %v4814_v9 = vsel %vm16298_vm2, 0.0, %v4726_v22 }
 0x13b   : > { %16432 = vst [vmem:[#allocation121_spill] sm:$0xff] %v11543_v27  ;;  %1484 = vrot.lane.b32.xlu0 %v11073_v32, %s10600_s12 }
 0x13c   : > { %1478 = vrot.lane.b32.xlu1 %v11075_v33, %s10600_s12 }
 0x13d   : > { %v11549_v28 = vpop.permute.xlu0 %1244 }
 0x13e   : > { %16433 = vst [vmem:[#allocation122_spill] sm:$0xff] %v11549_v28  ;;  %v11551_v29 = vpop.permute.xlu1 %1238  ;;  %v16471_v28 = vld [vmem:[#allocation32_spill] sm:$0xff] }
 0x13f   : > { %16434 = vst [vmem:[#allocation123_spill] sm:$0xff] %v11551_v29  ;;  %1488 = vrot.lane.b32.xlu0 %v11081_v34, %s10600_s12 }
 0x140   : > { %1482 = vrot.lane.b32.xlu1 %v11083_v35, %s10600_s12 }
 0x141   : > { %v11557_v30 = vpop.permute.xlu0 %1248 }
 0x142   : > { %16435 = vst [vmem:[#allocation124_spill] sm:$0xff] %v11557_v30  ;;  %v11559_v31 = vpop.permute.xlu1 %1242  ;;  %v16470_v30 = vld [vmem:[#allocation30_spill] sm:$0xff] }
 0x143   : > { %16436 = vst [vmem:[#allocation125_spill] sm:$0xff] %v11559_v31  ;;  %1492 = vrot.lane.b32.xlu0 %v11089_v37, %s10600_s12  ;;  %v9110_v31 = vld [vmem:[%s10784_s30 + $0x128] sm:$0xff] }
 0x144   : > { %1486 = vrot.lane.b32.xlu1 %v11091_v38, %s10600_s12  ;;  %v4721_v26 = vrot.slane %v9110_v31, 7  ;;  %v9111_v31 = vld [vmem:[%s10784_s30 + $0x130] sm:$0xff] }
 0x145   : > { %v11565_v32 = vpop.permute.xlu0 %1252  ;;  %v4723_v27 = vrot.slane %v9111_v31, 7 }
 0x146   : > { %16437 = vst [vmem:[#allocation126_spill] sm:$0xff] %v11565_v32  ;;  %v11567_v33 = vpop.permute.xlu1 %1246  ;;  %v4828_v41 = vsel %vm16298_vm2, %v4721_v26, 0.0 }
 0x147   : > { %16438 = vst [vmem:[#allocation127_spill] sm:$0xff] %v11567_v33  ;;  %1496 = vrot.lane.b32.xlu0 %v11097_v39, %s10600_s12  ;;  %v11667_v33 = vld [vmem:[#allocation2 + $0x39] sm:$0xff]  ;;  %v4725_v31 = vsel %vm16298_vm2, %v4723_v27, %v4724_v20 }
 0x148   : > { %1490 = vrot.lane.b32.xlu1 %v11099_v40, %s10600_s12 }
 0x149   : > { %v11573_v34 = vpop.permute.xlu0 %1256 }
 0x14a   : > { %16439 = vst [vmem:[#allocation128_spill] sm:$0xff] %v11573_v34  ;;  %v11575_v35 = vpop.permute.xlu1 %1250 }
 0x14b   : > { %16440 = vst [vmem:[#allocation129_spill] sm:$0xff] %v11575_v35  ;;  %1500 = vrot.lane.b32.xlu0 %v11105_v42, %s10600_s12 }
 0x14c   : > { %1494 = vrot.lane.b32.xlu1 %v11107_v43, %s10600_s12 }
 0x14d   : > { %v11581_v37 = vpop.permute.xlu0 %1260 }
 0x14e   : > { %16441 = vst [vmem:[#allocation130_spill] sm:$0xff] %v11581_v37  ;;  %v11583_v38 = vpop.permute.xlu1 %1254 }
 0x14f   : > { %16442 = vst [vmem:[#allocation131_spill] sm:$0xff] %v11583_v38  ;;  %1504 = vrot.lane.b32.xlu0 %v11113_v44, %s10600_s12  ;;  %v16447_v44 = vld [vmem:[#allocation5_spill] sm:$0xff]  ;;  %v9107_v38 = vld [vmem:[%s10784_s30 + $0x110] sm:$0xff] }
 0x150   : > { %1498 = vrot.lane.b32.xlu1 %v11115_v45, %s10600_s12  ;;  %v4717_v55 = vrot.slane %v9107_v38, 7 }
 0x151   : > { %v11589_v39 = vpop.permute.xlu0 %1264 }
 0x152   : > { %16443 = vst [vmem:[#allocation132_spill] sm:$0xff] %v11589_v39  ;;  %v11591_v40 = vpop.permute.xlu1 %1258  ;;  %v4811_v56 = vsel %vm16298_vm2, 0.0, %v4717_v55 }
 0x153   : > { %16444 = vst [vmem:[#allocation133_spill] sm:$0xff] %v11591_v40  ;;  %1508 = vrot.lane.b32.xlu0 %v11121_v46, %s10600_s12  ;;  %v16451_v46 = vld [vmem:[#allocation8_spill] sm:$0xff] }
 0x154   : > { %1502 = vrot.lane.b32.xlu1 %v11123_v47, %s10600_s12 }
 0x155   : > { %v11597_v42 = vpop.permute.xlu0 %1268 }
 0x156   : > { %16445 = vst [vmem:[#allocation134_spill] sm:$0xff] %v11597_v42  ;;  %v11599_v43 = vpop.permute.xlu1 %1262 }
 0x157   : > { %16446 = vst [vmem:[#allocation135_spill] sm:$0xff] %v11599_v43  ;;  %1512 = vrot.lane.b32.xlu0 %v11131_v49, %s10600_s12  ;;  %v16454_v43 = vld [vmem:[#allocation9_spill] sm:$0xff]  ;;  %v16455_v49 = vld [vmem:[#allocation11_spill] sm:$0xff] }
 0x158   : > { %1506 = vrot.lane.b32.xlu1 %v16447_v44, %s10600_s12  ;;  %v11621_v44 = vld [vmem:[#allocation2 + $0x182] sm:$0xff] }
 0x159   : > { %v11605_v45 = vpop.permute.xlu0 %1336  ;;  %16456 = vst [vmem:[#allocation9_spill] sm:$0xff] %v11621_v44 }
 0x15a   : > { %16448 = vst [vmem:[#allocation5_spill] sm:$0xff] %v11605_v45  ;;  %v11607_v39 = vpop.permute.xlu1 %1266  ;;  %v854_v45 = vld [vmem:[#allocation2 + $0x198] sm:$0xff] }
 0x15b   : > { %16449 = vst [vmem:[#allocation136_spill] sm:$0xff] %v11607_v39  ;;  %1516 = vrot.lane.b32.xlu0 %v16450_v62, %s10600_s12  ;;  %v16459_v62 = vld [vmem:[#allocation14_spill] sm:$0xff] }
 0x15c   : > { %1510 = vrot.lane.b32.xlu1 %v16451_v46, %s10600_s12 }
 0x15d   : > { %v11613_v47 = vpop.permute.xlu0 %1340 }
 0x15e   : > { %16452 = vst [vmem:[#allocation7_spill] sm:$0xff] %v11613_v47  ;;  %v11615_v42 = vpop.permute.xlu1 %1270 }
 0x15f   : > { %16453 = vst [vmem:[#allocation8_spill] sm:$0xff] %v11615_v42  ;;  %1520 = vrot.lane.b32.xlu0 %v16454_v43, %s10600_s12  ;;  %v16463_v42 = vld [vmem:[#allocation18_spill] sm:$0xff] }
 0x160   : > { %1514 = vrot.lane.b32.xlu1 %v16455_v49, %s10600_s12  ;;  %v16462_v49 = vld [vmem:[#allocation19_spill] sm:$0xff] }
 0x161   : > { %v11623_v37 = vpop.permute.xlu0 %1344 }
 0x162   : > { %16457 = vst [vmem:[#allocation11_spill] sm:$0xff] %v11623_v37  ;;  %v11625_v39 = vpop.permute.xlu1 %1338 }
 0x163   : > { %16458 = vst [vmem:[#allocation137_spill] sm:$0xff] %v11625_v39  ;;  %1524 = vrot.lane.b32.xlu0 %v11621_v44, %s10600_s12 }
 0x164   : > { %1518 = vrot.lane.b32.xlu1 %v16459_v62, %s10600_s12 }
 0x165   : > { %v11631_v46 = vpop.permute.xlu0 %1348 }
 0x166   : > { %16460 = vst [vmem:[#allocation14_spill] sm:$0xff] %v11631_v46  ;;  %v11633_v43 = vpop.permute.xlu1 %1342 }
 0x167   : > { %16461 = vst [vmem:[#allocation138_spill] sm:$0xff] %v11633_v43  ;;  %1592 = vrot.lane.b32.xlu0 %v16462_v49, %s10601_s13 }
 0x168   : > { %1522 = vrot.lane.b32.xlu1 %v16463_v42, %s10600_s12  ;;  %v9108_v42 = vld [vmem:[%s10784_s30 + $0x118] sm:$0xff] }
 0x169   : > { %v11639_v40 = vpop.permute.xlu0 %1352  ;;  %v4718_v32 = vrot.slane %v9108_v42, 7  ;;  %v9109_v42 = vld [vmem:[%s10784_s30 + $0x120] sm:$0xff] }
 0x16a   : > { %16464 = vst [vmem:[#allocation18_spill] sm:$0xff] %v11639_v40  ;;  %v11641_v60 = vpop.permute.xlu1 %1346  ;;  %v4720_v36 = vrot.slane %v9109_v42, 7 }
 0x16b   : > { %16465 = vst [vmem:[#allocation139_spill] sm:$0xff] %v11641_v60  ;;  %1596 = vrot.lane.b32.xlu0 %v11194_v15, %s10601_s13  ;;  %v4719_v38 = vsel %vm16298_vm2, %v4717_v55, %v4718_v32  ;;  %v4827_v54 = vsel %vm16298_vm2, %v4718_v32, 0.0  ;;  %v11684_v32 = vld [vmem:[#allocation2 + $0x49] sm:$0xff] }
 0x16c   : > { %1526 = vrot.lane.b32.xlu1 %v822_v57, %s10600_s12  ;;  %v11660_v57 = vld [vmem:[#allocation2 + $0x31] sm:$0xff]  ;;  %4847 = vst.msk [vmem:[#allocation2 + $0x40] sm:$0x3] %vm280_vm1, %v4827_v54  ;;  %v4812_v29 = vsel %vm16298_vm2, 0.0, %v4720_v36  ;;  %v4722_v42 = vsel %vm16298_vm2, %v4720_v36, %v4721_v26  ;;  %v11708_v26 = vld [vmem:[#allocation2 + $0x61] sm:$0xff] }
 0x16d   : > { %v11646_v62 = vpop.permute.xlu0 %1356  ;;  %4845 = vst.msk [vmem:[#allocation2 + $0x30] sm:$0xff] %vm277_vm0, %v4811_v56  ;;  %4846 = vst.msk [vmem:[#allocation2 + $0x38] sm:$0xff] %vm277_vm0, %v4719_v38  ;;  %v11686_v56 = vld [vmem:[#allocation2 + $0x4a] sm:$0xff]  ;;  %v11693_v38 = vld [vmem:[#allocation2 + $0x52] sm:$0xff] }
 0x16e   : > { %16466 = vst [vmem:[#allocation140_spill] sm:$0xff] %v11646_v62  ;;  %v11648_v34 = vpop.permute.xlu1 %1350  ;;  %v11691_v54 = vld [vmem:[#allocation2 + $0x51] sm:$0xff]  ;;  %4848 = vst.msk [vmem:[#allocation2 + $0x48] sm:$0xff] %vm277_vm0, %v4812_v29  ;;  %v11710_v29 = vld [vmem:[#allocation2 + $0x62] sm:$0xff] }
 0x16f   : > { %16467 = vst [vmem:[#allocation141_spill] sm:$0xff] %v11648_v34  ;;  %1600 = vrot.lane.b32.xlu0 %v11207_v18, %s10601_s13  ;;  %4850 = vst.msk [vmem:[#allocation2 + $0x58] sm:$0x3] %vm280_vm1, %v4828_v41  ;;  %v11715_v41 = vld [vmem:[#allocation2 + $0x69] sm:$0xff] }
 0x170   : > { %1594 = vrot.lane.b32.xlu1 %v11213_v50, %s10601_s13  ;;  %4849 = vst.msk [vmem:[#allocation2 + $0x50] sm:$0xff] %vm277_vm0, %v4722_v42  ;;  %v11717_v42 = vld [vmem:[#allocation2 + $0x6a] sm:$0xff] }
 0x171   : > { %v11656_v58 = vpop.permute.xlu0 %1360  ;;  %4852 = vst.msk [vmem:[#allocation2 + $0x68] sm:$0xff] %vm277_vm0, %v4725_v31  ;;  %v11741_v31 = vld [vmem:[#allocation2 + $0x82] sm:$0xff] }
 0x172   : > { %16468 = vst [vmem:[#allocation142_spill] sm:$0xff] %v11656_v58  ;;  %v11658_v35 = vpop.permute.xlu1 %1354  ;;  %v4813_v58 = vsel %vm16298_vm2, 0.0, %v4723_v27 }
 0x173   : > { %16469 = vst [vmem:[#allocation143_spill] sm:$0xff] %v11658_v35  ;;  %1604 = vrot.lane.b32.xlu0 %v16470_v30, %s10601_s13  ;;  %4851 = vst.msk [vmem:[#allocation2 + $0x60] sm:$0xff] %vm277_vm0, %v4813_v58  ;;  %v11734_v58 = vld [vmem:[#allocation2 + $0x7a] sm:$0xff] }
 0x174   : > { %1598 = vrot.lane.b32.xlu1 %v16471_v28, %s10601_s13 }
 0x175   : > { %v11680_v52 = vpop.permute.xlu0 %1364 }
 0x176   : > { %16472 = vst [vmem:[#allocation144_spill] sm:$0xff] %v11680_v52  ;;  %v11682_v55 = vpop.permute.xlu1 %1358  ;;  %v16475_v52 = vld [vmem:[#allocation36_spill] sm:$0xff] }
 0x177   : > { %16473 = vst [vmem:[#allocation145_spill] sm:$0xff] %v11682_v55  ;;  %1608 = vrot.lane.b32.xlu0 %v16474_v14, %s10601_s13  ;;  %v16478_v55 = vld [vmem:[#allocation38_spill] sm:$0xff] }
 0x178   : > { %1602 = vrot.lane.b32.xlu1 %v16475_v52, %s10601_s13  ;;  %v16482_v14 = vld [vmem:[#allocation42_spill] sm:$0xff] }
 0x179   : > { %v11704_v63 = vpop.permute.xlu0 %1368 }
 0x17a   : > { %16476 = vst [vmem:[#allocation146_spill] sm:$0xff] %v11704_v63  ;;  %v11706_v36 = vpop.permute.xlu1 %1362  ;;  %v4829_v63 = vsel %vm16298_vm2, %v4724_v20, 0.0  ;;  %v11732_v20 = vld [vmem:[#allocation2 + $0x79] sm:$0xff] }
 0x17b   : > { %16477 = vst [vmem:[#allocation147_spill] sm:$0xff] %v11706_v36  ;;  %1612 = vrot.lane.b32.xlu0 %v16478_v55, %s10601_s13  ;;  %v16479_v36 = vld [vmem:[#allocation40_spill] sm:$0xff]  ;;  %4853 = vst.msk [vmem:[#allocation2 + $0x70] sm:$0x3] %vm280_vm1, %v4829_v63  ;;  %v9114_v55 = vld [vmem:[%s10784_s30 + $0x148] sm:$0xff] }
 0x17c   : > { %1606 = vrot.lane.b32.xlu1 %v16479_v36, %s10601_s13  ;;  %v4727_v7 = vrot.slane %v9114_v55, 7  ;;  %v11739_v63 = vld [vmem:[#allocation2 + $0x81] sm:$0xff]  ;;  %4854 = vst.msk [vmem:[#allocation2 + $0x78] sm:$0xff] %vm277_vm0, %v4814_v9  ;;  %v9115_v55 = vld [vmem:[%s10784_s30 + $0x150] sm:$0xff] }
 0x17d   : > { %v11728_v59 = vpop.permute.xlu0 %1372  ;;  %v4729_v62 = vrot.slane %v9115_v55, 7  ;;  %v11758_v9 = vld [vmem:[#allocation2 + $0x92] sm:$0xff] }
 0x17e   : > { %16480 = vst [vmem:[#allocation148_spill] sm:$0xff] %v11728_v59  ;;  %v11730_v27 = vpop.permute.xlu1 %1366  ;;  %v4728_v24 = vsel %vm16298_vm2, %v4726_v22, %v4727_v7  ;;  %v4830_v59 = vsel %vm16298_vm2, %v4727_v7, 0.0  ;;  %v11756_v7 = vld [vmem:[#allocation2 + $0x91] sm:$0xff] }
 0x17f   : > { %16481 = vst [vmem:[#allocation149_spill] sm:$0xff] %v11730_v27  ;;  %1616 = vrot.lane.b32.xlu0 %v16482_v14, %s10601_s13  ;;  %v16483_v27 = vld [vmem:[#allocation44_spill] sm:$0xff]  ;;  %4856 = vst.msk [vmem:[#allocation2 + $0x88] sm:$0x3] %vm280_vm1, %v4830_v59  ;;  %v9116_v14 = vld [vmem:[%s10784_s30 + $0x158] sm:$0xff]  ;;  %v4815_v21 = vsel %vm16298_vm2, 0.0, %v4729_v62 }
 0x180   : > { %1610 = vrot.lane.b32.xlu1 %v16483_v27, %s10601_s13  ;;  %4855 = vst.msk [vmem:[#allocation2 + $0x80] sm:$0xff] %vm277_vm0, %v4728_v24  ;;  %v4730_v35 = vrot.slane %v9116_v14, 7  ;;  %v16486_v27 = vld [vmem:[#allocation46_spill] sm:$0xff]  ;;  %v11763_v59 = vld [vmem:[#allocation2 + $0x99] sm:$0xff]  ;;  %4857 = vst.msk [vmem:[#allocation2 + $0x90] sm:$0xff] %vm277_vm0, %v4815_v21 }
 0x181   : > { %v11752_v36 = vpop.permute.xlu0 %1376  ;;  %v11765_v24 = vld [vmem:[#allocation2 + $0x9a] sm:$0xff]  ;;  %v11782_v21 = vld [vmem:[#allocation2 + $0xaa] sm:$0xff] }
 0x182   : > { %16484 = vst [vmem:[#allocation150_spill] sm:$0xff] %v11752_v36  ;;  %v11754_v22 = vpop.permute.xlu1 %1370  ;;  %v4731_v55 = vsel %vm16298_vm2, %v4729_v62, %v4730_v35  ;;  %v4831_v36 = vsel %vm16298_vm2, %v4730_v35, 0.0  ;;  %v9117_v14 = vld [vmem:[%s10784_s30 + $0x160] sm:$0xff]  ;;  %v11780_v35 = vld [vmem:[#allocation2 + $0xa9] sm:$0xff] }
 0x183   : > { %16485 = vst [vmem:[#allocation151_spill] sm:$0xff] %v11754_v22  ;;  %1620 = vrot.lane.b32.xlu0 %v16486_v27, %s10601_s13  ;;  %v16487_v22 = vld [vmem:[#allocation48_spill] sm:$0xff]  ;;  %4859 = vst.msk [vmem:[#allocation2 + $0xa0] sm:$0x3] %vm280_vm1, %v4831_v36  ;;  %v9118_v27 = vld [vmem:[%s10784_s30 + $0x168] sm:$0xff]  ;;  %v4732_v23 = vrot.slane %v9117_v14, 7 }
 0x184   : > { %1614 = vrot.lane.b32.xlu1 %v16487_v22, %s10601_s13  ;;  %4858 = vst.msk [vmem:[#allocation2 + $0x98] sm:$0xff] %vm277_vm0, %v4731_v55  ;;  %v4733_v30 = vrot.slane %v9118_v27, 7  ;;  %v16490_v22 = vld [vmem:[#allocation50_spill] sm:$0xff] }
 0x185   : > { %v11776_v0 = vpop.permute.xlu0 %1380  ;;  %v4816_v40 = vsel %vm16298_vm2, 0.0, %v4732_v23  ;;  %v11787_v36 = vld [vmem:[#allocation2 + $0xb1] sm:$0xff] }
 0x186   : > { %16488 = vst [vmem:[#allocation152_spill] sm:$0xff] %v11776_v0  ;;  %v11778_v62 = vpop.permute.xlu1 %1374  ;;  %v11789_v55 = vld [vmem:[#allocation2 + $0xb2] sm:$0xff]  ;;  %v4734_v14 = vsel %vm16298_vm2, %v4732_v23, %v4733_v30  ;;  %v4832_v0 = vsel %vm16298_vm2, %v4733_v30, 0.0  ;;  %4860 = vst.msk [vmem:[#allocation2 + $0xa8] sm:$0xff] %vm277_vm0, %v4816_v40  ;;  %v11804_v30 = vld [vmem:[#allocation2 + $0xc1] sm:$0xff] }
 0x187   : > { %16489 = vst [vmem:[#allocation153_spill] sm:$0xff] %v11778_v62  ;;  %1624 = vrot.lane.b32.xlu0 %v16490_v22, %s10601_s13  ;;  %v9119_v27 = vld [vmem:[%s10784_s30 + $0x170] sm:$0xff]  ;;  %v16491_v62 = vld [vmem:[#allocation52_spill] sm:$0xff]  ;;  %4862 = vst.msk [vmem:[#allocation2 + $0xb8] sm:$0x3] %vm280_vm1, %v4832_v0 }
 0x188   : > { %1618 = vrot.lane.b32.xlu1 %v16491_v62, %s10601_s13  ;;  %4861 = vst.msk [vmem:[#allocation2 + $0xb0] sm:$0xff] %vm277_vm0, %v4734_v14  ;;  %v9120_v22 = vld [vmem:[%s10784_s30 + $0x178] sm:$0xff]  ;;  %v4735_v52 = vrot.slane %v9119_v27, 7  ;;  %v11806_v40 = vld [vmem:[#allocation2 + $0xc2] sm:$0xff]  ;;  %v16494_v62 = vld [vmem:[#allocation54_spill] sm:$0xff] }
 0x189   : > { %v11800_v34 = vpop.permute.xlu0 %1384  ;;  %v4736_v13 = vrot.slane %v9120_v22, 7  ;;  %v11811_v0 = vld [vmem:[#allocation2 + $0xc9] sm:$0xff]  ;;  %v9121_v22 = vld [vmem:[%s10784_s30 + $0x180] sm:$0xff] }
 0x18a   : > { %16492 = vst [vmem:[#allocation154_spill] sm:$0xff] %v11800_v34  ;;  %v11802_v23 = vpop.permute.xlu1 %1378  ;;  %v4817_v2 = vsel %vm16298_vm2, 0.0, %v4735_v52  ;;  %v11813_v14 = vld [vmem:[#allocation2 + $0xca] sm:$0xff]  ;;  %v4738_v25 = vrot.slane %v9121_v22, 7 }
 0x18b   : > { %16493 = vst [vmem:[#allocation155_spill] sm:$0xff] %v11802_v23  ;;  %1628 = vrot.lane.b32.xlu0 %v16494_v62, %s10601_s13  ;;  %v4737_v27 = vsel %vm16298_vm2, %v4735_v52, %v4736_v13  ;;  %v4833_v34 = vsel %vm16298_vm2, %v4736_v13, 0.0  ;;  %4863 = vst.msk [vmem:[#allocation2 + $0xc0] sm:$0xff] %vm277_vm0, %v4817_v2  ;;  %v16495_v23 = vld [vmem:[#allocation56_spill] sm:$0xff]  ;;  %v9122_v62 = vld [vmem:[%s10784_s30 + $0x188] sm:$0xff] }
 0x18c   : > { %1622 = vrot.lane.b32.xlu1 %v16495_v23, %s10601_s13  ;;  %4865 = vst.msk [vmem:[#allocation2 + $0xd0] sm:$0x3] %vm280_vm1, %v4833_v34  ;;  %v4739_v46 = vrot.slane %v9122_v62, 7  ;;  %v11828_v13 = vld [vmem:[#allocation2 + $0xd9] sm:$0xff]  ;;  %v4818_v28 = vsel %vm16298_vm2, 0.0, %v4738_v25  ;;  %v16498_v23 = vld [vmem:[#allocation58_spill] sm:$0xff] }
 0x18d   : > { %4864 = vst.msk [vmem:[#allocation2 + $0xc8] sm:$0xff] %vm277_vm0, %v4737_v27  ;;  %v11824_v18 = vpop.permute.xlu0 %1388  ;;  %v11830_v2 = vld [vmem:[#allocation2 + $0xda] sm:$0xff]  ;;  %v11837_v27 = vld [vmem:[#allocation2 + $0xe2] sm:$0xff]  ;;  %v9123_v62 = vld [vmem:[%s10784_s30 + $0x190] sm:$0xff] }
 0x18e   : > { %16496 = vst [vmem:[#allocation156_spill] sm:$0xff] %v11824_v18  ;;  %v11826_v52 = vpop.permute.xlu1 %1382  ;;  %v11835_v34 = vld [vmem:[#allocation2 + $0xe1] sm:$0xff]  ;;  %v4740_v22 = vsel %vm16298_vm2, %v4738_v25, %v4739_v46  ;;  %v4834_v18 = vsel %vm16298_vm2, %v4739_v46, 0.0  ;;  %4866 = vst.msk [vmem:[#allocation2 + $0xd8] sm:$0xff] %vm277_vm0, %v4818_v28  ;;  %v4741_v60 = vrot.slane %v9123_v62, 7  ;;  %v11852_v46 = vld [vmem:[#allocation2 + $0xf1] sm:$0xff] }
 0x18f   : > { %16497 = vst [vmem:[#allocation157_spill] sm:$0xff] %v11826_v52  ;;  %1632 = vrot.lane.b32.xlu0 %v16498_v23, %s10601_s13  ;;  %v16499_v52 = vld [vmem:[#allocation60_spill] sm:$0xff]  ;;  %4868 = vst.msk [vmem:[#allocation2 + $0xe8] sm:$0x3] %vm280_vm1, %v4834_v18  ;;  %v9124_v23 = vld [vmem:[%s10784_s30 + $0x198] sm:$0xff] }
 0x190   : > { %1626 = vrot.lane.b32.xlu1 %v16499_v52, %s10601_s13  ;;  %4867 = vst.msk [vmem:[#allocation2 + $0xe0] sm:$0xff] %vm277_vm0, %v4740_v22  ;;  %v4742_v4 = vrot.slane %v9124_v23, 7  ;;  %v11854_v28 = vld [vmem:[#allocation2 + $0xf2] sm:$0xff]  ;;  %v4819_v19 = vsel %vm16298_vm2, 0.0, %v4741_v60  ;;  %v11861_v22 = vld [vmem:[#allocation2 + $0xfa] sm:$0xff] }
 0x191   : > { %v11848_v11 = vpop.permute.xlu0 %1392  ;;  %v16502_v52 = vld [vmem:[#allocation62_spill] sm:$0xff]  ;;  %v11859_v18 = vld [vmem:[#allocation2 + $0xf9] sm:$0xff]  ;;  %4869 = vst.msk [vmem:[#allocation2 + $0xf0] sm:$0xff] %vm277_vm0, %v4819_v19 }
 0x192   : > { %16500 = vst [vmem:[#allocation158_spill] sm:$0xff] %v11848_v11  ;;  %v11850_v25 = vpop.permute.xlu1 %1386  ;;  %v4743_v62 = vsel %vm16298_vm2, %v4741_v60, %v4742_v4  ;;  %v4835_v11 = vsel %vm16298_vm2, %v4742_v4, 0.0  ;;  %v9125_v23 = vld [vmem:[%s10784_s30 + $0x1a0] sm:$0xff]  ;;  %v11876_v4 = vld [vmem:[#allocation2 + $0x109] sm:$0xff] }
 0x193   : > { %16501 = vst [vmem:[#allocation159_spill] sm:$0xff] %v11850_v25  ;;  %1636 = vrot.lane.b32.xlu0 %v16502_v52, %s10601_s13  ;;  %v16503_v25 = vld [vmem:[#allocation64_spill] sm:$0xff]  ;;  %4871 = vst.msk [vmem:[#allocation2 + $0x100] sm:$0x3] %vm280_vm1, %v4835_v11  ;;  %v9126_v52 = vld [vmem:[%s10784_s30 + $0x1a8] sm:$0xff]  ;;  %v4744_v15 = vrot.slane %v9125_v23, 7 }
 0x194   : > { %1630 = vrot.lane.b32.xlu1 %v16503_v25, %s10601_s13  ;;  %4870 = vst.msk [vmem:[#allocation2 + $0xf8] sm:$0xff] %vm277_vm0, %v4743_v62  ;;  %v4745_v50 = vrot.slane %v9126_v52, 7  ;;  %v11878_v19 = vld [vmem:[#allocation2 + $0x10a] sm:$0xff]  ;;  %v11885_v62 = vld [vmem:[#allocation2 + $0x112] sm:$0xff] }
 0x195   : > { %v11872_v37 = vpop.permute.xlu0 %1396  ;;  %v4820_v43 = vsel %vm16298_vm2, 0.0, %v4744_v15  ;;  %v16506_v25 = vld [vmem:[#allocation66_spill] sm:$0xff] }
 0x196   : > { %16504 = vst [vmem:[#allocation160_spill] sm:$0xff] %v11872_v37  ;;  %v11874_v60 = vpop.permute.xlu1 %1390  ;;  %v11883_v11 = vld [vmem:[#allocation2 + $0x111] sm:$0xff]  ;;  %v4746_v23 = vsel %vm16298_vm2, %v4744_v15, %v4745_v50  ;;  %v4836_v37 = vsel %vm16298_vm2, %v4745_v50, 0.0  ;;  %4872 = vst.msk [vmem:[#allocation2 + $0x108] sm:$0xff] %vm277_vm0, %v4820_v43  ;;  %v11900_v50 = vld [vmem:[#allocation2 + $0x121] sm:$0xff] }
 0x197   : > { %16505 = vst [vmem:[#allocation161_spill] sm:$0xff] %v11874_v60  ;;  %1640 = vrot.lane.b32.xlu0 %v16506_v25, %s10601_s13  ;;  %v9127_v52 = vld [vmem:[%s10784_s30 + $0x1b0] sm:$0xff]  ;;  %v16507_v60 = vld [vmem:[#allocation68_spill] sm:$0xff]  ;;  %4874 = vst.msk [vmem:[#allocation2 + $0x118] sm:$0x3] %vm280_vm1, %v4836_v37 }
 0x198   : > { %1634 = vrot.lane.b32.xlu1 %v16507_v60, %s10601_s13  ;;  %4873 = vst.msk [vmem:[#allocation2 + $0x110] sm:$0xff] %vm277_vm0, %v4746_v23  ;;  %v9128_v25 = vld [vmem:[%s10784_s30 + $0x1b8] sm:$0xff]  ;;  %v4747_v8 = vrot.slane %v9127_v52, 7  ;;  %v11902_v43 = vld [vmem:[#allocation2 + $0x122] sm:$0xff]  ;;  %v16510_v60 = vld [vmem:[#allocation70_spill] sm:$0xff] }
 0x199   : > { %v11896_v12 = vpop.permute.xlu0 %1464  ;;  %v4748_v49 = vrot.slane %v9128_v25, 7  ;;  %v11907_v37 = vld [vmem:[#allocation2 + $0x129] sm:$0xff]  ;;  %v9129_v25 = vld [vmem:[%s10784_s30 + $0x1c0] sm:$0xff] }
 0x19a   : > { %16508 = vst [vmem:[#allocation162_spill] sm:$0xff] %v11896_v12  ;;  %v11898_v15 = vpop.permute.xlu1 %1394  ;;  %v4821_v47 = vsel %vm16298_vm2, 0.0, %v4747_v8  ;;  %v11909_v23 = vld [vmem:[#allocation2 + $0x12a] sm:$0xff]  ;;  %v11928_v12 = vld [vmem:[#allocation2 + $0x13a] sm:$0xff] }
 0x19b   : > { %16509 = vst [vmem:[#allocation163_spill] sm:$0xff] %v11898_v15  ;;  %1644 = vrot.lane.b32.xlu0 %v16510_v60, %s10601_s13  ;;  %16511 = vst [vmem:[#allocation164_spill] sm:$0xff] %v11909_v23  ;;  %v4749_v52 = vsel %vm16298_vm2, %v4747_v8, %v4748_v49  ;;  %v4837_v39 = vsel %vm16298_vm2, %v4748_v49, 0.0  ;;  %v9130_v15 = vld [vmem:[%s10784_s30 + $0x1c8] sm:$0xff]  ;;  %v4750_v60 = vrot.slane %v9129_v25, 7  ;;  %v11924_v49 = vld [vmem:[#allocation2 + $0x139] sm:$0xff] }
 0x19c   : > { %4875 = vst.msk [vmem:[#allocation2 + $0x120] sm:$0xff] %vm277_vm0, %v4821_v47  ;;  %1638 = vrot.lane.b32.xlu1 %v11347_v17, %s10601_s13  ;;  %4876 = vst.msk [vmem:[#allocation2 + $0x128] sm:$0xff] %vm277_vm0, %v4749_v52  ;;  %v4751_v61 = vrot.slane %v9130_v15, 7  ;;  %v11926_v47 = vld [vmem:[#allocation2 + $0x141] sm:$0xff]  ;;  %v11951_v23 = vld [vmem:[#allocation2 + $0x152] sm:$0xff] }
 0x19d   : > { %4877 = vst.msk [vmem:[#allocation2 + $0x130] sm:$0x3] %vm280_vm1, %v4837_v39  ;;  %v11920_v3 = vpop.permute.xlu0 %1468  ;;  %v4822_v39 = vsel %vm16298_vm2, 0.0, %v4750_v60  ;;  %v16514_v17 = vld [vmem:[#allocation73_spill] sm:$0xff]  ;;  %16518 = vst [vmem:[#allocation169_spill] sm:$0xff] %v11951_v23 }
 0x19e   : > { %16512 = vst [vmem:[#allocation165_spill] sm:$0xff] %v11920_v3  ;;  %v11922_v8 = vpop.permute.xlu1 %1398  ;;  %v11933_v52 = vld [vmem:[#allocation2 + $0x142] sm:$0xff]  ;;  %v4752_v25 = vsel %vm16298_vm2, %v4750_v60, %v4751_v61  ;;  %v4838_v15 = vsel %vm16298_vm2, %v4751_v61, 0.0  ;;  %4878 = vst.msk [vmem:[#allocation2 + $0x138] sm:$0xff] %vm277_vm0, %v4822_v39  ;;  %v9131_v3 = vld [vmem:[%s10784_s30 + $0x1d0] sm:$0xff] }
 0x19f   : > { %16513 = vst [vmem:[#allocation166_spill] sm:$0xff] %v11922_v8  ;;  %1648 = vrot.lane.b32.xlu0 %v16514_v17, %s10601_s13  ;;  %16515 = vst [vmem:[#allocation73_spill] sm:$0xff] %v11933_v52  ;;  %v9135_v8 = vld [vmem:[%s10784_s30 + $0x1f0] sm:$0xff]  ;;  %v9132_v17 = vld [vmem:[%s10784_s30 + $0x1d8] sm:$0xff]  ;;  %v4753_v44 = vrot.slane %v9131_v3, 7 }
 0x1a0   : > { %1642 = vrot.lane.b32.xlu1 %v11359_v10, %s10601_s13  ;;  %4880 = vst.msk [vmem:[#allocation2 + $0x148] sm:$0x3] %vm280_vm1, %v4838_v15  ;;  %v4759_v1 = vrot.slane %v9135_v8, 7  ;;  %v4754_v60 = vrot.slane %v9132_v17, 7  ;;  %v11949_v39 = vld [vmem:[#allocation2 + $0x151] sm:$0xff]  ;;  %v11956_v8 = vld [vmem:[#allocation2 + $0x159] sm:$0xff] }
 0x1a1   : > { %4879 = vst.msk [vmem:[#allocation2 + $0x140] sm:$0xff] %vm277_vm0, %v4752_v25  ;;  %v11945_v52 = vpop.permute.xlu0 %1472  ;;  %v4823_v15 = vsel %vm16298_vm2, 0.0, %v4753_v44  ;;  %v11959_v3 = vld [vmem:[#allocation2 + $0x15a] sm:$0xff] }
 0x1a2   : > { %16516 = vst [vmem:[#allocation167_spill] sm:$0xff] %v11945_v52  ;;  %v11947_v61 = vpop.permute.xlu1 %1466  ;;  %v4825_v10 = vsel %vm16298_vm2, 0.0, %v4759_v1  ;;  %16519 = vst [vmem:[#allocation170_spill] sm:$0xff] %v11959_v3  ;;  %v4755_v25 = vsel %vm16298_vm2, %v4753_v44, %v4754_v60  ;;  %v4839_v17 = vsel %vm16298_vm2, %v4754_v60, 0.0  ;;  %v9133_v52 = vld [vmem:[%s10784_s30 + $0x1e0] sm:$0xff]  ;;  %v11974_v44 = vld [vmem:[#allocation2 + $0x169] sm:$0xff] }
 0x1a3   : > { %16517 = vst [vmem:[#allocation168_spill] sm:$0xff] %v11947_v61  ;;  %1652 = vrot.lane.b32.xlu0 %v854_v45, %s10601_s13  ;;  %4887 = vst.msk [vmem:[#allocation2 + $0x180] sm:$0xff] %vm277_vm0, %v4825_v10  ;;  %v9134_v45 = vld [vmem:[%s10784_s30 + $0x1e8] sm:$0xff]  ;;  %v4756_v61 = vrot.slane %v9133_v52, 7 }
 0x1a4   : > { %4881 = vst.msk [vmem:[#allocation2 + $0x150] sm:$0xff] %vm277_vm0, %v4823_v15  ;;  %1646 = vrot.lane.b32.xlu1 %v11369_v6, %s10601_s13  ;;  %4882 = vst.msk [vmem:[#allocation2 + $0x158] sm:$0xff] %vm277_vm0, %v4755_v25  ;;  %v4757_v3 = vrot.slane %v9134_v45, 7  ;;  %v11976_v60 = vld [vmem:[#allocation2 + $0x16a] sm:$0xff]  ;;  %v11983_v25 = vld [vmem:[#allocation2 + $0x172] sm:$0xff] }
 0x1a5   : > { %4883 = vst.msk [vmem:[#allocation2 + $0x160] sm:$0x3] %vm280_vm1, %v4839_v17  ;;  %v11970_v10 = vpop.permute.xlu0 %1476  ;;  %16522 = vst [vmem:[#allocation173_spill] sm:$0xff] %v11976_v60  ;;  %v4824_v15 = vsel %vm16298_vm2, 0.0, %v4756_v61  ;;  %v11981_v17 = vld [vmem:[#allocation2 + $0x171] sm:$0xff] }
 0x1a6   : > { %16520 = vst [vmem:[#allocation171_spill] sm:$0xff] %v11970_v10  ;;  %v11972_v23 = vpop.permute.xlu1 %1470  ;;  %16523 = vst [vmem:[#allocation174_spill] sm:$0xff] %v11983_v25  ;;  %v4758_v52 = vsel %vm16298_vm2, %v4756_v61, %v4757_v3  ;;  %v4840_v45 = vsel %vm16298_vm2, %v4757_v3, 0.0  ;;  %v9136_v6 = vld [vmem:[%s10784_s30 + $0x1f8] sm:$0xff]  ;;  %v11997_v25 = vld [vmem:[#allocation2 + $0x18a] sm:$0xff]  ;;  %s10606_s30 = smov 48  }
 0x1a7   : > { %16521 = vst [vmem:[#allocation172_spill] sm:$0xff] %v11972_v23  ;;  %1720 = vrot.lane.b32.xlu0 %v11660_v57, %s10602_s14  ;;  %4884 = vst.msk [vmem:[#allocation2 + $0x168] sm:$0xff] %vm277_vm0, %v4824_v15  ;;  %v4760_v10 = vrot.slane %v9136_v6, 7  ;;  %v855_v23 = vld [vmem:[#allocation2 + $0x1a0] sm:$0xff] }
 0x1a8   : > { %1650 = vrot.lane.b32.xlu1 %v11377_v48, %s10601_s13  ;;  %4886 = vst.msk [vmem:[#allocation2 + $0x178] sm:$0x3] %vm280_vm1, %v4840_v45  ;;  %v886_v15 = vld [vmem:[#allocation2 + $0x199] sm:$0xff] }
 0x1a9   : > { %4885 = vst.msk [vmem:[#allocation2 + $0x170] sm:$0xff] %vm277_vm0, %v4758_v52  ;;  %v11993_v57 = vpop.permute.xlu0 %1480  ;;  %v4761_v61 = vsel %vm16298_vm2, %v4759_v1, %v4760_v10  ;;  %v4841_v3 = vsel %vm16298_vm2, %v4760_v10, 0.0 }
 0x1aa   : > { %v11995_v60 = vpop.permute.xlu1 %1474  ;;  %4889 = vst.msk [vmem:[#allocation2 + $0x190] sm:$0x3] %vm280_vm1, %v4841_v3  ;;  %vm16313_vm1 = vcmask 523264  }
 0x1ab   : > { %1724 = vrot.lane.b32.xlu0 %v11684_v32, %s10602_s14  ;;  %4888 = vst.msk [vmem:[#allocation2 + $0x188] sm:$0xff] %vm277_vm0, %v4761_v61 }
 0x1ac   : > { %1654 = vrot.lane.b32.xlu1 %v855_v23, %s10601_s13 }
 0x1ad   : > { %v12006_v6 = vpop.permute.xlu0 %1484 }
 0x1ae   : > { %v12008_v48 = vpop.permute.xlu1 %1478 }
 0x1af   : > { %1728 = vrot.lane.b32.xlu0 %v11708_v26, %s10602_s14 }
 0x1b0   : > { %1722 = vrot.lane.b32.xlu1 %v11667_v33, %s10602_s14 }
 0x1b1   : > { %v12014_v1 = vpop.permute.xlu0 %1488 }
 0x1b2   : > { %v12016_v10 = vpop.permute.xlu1 %1482 }
 0x1b3   : > { %1732 = vrot.lane.b32.xlu0 %v11732_v20, %s10602_s14 }
 0x1b4   : > { %1726 = vrot.lane.b32.xlu1 %v11691_v54, %s10602_s14 }
 0x1b5   : > { %v12022_v32 = vpop.permute.xlu0 %1492 }
 0x1b6   : > { %v12024_v23 = vpop.permute.xlu1 %1486 }
 0x1b7   : > { %1736 = vrot.lane.b32.xlu0 %v11756_v7, %s10602_s14 }
 0x1b8   : > { %1730 = vrot.lane.b32.xlu1 %v11715_v41, %s10602_s14 }
 0x1b9   : > { %v12030_v33 = vpop.permute.xlu0 %1496 }
 0x1ba   : > { %v12032_v26 = vpop.permute.xlu1 %1490 }
 0x1bb   : > { %1740 = vrot.lane.b32.xlu0 %v11780_v35, %s10602_s14 }
 0x1bc   : > { %1734 = vrot.lane.b32.xlu1 %v11739_v63, %s10602_s14 }
 0x1bd   : > { %v12038_v54 = vpop.permute.xlu0 %1500 }
 0x1be   : > { %v12040_v20 = vpop.permute.xlu1 %1494 }
 0x1bf   : > { %1744 = vrot.lane.b32.xlu0 %v11804_v30, %s10602_s14 }
 0x1c0   : > { %1738 = vrot.lane.b32.xlu1 %v11763_v59, %s10602_s14 }
 0x1c1   : > { %v12046_v41 = vpop.permute.xlu0 %1504 }
 0x1c2   : > { %16524 = vst [vmem:[#allocation175_spill] sm:$0xff] %v12046_v41  ;;  %v12048_v7 = vpop.permute.xlu1 %1498 }
 0x1c3   : > { %1748 = vrot.lane.b32.xlu0 %v11828_v13, %s10602_s14 }
 0x1c4   : > { %1742 = vrot.lane.b32.xlu1 %v11787_v36, %s10602_s14 }
 0x1c5   : > { %v12054_v63 = vpop.permute.xlu0 %1508 }
 0x1c6   : > { %16525 = vst [vmem:[#allocation176_spill] sm:$0xff] %v12054_v63  ;;  %v12056_v35 = vpop.permute.xlu1 %1502  ;;  %v631_v63 = vld [vmem:[#allocation2] sm:$0xff] }
 0x1c7   : > { %16526 = vst [vmem:[#allocation177_spill] sm:$0xff] %v12056_v35  ;;  %1752 = vrot.lane.b32.xlu0 %v11852_v46, %s10602_s14 }
 0x1c8   : > { %1746 = vrot.lane.b32.xlu1 %v11811_v0, %s10602_s14 }
 0x1c9   : > { %v12062_v59 = vpop.permute.xlu0 %1512 }
 0x1ca   : > { %16527 = vst [vmem:[#allocation178_spill] sm:$0xff] %v12062_v59  ;;  %v12064_v30 = vpop.permute.xlu1 %1506 }
 0x1cb   : > { %16528 = vst [vmem:[#allocation179_spill] sm:$0xff] %v12064_v30  ;;  %1756 = vrot.lane.b32.xlu0 %v11876_v4, %s10602_s14 }
 0x1cc   : > { %1750 = vrot.lane.b32.xlu1 %v11835_v34, %s10602_s14 }
 0x1cd   : > { %v12070_v36 = vpop.permute.xlu0 %1516 }
 0x1ce   : > { %16529 = vst [vmem:[#allocation180_spill] sm:$0xff] %v12070_v36  ;;  %v12072_v13 = vpop.permute.xlu1 %1510 }
 0x1cf   : > { %16530 = vst [vmem:[#allocation181_spill] sm:$0xff] %v12072_v13  ;;  %1760 = vrot.lane.b32.xlu0 %v11900_v50, %s10602_s14 }
 0x1d0   : > { %1754 = vrot.lane.b32.xlu1 %v11859_v18, %s10602_s14 }
 0x1d1   : > { %v12078_v0 = vpop.permute.xlu0 %1520 }
 0x1d2   : > { %16531 = vst [vmem:[#allocation182_spill] sm:$0xff] %v12078_v0  ;;  %v12080_v46 = vpop.permute.xlu1 %1514 }
 0x1d3   : > { %16532 = vst [vmem:[#allocation183_spill] sm:$0xff] %v12080_v46  ;;  %1764 = vrot.lane.b32.xlu0 %v11924_v49, %s10602_s14  ;;  %v2209_v49 = vld [vmem:[%s16161_s1 + $0x10] sm:$0xff] }
 0x1d4   : > { %1758 = vrot.lane.b32.xlu1 %v11883_v11, %s10602_s14  ;;  %v2210_v11 = vld [vmem:[%s16161_s1 + $0x18] sm:$0x7] }
 0x1d5   : > { %v12086_v34 = vpop.permute.xlu0 %1524  ;;  %9286 = vmatprep.subr.msk.mxu1 %vm2315_vm3, %v2210_v11 }
 0x1d6   : > { %16533 = vst [vmem:[#allocation184_spill] sm:$0xff] %v12086_v34  ;;  %v12088_v4 = vpop.permute.xlu1 %1518  ;;  %9287 = vmatpush3.msk.msra.mxu1 %vm2315_vm3, %v2210_v11  ;;  %v887_v11 = vld [vmem:[#allocation2 + $0x1a1] sm:$0xff] }
 0x1d7   : > { %16534 = vst [vmem:[#allocation185_spill] sm:$0xff] %v12088_v4  ;;  %1768 = vrot.lane.b32.xlu0 %v11949_v39, %s10602_s14  ;;  %9288 = vmatprep.subr.mxu1 %v2209_v49  ;;  %v16556_v34 = vld [vmem:[#allocation9_spill] sm:$0xff] }
 0x1d8   : > { %1762 = vrot.lane.b32.xlu1 %v11907_v37, %s10602_s14  ;;  %9289 = vmatpush3.msra.mxu1 %v2209_v49 }
 0x1d9   : > { %v12094_v18 = vpop.permute.xlu0 %1592 }
 0x1da   : > { %v12096_v50 = vpop.permute.xlu1 %1522 }
 0x1db   : > { %16535 = vst [vmem:[#allocation186_spill] sm:$0xff] %v12096_v50  ;;  %1772 = vrot.lane.b32.xlu0 %v11974_v44, %s10602_s14  ;;  %v2208_v44 = vld [vmem:[%s16161_s1 + $0x8] sm:$0xff] }
 0x1dc   : > { %1766 = vrot.lane.b32.xlu1 %v11926_v47, %s10602_s14  ;;  %v2207_v47 = vld [vmem:[%s16161_s1] sm:$0xff]  ;;  %9290 = vmatprep.subr.mxu1 %v2208_v44 }
 0x1dd   : > { %v12109_v37 = vpop.permute.xlu0 %1596  ;;  %9291 = vmatpush3.msra.mxu1 %v2208_v44 }
 0x1de   : > { %v12112_v39 = vpop.permute.xlu1 %1526  ;;  %9292 = vmatprep.subr.mxu1 %v2207_v47 }
 0x1df   : > { %16536 = vst [vmem:[#allocation187_spill] sm:$0xff] %v12112_v39  ;;  %1776 = vrot.lane.b32.xlu0 %v11489_v5, %s10602_s14  ;;  %9293 = vmatpush3.msra.mxu1 %v2207_v47  ;;  %v16537_v5 = vmov 0.0   ;;  %v16553_v39 = vld [vmem:[#allocation173_spill] sm:$0xff] }
 0x1e0   : > { %1770 = vrot.lane.b32.xlu1 %v11956_v8, %s10602_s14  ;;  %4321 = vmatprep.subr.mxu1 %v16537_v5  ;;  %340 = vst.msk [vmem:[#allocation3 + $0x28] sm:$0x3] %vm16295_vm4, %v16537_v5  ;;  %337 = vst.msk [vmem:[#allocation3 + $0x10] sm:$0x3] %vm16295_vm4, %v16537_v5 }
 0x1e1   : > { %v12124_v52 = vpop.permute.xlu0 %1600  ;;  %343 = vst.msk [vmem:[#allocation3 + $0x40] sm:$0x3] %vm16295_vm4, %v16537_v5  ;;  %346 = vst.msk [vmem:[#allocation3 + $0x58] sm:$0x3] %vm16295_vm4, %v16537_v5 }
 0x1e2   : > { %v12126_v45 = vpop.permute.xlu1 %1594  ;;  %349 = vst.msk [vmem:[#allocation3 + $0x70] sm:$0x3] %vm16295_vm4, %v16537_v5  ;;  %352 = vst.msk [vmem:[#allocation3 + $0x88] sm:$0x3] %vm16295_vm4, %v16537_v5 }
 0x1e3   : > { %1780 = vrot.lane.b32.xlu0 %v886_v15, %s10602_s14  ;;  %v16550_v15 = vld [vmem:[#allocation169_spill] sm:$0xff]  ;;  %355 = vst.msk [vmem:[#allocation3 + $0xa0] sm:$0x3] %vm16295_vm4, %v16537_v5  ;;  %358 = vst.msk [vmem:[#allocation3 + $0xb8] sm:$0x3] %vm16295_vm4, %v16537_v5 }
 0x1e4   : > { %1774 = vrot.lane.b32.xlu1 %v11981_v17, %s10602_s14  ;;  %361 = vst.msk [vmem:[#allocation3 + $0xd0] sm:$0x3] %vm16295_vm4, %v16537_v5  ;;  %364 = vst.msk [vmem:[#allocation3 + $0xe8] sm:$0x3] %vm16295_vm4, %v16537_v5 }
 0x1e5   : > { %v12132_v61 = vpop.permute.xlu0 %1604  ;;  %367 = vst.msk [vmem:[#allocation3 + $0x100] sm:$0x3] %vm16295_vm4, %v16537_v5  ;;  %370 = vst.msk [vmem:[#allocation3 + $0x118] sm:$0x3] %vm16295_vm4, %v16537_v5 }
 0x1e6   : > { %v12134_v3 = vpop.permute.xlu1 %1598  ;;  %373 = vst.msk [vmem:[#allocation3 + $0x130] sm:$0x3] %vm16295_vm4, %v16537_v5  ;;  %376 = vst.msk [vmem:[#allocation3 + $0x148] sm:$0x3] %vm16295_vm4, %v16537_v5 }
 0x1e7   : > { %1848 = vrot.lane.b32.xlu0 %v11662_v53, %s10603_s23  ;;  %379 = vst.msk [vmem:[#allocation3 + $0x160] sm:$0x3] %vm16295_vm4, %v16537_v5  ;;  %382 = vst.msk [vmem:[#allocation3 + $0x178] sm:$0x3] %vm16295_vm4, %v16537_v5 }
 0x1e8   : > { %1778 = vrot.lane.b32.xlu1 %v11509_v16, %s10602_s14  ;;  %385 = vst.msk [vmem:[#allocation3 + $0x190] sm:$0x3] %vm16295_vm4, %v16537_v5  ;;  %388 = vst.msk [vmem:[#allocation3 + $0x1a8] sm:$0x3] %vm16295_vm4, %v16537_v5 }
 0x1e9   : > { %v12140_v8 = vpop.permute.xlu0 %1608 }
 0x1ea   : > { %v12142_v49 = vpop.permute.xlu1 %1602 }
 0x1eb   : > { %1852 = vrot.lane.b32.xlu0 %v11686_v56, %s10603_s23 }
 0x1ec   : > { %1782 = vrot.lane.b32.xlu1 %v887_v11, %s10602_s14 }
 0x1ed   : > { %v12147_v17 = vpop.permute.xlu0 %1612 }
 0x1ee   : > { %v12149_v44 = vpop.permute.xlu1 %1606 }
 0x1ef   : > { %1856 = vrot.lane.b32.xlu0 %v11710_v29, %s10603_s23 }
 0x1f0   : > { %1850 = vrot.lane.b32.xlu1 %v11669_v51, %s10603_s23 }
 0x1f1   : > { %v12155_v53 = vpop.permute.xlu0 %1616 }
 0x1f2   : > { %v12157_v16 = vpop.permute.xlu1 %1610 }
 0x1f3   : > { %1860 = vrot.lane.b32.xlu0 %v11734_v58, %s10603_s23 }
 0x1f4   : > { %1854 = vrot.lane.b32.xlu1 %v11693_v38, %s10603_s23 }
 0x1f5   : > { %v12163_v56 = vpop.permute.xlu0 %1620 }
 0x1f6   : > { %v12165_v47 = vpop.permute.xlu1 %1614 }
 0x1f7   : > { %1864 = vrot.lane.b32.xlu0 %v11758_v9, %s10603_s23 }
 0x1f8   : > { %1858 = vrot.lane.b32.xlu1 %v11717_v42, %s10603_s23 }
 0x1f9   : > { %v12171_v51 = vpop.permute.xlu0 %1624 }
 0x1fa   : > { %v12173_v29 = vpop.permute.xlu1 %1618 }
 0x1fb   : > { %1868 = vrot.lane.b32.xlu0 %v11782_v21, %s10603_s23 }
 0x1fc   : > { %1862 = vrot.lane.b32.xlu1 %v11741_v31, %s10603_s23 }
 0x1fd   : > { %v12179_v38 = vpop.permute.xlu0 %1628 }
 0x1fe   : > { %16538 = vst [vmem:[#allocation188_spill] sm:$0xff] %v12179_v38  ;;  %v12181_v58 = vpop.permute.xlu1 %1622  ;;  %v16590_v38 = vld [vmem:[#allocation168_spill] sm:$0xff] }
 0x1ff   : > { %1872 = vrot.lane.b32.xlu0 %v11806_v40, %s10603_s23 }
 0x200   : > { %1866 = vrot.lane.b32.xlu1 %v11765_v24, %s10603_s23 }
 0x201   : > { %v12187_v42 = vpop.permute.xlu0 %1632 }
 0x202   : > { %16539 = vst [vmem:[#allocation189_spill] sm:$0xff] %v12187_v42  ;;  %v12189_v9 = vpop.permute.xlu1 %1626  ;;  %v16570_v42 = vld [vmem:[#allocation4_spill] sm:$0xff] }
 0x203   : > { %1876 = vrot.lane.b32.xlu0 %v11830_v2, %s10603_s23 }
 0x204   : > { %1870 = vrot.lane.b32.xlu1 %v11789_v55, %s10603_s23 }
 0x205   : > { %v12195_v31 = vpop.permute.xlu0 %1636 }
 0x206   : > { %16540 = vst [vmem:[#allocation190_spill] sm:$0xff] %v12195_v31  ;;  %v12197_v21 = vpop.permute.xlu1 %1630 }
 0x207   : > { %16541 = vst [vmem:[#allocation191_spill] sm:$0xff] %v12197_v21  ;;  %1880 = vrot.lane.b32.xlu0 %v11854_v28, %s10603_s23  ;;  %v16574_v21 = vld [vmem:[#allocation5_spill] sm:$0xff] }
 0x208   : > { %1874 = vrot.lane.b32.xlu1 %v11813_v14, %s10603_s23 }
 0x209   : > { %v12203_v24 = vpop.permute.xlu0 %1640 }
 0x20a   : > { %16542 = vst [vmem:[#allocation192_spill] sm:$0xff] %v12203_v24  ;;  %v12205_v40 = vpop.permute.xlu1 %1634 }
 0x20b   : > { %16543 = vst [vmem:[#allocation193_spill] sm:$0xff] %v12205_v40  ;;  %1884 = vrot.lane.b32.xlu0 %v11878_v19, %s10603_s23 }
 0x20c   : > { %1878 = vrot.lane.b32.xlu1 %v11837_v27, %s10603_s23 }
 0x20d   : > { %v12211_v55 = vpop.permute.xlu0 %1644 }
 0x20e   : > { %16544 = vst [vmem:[#allocation194_spill] sm:$0xff] %v12211_v55  ;;  %v12213_v2 = vpop.permute.xlu1 %1638 }
 0x20f   : > { %16545 = vst [vmem:[#allocation195_spill] sm:$0xff] %v12213_v2  ;;  %1888 = vrot.lane.b32.xlu0 %v11902_v43, %s10603_s23  ;;  %v16551_v43 = vld [vmem:[#allocation164_spill] sm:$0xff] }
 0x210   : > { %1882 = vrot.lane.b32.xlu1 %v11861_v22, %s10603_s23 }
 0x211   : > { %v12219_v14 = vpop.permute.xlu0 %1648 }
 0x212   : > { %16546 = vst [vmem:[#allocation196_spill] sm:$0xff] %v12219_v14  ;;  %v12221_v28 = vpop.permute.xlu1 %1642 }
 0x213   : > { %16547 = vst [vmem:[#allocation197_spill] sm:$0xff] %v12221_v28  ;;  %1892 = vrot.lane.b32.xlu0 %v11928_v12, %s10603_s23  ;;  %v16554_v12 = vld [vmem:[#allocation73_spill] sm:$0xff] }
 0x214   : > { %1886 = vrot.lane.b32.xlu1 %v11885_v62, %s10603_s23 }
 0x215   : > { %v12227_v27 = vpop.permute.xlu0 %1652 }
 0x216   : > { %16548 = vst [vmem:[#allocation198_spill] sm:$0xff] %v12227_v27  ;;  %v12229_v19 = vpop.permute.xlu1 %1646 }
 0x217   : > { %16549 = vst [vmem:[#allocation199_spill] sm:$0xff] %v12229_v19  ;;  %1896 = vrot.lane.b32.xlu0 %v16550_v15, %s10603_s23  ;;  %v16557_v15 = vld [vmem:[#allocation170_spill] sm:$0xff] }
 0x218   : > { %1890 = vrot.lane.b32.xlu1 %v16551_v43, %s10603_s23  ;;  %v918_v43 = vld [vmem:[#allocation2 + $0x19a] sm:$0xff] }
 0x219   : > { %v12235_v22 = vpop.permute.xlu0 %1720 }
 0x21a   : > { %v12237_v11 = vpop.permute.xlu1 %1650 }
 0x21b   : > { %16552 = vst [vmem:[#allocation169_spill] sm:$0xff] %v12237_v11  ;;  %1900 = vrot.lane.b32.xlu0 %v16553_v39, %s10603_s23  ;;  %v16558_v39 = vld [vmem:[#allocation174_spill] sm:$0xff]  ;;  %v919_v11 = vld [vmem:[#allocation2 + $0x1a2] sm:$0xff] }
 0x21c   : > { %1894 = vrot.lane.b32.xlu1 %v16554_v12, %s10603_s23 }
 0x21d   : > { %v12243_v62 = vpop.permute.xlu0 %1724 }
 0x21e   : > { %v12245_v27 = vpop.permute.xlu1 %1654 }
 0x21f   : > { %16555 = vst [vmem:[#allocation164_spill] sm:$0xff] %v12245_v27  ;;  %1904 = vrot.lane.b32.xlu0 %v16556_v34, %s10603_s23 }
 0x220   : > { %1898 = vrot.lane.b32.xlu1 %v16557_v15, %s10603_s23 }
 0x221   : > { %v12251_v50 = vpop.permute.xlu0 %1728 }
 0x222   : > { %v12289_v34 = vpop.permute.xlu1 %1722 }
 0x223   : > { %1908 = vrot.lane.b32.xlu0 %v918_v43, %s10603_s23 }
 0x224   : > { %1902 = vrot.lane.b32.xlu1 %v16558_v39, %s10603_s23 }
 0x225   : > { %v12294_v12 = vpop.permute.xlu0 %1732 }
 0x226   : > { %v12296_v15 = vpop.permute.xlu1 %1726 }
 0x228   : > { %1906 = vrot.lane.b32.xlu1 %v11997_v25, %s10603_s23 }
 0x229   : > { %v12300_v27 = vpop.permute.xlu0 %1736 }
 0x22a   : > { %v12302_v14 = vpop.permute.xlu1 %1730 }
 0x22c   : > { %1910 = vrot.lane.b32.xlu1 %v919_v11, %s10603_s23 }
 0x22d   : > { %v12305_v5 = vpop.permute.xlu0 %1740 }
 0x22e   : > { %v12307_v43 = vpop.permute.xlu1 %1734 }
 0x231   : > { %v12309_v19 = vpop.permute.xlu0 %1744 }
 0x232   : > { %v12311_v39 = vpop.permute.xlu1 %1738 }
 0x235   : > { %v12313_v0 = vpop.permute.xlu0 %1748 }
 0x236   : > { %v12315_v4 = vpop.permute.xlu1 %1742 }
 0x239   : > { %v12317_v25 = vpop.permute.xlu0 %1752 }
 0x23a   : > { %v12319_v55 = vpop.permute.xlu1 %1746 }
 0x23d   : > { %v12321_v28 = vpop.permute.xlu0 %1756 }
 0x23e   : > { %16559 = vst [vmem:[#allocation173_spill] sm:$0xff] %v12321_v28  ;;  %v12323_v36 = vpop.permute.xlu1 %1750  ;;  %v16582_v28 = vld [vmem:[#allocation69_spill] sm:$0xff] }
 0x241   : > { %v12325_v11 = vpop.permute.xlu0 %1760 }
 0x242   : > { %16560 = vst [vmem:[#allocation73_spill] sm:$0xff] %v12325_v11  ;;  %v12327_v46 = vpop.permute.xlu1 %1754 }
 0x243   : > { %16561 = vst [vmem:[#allocation9_spill] sm:$0xff] %v12327_v46  ;;  %v16587_v46 = vld [vmem:[#allocation16_spill] sm:$0xff] }
 0x245   : > { %v12329_v24 = vpop.permute.xlu0 %1764 }
 0x246   : > { %16562 = vst [vmem:[#allocation170_spill] sm:$0xff] %v12329_v24  ;;  %v12331_v2 = vpop.permute.xlu1 %1758  ;;  %v1944_v24 = vsel %vm277_vm0, %v631_v63, %v16570_v42 }
 0x247   : > { %16563 = vst [vmem:[#allocation174_spill] sm:$0xff] %v12331_v2  ;;  %v16571_v2 = vld [vmem:[#allocation65_spill] sm:$0xff] }
 0x249   : > { %v12333_v59 = vpop.permute.xlu0 %1768 }
 0x24a   : > { %16564 = vst [vmem:[#allocation200_spill] sm:$0xff] %v12333_v59  ;;  %v12335_v13 = vpop.permute.xlu1 %1762  ;;  %v1977_v59 = vsel %vm1976_vm5, %v1944_v24, %v16571_v2  ;;  %v632_v24 = vld [vmem:[#allocation2 + $0x8] sm:$0xff] }
 0x24b   : > { %16565 = vst [vmem:[#allocation201_spill] sm:$0xff] %v12335_v13  ;;  %v16572_v13 = vld [vmem:[#allocation104_spill] sm:$0xff] }
 0x24d   : > { %v12337_v31 = vpop.permute.xlu0 %1772 }
 0x24e   : > { %16566 = vst [vmem:[#allocation202_spill] sm:$0xff] %v12337_v31  ;;  %v12339_v40 = vpop.permute.xlu1 %1766  ;;  %v2010_v31 = vsel %vm2009_vm6, %v1977_v59, %v16572_v13 }
 0x24f   : > { %16567 = vst [vmem:[#allocation203_spill] sm:$0xff] %v12339_v40 }
 0x251   : > { %v12341_v30 = vpop.permute.xlu0 %1776 }
 0x252   : > { %16568 = vst [vmem:[#allocation204_spill] sm:$0xff] %v12341_v30  ;;  %v12343_v11 = vpop.permute.xlu1 %1770  ;;  %v2043_v30 = vsel %vm2042_vm7, %v2010_v31, %v16574_v21  ;;  %v16578_v21 = vld [vmem:[#allocation6_spill] sm:$0xff] }
 0x253   : > { %16569 = vst [vmem:[#allocation205_spill] sm:$0xff] %v12343_v11  ;;  %v16576_v11 = vld [vmem:[#allocation162_spill] sm:$0xff] }
 0x254   : > { %v2076_v63 = vsel %vm2075_vm8, %v2043_v30, %v16576_v11  ;;  %v16579_v30 = vld [vmem:[#allocation12_spill] sm:$0xff]  ;;  %v16580_v11 = vld [vmem:[#allocation15_spill] sm:$0xff] }
 0x255   : > { %v12351_v40 = vpop.permute.xlu0 %1780  ;;  %v2109_v42 = vsel %vm2108_vm9, %v2076_v63, %v12094_v18  ;;  %v16581_v18 = vld [vmem:[#allocation75_spill] sm:$0xff] }
 0x256   : > { %16573 = vst [vmem:[#allocation4_spill] sm:$0xff] %v12351_v40  ;;  %v12355_v41 = vpop.permute.xlu1 %1774  ;;  %v2142_v59 = vsel %vm2141_vm10, %v2109_v42, %v12235_v22  ;;  %v1945_v40 = vsel %vm277_vm0, %v632_v24, %v16578_v21  ;;  %v16583_v42 = vld [vmem:[#allocation109_spill] sm:$0xff] }
 0x257   : > { %16575 = vst [vmem:[#allocation65_spill] sm:$0xff] %v12355_v41  ;;  %v1946_v41 = vsel %vm277_vm0, %v16580_v11, %v16579_v30  ;;  %v1978_v63 = vsel %vm1976_vm5, %v1945_v40, %v16581_v18  ;;  %v16586_v24 = vld [vmem:[#allocation137_spill] sm:$0xff]  ;;  %v16588_v30 = vld [vmem:[#allocation24_spill] sm:$0xff]  ;;  %v16589_v40 = vld [vmem:[#allocation7_spill] sm:$0xff] }
 0x258   : > { %v1979_v22 = vsel %vm1976_vm5, %v1946_v41, %v16582_v28  ;;  %v1947_v11 = vsel %vm277_vm0, %v16588_v30, %v16587_v46  ;;  %v16591_v28 = vld [vmem:[#allocation10_spill] sm:$0xff] }
 0x259   : > { %v1849_v13 = vpop.permute.xlu0 %1848  ;;  %v16595_v30 = vld [vmem:[#allocation74_spill] sm:$0xff] }
 0x25a   : > { %v12363_v2 = vpop.permute.xlu1 %1778  ;;  %v2175_v31 = vsel %vm2174_vm11, %v2142_v59, %v1849_v13  ;;  %v16585_v13 = vld [vmem:[#allocation106_spill] sm:$0xff] }
 0x25b   : > { %16577 = vst [vmem:[#allocation104_spill] sm:$0xff] %v12363_v2  ;;  %9294 = vmatprep.mubr.msk.f32.mxu1 %vm16302_vm12, %v2175_v31  ;;  %v2011_v2 = vsel %vm2009_vm6, %v1978_v63, %v16583_v42  ;;  %v2012_v31 = vsel %vm2009_vm6, %v1979_v22, %v16585_v13  ;;  %v16592_v63 = vld [vmem:[#allocation19_spill] sm:$0xff]  ;;  %v16594_v13 = vld [vmem:[#allocation165_spill] sm:$0xff] }
 0x25c   : > { %v2044_v21 = vsel %vm2042_vm7, %v2011_v2, %v16586_v24  ;;  %v2045_v18 = vsel %vm2042_vm7, %v2012_v31, %v16589_v40  ;;  %v1948_v42 = vsel %vm277_vm0, %v16592_v63, %v16591_v28  ;;  %v16596_v40 = vld [vmem:[#allocation111_spill] sm:$0xff]  ;;  %v16598_v63 = vld [vmem:[#allocation138_spill] sm:$0xff] }
 0x25d   : > { %v1853_v35 = vpop.permute.xlu0 %1852  ;;  %v2077_v41 = vsel %vm2075_vm8, %v2044_v21, %v16590_v38  ;;  %v2078_v2 = vsel %vm2075_vm8, %v2045_v18, %v16594_v13  ;;  %v1981_v31 = vsel %vm1976_vm5, %v1948_v42, %v16595_v30  ;;  %v16599_v13 = vld [vmem:[#allocation20_spill] sm:$0xff] }
 0x25e   : > { %v12378_v59 = vpop.permute.xlu1 %1782  ;;  %v2110_v24 = vsel %vm2108_vm9, %v2077_v41, %v12126_v45  ;;  %v2111_v21 = vsel %vm2108_vm9, %v2078_v2, %v12109_v37  ;;  %v16601_v37 = vld [vmem:[#allocation11_spill] sm:$0xff] }
 0x25f   : > { %16584 = vst [vmem:[#allocation5_spill] sm:$0xff] %v12378_v59  ;;  %v16593_v59 = vld [vmem:[#allocation78_spill] sm:$0xff]  ;;  %v2143_v28 = vsel %vm2141_vm10, %v2110_v24, %v12289_v34  ;;  %v2144_v41 = vsel %vm2141_vm10, %v2111_v21, %v12243_v62  ;;  %v16602_v34 = vld [vmem:[#allocation172_spill] sm:$0xff]  ;;  %v16605_v21 = vld [vmem:[#allocation81_spill] sm:$0xff] }
 0x260   : > { %v1980_v22 = vsel %vm1976_vm5, %v1947_v11, %v16593_v59  ;;  %v16597_v11 = vld [vmem:[#allocation108_spill] sm:$0xff] }
 0x261   : > { %v1857_v46 = vpop.permute.xlu0 %1856  ;;  %v2013_v38 = vsel %vm2009_vm6, %v1980_v22, %v16596_v40  ;;  %v2014_v18 = vsel %vm2009_vm6, %v1981_v31, %v16597_v11  ;;  %v16600_v22 = vld [vmem:[#allocation28_spill] sm:$0xff]  ;;  %v2177_v31 = vsel %vm2174_vm11, %v2144_v41, %v1853_v35  ;;  %v16603_v40 = vld [vmem:[#allocation13_spill] sm:$0xff] }
 0x262   : > { %v1851_v59 = vpop.permute.xlu1 %1850  ;;  %v2046_v45 = vsel %vm2042_vm7, %v2013_v38, %v16598_v63  ;;  %v1949_v30 = vsel %vm277_vm0, %v16600_v22, %v16599_v13  ;;  %v2047_v2 = vsel %vm2042_vm7, %v2014_v18, %v16601_v37  ;;  %v16604_v38 = vld [vmem:[#allocation22_spill] sm:$0xff]  ;;  %v16608_v41 = vld [vmem:[#allocation113_spill] sm:$0xff] }
 0x263   : > { %v2176_v42 = vsel %vm2174_vm11, %v2143_v28, %v1851_v59  ;;  %v2079_v24 = vsel %vm2075_vm8, %v2046_v45, %v16602_v34  ;;  %v1950_v62 = vsel %vm277_vm0, %v16604_v38, %v16603_v40  ;;  %v1982_v28 = vsel %vm1976_vm5, %v1949_v30, %v16605_v21  ;;  %v16606_v59 = vld [vmem:[#allocation167_spill] sm:$0xff]  ;;  %v16607_v45 = vld [vmem:[#allocation77_spill] sm:$0xff]  ;;  %v16609_v37 = vld [vmem:[#allocation110_spill] sm:$0xff] }
 0x264   : > { %9295 = vmatmul.mubr.msk.f32.vlgmr.msra.gmra.mxu1 %vm16302_vm12, %v2176_v42  ;;  %v2080_v11 = vsel %vm2075_vm8, %v2047_v2, %v16606_v59  ;;  %v2112_v18 = vsel %vm2108_vm9, %v2079_v24, %v12134_v3  ;;  %v1983_v35 = vsel %vm1976_vm5, %v1950_v62, %v16607_v45  ;;  %v2015_v42 = vsel %vm2009_vm6, %v1982_v28, %v16608_v41  ;;  %v16610_v3 = vld [vmem:[#allocation139_spill] sm:$0xff]  ;;  %v16612_v38 = vld [vmem:[#allocation32_spill] sm:$0xff]  ;;  %v16614_v59 = vld [vmem:[#allocation17_spill] sm:$0xff] }
 0x265   : > { %9297 = vmatprep.mubr.msk.f32.mxu1 %vm16302_vm12, %v2177_v31  ;;  %v1861_v63 = vpop.permute.xlu0 %1860  ;;  %v2113_v13 = vsel %vm2108_vm9, %v2080_v11, %v12124_v52  ;;  %v2145_v22 = vsel %vm2141_vm10, %v2112_v18, %v12296_v15  ;;  %v2016_v2 = vsel %vm2009_vm6, %v1983_v35, %v16609_v37  ;;  %v2048_v34 = vsel %vm2042_vm7, %v2015_v42, %v16610_v3  ;;  %v16611_v40 = vld [vmem:[#allocation23_spill] sm:$0xff]  ;;  %v16613_v52 = vld [vmem:[#allocation14_spill] sm:$0xff] }
 0x266   : > { %v1855_v30 = vpop.permute.xlu1 %1854  ;;  %v2146_v24 = vsel %vm2141_vm10, %v2113_v13, %v12251_v50  ;;  %v1951_v62 = vsel %vm277_vm0, %v16612_v38, %v16611_v40  ;;  %v2049_v21 = vsel %vm2042_vm7, %v2016_v2, %v16613_v52  ;;  %v2081_v15 = vsel %vm2075_vm8, %v2048_v34, %v11995_v60  ;;  %v16615_v11 = vld [vmem:[#allocation26_spill] sm:$0xff]  ;;  %v16616_v18 = vld [vmem:[#allocation83_spill] sm:$0xff]  ;;  %v16618_v13 = vld [vmem:[#allocation80_spill] sm:$0xff] }
 0x267   : > { %v2178_v31 = vsel %vm2174_vm11, %v2145_v22, %v1855_v30  ;;  %v2179_v28 = vsel %vm2174_vm11, %v2146_v24, %v1857_v46  ;;  %v1952_v50 = vsel %vm277_vm0, %v16615_v11, %v16614_v59  ;;  %v1984_v45 = vsel %vm1976_vm5, %v1951_v62, %v16616_v18  ;;  %v16617_v35 = vld [vmem:[#allocation171_spill] sm:$0xff]  ;;  %v16620_v34 = vld [vmem:[#allocation112_spill] sm:$0xff]  ;;  %v16625_v59 = vld [vmem:[#allocation21_spill] sm:$0xff] }
 0x268   : > { %9298 = vmatmul.mubr.msk.f32.gmra.mxu1 %vm16302_vm12, %v2178_v31  ;;  %v2082_v41 = vsel %vm2075_vm8, %v2049_v21, %v16617_v35  ;;  %v2114_v42 = vsel %vm2108_vm9, %v2081_v15, %v12142_v49  ;;  %v1985_v46 = vsel %vm1976_vm5, %v1952_v50, %v16618_v13  ;;  %v16619_v22 = vld [vmem:[#allocation115_spill] sm:$0xff]  ;;  %v16621_v49 = vld [vmem:[#allocation141_spill] sm:$0xff]  ;;  %v16623_v52 = vld [vmem:[#allocation36_spill] sm:$0xff] }
 0x269   : > { %9300 = vmatprep.mubr.msk.f32.mxu1 %vm16302_vm12, %v2179_v28  ;;  %v1865_v60 = vpop.permute.xlu0 %1864  ;;  %v2017_v30 = vsel %vm2009_vm6, %v1984_v45, %v16619_v22  ;;  %v2115_v37 = vsel %vm2108_vm9, %v2082_v41, %v12132_v61  ;;  %v2147_v2 = vsel %vm2141_vm10, %v2114_v42, %v12302_v14  ;;  %v2018_v24 = vsel %vm2009_vm6, %v1985_v46, %v16620_v34  ;;  %v16622_v62 = vld [vmem:[#allocation27_spill] sm:$0xff]  ;;  %v16624_v61 = vld [vmem:[#allocation18_spill] sm:$0xff]  ;;  %v16627_v50 = vld [vmem:[#allocation85_spill] sm:$0xff] }
 0x26a   : > { %v1859_v3 = vpop.permute.xlu1 %1858  ;;  %v2050_v31 = vsel %vm2042_vm7, %v2017_v30, %v16621_v49  ;;  %v2148_v40 = vsel %vm2141_vm10, %v2115_v37, %v12294_v12  ;;  %v1953_v21 = vsel %vm277_vm0, %v16623_v52, %v16622_v62  ;;  %v2051_v15 = vsel %vm2042_vm7, %v2018_v24, %v16624_v61  ;;  %v16626_v11 = vld [vmem:[#allocation30_spill] sm:$0xff]  ;;  %v16629_v42 = vld [vmem:[#allocation117_spill] sm:$0xff]  ;;  %v16632_v24 = vld [vmem:[#allocation31_spill] sm:$0xff] }
 0x26b   : > { %v2180_v38 = vsel %vm2174_vm11, %v2147_v2, %v1859_v3  ;;  %v2083_v14 = vsel %vm2075_vm8, %v2050_v31, %v12008_v48  ;;  %v2181_v28 = vsel %vm2174_vm11, %v2148_v40, %v1861_v63  ;;  %v1954_v12 = vsel %vm277_vm0, %v16626_v11, %v16625_v59  ;;  %v16628_v41 = vld [vmem:[#allocation82_spill] sm:$0xff]  ;;  %v16633_v49 = vld [vmem:[#allocation40_spill] sm:$0xff]  ;;  %v16635_v62 = vld [vmem:[#allocation25_spill] sm:$0xff] }
 0x26c   : > { %9301 = vmatmul.mubr.msk.f32.gmra.mxu1 %vm16302_vm12, %v2180_v38  ;;  %v1986_v18 = vsel %vm1976_vm5, %v1953_v21, %v16627_v50  ;;  %v2084_v45 = vsel %vm2075_vm8, %v2051_v15, %v11993_v57  ;;  %v2116_v35 = vsel %vm2108_vm9, %v2083_v14, %v12149_v44  ;;  %v1987_v63 = vsel %vm1976_vm5, %v1954_v12, %v16628_v41  ;;  %v16630_v57 = vld [vmem:[#allocation114_spill] sm:$0xff]  ;;  %v16631_v44 = vld [vmem:[#allocation143_spill] sm:$0xff] }
 0x26d   : > { %9303 = vmatprep.mubr.msk.f32.mxu1 %vm16302_vm12, %v2181_v28  ;;  %v1869_v48 = vpop.permute.xlu0 %1868  ;;  %v2019_v13 = vsel %vm2009_vm6, %v1986_v18, %v16629_v42  ;;  %v2117_v46 = vsel %vm2108_vm9, %v2084_v45, %v12140_v8  ;;  %v2149_v22 = vsel %vm2141_vm10, %v2116_v35, %v12307_v43  ;;  %v2020_v37 = vsel %vm2009_vm6, %v1987_v63, %v16630_v57  ;;  %v16634_v8 = vld [vmem:[#allocation140_spill] sm:$0xff]  ;;  %v16636_v52 = vld [vmem:[#allocation34_spill] sm:$0xff]  ;;  %v16637_v21 = vld [vmem:[#allocation87_spill] sm:$0xff] }
 0x26e   : > { %v1863_v30 = vpop.permute.xlu1 %1862  ;;  %v2052_v2 = vsel %vm2042_vm7, %v2019_v13, %v16631_v44  ;;  %v2150_v3 = vsel %vm2141_vm10, %v2117_v46, %v12300_v27  ;;  %v1955_v31 = vsel %vm277_vm0, %v16633_v49, %v16632_v24  ;;  %v2053_v40 = vsel %vm2042_vm7, %v2020_v37, %v16634_v8  ;;  %v16638_v28 = vld [vmem:[#allocation84_spill] sm:$0xff]  ;;  %v16639_v59 = vld [vmem:[#allocation119_spill] sm:$0xff]  ;;  %v16645_v57 = vld [vmem:[#allocation29_spill] sm:$0xff] }
 0x26f   : > { %v2182_v34 = vsel %vm2174_vm11, %v2149_v22, %v1863_v30  ;;  %v2085_v43 = vsel %vm2075_vm8, %v2052_v2, %v12016_v10  ;;  %v2183_v38 = vsel %vm2174_vm11, %v2150_v3, %v1865_v60  ;;  %v1956_v27 = vsel %vm277_vm0, %v16636_v52, %v16635_v62  ;;  %v16642_v42 = vld [vmem:[#allocation35_spill] sm:$0xff]  ;;  %v16643_v13 = vld [vmem:[#allocation44_spill] sm:$0xff]  ;;  %v16646_v37 = vld [vmem:[#allocation38_spill] sm:$0xff] }
 0x270   : > { %9304 = vmatmul.mubr.msk.f32.gmra.mxu1 %vm16302_vm12, %v2182_v34  ;;  %v1988_v61 = vsel %vm1976_vm5, %v1955_v31, %v16637_v21  ;;  %v2086_v15 = vsel %vm2075_vm8, %v2053_v40, %v12006_v6  ;;  %v2118_v14 = vsel %vm2108_vm9, %v2085_v43, %v12157_v16  ;;  %v1989_v60 = vsel %vm1976_vm5, %v1956_v27, %v16638_v28  ;;  %v16640_v6 = vld [vmem:[#allocation116_spill] sm:$0xff]  ;;  %v16641_v16 = vld [vmem:[#allocation145_spill] sm:$0xff]  ;;  %v16648_v24 = vld [vmem:[#allocation86_spill] sm:$0xff] }
 0x271   : > { %9306 = vmatprep.mubr.msk.f32.mxu1 %vm16302_vm12, %v2183_v38  ;;  %v1873_v10 = vpop.permute.xlu0 %1872  ;;  %v2021_v11 = vsel %vm2009_vm6, %v1988_v61, %v16639_v59  ;;  %v2119_v12 = vsel %vm2108_vm9, %v2086_v15, %v12147_v17  ;;  %v2151_v50 = vsel %vm2141_vm10, %v2118_v14, %v12311_v39  ;;  %v2022_v45 = vsel %vm2009_vm6, %v1989_v60, %v16640_v6  ;;  %v16644_v17 = vld [vmem:[#allocation142_spill] sm:$0xff]  ;;  %v16647_v44 = vld [vmem:[#allocation89_spill] sm:$0xff]  ;;  %v16652_v21 = vld [vmem:[#allocation39_spill] sm:$0xff] }
 0x272   : > { %v1867_v18 = vpop.permute.xlu1 %1866  ;;  %v2054_v35 = vsel %vm2042_vm7, %v2021_v11, %v16641_v16  ;;  %v2152_v41 = vsel %vm2141_vm10, %v2119_v12, %v12305_v5  ;;  %v1957_v46 = vsel %vm277_vm0, %v16643_v13, %v16642_v42  ;;  %v2055_v22 = vsel %vm2042_vm7, %v2022_v45, %v16644_v17  ;;  %v16649_v49 = vld [vmem:[#allocation121_spill] sm:$0xff]  ;;  %v16653_v61 = vld [vmem:[#allocation48_spill] sm:$0xff]  ;;  %v16656_v59 = vld [vmem:[#allocation42_spill] sm:$0xff] }
 0x273   : > { %v2184_v63 = vsel %vm2174_vm11, %v2151_v50, %v1867_v18  ;;  %v2087_v39 = vsel %vm2075_vm8, %v2054_v35, %v12024_v23  ;;  %v2185_v30 = vsel %vm2174_vm11, %v2152_v41, %v1869_v48  ;;  %v1958_v5 = vsel %vm277_vm0, %v16646_v37, %v16645_v57  ;;  %v16655_v60 = vld [vmem:[#allocation33_spill] sm:$0xff]  ;;  %v16657_v11 = vld [vmem:[#allocation91_spill] sm:$0xff]  ;;  %v16658_v6 = vld [vmem:[#allocation88_spill] sm:$0xff] }
 0x274   : > { %9307 = vmatmul.mubr.msk.f32.gmra.mxu1 %vm16302_vm12, %v2184_v63  ;;  %v1990_v2 = vsel %vm1976_vm5, %v1957_v46, %v16647_v44  ;;  %v2088_v3 = vsel %vm2075_vm8, %v2055_v22, %v12014_v1  ;;  %v2120_v34 = vsel %vm2108_vm9, %v2087_v39, %v12165_v47  ;;  %v1991_v48 = vsel %vm1976_vm5, %v1958_v5, %v16648_v24  ;;  %v16650_v1 = vld [vmem:[#allocation118_spill] sm:$0xff]  ;;  %v16651_v47 = vld [vmem:[#allocation147_spill] sm:$0xff]  ;;  %v16663_v39 = vld [vmem:[#allocation52_spill] sm:$0xff] }
 0x275   : > { %9309 = vmatprep.mubr.msk.f32.mxu1 %vm16302_vm12, %v2185_v30  ;;  %v1877_v23 = vpop.permute.xlu0 %1876  ;;  %v2023_v31 = vsel %vm2009_vm6, %v1990_v2, %v16649_v49  ;;  %v2121_v8 = vsel %vm2108_vm9, %v2088_v3, %v12155_v53  ;;  %v2153_v40 = vsel %vm2141_vm10, %v2120_v34, %v12315_v4  ;;  %v2024_v38 = vsel %vm2009_vm6, %v1991_v48, %v16650_v1  ;;  %v16654_v53 = vld [vmem:[#allocation144_spill] sm:$0xff]  ;;  %v16659_v45 = vld [vmem:[#allocation123_spill] sm:$0xff]  ;;  %v16665_v5 = vld [vmem:[#allocation37_spill] sm:$0xff] }
 0x276   : > { %v1871_v43 = vpop.permute.xlu1 %1870  ;;  %v2056_v62 = vsel %vm2042_vm7, %v2023_v31, %v16651_v47  ;;  %v2154_v52 = vsel %vm2141_vm10, %v2121_v8, %v12309_v19  ;;  %v1959_v15 = vsel %vm277_vm0, %v16653_v61, %v16652_v21  ;;  %v2057_v14 = vsel %vm2042_vm7, %v2024_v38, %v16654_v53  ;;  %v16662_v22 = vld [vmem:[#allocation43_spill] sm:$0xff]  ;;  %v16666_v44 = vld [vmem:[#allocation46_spill] sm:$0xff]  ;;  %v16667_v2 = vld [vmem:[#allocation93_spill] sm:$0xff] }
 0x277   : > { %v2186_v27 = vsel %vm2174_vm11, %v2153_v40, %v1871_v43  ;;  %v2089_v4 = vsel %vm2075_vm8, %v2056_v62, %v12032_v26  ;;  %v2187_v28 = vsel %vm2174_vm11, %v2154_v52, %v1873_v10  ;;  %v1960_v19 = vsel %vm277_vm0, %v16656_v59, %v16655_v60  ;;  %v16668_v48 = vld [vmem:[#allocation90_spill] sm:$0xff]  ;;  %v16669_v49 = vld [vmem:[#allocation125_spill] sm:$0xff]  ;;  %v16672_v52 = vld [vmem:[#allocation47_spill] sm:$0xff] }
 0x278   : > { %9310 = vmatmul.mubr.msk.f32.gmra.mxu1 %vm16302_vm12, %v2186_v27  ;;  %v1992_v12 = vsel %vm1976_vm5, %v1959_v15, %v16657_v11  ;;  %v2090_v50 = vsel %vm2075_vm8, %v2057_v14, %v12022_v32  ;;  %v2122_v18 = vsel %vm2108_vm9, %v2089_v4, %v12173_v29  ;;  %v1993_v10 = vsel %vm1976_vm5, %v1960_v19, %v16658_v6  ;;  %v16660_v32 = vld [vmem:[#allocation120_spill] sm:$0xff]  ;;  %v16661_v29 = vld [vmem:[#allocation149_spill] sm:$0xff]  ;;  %v16676_v14 = vld [vmem:[#allocation50_spill] sm:$0xff] }
 0x279   : > { %9312 = vmatprep.mubr.msk.f32.mxu1 %vm16302_vm12, %v2187_v28  ;;  %v1881_v26 = vpop.permute.xlu0 %1880  ;;  %v2025_v16 = vsel %vm2009_vm6, %v1992_v12, %v16659_v45  ;;  %v2123_v35 = vsel %vm2108_vm9, %v2090_v50, %v12163_v56  ;;  %v2155_v41 = vsel %vm2141_vm10, %v2122_v18, %v12319_v55  ;;  %v2026_v42 = vsel %vm2009_vm6, %v1993_v10, %v16660_v32  ;;  %v16664_v56 = vld [vmem:[#allocation146_spill] sm:$0xff]  ;;  %v16673_v27 = vld [vmem:[#allocation56_spill] sm:$0xff]  ;;  %v16675_v53 = vld [vmem:[#allocation41_spill] sm:$0xff] }
 0x27a   : > { %v1875_v63 = vpop.permute.xlu1 %1874  ;;  %v2058_v13 = vsel %vm2042_vm7, %v2025_v16, %v16661_v29  ;;  %v2156_v46 = vsel %vm2141_vm10, %v2123_v35, %v12313_v0  ;;  %v1961_v30 = vsel %vm277_vm0, %v16663_v39, %v16662_v22  ;;  %v2059_v57 = vsel %vm2042_vm7, %v2026_v42, %v16664_v56  ;;  %v16677_v4 = vld [vmem:[#allocation95_spill] sm:$0xff]  ;;  %v16678_v19 = vld [vmem:[#allocation92_spill] sm:$0xff]  ;;  %v16681_v6 = vld [vmem:[#allocation9_spill] sm:$0xff] }
 0x27b   : > { %v2188_v17 = vsel %vm2174_vm11, %v2155_v41, %v1875_v63  ;;  %v2091_v55 = vsel %vm2075_vm8, %v2058_v13, %v12040_v20  ;;  %v2189_v37 = vsel %vm2174_vm11, %v2156_v46, %v1877_v23  ;;  %v1962_v0 = vsel %vm277_vm0, %v16666_v44, %v16665_v5  ;;  %v16679_v12 = vld [vmem:[#allocation127_spill] sm:$0xff]  ;;  %v16680_v18 = vld [vmem:[#allocation188_spill] sm:$0xff]  ;;  %v16684_v41 = vld [vmem:[#allocation173_spill] sm:$0xff] }
 0x27c   : > { %9313 = vmatmul.mubr.msk.f32.gmra.mxu1 %vm16302_vm12, %v2188_v17  ;;  %v1994_v3 = vsel %vm1976_vm5, %v1961_v30, %v16667_v2  ;;  %v2092_v34 = vsel %vm2075_vm8, %v2059_v57, %v12030_v33  ;;  %v2124_v24 = vsel %vm2108_vm9, %v2091_v55, %v12181_v58  ;;  %v1995_v23 = vsel %vm1976_vm5, %v1962_v0, %v16668_v48  ;;  %v16670_v33 = vld [vmem:[#allocation122_spill] sm:$0xff]  ;;  %v16671_v58 = vld [vmem:[#allocation151_spill] sm:$0xff]  ;;  %v16686_v29 = vld [vmem:[#allocation60_spill] sm:$0xff] }
 0x27d   : > { %9315 = vmatprep.mubr.msk.f32.mxu1 %vm16302_vm12, %v2189_v37  ;;  %v1885_v20 = vpop.permute.xlu0 %1884  ;;  %v2027_v31 = vsel %vm2009_vm6, %v1994_v3, %v16669_v49  ;;  %v2125_v8 = vsel %vm2108_vm9, %v2092_v34, %v12171_v51  ;;  %v2157_v40 = vsel %vm2141_vm10, %v2124_v24, %v12323_v36  ;;  %v2028_v1 = vsel %vm2009_vm6, %v1995_v23, %v16670_v33  ;;  %v16674_v51 = vld [vmem:[#allocation148_spill] sm:$0xff]  ;;  %v16685_v42 = vld [vmem:[#allocation51_spill] sm:$0xff]  ;;  %v16687_v46 = vld [vmem:[#allocation150_spill] sm:$0xff] }
 0x27e   : > { %v1879_v43 = vpop.permute.xlu1 %1878  ;;  %v2060_v38 = vsel %vm2042_vm7, %v2027_v31, %v16671_v58  ;;  %v2158_v47 = vsel %vm2141_vm10, %v2125_v8, %v12317_v25  ;;  %v1963_v21 = vsel %vm277_vm0, %v16673_v27, %v16672_v52  ;;  %v2061_v61 = vsel %vm2042_vm7, %v2028_v1, %v16674_v51  ;;  %v16688_v22 = vld [vmem:[#allocation177_spill] sm:$0xff]  ;;  %v16690_v57 = vld [vmem:[#allocation54_spill] sm:$0xff]  ;;  %v16692_v44 = vld [vmem:[#allocation175_spill] sm:$0xff] }
 0x27f   : > { %v2190_v62 = vsel %vm2174_vm11, %v2157_v40, %v1879_v43  ;;  %v2093_v36 = vsel %vm2075_vm8, %v2060_v38, %v12048_v7  ;;  %v2191_v15 = vsel %vm2174_vm11, %v2158_v47, %v1881_v26  ;;  %v1964_v25 = vsel %vm277_vm0, %v16676_v14, %v16675_v53  ;;  %v16689_v56 = vld [vmem:[#allocation45_spill] sm:$0xff]  ;;  %v16693_v2 = vld [vmem:[#allocation191_spill] sm:$0xff]  ;;  %v16694_v24 = vld [vmem:[#allocation94_spill] sm:$0xff] }
 0x280   : > { %9316 = vmatmul.mubr.msk.f32.gmra.mxu1 %vm16302_vm12, %v2190_v62  ;;  %v1996_v28 = vsel %vm1976_vm5, %v1963_v21, %v16677_v4  ;;  %v2094_v60 = vsel %vm2075_vm8, %v2061_v61, %v12038_v54  ;;  %v2126_v59 = vsel %vm2108_vm9, %v2093_v36, %v12189_v9  ;;  %v1997_v11 = vsel %vm1976_vm5, %v1964_v25, %v16678_v19  ;;  %v16682_v54 = vld [vmem:[#allocation124_spill] sm:$0xff]  ;;  %v16683_v9 = vld [vmem:[#allocation153_spill] sm:$0xff]  ;;  %v16697_v8 = vld [vmem:[#allocation174_spill] sm:$0xff] }
 0x281   : > { %9318 = vmatprep.mubr.msk.f32.mxu1 %vm16302_vm12, %v2191_v15  ;;  %v1889_v7 = vpop.permute.xlu0 %1888  ;;  %v2029_v50 = vsel %vm2009_vm6, %v1996_v28, %v16679_v12  ;;  %v2127_v26 = vsel %vm2108_vm9, %v2094_v60, %v16680_v18  ;;  %v2159_v10 = vsel %vm2141_vm10, %v2126_v59, %v16681_v6  ;;  %v2030_v16 = vsel %vm2009_vm6, %v1997_v11, %v16682_v54  ;;  %v16691_v37 = vld [vmem:[#allocation97_spill] sm:$0xff]  ;;  %v16698_v33 = vld [vmem:[#allocation126_spill] sm:$0xff]  ;;  %v16699_v58 = vld [vmem:[#allocation155_spill] sm:$0xff] }
 0x282   : > { %v1883_v45 = vpop.permute.xlu1 %1882  ;;  %v2062_v35 = vsel %vm2042_vm7, %v2029_v50, %v16683_v9  ;;  %v2160_v63 = vsel %vm2141_vm10, %v2127_v26, %v16684_v41  ;;  %v1965_v13 = vsel %vm277_vm0, %v16686_v29, %v16685_v42  ;;  %v2063_v17 = vsel %vm2042_vm7, %v2030_v16, %v16687_v46  ;;  %v16695_v48 = vld [vmem:[#allocation129_spill] sm:$0xff]  ;;  %v16701_v27 = vld [vmem:[#allocation55_spill] sm:$0xff]  ;;  %v16702_v21 = vld [vmem:[#allocation64_spill] sm:$0xff] }
 0x283   : > { %v2192_v32 = vsel %vm2174_vm11, %v2159_v10, %v1883_v45  ;;  %v2095_v39 = vsel %vm2075_vm8, %v2062_v35, %v16688_v22  ;;  %v2193_v30 = vsel %vm2174_vm11, %v2160_v63, %v1885_v20  ;;  %v1966_v55 = vsel %vm277_vm0, %v16690_v57, %v16689_v56  ;;  %v16696_v49 = vld [vmem:[#allocation189_spill] sm:$0xff]  ;;  %v16703_v61 = vld [vmem:[#allocation152_spill] sm:$0xff]  ;;  %v16704_v15 = vld [vmem:[#allocation179_spill] sm:$0xff] }
 0x284   : > { %9319 = vmatmul.mubr.msk.f32.gmra.mxu1 %vm16302_vm12, %v2192_v32  ;;  %v1998_v5 = vsel %vm1976_vm5, %v1965_v13, %v16691_v37  ;;  %v2096_v0 = vsel %vm2075_vm8, %v2063_v17, %v16692_v44  ;;  %v2128_v3 = vsel %vm2108_vm9, %v2095_v39, %v16693_v2  ;;  %v1999_v20 = vsel %vm1976_vm5, %v1966_v55, %v16694_v24  ;;  %v16700_v47 = vld [vmem:[#allocation73_spill] sm:$0xff]  ;;  %v16706_v4 = vld [vmem:[#allocation58_spill] sm:$0xff]  ;;  %v16707_v60 = vld [vmem:[#allocation99_spill] sm:$0xff] }
 0x285   : > { %9321 = vmatprep.mubr.msk.f32.mxu1 %vm16302_vm12, %v2193_v30  ;;  %v1893_v34 = vpop.permute.xlu0 %1892  ;;  %v2031_v23 = vsel %vm2009_vm6, %v1998_v5, %v16695_v48  ;;  %v2129_v31 = vsel %vm2108_vm9, %v2096_v0, %v16696_v49  ;;  %v2161_v40 = vsel %vm2141_vm10, %v2128_v3, %v16697_v8  ;;  %v2032_v1 = vsel %vm2009_vm6, %v1999_v20, %v16698_v33  ;;  %v16705_v25 = vld [vmem:[#allocation49_spill] sm:$0xff]  ;;  %v16708_v19 = vld [vmem:[#allocation176_spill] sm:$0xff]  ;;  %v16711_v6 = vld [vmem:[#allocation131_spill] sm:$0xff] }
 0x286   : > { %v1887_v43 = vpop.permute.xlu1 %1886  ;;  %v2064_v38 = vsel %vm2042_vm7, %v2031_v23, %v16699_v58  ;;  %v2162_v62 = vsel %vm2141_vm10, %v2129_v31, %v16700_v47  ;;  %v1967_v51 = vsel %vm277_vm0, %v16702_v21, %v16701_v27  ;;  %v2065_v36 = vsel %vm2042_vm7, %v2032_v1, %v16703_v61  ;;  %v16709_v12 = vld [vmem:[#allocation193_spill] sm:$0xff]  ;;  %v16710_v26 = vld [vmem:[#allocation96_spill] sm:$0xff]  ;;  %v16712_v45 = vld [vmem:[#allocation190_spill] sm:$0xff] }
 0x287   : > { %v2194_v52 = vsel %vm2174_vm11, %v2161_v40, %v1887_v43  ;;  %v2097_v53 = vsel %vm2075_vm8, %v2064_v38, %v16704_v15  ;;  %v2195_v14 = vsel %vm2174_vm11, %v2162_v62, %v1889_v7  ;;  %v1968_v28 = vsel %vm277_vm0, %v16706_v4, %v16705_v25  ;;  %v16713_v16 = vld [vmem:[#allocation201_spill] sm:$0xff]  ;;  %v16714_v41 = vld [vmem:[#allocation128_spill] sm:$0xff]  ;;  %v16716_v29 = vld [vmem:[#allocation170_spill] sm:$0xff] }
 0x288   : > { %9322 = vmatmul.mubr.msk.f32.gmra.mxu1 %vm16302_vm12, %v2194_v52  ;;  %v2000_v59 = vsel %vm1976_vm5, %v1967_v51, %v16707_v60  ;;  %v2098_v11 = vsel %vm2075_vm8, %v2065_v36, %v16708_v19  ;;  %v2130_v50 = vsel %vm2108_vm9, %v2097_v53, %v16709_v12  ;;  %v2001_v7 = vsel %vm1976_vm5, %v1968_v28, %v16710_v26  ;;  %v16715_v32 = vld [vmem:[#allocation157_spill] sm:$0xff]  ;;  %v16717_v17 = vld [vmem:[#allocation59_spill] sm:$0xff]  ;;  %v16718_v22 = vld [vmem:[#allocation68_spill] sm:$0xff] }
 0x289   : > { %9324 = vmatprep.mubr.msk.f32.mxu1 %vm16302_vm12, %v2195_v14  ;;  %v1897_v18 = vpop.permute.xlu0 %1896  ;;  %v2033_v10 = vsel %vm2009_vm6, %v2000_v59, %v16711_v6  ;;  %v2131_v54 = vsel %vm2108_vm9, %v2098_v11, %v16712_v45  ;;  %v2163_v9 = vsel %vm2141_vm10, %v2130_v50, %v16713_v16  ;;  %v2034_v63 = vsel %vm2009_vm6, %v2001_v7, %v16714_v41  ;;  %v16719_v30 = vld [vmem:[#allocation154_spill] sm:$0xff]  ;;  %v16720_v57 = vld [vmem:[#allocation181_spill] sm:$0xff]  ;;  %v16725_v48 = vld [vmem:[#allocation195_spill] sm:$0xff] }
 0x28a   : > { %v1891_v35 = vpop.permute.xlu1 %1890  ;;  %v2066_v42 = vsel %vm2042_vm7, %v2033_v10, %v16715_v32  ;;  %v2164_v13 = vsel %vm2141_vm10, %v2131_v54, %v16716_v29  ;;  %v1969_v39 = vsel %vm277_vm0, %v16718_v22, %v16717_v17  ;;  %v2067_v56 = vsel %vm2042_vm7, %v2034_v63, %v16719_v30  ;;  %v16721_v5 = vld [vmem:[#allocation53_spill] sm:$0xff]  ;;  %v16722_v44 = vld [vmem:[#allocation62_spill] sm:$0xff]  ;;  %v16728_v43 = vld [vmem:[#allocation192_spill] sm:$0xff] }
 0x28b   : > { %v2196_v46 = vsel %vm2174_vm11, %v2163_v9, %v1891_v35  ;;  %v2099_v55 = vsel %vm2075_vm8, %v2066_v42, %v16720_v57  ;;  %v2197_v37 = vsel %vm2174_vm11, %v2164_v13, %v1893_v34  ;;  %v1970_v0 = vsel %vm277_vm0, %v16722_v44, %v16721_v5  ;;  %v16723_v2 = vld [vmem:[#allocation101_spill] sm:$0xff]  ;;  %v16724_v24 = vld [vmem:[#allocation178_spill] sm:$0xff]  ;;  %v16729_v1 = vld [vmem:[#allocation203_spill] sm:$0xff] }
 0x28c   : > { %9325 = vmatmul.mubr.msk.f32.gmra.mxu1 %vm16302_vm12, %v2196_v46  ;;  %v2002_v3 = vsel %vm1976_vm5, %v1969_v39, %v16723_v2  ;;  %v2100_v20 = vsel %vm2075_vm8, %v2067_v56, %v16724_v24  ;;  %v2132_v23 = vsel %vm2108_vm9, %v2099_v55, %v16725_v48  ;;  %v16726_v31 = vld [vmem:[#allocation98_spill] sm:$0xff]  ;;  %v16727_v8 = vld [vmem:[#allocation133_spill] sm:$0xff]  ;;  %v16731_v52 = vld [vmem:[#allocation159_spill] sm:$0xff] }
 0x28d   : > { %9327 = vmatprep.mubr.msk.f32.mxu1 %vm16302_vm12, %v2197_v37  ;;  %v1901_v49 = vpop.permute.xlu0 %1900  ;;  %v2003_v34 = vsel %vm1976_vm5, %v1970_v0, %v16726_v31  ;;  %v2035_v40 = vsel %vm2009_vm6, %v2002_v3, %v16727_v8  ;;  %v2133_v33 = vsel %vm2108_vm9, %v2100_v20, %v16728_v43  ;;  %v2165_v58 = vsel %vm2141_vm10, %v2132_v23, %v16729_v1  ;;  %v16730_v47 = vld [vmem:[#allocation130_spill] sm:$0xff]  ;;  %v16732_v21 = vld [vmem:[#allocation200_spill] sm:$0xff]  ;;  %v16733_v36 = vld [vmem:[#allocation63_spill] sm:$0xff] }
 0x28e   : > { %v1895_v38 = vpop.permute.xlu1 %1894  ;;  %v2036_v62 = vsel %vm2009_vm6, %v2003_v34, %v16730_v47  ;;  %v2068_v27 = vsel %vm2042_vm7, %v2035_v40, %v16731_v52  ;;  %v2166_v51 = vsel %vm2141_vm10, %v2133_v33, %v16732_v21  ;;  %v16734_v15 = vld [vmem:[#allocation72_spill] sm:$0xff]  ;;  %v16736_v4 = vld [vmem:[#allocation183_spill] sm:$0xff]  ;;  %v16737_v59 = vld [vmem:[#allocation57_spill] sm:$0xff] }
 0x28f   : > { %v2198_v61 = vsel %vm2174_vm11, %v2165_v58, %v1895_v38  ;;  %v1971_v53 = vsel %vm277_vm0, %v16734_v15, %v16733_v36  ;;  %v16735_v14 = vld [vmem:[#allocation156_spill] sm:$0xff]  ;;  %v2101_v28 = vsel %vm2075_vm8, %v2068_v27, %v16736_v4  ;;  %v2199_v60 = vsel %vm2174_vm11, %v2166_v51, %v1897_v18  ;;  %v16738_v19 = vld [vmem:[#allocation66_spill] sm:$0xff]  ;;  %v16739_v12 = vld [vmem:[#allocation103_spill] sm:$0xff] }
 0x290   : > { %v2069_v25 = vsel %vm2042_vm7, %v2036_v62, %v16735_v14  ;;  %9328 = vmatmul.mubr.msk.f32.gmra.mxu1 %vm16302_vm12, %v2198_v61  ;;  %v1972_v11 = vsel %vm277_vm0, %v16738_v19, %v16737_v59  ;;  %v2004_v50 = vsel %vm1976_vm5, %v1971_v53, %v16739_v12  ;;  %v16740_v26 = vld [vmem:[#allocation180_spill] sm:$0xff]  ;;  %v16741_v6 = vld [vmem:[#allocation197_spill] sm:$0xff]  ;;  %v16743_v54 = vld [vmem:[#allocation135_spill] sm:$0xff] }
 0x291   : > { %v2102_v7 = vsel %vm2075_vm8, %v2069_v25, %v16740_v26  ;;  %v2134_v10 = vsel %vm2108_vm9, %v2101_v28, %v16741_v6  ;;  %9330 = vmatprep.mubr.msk.f32.mxu1 %vm16302_vm12, %v2199_v60  ;;  %v16742_v45 = vld [vmem:[#allocation100_spill] sm:$0xff]  ;;  %v2037_v16 = vsel %vm2009_vm6, %v2004_v50, %v16743_v54  ;;  %v16744_v9 = vld [vmem:[#allocation194_spill] sm:$0xff]  ;;  %v16745_v41 = vld [vmem:[#allocation205_spill] sm:$0xff]  ;;  %v1905_v39 = vpop.permute.xlu0 %1904 }
 0x292   : > { %v2005_v18 = vsel %vm1976_vm5, %v1972_v11, %v16742_v45  ;;  %v2135_v35 = vsel %vm2108_vm9, %v2102_v7, %v16744_v9  ;;  %v2167_v63 = vsel %vm2141_vm10, %v2134_v10, %v16745_v41  ;;  %v1899_v32 = vpop.permute.xlu1 %1898  ;;  %v16746_v42 = vld [vmem:[#allocation132_spill] sm:$0xff]  ;;  %v16747_v13 = vld [vmem:[#allocation161_spill] sm:$0xff]  ;;  %v16748_v17 = vld [vmem:[#allocation202_spill] sm:$0xff] }
 0x293   : > { %v2038_v29 = vsel %vm2009_vm6, %v2005_v18, %v16746_v42  ;;  %v2070_v46 = vsel %vm2042_vm7, %v2037_v16, %v16747_v13  ;;  %v2168_v22 = vsel %vm2141_vm10, %v2135_v35, %v16748_v17  ;;  %v2200_v30 = vsel %vm2174_vm11, %v2167_v63, %v1899_v32  ;;  %v16749_v56 = vld [vmem:[#allocation67_spill] sm:$0xff]  ;;  %v16750_v57 = vld [vmem:[#allocation76_spill] sm:$0xff]  ;;  %v16751_v37 = vld [vmem:[#allocation158_spill] sm:$0xff] }
 0x294   : > { %v1973_v55 = vsel %vm277_vm0, %v16750_v57, %v16749_v56  ;;  %v2071_v5 = vsel %vm2042_vm7, %v2038_v29, %v16751_v37  ;;  %v16752_v44 = vld [vmem:[#allocation185_spill] sm:$0xff]  ;;  %v2201_v2 = vsel %vm2174_vm11, %v2168_v22, %v1901_v49  ;;  %9331 = vmatmul.mubr.msk.f32.gmra.mxu1 %vm16302_vm12, %v2200_v30  ;;  %v16754_v24 = vld [vmem:[#allocation70_spill] sm:$0xff]  ;;  %v16757_v8 = vld [vmem:[#allocation199_spill] sm:$0xff] }
 0x295   : > { %v2103_v0 = vsel %vm2075_vm8, %v2070_v46, %v16752_v44  ;;  %v16753_v3 = vld [vmem:[#allocation61_spill] sm:$0xff]  ;;  %v16756_v31 = vld [vmem:[#allocation182_spill] sm:$0xff]  ;;  %9333 = vmatprep.mubr.msk.f32.mxu1 %vm16302_vm12, %v2201_v2  ;;  %v16759_v33 = vld [vmem:[#allocation136_spill] sm:$0xff]  ;;  %v1909_v45 = vpop.permute.xlu0 %1908  ;;  %v16780_v44 = vmov 0.0  }
 0x296   : > { %v1974_v20 = vsel %vm277_vm0, %v16754_v24, %v16753_v3  ;;  %v16755_v48 = vld [vmem:[#allocation105_spill] sm:$0xff]  ;;  %v2104_v34 = vsel %vm2075_vm8, %v2071_v5, %v16756_v31  ;;  %v2136_v40 = vsel %vm2108_vm9, %v2103_v0, %v16757_v8  ;;  %v16758_v43 = vld [vmem:[#allocation102_spill] sm:$0xff]  ;;  %v16760_v58 = vld [vmem:[#allocation196_spill] sm:$0xff]  ;;  %v1903_v52 = vpop.permute.xlu1 %1902  ;;  %338 = vst.msk [vmem:[#allocation3 + $0x18] sm:$0xff] %vm333_vm13, %v16780_v44 }
 0x297   : > { %v2006_v23 = vsel %vm1976_vm5, %v1973_v55, %v16755_v48  ;;  %v2007_v49 = vsel %vm1976_vm5, %v1974_v20, %v16758_v43  ;;  %v2137_v38 = vsel %vm2108_vm9, %v2104_v34, %v16760_v58  ;;  %v16761_v47 = vld [vmem:[#allocation65_spill] sm:$0xff]  ;;  %v16762_v27 = vld [vmem:[#allocation134_spill] sm:$0xff]  ;;  %v16763_v51 = vld [vmem:[#allocation163_spill] sm:$0xff]  ;;  %339 = vst.msk [vmem:[#allocation3 + $0x20] sm:$0xff] %vm333_vm13, %v16780_v44 }
 0x298   : > { %v2039_v1 = vsel %vm2009_vm6, %v2006_v23, %v16759_v33  ;;  %v2169_v62 = vsel %vm2141_vm10, %v2136_v40, %v16761_v47  ;;  %v2040_v21 = vsel %vm2009_vm6, %v2007_v49, %v16762_v27  ;;  %v16764_v36 = vld [vmem:[#allocation204_spill] sm:$0xff]  ;;  %v16765_v14 = vld [vmem:[#allocation71_spill] sm:$0xff]  ;;  %v16768_v59 = vld [vmem:[#allocation186_spill] sm:$0xff]  ;;  %334 = vst.msk [vmem:[#allocation3] sm:$0xff] %vm333_vm13, %v16780_v44 }
 0x299   : > { %v2072_v61 = vsel %vm2042_vm7, %v2039_v1, %v16763_v51  ;;  %v2170_v15 = vsel %vm2141_vm10, %v2137_v38, %v16764_v36  ;;  %v2202_v53 = vsel %vm2174_vm11, %v2169_v62, %v1903_v52  ;;  %v16766_v25 = vld [vmem:[#allocation79_spill] sm:$0xff]  ;;  %v16767_v28 = vld [vmem:[#allocation160_spill] sm:$0xff]  ;;  %v16771_v6 = vld [vmem:[#allocation169_spill] sm:$0xff]  ;;  %335 = vst.msk [vmem:[#allocation3 + $0x8] sm:$0xff] %vm333_vm13, %v16780_v44 }
 0x29a   : > { %v1975_v4 = vsel %vm277_vm0, %v16766_v25, %v16765_v14  ;;  %v2073_v60 = vsel %vm2042_vm7, %v2040_v21, %v16767_v28  ;;  %v2105_v19 = vsel %vm2075_vm8, %v2072_v61, %v16768_v59  ;;  %v2203_v11 = vsel %vm2174_vm11, %v2170_v15, %v1905_v39  ;;  %9334 = vmatmul.mubr.msk.f32.gmra.mxu1 %vm16302_vm12, %v2202_v53  ;;  %v16769_v12 = vld [vmem:[#allocation107_spill] sm:$0xff]  ;;  %v16770_v26 = vld [vmem:[#allocation184_spill] sm:$0xff]  ;;  %v16773_v16 = vld [vmem:[#allocation198_spill] sm:$0xff]  ;;  %v1907_v63 = vpop.permute.xlu1 %1906 }
 0x29b   : > { %v2008_v50 = vsel %vm1976_vm5, %v1975_v4, %v16769_v12  ;;  %v2106_v7 = vsel %vm2075_vm8, %v2073_v60, %v16770_v26  ;;  %v2138_v10 = vsel %vm2108_vm9, %v2105_v19, %v16771_v6  ;;  %9336 = vmatprep.mubr.msk.f32.mxu1 %vm16302_vm12, %v2203_v11  ;;  %v16772_v18 = vld [vmem:[#allocation8_spill] sm:$0xff]  ;;  %v16775_v32 = vld [vmem:[#allocation166_spill] sm:$0xff]  ;;  %v16777_v17 = vld [vmem:[#allocation187_spill] sm:$0xff]  ;;  %341 = vst.msk [vmem:[#allocation3 + $0x30] sm:$0xff] %vm333_vm13, %v16780_v44 }
 0x29c   : > { %v2041_v54 = vsel %vm2009_vm6, %v2008_v50, %v16772_v18  ;;  %v2139_v9 = vsel %vm2108_vm9, %v2106_v7, %v16773_v16  ;;  %v16774_v35 = vld [vmem:[#allocation104_spill] sm:$0xff]  ;;  %v16779_v57 = vld [vmem:[#allocation5_spill] sm:$0xff]  ;;  %342 = vst.msk [vmem:[#allocation3 + $0x38] sm:$0xff] %vm333_vm13, %v16780_v44  ;;  %344 = vst.msk [vmem:[#allocation3 + $0x48] sm:$0xff] %vm333_vm13, %v16780_v44 }
 0x29d   : > { %v2171_v41 = vsel %vm2141_vm10, %v2138_v10, %v16774_v35  ;;  %v2074_v42 = vsel %vm2042_vm7, %v2041_v54, %v16775_v32  ;;  %v16776_v29 = vld [vmem:[#allocation4_spill] sm:$0xff]  ;;  %345 = vst.msk [vmem:[#allocation3 + $0x50] sm:$0xff] %vm333_vm13, %v16780_v44  ;;  %347 = vst.msk [vmem:[#allocation3 + $0x60] sm:$0xff] %vm333_vm13, %v16780_v44 }
 0x29e   : > { %v2172_v13 = vsel %vm2141_vm10, %v2139_v9, %v16776_v29  ;;  %v2204_v46 = vsel %vm2174_vm11, %v2171_v41, %v1907_v63  ;;  %v2107_v22 = vsel %vm2075_vm8, %v2074_v42, %v16777_v17  ;;  %v16778_v30 = vld [vmem:[#allocation164_spill] sm:$0xff]  ;;  %v1911_v37 = vpop.permute.xlu1 %1910  ;;  %348 = vst.msk [vmem:[#allocation3 + $0x68] sm:$0xff] %vm333_vm13, %v16780_v44  ;;  %350 = vst.msk [vmem:[#allocation3 + $0x78] sm:$0xff] %vm333_vm13, %v16780_v44 }
 0x29f   : > { %v2205_v39 = vsel %vm2174_vm11, %v2172_v13, %v1909_v45  ;;  %9337 = vmatmul.mubr.msk.f32.gmra.mxu1 %vm16302_vm12, %v2204_v46  ;;  %v2140_v56 = vsel %vm2108_vm9, %v2107_v22, %v16778_v30  ;;  %351 = vst.msk [vmem:[#allocation3 + $0x80] sm:$0xff] %vm333_vm13, %v16780_v44  ;;  %353 = vst.msk [vmem:[#allocation3 + $0x90] sm:$0xff] %vm333_vm13, %v16780_v44  ;;  %v12971_v24 = vld [vmem:[%s16162_s2] ss:$0 sm:$0xff] }
 0x2a0   : > { %9339 = vmatprep.mubr.msk.f32.mxu1 %vm16302_vm12, %v2205_v39  ;;  %v2173_v55 = vsel %vm2141_vm10, %v2140_v56, %v16779_v57  ;;  %354 = vst.msk [vmem:[#allocation3 + $0x98] sm:$0xff] %vm333_vm13, %v16780_v44  ;;  %356 = vst.msk [vmem:[#allocation3 + $0xa8] sm:$0xff] %vm333_vm13, %v16780_v44  ;;  %v2817_v0 = vld [vmem:[#allocation3 + $0x1] sm:$0xff]  ;;  %v2818_v2 = vld [vmem:[#allocation3 + $0x9] sm:$0xff] }
 0x2a1   : > { %v2206_v5 = vsel %vm2174_vm11, %v2173_v55, %v1911_v37  ;;  %357 = vst.msk [vmem:[#allocation3 + $0xb0] sm:$0xff] %vm333_vm13, %v16780_v44  ;;  %359 = vst.msk [vmem:[#allocation3 + $0xc0] sm:$0xff] %vm333_vm13, %v16780_v44  ;;  %v9434_v3 = vpack.i.bf16 %v2818_v2, %v2817_v0 }
 0x2a2   : > { %360 = vst.msk [vmem:[#allocation3 + $0xc8] sm:$0xff] %vm333_vm13, %v16780_v44  ;;  %362 = vst.msk [vmem:[#allocation3 + $0xd8] sm:$0xff] %vm333_vm13, %v16780_v44 }
 0x2a3   : > { %9340 = vmatmul.mubr.msk.f32.gmra.mxu1 %vm16302_vm12, %v2206_v5  ;;  %363 = vst.msk [vmem:[#allocation3 + $0xe0] sm:$0xff] %vm333_vm13, %v16780_v44  ;;  %365 = vst.msk [vmem:[#allocation3 + $0xf0] sm:$0xff] %vm333_vm13, %v16780_v44  ;;  %9435 = vrot.lane.b32.xlu0 %v9434_v3, %s10604_s26  ;;  %vm16310_vm12 = vcmask 916480  }
 0x2a4   : > { %366 = vst.msk [vmem:[#allocation3 + $0xf8] sm:$0xff] %vm333_vm13, %v16780_v44  ;;  %368 = vst.msk [vmem:[#allocation3 + $0x108] sm:$0xff] %vm333_vm13, %v16780_v44 }
 0x2a5   : > { %369 = vst.msk [vmem:[#allocation3 + $0x110] sm:$0xff] %vm333_vm13, %v16780_v44  ;;  %371 = vst.msk [vmem:[#allocation3 + $0x120] sm:$0xff] %vm333_vm13, %v16780_v44 }
 0x2a6   : > { %372 = vst.msk [vmem:[#allocation3 + $0x128] sm:$0xff] %vm333_vm13, %v16780_v44  ;;  %374 = vst.msk [vmem:[#allocation3 + $0x138] sm:$0xff] %vm333_vm13, %v16780_v44 }
 0x2a7   : > { %375 = vst.msk [vmem:[#allocation3 + $0x140] sm:$0xff] %vm333_vm13, %v16780_v44  ;;  %377 = vst.msk [vmem:[#allocation3 + $0x150] sm:$0xff] %vm333_vm13, %v16780_v44 }
 0x2a8   : > { %378 = vst.msk [vmem:[#allocation3 + $0x158] sm:$0xff] %vm333_vm13, %v16780_v44  ;;  %380 = vst.msk [vmem:[#allocation3 + $0x168] sm:$0xff] %vm333_vm13, %v16780_v44 }
 0x2a9   : > { %381 = vst.msk [vmem:[#allocation3 + $0x170] sm:$0xff] %vm333_vm13, %v16780_v44  ;;  %383 = vst.msk [vmem:[#allocation3 + $0x180] sm:$0xff] %vm333_vm13, %v16780_v44 }
 0x2aa   : > { %384 = vst.msk [vmem:[#allocation3 + $0x188] sm:$0xff] %vm333_vm13, %v16780_v44  ;;  %386 = vst.msk [vmem:[#allocation3 + $0x198] sm:$0xff] %vm333_vm13, %v16780_v44 }
 0x2ab   : > { %387 = vst.msk [vmem:[#allocation3 + $0x1a0] sm:$0xff] %vm333_vm13, %v16780_v44 }
 0x324   : > { %v9296_v20 = vpop.f32.mrf.mxu1 }
 0x325   : > { %v2391_v48 = vadd.f32 %v9296_v20, %v12971_v24 }
 0x326   : > { %v2385_v23 = vpop.f32.mrf.mxu1 }
 0x327   : > { %v2545_v31 = vmax.f32 %v2391_v48, 0.0  ;;  %v2386_v34 = vadd.f32 %v12971_v24, %v2385_v23 }
 0x328   : > { %v9299_v8 = vpop.f32.mrf.mxu1 }
 0x329   : > { %v2609_v40 = vrot.slane %v2545_v31, 7  ;;  %v2544_v43 = vmax.f32 %v2386_v34, 0.0  ;;  %v2401_v49 = vadd.f32 %v9299_v8, %v12971_v24 }
 0x32a   : > { %v2395_v33 = vpop.f32.mrf.mxu1 }
 0x32b   : > { %v2720_v1 = vsel %vm16298_vm2, %v2609_v40, 0.0  ;;  %v2608_v58 = vrot.slane %v2544_v43, 7  ;;  %v2547_v38 = vmax.f32 %v2401_v49, 0.0  ;;  %v2396_v47 = vadd.f32 %v12971_v24, %v2395_v33 }
 0x32c   : > { %2739 = vst.msk [vmem:[#allocation3 + $0x28] sm:$0x3] %vm16295_vm4, %v2720_v1  ;;  %v9302_v62 = vpop.f32.mrf.mxu1 }
 0x32d   : > { %v2610_v52 = vsel %vm16298_vm2, %v2608_v58, %v2609_v40  ;;  %v2704_v27 = vsel %vm16298_vm2, 0.0, %v2608_v58  ;;  %v2612_v21 = vrot.slane %v2547_v38, 7  ;;  %v2546_v51 = vmax.f32 %v2396_v47, 0.0 }
 0x32e   : > { %2737 = vst.msk [vmem:[#allocation3 + $0x18] sm:$0xff] %vm333_vm13, %v2704_v27  ;;  %2738 = vst.msk [vmem:[#allocation3 + $0x20] sm:$0xff] %vm333_vm13, %v2610_v52  ;;  %v2411_v61 = vadd.f32 %v9302_v62, %v12971_v24  ;;  %v2405_v36 = vpop.f32.mrf.mxu1 }
 0x32f   : > { %v2721_v15 = vsel %vm16298_vm2, %v2612_v21, 0.0  ;;  %v2611_v53 = vrot.slane %v2546_v51, 7  ;;  %v2406_v14 = vadd.f32 %v12971_v24, %v2405_v36 }
 0x330   : > { %2742 = vst.msk [vmem:[#allocation3 + $0x40] sm:$0x3] %vm16295_vm4, %v2721_v15  ;;  %v2549_v25 = vmax.f32 %v2411_v61, 0.0  ;;  %v9305_v4 = vpop.f32.mrf.mxu1 }
 0x331   : > { %v2613_v28 = vsel %vm16298_vm2, %v2611_v53, %v2612_v21  ;;  %v2705_v60 = vsel %vm16298_vm2, 0.0, %v2611_v53  ;;  %v2548_v59 = vmax.f32 %v2406_v14, 0.0  ;;  %v2421_v19 = vadd.f32 %v9305_v4, %v12971_v24 }
 0x332   : > { %2740 = vst.msk [vmem:[#allocation3 + $0x30] sm:$0xff] %vm333_vm13, %v2705_v60  ;;  %2741 = vst.msk [vmem:[#allocation3 + $0x38] sm:$0xff] %vm333_vm13, %v2613_v28  ;;  %v2615_v11 = vrot.slane %v2549_v25, 7  ;;  %v2415_v12 = vpop.f32.mrf.mxu1 }
 0x333   : > { %v2614_v50 = vrot.slane %v2548_v59, 7  ;;  %v2551_v26 = vmax.f32 %v2421_v19, 0.0  ;;  %v2416_v7 = vadd.f32 %v12971_v24, %v2415_v12 }
 0x334   : > { %v2722_v6 = vsel %vm16298_vm2, %v2615_v11, 0.0  ;;  %v9308_v10 = vpop.f32.mrf.mxu1 }
 0x335   : > { %2745 = vst.msk [vmem:[#allocation3 + $0x58] sm:$0x3] %vm16295_vm4, %v2722_v6  ;;  %v2616_v45 = vsel %vm16298_vm2, %v2614_v50, %v2615_v11  ;;  %v2706_v18 = vsel %vm16298_vm2, 0.0, %v2614_v50  ;;  %v2618_v54 = vrot.slane %v2551_v26, 7  ;;  %v2550_v16 = vmax.f32 %v2416_v7, 0.0  ;;  %v2819_v9 = vld [vmem:[#allocation3 + $0x19] sm:$0xff] }
 0x336   : > { %v2820_v35 = vld [vmem:[#allocation3 + $0x21] sm:$0xff]  ;;  %2743 = vst.msk [vmem:[#allocation3 + $0x48] sm:$0xff] %vm333_vm13, %v2706_v18  ;;  %2744 = vst.msk [vmem:[#allocation3 + $0x50] sm:$0xff] %vm333_vm13, %v2616_v45  ;;  %v2431_v41 = vadd.f32 %v9308_v10, %v12971_v24  ;;  %v2425_v63 = vpop.f32.mrf.mxu1 }
 0x337   : > { %v13000_v32 = vpack.i.bf16 %v2820_v35, %v2819_v9  ;;  %v2723_v42 = vsel %vm16298_vm2, %v2618_v54, 0.0  ;;  %v2617_v29 = vrot.slane %v2550_v16, 7  ;;  %v2426_v13 = vadd.f32 %v12971_v24, %v2425_v63 }
 0x338   : > { %2748 = vst.msk [vmem:[#allocation3 + $0x70] sm:$0x3] %vm16295_vm4, %v2723_v42  ;;  %v2553_v46 = vmax.f32 %v2431_v41, 0.0  ;;  %v9311_v17 = vpop.f32.mrf.mxu1 }
 0x339   : > { %9440 = vrot.lane.b32.xlu1 %v13000_v32, %s10604_s26  ;;  %v2619_v22 = vsel %vm16298_vm2, %v2617_v29, %v2618_v54  ;;  %v2707_v39 = vsel %vm16298_vm2, 0.0, %v2617_v29  ;;  %v2552_v30 = vmax.f32 %v2426_v13, 0.0  ;;  %v2441_v56 = vadd.f32 %v9311_v17, %v12971_v24  ;;  %v13010_v57 = vld [vmem:[#allocation3 + $0x32] sm:$0xff] }
 0x33a   : > { %v2821_v55 = vld [vmem:[#allocation3 + $0x31] sm:$0xff]  ;;  %v2822_v37 = vld [vmem:[#allocation3 + $0x39] sm:$0xff]  ;;  %2746 = vst.msk [vmem:[#allocation3 + $0x60] sm:$0xff] %vm333_vm13, %v2707_v39  ;;  %2747 = vst.msk [vmem:[#allocation3 + $0x68] sm:$0xff] %vm333_vm13, %v2619_v22  ;;  %v2621_v5 = vrot.slane %v2553_v46, 7  ;;  %v2435_v0 = vpop.f32.mrf.mxu1  ;;  %9073 = vmatprep.mubr.msk.f32.mxu1 %vm333_vm13, %v13010_v57 }
 0x33b   : > { %v13016_v2 = vpack.i.bf16 %v2822_v37, %v2821_v55  ;;  %v2620_v3 = vrot.slane %v2552_v30, 7  ;;  %v2555_v20 = vmax.f32 %v2441_v56, 0.0  ;;  %v2436_v48 = vadd.f32 %v12971_v24, %v2435_v0 }
 0x33c   : > { %v2724_v23 = vsel %vm16298_vm2, %v2621_v5, 0.0  ;;  %v9314_v31 = vpop.f32.mrf.mxu1 }
 0x33d   : > { %9445 = vrot.lane.b32.xlu0 %v13016_v2, %s10604_s26  ;;  %2751 = vst.msk [vmem:[#allocation3 + $0x88] sm:$0x3] %vm16295_vm4, %v2724_v23  ;;  %v2622_v34 = vsel %vm16298_vm2, %v2620_v3, %v2621_v5  ;;  %v2708_v8 = vsel %vm16298_vm2, 0.0, %v2620_v3  ;;  %v2624_v40 = vrot.slane %v2555_v20, 7  ;;  %v2554_v43 = vmax.f32 %v2436_v48, 0.0  ;;  %v2823_v49 = vld [vmem:[#allocation3 + $0x49] sm:$0xff] }
 0x33e   : > { %v2824_v33 = vld [vmem:[#allocation3 + $0x51] sm:$0xff]  ;;  %2749 = vst.msk [vmem:[#allocation3 + $0x78] sm:$0xff] %vm333_vm13, %v2708_v8  ;;  %2750 = vst.msk [vmem:[#allocation3 + $0x80] sm:$0xff] %vm333_vm13, %v2622_v34  ;;  %v2451_v1 = vadd.f32 %v9314_v31, %v12971_v24  ;;  %v2445_v58 = vpop.f32.mrf.mxu1 }
 0x33f   : > { %v13028_v38 = vpack.i.bf16 %v2824_v33, %v2823_v49  ;;  %v2725_v47 = vsel %vm16298_vm2, %v2624_v40, 0.0  ;;  %v2623_v62 = vrot.slane %v2554_v43, 7  ;;  %v2446_v52 = vadd.f32 %v12971_v24, %v2445_v58 }
 0x340   : > { %2754 = vst.msk [vmem:[#allocation3 + $0xa0] sm:$0x3] %vm16295_vm4, %v2725_v47  ;;  %v2557_v27 = vmax.f32 %v2451_v1, 0.0  ;;  %v9317_v21 = vpop.f32.mrf.mxu1 }
 0x341   : > { %9450 = vrot.lane.b32.xlu1 %v13028_v38, %s10604_s26  ;;  %v2625_v51 = vsel %vm16298_vm2, %v2623_v62, %v2624_v40  ;;  %v2709_v61 = vsel %vm16298_vm2, 0.0, %v2623_v62  ;;  %v2556_v36 = vmax.f32 %v2446_v52, 0.0  ;;  %v2461_v15 = vadd.f32 %v9317_v21, %v12971_v24  ;;  %v2825_v53 = vld [vmem:[#allocation3 + $0x61] sm:$0xff]  ;;  %v2826_v14 = vld [vmem:[#allocation3 + $0x69] sm:$0xff] }
 0x342   : > { %2752 = vst.msk [vmem:[#allocation3 + $0x90] sm:$0xff] %vm333_vm13, %v2709_v61  ;;  %2753 = vst.msk [vmem:[#allocation3 + $0x98] sm:$0xff] %vm333_vm13, %v2625_v51  ;;  %v2627_v25 = vrot.slane %v2557_v27, 7  ;;  %v2455_v4 = vpop.f32.mrf.mxu1  ;;  %v13040_v28 = vpack.i.bf16 %v2826_v14, %v2825_v53 }
 0x343   : > { %v2626_v60 = vrot.slane %v2556_v36, 7  ;;  %v2559_v59 = vmax.f32 %v2461_v15, 0.0  ;;  %v2456_v19 = vadd.f32 %v12971_v24, %v2455_v4 }
 0x344   : > { %v2726_v11 = vsel %vm16298_vm2, %v2627_v25, 0.0  ;;  %v9320_v12 = vpop.f32.mrf.mxu1  ;;  %9455 = vrot.lane.b32.xlu0 %v13040_v28, %s10604_s26 }
 0x345   : > { %2757 = vst.msk [vmem:[#allocation3 + $0xb8] sm:$0x3] %vm16295_vm4, %v2726_v11  ;;  %v2628_v50 = vsel %vm16298_vm2, %v2626_v60, %v2627_v25  ;;  %v2710_v26 = vsel %vm16298_vm2, 0.0, %v2626_v60  ;;  %v2630_v7 = vrot.slane %v2559_v59, 7  ;;  %v2558_v6 = vmax.f32 %v2456_v19, 0.0  ;;  %v2827_v10 = vld [vmem:[#allocation3 + $0x79] sm:$0xff] }
 0x346   : > { %v2828_v45 = vld [vmem:[#allocation3 + $0x81] sm:$0xff]  ;;  %2755 = vst.msk [vmem:[#allocation3 + $0xa8] sm:$0xff] %vm333_vm13, %v2710_v26  ;;  %2756 = vst.msk [vmem:[#allocation3 + $0xb0] sm:$0xff] %vm333_vm13, %v2628_v50  ;;  %v2471_v18 = vadd.f32 %v9320_v12, %v12971_v24  ;;  %v2465_v54 = vpop.f32.mrf.mxu1 }
 0x347   : > { %v13052_v16 = vpack.i.bf16 %v2828_v45, %v2827_v10  ;;  %v2727_v9 = vsel %vm16298_vm2, %v2630_v7, 0.0  ;;  %v2629_v35 = vrot.slane %v2558_v6, 7  ;;  %v2466_v41 = vadd.f32 %v12971_v24, %v2465_v54 }
 0x348   : > { %2760 = vst.msk [vmem:[#allocation3 + $0xd0] sm:$0x3] %vm16295_vm4, %v2727_v9  ;;  %v2561_v63 = vmax.f32 %v2471_v18, 0.0  ;;  %v9323_v42 = vpop.f32.mrf.mxu1 }
 0x349   : > { %9460 = vrot.lane.b32.xlu1 %v13052_v16, %s10604_s26  ;;  %v2631_v29 = vsel %vm16298_vm2, %v2629_v35, %v2630_v7  ;;  %v2711_v13 = vsel %vm16298_vm2, 0.0, %v2629_v35  ;;  %v2560_v46 = vmax.f32 %v2466_v41, 0.0  ;;  %v2481_v17 = vadd.f32 %v9323_v42, %v12971_v24  ;;  %v2829_v22 = vld [vmem:[#allocation3 + $0x91] sm:$0xff]  ;;  %v2830_v39 = vld [vmem:[#allocation3 + $0x99] sm:$0xff] }
 0x34a   : > { %2758 = vst.msk [vmem:[#allocation3 + $0xc0] sm:$0xff] %vm333_vm13, %v2711_v13  ;;  %2759 = vst.msk [vmem:[#allocation3 + $0xc8] sm:$0xff] %vm333_vm13, %v2631_v29  ;;  %v2633_v30 = vrot.slane %v2561_v63, 7  ;;  %v2475_v56 = vpop.f32.mrf.mxu1  ;;  %v13064_v55 = vpack.i.bf16 %v2830_v39, %v2829_v22 }
 0x34b   : > { %v2632_v37 = vrot.slane %v2560_v46, 7  ;;  %v2563_v5 = vmax.f32 %v2481_v17, 0.0  ;;  %v2476_v0 = vadd.f32 %v12971_v24, %v2475_v56 }
 0x34c   : > { %v2728_v3 = vsel %vm16298_vm2, %v2633_v30, 0.0  ;;  %v9326_v20 = vpop.f32.mrf.mxu1  ;;  %9465 = vrot.lane.b32.xlu0 %v13064_v55, %s10604_s26 }
 0x34d   : > { %2763 = vst.msk [vmem:[#allocation3 + $0xe8] sm:$0x3] %vm16295_vm4, %v2728_v3  ;;  %v2634_v48 = vsel %vm16298_vm2, %v2632_v37, %v2633_v30  ;;  %v2712_v23 = vsel %vm16298_vm2, 0.0, %v2632_v37  ;;  %v2636_v31 = vrot.slane %v2563_v5, 7  ;;  %v2562_v34 = vmax.f32 %v2476_v0, 0.0  ;;  %v2831_v8 = vld [vmem:[#allocation3 + $0xa9] sm:$0xff] }
 0x34e   : > { %v2832_v40 = vld [vmem:[#allocation3 + $0xb1] sm:$0xff]  ;;  %2761 = vst.msk [vmem:[#allocation3 + $0xd8] sm:$0xff] %vm333_vm13, %v2712_v23  ;;  %2762 = vst.msk [vmem:[#allocation3 + $0xe0] sm:$0xff] %vm333_vm13, %v2634_v48  ;;  %v2491_v43 = vadd.f32 %v9326_v20, %v12971_v24  ;;  %v2485_v49 = vpop.f32.mrf.mxu1 }
 0x34f   : > { %v13076_v33 = vpack.i.bf16 %v2832_v40, %v2831_v8  ;;  %v2729_v1 = vsel %vm16298_vm2, %v2636_v31, 0.0  ;;  %v2635_v58 = vrot.slane %v2562_v34, 7  ;;  %v2486_v47 = vadd.f32 %v12971_v24, %v2485_v49 }
 0x350   : > { %2766 = vst.msk [vmem:[#allocation3 + $0x100] sm:$0x3] %vm16295_vm4, %v2729_v1  ;;  %v2565_v62 = vmax.f32 %v2491_v43, 0.0  ;;  %v9329_v52 = vpop.f32.mrf.mxu1 }
 0x351   : > { %9470 = vrot.lane.b32.xlu1 %v13076_v33, %s10604_s26  ;;  %v2637_v27 = vsel %vm16298_vm2, %v2635_v58, %v2636_v31  ;;  %v2713_v21 = vsel %vm16298_vm2, 0.0, %v2635_v58  ;;  %v2564_v51 = vmax.f32 %v2486_v47, 0.0  ;;  %v2501_v61 = vadd.f32 %v9329_v52, %v12971_v24  ;;  %v2833_v36 = vld [vmem:[#allocation3 + $0xc1] sm:$0xff]  ;;  %v2834_v15 = vld [vmem:[#allocation3 + $0xc9] sm:$0xff] }
 0x352   : > { %2764 = vst.msk [vmem:[#allocation3 + $0xf0] sm:$0xff] %vm333_vm13, %v2713_v21  ;;  %2765 = vst.msk [vmem:[#allocation3 + $0xf8] sm:$0xff] %vm333_vm13, %v2637_v27  ;;  %v2639_v53 = vrot.slane %v2565_v62, 7  ;;  %v2495_v14 = vpop.f32.mrf.mxu1  ;;  %v13088_v25 = vpack.i.bf16 %v2834_v15, %v2833_v36 }
 0x353   : > { %v2638_v4 = vrot.slane %v2564_v51, 7  ;;  %v2567_v60 = vmax.f32 %v2501_v61, 0.0  ;;  %v2496_v59 = vadd.f32 %v12971_v24, %v2495_v14 }
 0x354   : > { %v2730_v19 = vsel %vm16298_vm2, %v2639_v53, 0.0  ;;  %v9332_v11 = vpop.f32.mrf.mxu1  ;;  %9475 = vrot.lane.b32.xlu0 %v13088_v25, %s10604_s26 }
 0x355   : > { %2769 = vst.msk [vmem:[#allocation3 + $0x118] sm:$0x3] %vm16295_vm4, %v2730_v19  ;;  %v2640_v12 = vsel %vm16298_vm2, %v2638_v4, %v2639_v53  ;;  %v2714_v50 = vsel %vm16298_vm2, 0.0, %v2638_v4  ;;  %v2642_v26 = vrot.slane %v2567_v60, 7  ;;  %v2566_v7 = vmax.f32 %v2496_v59, 0.0  ;;  %v2835_v6 = vld [vmem:[#allocation3 + $0xd9] sm:$0xff] }
 0x356   : > { %v2836_v10 = vld [vmem:[#allocation3 + $0xe1] sm:$0xff]  ;;  %2767 = vst.msk [vmem:[#allocation3 + $0x108] sm:$0xff] %vm333_vm13, %v2714_v50  ;;  %2768 = vst.msk [vmem:[#allocation3 + $0x110] sm:$0xff] %vm333_vm13, %v2640_v12  ;;  %v2511_v45 = vadd.f32 %v9332_v11, %v12971_v24  ;;  %v2505_v18 = vpop.f32.mrf.mxu1 }
 0x357   : > { %v13100_v54 = vpack.i.bf16 %v2836_v10, %v2835_v6  ;;  %v2731_v9 = vsel %vm16298_vm2, %v2642_v26, 0.0  ;;  %v2641_v35 = vrot.slane %v2566_v7, 7  ;;  %v2506_v41 = vadd.f32 %v12971_v24, %v2505_v18 }
 0x358   : > { %2772 = vst.msk [vmem:[#allocation3 + $0x130] sm:$0x3] %vm16295_vm4, %v2731_v9  ;;  %v2569_v63 = vmax.f32 %v2511_v45, 0.0 }
 0x359   : > { %9480 = vrot.lane.b32.xlu1 %v13100_v54, %s10604_s26  ;;  %v2643_v29 = vsel %vm16298_vm2, %v2641_v35, %v2642_v26  ;;  %v2715_v13 = vsel %vm16298_vm2, 0.0, %v2641_v35  ;;  %v2568_v46 = vmax.f32 %v2506_v41, 0.0  ;;  %v2837_v22 = vld [vmem:[#allocation3 + $0xf1] sm:$0xff]  ;;  %v2838_v39 = vld [vmem:[#allocation3 + $0xf9] sm:$0xff]  ;;  %v2849_v41 = vld [vmem:[#allocation3 + $0x2] sm:$0xff] }
 0x35a   : > { %v9335_v42 = vpop.f32.mrf.mxu1  ;;  %2770 = vst.msk [vmem:[#allocation3 + $0x120] sm:$0xff] %vm333_vm13, %v2715_v13  ;;  %2771 = vst.msk [vmem:[#allocation3 + $0x128] sm:$0xff] %vm333_vm13, %v2643_v29  ;;  %v2645_v30 = vrot.slane %v2569_v63, 7  ;;  %v13112_v37 = vpack.i.bf16 %v2838_v39, %v2837_v22 }
 0x35b   : > { %v2521_v17 = vadd.f32 %v9335_v42, %v12971_v24  ;;  %v2644_v5 = vrot.slane %v2568_v46, 7  ;;  %v2850_v46 = vld [vmem:[#allocation3 + $0xa] sm:$0xff] }
 0x35c   : > { %v2515_v56 = vpop.f32.mrf.mxu1  ;;  %v2732_v20 = vsel %vm16298_vm2, %v2645_v30, 0.0  ;;  %9485 = vrot.lane.b32.xlu0 %v13112_v37, %s10604_s26  ;;  %v9514_v22 = vpack.i.bf16 %v2850_v46, %v2849_v41  ;;  %v13221_v46 = vld [vmem:[#allocation3 + $0x20] sm:$0xff] }
 0x35d   : > { %v2571_v0 = vmax.f32 %v2521_v17, 0.0  ;;  %v2516_v3 = vadd.f32 %v12971_v24, %v2515_v56  ;;  %2775 = vst.msk [vmem:[#allocation3 + $0x148] sm:$0x3] %vm16295_vm4, %v2732_v20  ;;  %v2646_v23 = vsel %vm16298_vm2, %v2644_v5, %v2645_v30  ;;  %v2716_v31 = vsel %vm16298_vm2, 0.0, %v2644_v5  ;;  %v2839_v40 = vld [vmem:[#allocation3 + $0x109] sm:$0xff]  ;;  %v2840_v43 = vld [vmem:[#allocation3 + $0x111] sm:$0xff] }
 0x35e   : > { %2773 = vst.msk [vmem:[#allocation3 + $0x138] sm:$0xff] %vm333_vm13, %v2716_v31  ;;  %2774 = vst.msk [vmem:[#allocation3 + $0x140] sm:$0xff] %vm333_vm13, %v2646_v23  ;;  %v13124_v58 = vpack.i.bf16 %v2840_v43, %v2839_v40  ;;  %v2851_v5 = vld [vmem:[#allocation3 + $0x1a] sm:$0xff]  ;;  %v2855_v23 = vld [vmem:[#allocation3 + $0x4a] sm:$0xff] }
 0x35f   : > { %v9338_v48 = vpop.f32.mrf.mxu1  ;;  %v2648_v34 = vrot.slane %v2571_v0, 7  ;;  %v2570_v8 = vmax.f32 %v2516_v3, 0.0  ;;  %v2852_v0 = vld [vmem:[#allocation3 + $0x22] sm:$0xff]  ;;  %v2854_v3 = vld [vmem:[#allocation3 + $0x3a] sm:$0xff]  ;;  %v2856_v31 = vld [vmem:[#allocation3 + $0x52] sm:$0xff] }
 0x360   : > { %v2531_v49 = vadd.f32 %v9338_v48, %v12971_v24  ;;  %9490 = vrot.lane.b32.xlu1 %v13124_v58, %s10604_s26  ;;  %v13166_v20 = vpack.i.bf16 %v2852_v0, %v2851_v5  ;;  %v13169_v48 = vpack.i.bf16 %v2854_v3, %v13010_v57  ;;  %v13175_v40 = vpack.i.bf16 %v2856_v31, %v2855_v23  ;;  %v2884_v5 = vld [vmem:[#allocation3 + $0x38] sm:$0xff]  ;;  %v2885_v0 = vld [vmem:[#allocation3 + $0x48] sm:$0xff]  ;;  %v2886_v3 = vld [vmem:[#allocation3 + $0x50] sm:$0xff] }
 0x361   : > { %v2525_v1 = vpop.f32.mrf.mxu1  ;;  %v2733_v47 = vsel %vm16298_vm2, %v2648_v34, 0.0  ;;  %v2647_v62 = vrot.slane %v2570_v8, 7  ;;  %v2841_v53 = vld [vmem:[#allocation3 + $0x121] sm:$0xff]  ;;  %v2842_v14 = vld [vmem:[#allocation3 + $0x129] sm:$0xff]  ;;  %v13239_v31 = vpack.i.bf16 %v2886_v3, %v2885_v0 }
 0x362   : > { %v2526_v52 = vadd.f32 %v12971_v24, %v2525_v1  ;;  %2778 = vst.msk [vmem:[#allocation3 + $0x160] sm:$0x3] %vm16295_vm4, %v2733_v47  ;;  %v2573_v27 = vmax.f32 %v2531_v49, 0.0  ;;  %v13136_v59 = vpack.i.bf16 %v2842_v14, %v2841_v53  ;;  %v2858_v8 = vld [vmem:[#allocation3 + $0x6a] sm:$0xff]  ;;  %v2859_v49 = vld [vmem:[#allocation3 + $0x7a] sm:$0xff]  ;;  %v2860_v1 = vld [vmem:[#allocation3 + $0x82] sm:$0xff] }
 0x363   : > { %v9341_v21 = vpop.f32.mrf.mxu1  ;;  %v2649_v51 = vsel %vm16298_vm2, %v2647_v62, %v2648_v34  ;;  %v2717_v61 = vsel %vm16298_vm2, 0.0, %v2647_v62  ;;  %v2857_v34 = vld [vmem:[#allocation3 + $0x62] sm:$0xff]  ;;  %v2861_v47 = vld [vmem:[#allocation3 + $0x92] sm:$0xff]  ;;  %v2862_v62 = vld [vmem:[#allocation3 + $0x9a] sm:$0xff]  ;;  %v13183_v57 = vpack.i.bf16 %v2860_v1, %v2859_v49 }
 0x364   : > { %v2572_v36 = vmax.f32 %v2526_v52, 0.0  ;;  %v2541_v15 = vadd.f32 %v9341_v21, %v12971_v24  ;;  %2776 = vst.msk [vmem:[#allocation3 + $0x150] sm:$0xff] %vm333_vm13, %v2717_v61  ;;  %2777 = vst.msk [vmem:[#allocation3 + $0x158] sm:$0xff] %vm333_vm13, %v2649_v51  ;;  %v2651_v4 = vrot.slane %v2573_v27, 7  ;;  %9495 = vrot.lane.b32.xlu0 %v13136_v59, %s10604_s26  ;;  %v13177_v43 = vpack.i.bf16 %v2858_v8, %v2857_v34  ;;  %v2863_v27 = vld [vmem:[#allocation3 + $0xaa] sm:$0xff]  ;;  %v2864_v21 = vld [vmem:[#allocation3 + $0xb2] sm:$0xff] }
 0x365   : > { %v2535_v60 = vpop.f32.mrf.mxu1  ;;  %v2843_v45 = vld [vmem:[#allocation3 + $0x139] sm:$0xff]  ;;  %v2844_v18 = vld [vmem:[#allocation3 + $0x141] sm:$0xff]  ;;  %v13185_v52 = vpack.i.bf16 %v2862_v62, %v2861_v47  ;;  %v2866_v61 = vld [vmem:[#allocation3 + $0xca] sm:$0xff] }
 0x366   : > { %v2650_v19 = vrot.slane %v2572_v36, 7  ;;  %v2575_v11 = vmax.f32 %v2541_v15, 0.0  ;;  %v2536_v12 = vadd.f32 %v12971_v24, %v2535_v60  ;;  %v2734_v50 = vsel %vm16298_vm2, %v2651_v4, 0.0  ;;  %v2865_v51 = vld [vmem:[#allocation3 + $0xc2] sm:$0xff]  ;;  %v2867_v53 = vld [vmem:[#allocation3 + $0xda] sm:$0xff] }
 0x367   : > { %2781 = vst.msk [vmem:[#allocation3 + $0x178] sm:$0x3] %vm16295_vm4, %v2734_v50  ;;  %v13147_v24 = vpack.i.bf16 %v2844_v18, %v2843_v45  ;;  %v13191_v36 = vpack.i.bf16 %v2864_v21, %v2863_v27  ;;  %v13193_v15 = vpack.i.bf16 %v2866_v61, %v2865_v51  ;;  %v2868_v14 = vld [vmem:[#allocation3 + $0xe2] sm:$0xff]  ;;  %v2870_v60 = vld [vmem:[#allocation3 + $0xfa] sm:$0xff]  ;;  %v2872_v50 = vld [vmem:[#allocation3 + $0x112] sm:$0xff] }
 0x368   : > { %v2652_v26 = vsel %vm16298_vm2, %v2650_v19, %v2651_v4  ;;  %v2718_v7 = vsel %vm16298_vm2, 0.0, %v2650_v19  ;;  %v2654_v6 = vrot.slane %v2575_v11, 7  ;;  %v2574_v10 = vmax.f32 %v2536_v12, 0.0  ;;  %v2869_v4 = vld [vmem:[#allocation3 + $0xf2] sm:$0xff]  ;;  %v2871_v12 = vld [vmem:[#allocation3 + $0x10a] sm:$0xff]  ;;  %v2875_v45 = vld [vmem:[#allocation3 + $0x13a] sm:$0xff] }
 0x369   : > { %2779 = vst.msk [vmem:[#allocation3 + $0x168] sm:$0xff] %vm333_vm13, %v2718_v7  ;;  %2780 = vst.msk [vmem:[#allocation3 + $0x170] sm:$0xff] %vm333_vm13, %v2652_v26  ;;  %9500 = vrot.lane.b32.xlu1 %v13147_v24, %s10604_s26  ;;  %v13199_v19 = vpack.i.bf16 %v2868_v14, %v2867_v53  ;;  %v13201_v11 = vpack.i.bf16 %v2870_v60, %v2869_v4  ;;  %v2873_v26 = vld [vmem:[#allocation3 + $0x122] sm:$0xff]  ;;  %v2874_v7 = vld [vmem:[#allocation3 + $0x12a] sm:$0xff] }
 0x36a   : > { %v2735_v9 = vsel %vm16298_vm2, %v2654_v6, 0.0  ;;  %v2653_v35 = vrot.slane %v2574_v10, 7  ;;  %v13209_v10 = vpack.i.bf16 %v2874_v7, %v2873_v26  ;;  %v2876_v18 = vld [vmem:[#allocation3 + $0x142] sm:$0xff]  ;;  %v2889_v49 = vld [vmem:[#allocation3 + $0x78] sm:$0xff]  ;;  %v2891_v27 = vld [vmem:[#allocation3 + $0x90] sm:$0xff] }
 0x36b   : > { %2784 = vst.msk [vmem:[#allocation3 + $0x190] sm:$0x3] %vm16295_vm4, %v2735_v9  ;;  %v2845_v29 = vld [vmem:[#allocation3 + $0x151] sm:$0xff]  ;;  %v2846_v13 = vld [vmem:[#allocation3 + $0x159] sm:$0xff]  ;;  %v13215_v41 = vpack.i.bf16 %v2876_v18, %v2875_v45  ;;  %v2888_v8 = vld [vmem:[#allocation3 + $0x68] sm:$0xff]  ;;  %vm16312_vm4 = vcmask 654336  }
 0x36c   : > { %v2655_v63 = vsel %vm16298_vm2, %v2653_v35, %v2654_v6  ;;  %v2719_v42 = vsel %vm16298_vm2, 0.0, %v2653_v35  ;;  %v13157_v17 = vpack.i.bf16 %v2846_v13, %v2845_v29  ;;  %v13207_v6 = vpack.i.bf16 %v2872_v50, %v2871_v12  ;;  %v2877_v9 = vld [vmem:[#allocation3 + $0x152] sm:$0xff]  ;;  %v2878_v35 = vld [vmem:[#allocation3 + $0x15a] sm:$0xff]  ;;  %v2893_v51 = vld [vmem:[#allocation3 + $0xa8] sm:$0xff] }
 0x36d   : > { %2782 = vst.msk [vmem:[#allocation3 + $0x180] sm:$0xff] %vm333_vm13, %v2719_v42  ;;  %2783 = vst.msk [vmem:[#allocation3 + $0x188] sm:$0xff] %vm333_vm13, %v2655_v63  ;;  %v13217_v63 = vpack.i.bf16 %v2878_v35, %v2877_v9  ;;  %v13219_v42 = vld [vmem:[#allocation3 + $0x18] sm:$0xff]  ;;  %v2887_v34 = vld [vmem:[#allocation3 + $0x60] sm:$0xff]  ;;  %vm16311_vm2 = vcmask 785408  }
 0x36e   : > { %9505 = vrot.lane.b32.xlu0 %v13157_v17, %s10604_s26  ;;  %v2890_v1 = vld [vmem:[#allocation3 + $0x80] sm:$0xff]  ;;  %v13245_v47 = vpack.i.bf16 %v2888_v8, %v2887_v34  ;;  %v2892_v21 = vld [vmem:[#allocation3 + $0x98] sm:$0xff]  ;;  %v2894_v61 = vld [vmem:[#allocation3 + $0xb0] sm:$0xff] }
 0x36f   : > { %v13247_v62 = vpack.i.bf16 %v2890_v1, %v2889_v49  ;;  %v13253_v53 = vpack.i.bf16 %v2892_v21, %v2891_v27  ;;  %v13255_v14 = vpack.i.bf16 %v2894_v61, %v2893_v51  ;;  %v2895_v4 = vld [vmem:[#allocation3 + $0xc0] sm:$0xff]  ;;  %v2896_v60 = vld [vmem:[#allocation3 + $0xc8] sm:$0xff]  ;;  %v2897_v12 = vld [vmem:[#allocation3 + $0xd8] sm:$0xff] }
 0x370   : > { %v2847_v39 = vld [vmem:[#allocation3 + $0x169] sm:$0xff]  ;;  %v2848_v30 = vld [vmem:[#allocation3 + $0x171] sm:$0xff]  ;;  %v2898_v50 = vld [vmem:[#allocation3 + $0xe0] sm:$0xff]  ;;  %v13261_v26 = vpack.i.bf16 %v2896_v60, %v2895_v4 }
 0x371   : > { %v13161_v56 = vpack.i.bf16 %v2848_v30, %v2847_v39  ;;  %v2879_v29 = vld [vmem:[#allocation3 + $0x16a] sm:$0xff]  ;;  %v2880_v13 = vld [vmem:[#allocation3 + $0x172] sm:$0xff]  ;;  %v9594_v39 = vpack.i.bf16 %v13221_v46, %v13219_v42  ;;  %v13263_v7 = vpack.i.bf16 %v2898_v50, %v2897_v12  ;;  %v2906_v3 = vld [vmem:[#allocation3 + $0x140] sm:$0xff]  ;;  %v13311_v50 = vpop.permute.xlu0 %9435 }
 0x372   : > { %9515 = vrot.lane.b32.xlu0 %v9514_v22, %s10605_s29  ;;  %v13227_v22 = vpack.i.bf16 %v2880_v13, %v2879_v29  ;;  %v13231_v30 = vld [vmem:[#allocation3 + $0x30] sm:$0xff]  ;;  %v2900_v18 = vld [vmem:[#allocation3 + $0xf8] sm:$0xff]  ;;  %v2901_v9 = vld [vmem:[#allocation3 + $0x108] sm:$0xff] }
 0x373   : > { %9510 = vrot.lane.b32.xlu1 %v13161_v56, %s10604_s26  ;;  %v13237_v23 = vpack.i.bf16 %v2884_v5, %v13231_v30  ;;  %v2899_v45 = vld [vmem:[#allocation3 + $0xf0] sm:$0xff]  ;;  %v2904_v5 = vld [vmem:[#allocation3 + $0x128] sm:$0xff]  ;;  %v2905_v0 = vld [vmem:[#allocation3 + $0x138] sm:$0xff] }
 0x374   : > { %v2902_v35 = vld [vmem:[#allocation3 + $0x110] sm:$0xff]  ;;  %v13269_v29 = vpack.i.bf16 %v2900_v18, %v2899_v45  ;;  %v13279_v8 = vpack.i.bf16 %v2906_v3, %v2905_v0  ;;  %v2908_v1 = vld [vmem:[#allocation3 + $0x158] sm:$0xff]  ;;  %v2909_v27 = vld [vmem:[#allocation3 + $0x168] sm:$0xff] }
 0x375   : > { %v13271_v13 = vpack.i.bf16 %v2902_v35, %v2901_v9  ;;  %v2907_v49 = vld [vmem:[#allocation3 + $0x150] sm:$0xff]  ;;  %v2911_v4 = vld [vmem:[#allocation3 + $0x180] sm:$0xff]  ;;  %v2912_v60 = vld [vmem:[#allocation3 + $0x188] sm:$0xff] }
 0x376   : > { %9525 = vrot.lane.b32.xlu0 %v13169_v48, %s10605_s29  ;;  %v2910_v21 = vld [vmem:[#allocation3 + $0x170] sm:$0xff]  ;;  %v13285_v51 = vpack.i.bf16 %v2908_v1, %v2907_v49  ;;  %v13293_v12 = vpack.i.bf16 %v2912_v60, %v2911_v4  ;;  %v2975_v18 = vld [vmem:[#allocation3 + $0x182] sm:$0xff]  ;;  %v4209_v0 = vld [vmem:[%s16163_s3 + $0x48] sm:$0xff] }
 0x377   : > { %9520 = vrot.lane.b32.xlu1 %v13166_v20, %s10605_s29  ;;  %v13287_v61 = vpack.i.bf16 %v2910_v21, %v2909_v27  ;;  %v4212_v45 = vld [vmem:[%s16163_s3 + $0x60] sm:$0xff]  ;;  %v4207_v1 = vld [vmem:[%s16163_s3 + $0x38] sm:$0xff]  ;;  %v4206_v27 = vld [vmem:[%s16163_s3 + $0x30] sm:$0xff] }
 0x378   : > { %v2976_v9 = vld [vmem:[#allocation3 + $0x18a] sm:$0xff] }
 0x379   : > { %v4204_v4 = vld [vmem:[%s16163_s3 + $0x20] sm:$0xff]  ;;  %v4203_v60 = vld [vmem:[%s16163_s3 + $0x18] sm:$0xff] }
 0x37a   : > { %9535 = vrot.lane.b32.xlu0 %v13177_v43, %s10605_s29 }
 0x37b   : > { %9530 = vrot.lane.b32.xlu1 %v13175_v40, %s10605_s29 }
 0x37e   : > { %9545 = vrot.lane.b32.xlu0 %v13185_v52, %s10605_s29 }
 0x37f   : > { %9540 = vrot.lane.b32.xlu1 %v13183_v57, %s10605_s29 }
 0x382   : > { %9555 = vrot.lane.b32.xlu0 %v13193_v15, %s10605_s29 }
 0x383   : > { %9550 = vrot.lane.b32.xlu1 %v13191_v36, %s10605_s29 }
 0x386   : > { %9565 = vrot.lane.b32.xlu0 %v13201_v11, %s10605_s29 }
 0x387   : > { %9560 = vrot.lane.b32.xlu1 %v13199_v19, %s10605_s29 }
 0x38a   : > { %9575 = vrot.lane.b32.xlu0 %v13209_v10, %s10605_s29 }
 0x38b   : > { %9570 = vrot.lane.b32.xlu1 %v13207_v6, %s10605_s29 }
 0x38e   : > { %9585 = vrot.lane.b32.xlu0 %v13217_v63, %s10605_s29 }
 0x38f   : > { %9580 = vrot.lane.b32.xlu1 %v13215_v41, %s10605_s29 }
 0x392   : > { %9595 = vrot.lane.b32.xlu0 %v9594_v39, %s10606_s30  ;;  %v2903_v39 = vld [vmem:[#allocation3 + $0x120] sm:$0xff] }
 0x393   : > { %9590 = vrot.lane.b32.xlu1 %v13227_v22, %s10605_s29  ;;  %v13277_v34 = vpack.i.bf16 %v2904_v5, %v2903_v39  ;;  %v9829_v39 = vpack.i.bf16 %v2976_v9, %v2975_v18  ;;  %v3011_v18 = vld [vmem:[#allocation3 + $0x39] sm:$0xff] }
 0x396   : > { %9605 = vrot.lane.b32.xlu0 %v13239_v31, %s10606_s30 }
 0x397   : > { %9600 = vrot.lane.b32.xlu1 %v13237_v23, %s10606_s30 }
 0x39a   : > { %9615 = vrot.lane.b32.xlu0 %v13247_v62, %s10606_s30 }
 0x39b   : > { %9610 = vrot.lane.b32.xlu1 %v13245_v47, %s10606_s30 }
 0x39e   : > { %9625 = vrot.lane.b32.xlu0 %v13255_v14, %s10606_s30 }
 0x39f   : > { %9620 = vrot.lane.b32.xlu1 %v13253_v53, %s10606_s30 }
 0x3a2   : > { %9635 = vrot.lane.b32.xlu0 %v13263_v7, %s10606_s30 }
 0x3a3   : > { %9630 = vrot.lane.b32.xlu1 %v13261_v26, %s10606_s30 }
 0x3a6   : > { %9645 = vrot.lane.b32.xlu0 %v13271_v13, %s10606_s30 }
 0x3a7   : > { %9640 = vrot.lane.b32.xlu1 %v13269_v29, %s10606_s30 }
 0x3aa   : > { %9655 = vrot.lane.b32.xlu0 %v13279_v8, %s10606_s30 }
 0x3ab   : > { %9650 = vrot.lane.b32.xlu1 %v13277_v34, %s10606_s30 }
 0x3ae   : > { %9665 = vrot.lane.b32.xlu0 %v13287_v61, %s10606_s30 }
 0x3af   : > { %9660 = vrot.lane.b32.xlu1 %v13285_v51, %s10606_s30 }
 0x3b2   : > { %9675 = vrot.lane.b32.xlu0 %v13000_v32, %s10607_s15  ;;  %v13321_v32 = vpop.permute.xlu1 %9440 }
 0x3b3   : > { %9670 = vrot.lane.b32.xlu1 %v13293_v12, %s10606_s30 }
 0x3b6   : > { %9685 = vrot.lane.b32.xlu0 %v13028_v38, %s10607_s15  ;;  %v13329_v38 = vpop.permute.xlu1 %9450 }
 0x3b7   : > { %9680 = vrot.lane.b32.xlu1 %v13016_v2, %s10607_s15  ;;  %v13323_v2 = vpop.permute.xlu0 %9445 }
 0x3ba   : > { %9695 = vrot.lane.b32.xlu0 %v13052_v16, %s10607_s15  ;;  %v2943_v16 = vld [vmem:[#allocation3 + $0x181] sm:$0xff] }
 0x3bb   : > { %9690 = vrot.lane.b32.xlu1 %v13040_v28, %s10607_s15  ;;  %v13331_v28 = vpop.permute.xlu0 %9455 }
 0x3be   : > { %9705 = vrot.lane.b32.xlu0 %v13076_v33, %s10607_s15  ;;  %v13337_v33 = vpop.permute.xlu1 %9460 }
 0x3bf   : > { %9700 = vrot.lane.b32.xlu1 %v13064_v55, %s10607_s15  ;;  %v2944_v55 = vld [vmem:[#allocation3 + $0x189] sm:$0xff] }
 0x3c2   : > { %9715 = vrot.lane.b32.xlu0 %v13100_v54, %s10607_s15  ;;  %v13341_v54 = vpack.i.bf16 %v2944_v55, %v2943_v16  ;;  %v4201_v55 = vld [vmem:[%s16163_s3 + $0x8] sm:$0xff] }
 0x3c3   : > { %9710 = vrot.lane.b32.xlu1 %v13088_v25, %s10607_s15  ;;  %v13339_v25 = vpop.permute.xlu0 %9465 }
 0x3c4   : > { %16781 = vst [vmem:[#allocation162_spill] sm:$0xff] %v13339_v25 }
 0x3c6   : > { %9725 = vrot.lane.b32.xlu0 %v13124_v58, %s10607_s15 }
 0x3c7   : > { %9720 = vrot.lane.b32.xlu1 %v13112_v37, %s10607_s15  ;;  %v13347_v37 = vpop.permute.xlu1 %9470  ;;  %v13349_v58 = vpop.permute.xlu0 %9475 }
 0x3c8   : > { %16782 = vst [vmem:[#allocation6_spill] sm:$0xff] %v13347_v37  ;;  %16783 = vst [vmem:[#allocation12_spill] sm:$0xff] %v13349_v58  ;;  %v13746_v37 = vld [vmem:[#allocation2 + $0x52] sm:$0xff] }
 0x3c9   : > { %16844 = vst [vmem:[#allocation145_spill] sm:$0xff] %v13746_v37 }
 0x3ca   : > { %9735 = vrot.lane.b32.xlu0 %v13147_v24, %s10607_s15 }
 0x3cb   : > { %9730 = vrot.lane.b32.xlu1 %v13136_v59, %s10607_s15  ;;  %v13355_v59 = vpop.permute.xlu1 %9480 }
 0x3cc   : > { %16784 = vst [vmem:[#allocation15_spill] sm:$0xff] %v13355_v59 }
 0x3ce   : > { %9745 = vrot.lane.b32.xlu0 %v13161_v56, %s10607_s15  ;;  %v13357_v24 = vpop.permute.xlu0 %9485 }
 0x3cf   : > { %9740 = vrot.lane.b32.xlu1 %v13157_v17, %s10607_s15  ;;  %16785 = vst [vmem:[#allocation75_spill] sm:$0xff] %v13357_v24 }
 0x3d2   : > { %9755 = vrot.lane.b32.xlu0 %v13166_v20, %s10608_s16  ;;  %v13363_v17 = vpop.permute.xlu1 %9490 }
 0x3d3   : > { %9750 = vrot.lane.b32.xlu1 %v13341_v54, %s10607_s15  ;;  %16786 = vst [vmem:[#allocation69_spill] sm:$0xff] %v13363_v17  ;;  %v4936_v17 = vld [vmem:[#allocation2 + $0xa9] sm:$0xff] }
 0x3d6   : > { %9765 = vrot.lane.b32.xlu0 %v13175_v40, %s10608_s16  ;;  %v13365_v56 = vpop.permute.xlu0 %9495 }
 0x3d7   : > { %9760 = vrot.lane.b32.xlu1 %v13169_v48, %s10608_s16  ;;  %16787 = vst [vmem:[#allocation109_spill] sm:$0xff] %v13365_v56 }
 0x3da   : > { %9775 = vrot.lane.b32.xlu0 %v13183_v57, %s10608_s16  ;;  %v4215_v57 = vld [vmem:[%s16163_s3 + $0x78] sm:$0xff] }
 0x3db   : > { %9770 = vrot.lane.b32.xlu1 %v13177_v43, %s10608_s16  ;;  %v13371_v20 = vpop.permute.xlu1 %9500  ;;  %4322 = vmatpush1.msra.mxu1 %v4215_v57 }
 0x3dc   : > { %16788 = vst [vmem:[#allocation106_spill] sm:$0xff] %v13371_v20  ;;  %4323 = vmatprep.subr.mxu1 %v16780_v44 }
 0x3de   : > { %9785 = vrot.lane.b32.xlu0 %v13191_v36, %s10608_s16 }
 0x3df   : > { %9780 = vrot.lane.b32.xlu1 %v13185_v52, %s10608_s16  ;;  %v4214_v52 = vld [vmem:[%s16163_s3 + $0x70] sm:$0xff] }
 0x3e0   : > { %v13373_v48 = vpop.permute.xlu0 %9505  ;;  %4324 = vmatpush1.msra.mxu1 %v4214_v52 }
 0x3e1   : > { %16789 = vst [vmem:[#allocation137_spill] sm:$0xff] %v13373_v48  ;;  %4325 = vmatprep.subr.mxu1 %v16780_v44  ;;  %v3031_v48 = vld [vmem:[#allocation3 + $0x129] sm:$0xff] }
 0x3e2   : > { %9795 = vrot.lane.b32.xlu0 %v13199_v19, %s10608_s16  ;;  %v4213_v19 = vld [vmem:[%s16163_s3 + $0x68] sm:$0xff] }
 0x3e3   : > { %9790 = vrot.lane.b32.xlu1 %v13193_v15, %s10608_s16  ;;  %4326 = vmatpush1.msra.mxu1 %v4213_v19  ;;  %v4200_v19 = vld [vmem:[%s16163_s3] sm:$0xff] }
 0x3e4   : > { %v13381_v43 = vpop.permute.xlu0 %9515  ;;  %4327 = vmatprep.subr.mxu1 %v16780_v44 }
 0x3e5   : > { %v13379_v40 = vpop.permute.xlu1 %9510  ;;  %4328 = vmatpush1.msra.mxu1 %v4212_v45  ;;  %v3010_v45 = vld [vmem:[#allocation3 + $0x31] sm:$0xff] }
 0x3e6   : > { %16790 = vst [vmem:[#allocation16_spill] sm:$0xff] %v13379_v40  ;;  %9805 = vrot.lane.b32.xlu0 %v13207_v6, %s10608_s16  ;;  %4329 = vmatprep.subr.mxu1 %v16780_v44  ;;  %v3027_v40 = vld [vmem:[#allocation3 + $0xf9] sm:$0xff] }
 0x3e7   : > { %9800 = vrot.lane.b32.xlu1 %v13201_v11, %s10608_s16 }
 0x3e8   : > { %v13395_v15 = vpop.permute.xlu0 %9525 }
 0x3e9   : > { %v13393_v36 = vpop.permute.xlu1 %9520 }
 0x3ea   : > { %9815 = vrot.lane.b32.xlu0 %v13215_v41, %s10608_s16 }
 0x3eb   : > { %9810 = vrot.lane.b32.xlu1 %v13209_v10, %s10608_s16  ;;  %v4211_v10 = vld [vmem:[%s16163_s3 + $0x58] sm:$0xff] }
 0x3ec   : > { %v13408_v6 = vpop.permute.xlu0 %9535  ;;  %4330 = vmatpush1.msra.mxu1 %v4211_v10 }
 0x3ed   : > { %v13406_v11 = vpop.permute.xlu1 %9530  ;;  %4331 = vmatprep.subr.mxu1 %v16780_v44 }
 0x3ee   : > { %9825 = vrot.lane.b32.xlu0 %v13227_v22, %s10608_s16 }
 0x3ef   : > { %9820 = vrot.lane.b32.xlu1 %v13217_v63, %s10608_s16  ;;  %v4210_v63 = vld [vmem:[%s16163_s3 + $0x50] sm:$0xff] }
 0x3f0   : > { %v13423_v35 = vpop.permute.xlu0 %9545  ;;  %4332 = vmatpush1.msra.mxu1 %v4210_v63  ;;  %v3012_v63 = vld [vmem:[#allocation3 + $0x49] sm:$0xff] }
 0x3f1   : > { %v13421_v41 = vpop.permute.xlu1 %9540  ;;  %16791 = vst [vmem:[#allocation24_spill] sm:$0xff] %v13423_v35  ;;  %4333 = vmatprep.subr.mxu1 %v16780_v44 }
 0x3f2   : > { %9835 = vrot.lane.b32.xlu0 %v13237_v23, %s10609_s21  ;;  %v4208_v23 = vld [vmem:[%s16163_s3 + $0x40] sm:$0xff]  ;;  %4334 = vmatpush1.msra.mxu1 %v4209_v0 }
 0x3f3   : > { %9830 = vrot.lane.b32.xlu1 %v9829_v39, %s10608_s16  ;;  %4335 = vmatprep.subr.mxu1 %v16780_v44  ;;  %v9914_v39 = vpack.i.bf16 %v3011_v18, %v3010_v45  ;;  %v3013_v0 = vld [vmem:[#allocation3 + $0x51] sm:$0xff] }
 0x3f4   : > { %v13435_v5 = vpop.permute.xlu0 %9555  ;;  %4336 = vmatpush1.msra.mxu1 %v4208_v23  ;;  %v3014_v23 = vld [vmem:[#allocation3 + $0x61] sm:$0xff] }
 0x3f5   : > { %v13433_v22 = vpop.permute.xlu1 %9550  ;;  %16793 = vst [vmem:[#allocation168_spill] sm:$0xff] %v13435_v5  ;;  %4337 = vmatprep.subr.mxu1 %v16780_v44 }
 0x3f6   : > { %16792 = vst [vmem:[#allocation7_spill] sm:$0xff] %v13433_v22  ;;  %9845 = vrot.lane.b32.xlu0 %v13245_v47, %s10609_s21  ;;  %4338 = vmatpush1.msra.mxu1 %v4207_v1  ;;  %v2785_v22 = vld [vmem:[#allocation3] sm:$0xff] }
 0x3f7   : > { %9840 = vrot.lane.b32.xlu1 %v13239_v31, %s10609_s21  ;;  %4339 = vmatprep.subr.mxu1 %v16780_v44 }
 0x3f8   : > { %v13450_v49 = vpop.permute.xlu0 %9565  ;;  %4340 = vmatpush1.msra.mxu1 %v4206_v27 }
 0x3f9   : > { %v13448_v3 = vpop.permute.xlu1 %9560  ;;  %16795 = vst [vmem:[#allocation19_spill] sm:$0xff] %v13450_v49  ;;  %4341 = vmatprep.subr.mxu1 %v16780_v44 }
 0x3fa   : > { %16794 = vst [vmem:[#allocation10_spill] sm:$0xff] %v13448_v3  ;;  %9855 = vrot.lane.b32.xlu0 %v13253_v53, %s10609_s21 }
 0x3fb   : > { %9850 = vrot.lane.b32.xlu1 %v13247_v62, %s10609_s21  ;;  %v4205_v62 = vld [vmem:[%s16163_s3 + $0x28] sm:$0xff] }
 0x3fc   : > { %v13463_v47 = vpop.permute.xlu0 %9575  ;;  %4342 = vmatpush1.msra.mxu1 %v4205_v62  ;;  %v9919_v62 = vpack.i.bf16 %v3013_v0, %v3012_v63  ;;  %v3023_v63 = vld [vmem:[#allocation3 + $0xc9] sm:$0xff] }
 0x3fd   : > { %v13461_v31 = vpop.permute.xlu1 %9570  ;;  %16797 = vst [vmem:[#allocation165_spill] sm:$0xff] %v13463_v47  ;;  %4343 = vmatprep.subr.mxu1 %v16780_v44  ;;  %v13635_v47 = vld [vmem:[#allocation2 + $0x69] sm:$0xff] }
 0x3fe   : > { %16796 = vst [vmem:[#allocation78_spill] sm:$0xff] %v13461_v31  ;;  %9865 = vrot.lane.b32.xlu0 %v13261_v26, %s10609_s21  ;;  %4344 = vmatpush1.msra.mxu1 %v4204_v4  ;;  %16822 = vst [vmem:[#allocation115_spill] sm:$0xff] %v13635_v47 }
 0x3ff   : > { %9860 = vrot.lane.b32.xlu1 %v13255_v14, %s10609_s21  ;;  %4345 = vmatprep.subr.mxu1 %v16780_v44 }
 0x400   : > { %v13478_v21 = vpop.permute.xlu0 %9585  ;;  %4346 = vmatpush1.msra.mxu1 %v4203_v60  ;;  %v3016_v60 = vld [vmem:[#allocation3 + $0x79] sm:$0xff] }
 0x401   : > { %v13476_v53 = vpop.permute.xlu1 %9580  ;;  %16799 = vst [vmem:[#allocation111_spill] sm:$0xff] %v13478_v21  ;;  %4347 = vmatprep.subr.mxu1 %v16780_v44  ;;  %v3030_v21 = vld [vmem:[#allocation3 + $0x121] sm:$0xff] }
 0x402   : > { %16798 = vst [vmem:[#allocation74_spill] sm:$0xff] %v13476_v53  ;;  %9875 = vrot.lane.b32.xlu0 %v13269_v29, %s10609_s21  ;;  %v4930_v53 = vld [vmem:[#allocation2 + $0x61] sm:$0xff] }
 0x403   : > { %9870 = vrot.lane.b32.xlu1 %v13263_v7, %s10609_s21  ;;  %v4202_v7 = vld [vmem:[%s16163_s3 + $0x10] sm:$0xff] }
 0x404   : > { %v13491_v26 = vpop.permute.xlu0 %9595  ;;  %4348 = vmatpush1.msra.mxu1 %v4202_v7  ;;  %v3017_v7 = vld [vmem:[#allocation3 + $0x81] sm:$0xff] }
 0x405   : > { %v13489_v14 = vpop.permute.xlu1 %9590  ;;  %4349 = vmatprep.subr.mxu1 %v16780_v44  ;;  %v9929_v45 = vpack.i.bf16 %v3017_v7, %v3016_v60 }
 0x406   : > { %16800 = vst [vmem:[#allocation108_spill] sm:$0xff] %v13489_v14  ;;  %9885 = vrot.lane.b32.xlu0 %v13277_v34, %s10609_s21  ;;  %v3009_v34 = vld [vmem:[#allocation3 + $0x1a0] sm:$0xff]  ;;  %4350 = vmatpush1.msra.mxu1 %v4201_v55  ;;  %v3018_v55 = vld [vmem:[#allocation3 + $0x91] sm:$0xff] }
 0x407   : > { %9880 = vrot.lane.b32.xlu1 %v13271_v13, %s10609_s21  ;;  %v3008_v13 = vld [vmem:[#allocation3 + $0x198] sm:$0xff]  ;;  %4351 = vmatprep.subr.mxu1 %v16780_v44 }
 0x408   : > { %v13506_v16 = vpop.permute.xlu0 %9605  ;;  %4352 = vmatpush1.msra.mxu1 %v4200_v19  ;;  %v3026_v14 = vld [vmem:[#allocation3 + $0xf1] sm:$0xff] }
 0x409   : > { %v13504_v29 = vpop.permute.xlu1 %9600  ;;  %4381 = vmatprep.subr.mxu1 %v16780_v44 }
 0x40a   : > { %9895 = vrot.lane.b32.xlu0 %v13285_v51, %s10609_s21  ;;  %v4217_v51 = vld [vmem:[%s16163_s3 + $0x88] sm:$0xff] }
 0x40b   : > { %9890 = vrot.lane.b32.xlu1 %v13279_v8, %s10609_s21  ;;  %v9909_v8 = vpack.i.bf16 %v3009_v34, %v3008_v13  ;;  %4382 = vmatpush2.msra.mxu1 %v4217_v51  ;;  %v3019_v13 = vld [vmem:[#allocation3 + $0x99] sm:$0xff]  ;;  %v3021_v51 = vld [vmem:[#allocation3 + $0xb1] sm:$0xff] }
 0x40c   : > { %v13519_v52 = vpop.permute.xlu0 %9615  ;;  %4383 = vmatprep.subr.mxu1 %v16780_v44  ;;  %v9934_v18 = vpack.i.bf16 %v3019_v13, %v3018_v55  ;;  %v9954_v13 = vpack.i.bf16 %v3027_v40, %v3026_v14 }
 0x40d   : > { %v13517_v57 = vpop.permute.xlu1 %9610 }
 0x40e   : > { %9905 = vrot.lane.b32.xlu0 %v13293_v12, %s10609_s21  ;;  %v4216_v12 = vld [vmem:[%s16163_s3 + $0x80] sm:$0xff] }
 0x40f   : > { %9900 = vrot.lane.b32.xlu1 %v13287_v61, %s10609_s21  ;;  %v3015_v61 = vld [vmem:[#allocation3 + $0x69] sm:$0xff]  ;;  %4384 = vmatpush2.msra.mxu1 %v4216_v12 }
 0x410   : > { %v13534_v10 = vpop.permute.xlu0 %9625  ;;  %v9924_v4 = vpack.i.bf16 %v3015_v61, %v3014_v23  ;;  %9398 = vmatprep.subr.mxu1 %v16780_v44 }
 0x411   : > { %v13532_v9 = vpop.permute.xlu1 %9620  ;;  %16801 = vst [vmem:[#allocation138_spill] sm:$0xff] %v13534_v10  ;;  %v9518_v10 = vunpack.i.h.bf16 %v13381_v43 }
 0x412   : > { %9915 = vrot.lane.b32.xlu0 %v9914_v39, %s10610_s17  ;;  %v3022_v39 = vld [vmem:[#allocation3 + $0xc1] sm:$0xff] }
 0x413   : > { %9910 = vrot.lane.b32.xlu1 %v9909_v8, %s10609_s21  ;;  %v3020_v8 = vld [vmem:[#allocation3 + $0xa9] sm:$0xff]  ;;  %v9944_v12 = vpack.i.bf16 %v3023_v63, %v3022_v39  ;;  %v9964_v63 = vpack.i.bf16 %v3031_v48, %v3030_v21  ;;  %v3040_v48 = vld [vmem:[#allocation3 + $0x199] sm:$0xff]  ;;  %v3041_v21 = vld [vmem:[#allocation3 + $0x1a1] sm:$0xff] }
 0x414   : > { %v13545_v27 = vpop.permute.xlu0 %9635  ;;  %v9939_v61 = vpack.i.bf16 %v3021_v51, %v3020_v8 }
 0x415   : > { %v13543_v1 = vpop.permute.xlu1 %9630  ;;  %16803 = vst [vmem:[#allocation28_spill] sm:$0xff] %v13545_v27 }
 0x416   : > { %16802 = vst [vmem:[#allocation20_spill] sm:$0xff] %v13543_v1  ;;  %9925 = vrot.lane.b32.xlu0 %v9924_v4, %s10610_s17  ;;  %v3025_v4 = vld [vmem:[#allocation3 + $0xe1] sm:$0xff]  ;;  %v9437_v1 = vunpack.i.l.bf16 %v13311_v50 }
 0x417   : > { %9920 = vrot.lane.b32.xlu1 %v9919_v62, %s10610_s17  ;;  %v3024_v62 = vld [vmem:[#allocation3 + $0xd9] sm:$0xff] }
 0x418   : > { %v13552_v19 = vpop.permute.xlu0 %9645  ;;  %v9949_v55 = vpack.i.bf16 %v3025_v4, %v3024_v62 }
 0x419   : > { %v13550_v34 = vpop.permute.xlu1 %9640  ;;  %16805 = vst [vmem:[#allocation172_spill] sm:$0xff] %v13552_v19  ;;  %v4938_v19 = vld [vmem:[#allocation2 + $0xc1] sm:$0xff] }
 0x41a   : > { %16804 = vst [vmem:[#allocation11_spill] sm:$0xff] %v13550_v34  ;;  %9935 = vrot.lane.b32.xlu0 %v9934_v18, %s10610_s17  ;;  %v3029_v18 = vld [vmem:[#allocation3 + $0x111] sm:$0xff] }
 0x41b   : > { %9930 = vrot.lane.b32.xlu1 %v9929_v45, %s10610_s17  ;;  %v3028_v45 = vld [vmem:[#allocation3 + $0x109] sm:$0xff] }
 0x41c   : > { %v13558_v23 = vpop.permute.xlu0 %9655  ;;  %v9959_v39 = vpack.i.bf16 %v3029_v18, %v3028_v45 }
 0x41d   : > { %v13556_v0 = vpop.permute.xlu1 %9650  ;;  %16807 = vst [vmem:[#allocation22_spill] sm:$0xff] %v13558_v23 }
 0x41e   : > { %16806 = vst [vmem:[#allocation13_spill] sm:$0xff] %v13556_v0  ;;  %9945 = vrot.lane.b32.xlu0 %v9944_v12, %s10610_s17  ;;  %v3033_v12 = vld [vmem:[#allocation3 + $0x141] sm:$0xff] }
 0x41f   : > { %9940 = vrot.lane.b32.xlu1 %v9939_v61, %s10610_s17  ;;  %v3032_v61 = vld [vmem:[#allocation3 + $0x139] sm:$0xff]  ;;  %v4934_v0 = vld [vmem:[#allocation2 + $0x91] sm:$0xff] }
 0x420   : > { %v13564_v7 = vpop.permute.xlu0 %9665  ;;  %v9969_v62 = vpack.i.bf16 %v3033_v12, %v3032_v61  ;;  %v4923_v12 = vld [vmem:[#allocation2 + $0x9] sm:$0xff] }
 0x421   : > { %v13562_v60 = vpop.permute.xlu1 %9660  ;;  %16809 = vst [vmem:[#allocation167_spill] sm:$0xff] %v13564_v7  ;;  %v3035_v7 = vld [vmem:[#allocation3 + $0x159] sm:$0xff] }
 0x422   : > { %16808 = vst [vmem:[#allocation81_spill] sm:$0xff] %v13562_v60  ;;  %9955 = vrot.lane.b32.xlu0 %v9954_v13, %s10610_s17  ;;  %v3034_v60 = vld [vmem:[#allocation3 + $0x151] sm:$0xff] }
 0x423   : > { %9950 = vrot.lane.b32.xlu1 %v9949_v55, %s10610_s17  ;;  %v9974_v4 = vpack.i.bf16 %v3035_v7, %v3034_v60  ;;  %v3036_v55 = vld [vmem:[#allocation3 + $0x169] sm:$0xff]  ;;  %v3037_v13 = vld [vmem:[#allocation3 + $0x171] sm:$0xff] }
 0x424   : > { %v13570_v51 = vpop.permute.xlu0 %9675  ;;  %v4922_v60 = vld [vmem:[#allocation2 + $0x1] sm:$0xff] }
 0x425   : > { %v13568_v8 = vpop.permute.xlu1 %9670 }
 0x426   : > { %16810 = vst [vmem:[#allocation77_spill] sm:$0xff] %v13568_v8  ;;  %9965 = vrot.lane.b32.xlu0 %v9964_v63, %s10610_s17  ;;  %v9989_v63 = vpack.i.bf16 %v3041_v21, %v3040_v48  ;;  %v13626_v8 = vld [vmem:[#allocation2 + $0x51] sm:$0xff] }
 0x427   : > { %9960 = vrot.lane.b32.xlu1 %v9959_v39, %s10610_s17  ;;  %v9979_v39 = vpack.i.bf16 %v3037_v13, %v3036_v55  ;;  %v13604_v13 = vld [vmem:[#allocation2 + $0x31] sm:$0xff]  ;;  %16819 = vst [vmem:[#allocation83_spill] sm:$0xff] %v13626_v8 }
 0x428   : > { %v13576_v14 = vpop.permute.xlu0 %9685 }
 0x429   : > { %v13574_v40 = vpop.permute.xlu1 %9680 }
 0x42a   : > { %9975 = vrot.lane.b32.xlu0 %v9974_v4, %s10610_s17 }
 0x42b   : > { %9970 = vrot.lane.b32.xlu1 %v9969_v62, %s10610_s17  ;;  %v13593_v62 = vld [vmem:[#allocation2 + $0x19] sm:$0xff] }
 0x42c   : > { %v13582_v18 = vpop.permute.xlu0 %9695 }
 0x42d   : > { %v13580_v45 = vpop.permute.xlu1 %9690 }
 0x42e   : > { %9985 = vrot.lane.b32.xlu0 %v13341_v54, %s10610_s17  ;;  %v13602_v54 = vld [vmem:[#allocation2 + $0x21] sm:$0xff] }
 0x42f   : > { %9980 = vrot.lane.b32.xlu1 %v9979_v39, %s10610_s17  ;;  %v13614_v39 = vld [vmem:[#allocation2 + $0x39] sm:$0xff] }
 0x430   : > { %v13589_v61 = vpop.permute.xlu0 %9705 }
 0x431   : > { %v13587_v7 = vpop.permute.xlu1 %9700  ;;  %16811 = vst [vmem:[#allocation113_spill] sm:$0xff] %v13589_v61  ;;  %v3970_v61 = vsel %vm333_vm13, %v2785_v22, %v9437_v1  ;;  %v13767_v1 = vld [vmem:[#allocation2 + $0x6a] sm:$0xff] }
 0x432   : > { %5210 = vrot.lane.b32.xlu0 %v4922_v60, %s10596_s8 }
 0x433   : > { %9990 = vrot.lane.b32.xlu1 %v9989_v63, %s10610_s17  ;;  %v13616_v63 = vld [vmem:[#allocation2 + $0x49] sm:$0xff] }
 0x434   : > { %v13597_v55 = vpop.permute.xlu0 %9715  ;;  %16816 = vst [vmem:[#allocation14_spill] sm:$0xff] %v13616_v63 }
 0x435   : > { %v13595_v4 = vpop.permute.xlu1 %9710  ;;  %16813 = vst [vmem:[#allocation139_spill] sm:$0xff] %v13597_v55 }
 0x436   : > { %16812 = vst [vmem:[#allocation110_spill] sm:$0xff] %v13595_v4  ;;  %5214 = vrot.lane.b32.xlu0 %v13593_v62, %s10596_s8 }
 0x437   : > { %5212 = vrot.lane.b32.xlu1 %v4923_v12, %s10596_s8 }
 0x438   : > { %v13608_v21 = vpop.permute.xlu0 %9725 }
 0x439   : > { %v13606_v48 = vpop.permute.xlu1 %9720  ;;  %16815 = vst [vmem:[#allocation32_spill] sm:$0xff] %v13608_v21 }
 0x43a   : > { %16814 = vst [vmem:[#allocation23_spill] sm:$0xff] %v13606_v48  ;;  %5218 = vrot.lane.b32.xlu0 %v13604_v13, %s10596_s8 }
 0x43b   : > { %5216 = vrot.lane.b32.xlu1 %v13602_v54, %s10596_s8 }
 0x43c   : > { %v13620_v12 = vpop.permute.xlu0 %9735 }
 0x43d   : > { %v13618_v60 = vpop.permute.xlu1 %9730  ;;  %16818 = vst [vmem:[#allocation26_spill] sm:$0xff] %v13620_v12  ;;  %v4932_v12 = vld [vmem:[#allocation2 + $0x79] sm:$0xff] }
 0x43e   : > { %16817 = vst [vmem:[#allocation17_spill] sm:$0xff] %v13618_v60  ;;  %5222 = vrot.lane.b32.xlu0 %v13616_v63, %s10596_s8 }
 0x43f   : > { %5220 = vrot.lane.b32.xlu1 %v13614_v39, %s10596_s8 }
 0x440   : > { %v13630_v23 = vpop.permute.xlu0 %9745 }
 0x441   : > { %v13628_v20 = vpop.permute.xlu1 %9740  ;;  %16821 = vst [vmem:[#allocation80_spill] sm:$0xff] %v13630_v23 }
 0x442   : > { %16820 = vst [vmem:[#allocation171_spill] sm:$0xff] %v13628_v20  ;;  %5226 = vrot.lane.b32.xlu0 %v4930_v53, %s10596_s8  ;;  %v4933_v20 = vld [vmem:[#allocation2 + $0x81] sm:$0xff]  ;;  %v4935_v53 = vld [vmem:[#allocation2 + $0x99] sm:$0xff] }
 0x443   : > { %5224 = vrot.lane.b32.xlu1 %v13626_v8, %s10596_s8  ;;  %v13748_v8 = vld [vmem:[#allocation2 + $0x62] sm:$0xff] }
 0x444   : > { %v13639_v60 = vpop.permute.xlu0 %9755  ;;  %16845 = vst [vmem:[#allocation35_spill] sm:$0xff] %v13748_v8 }
 0x445   : > { %v13637_v56 = vpop.permute.xlu1 %9750 }
 0x446   : > { %16823 = vst [vmem:[#allocation112_spill] sm:$0xff] %v13637_v56  ;;  %5230 = vrot.lane.b32.xlu0 %v4932_v12, %s10596_s8  ;;  %v4937_v12 = vld [vmem:[#allocation2 + $0xb1] sm:$0xff] }
 0x447   : > { %5228 = vrot.lane.b32.xlu1 %v13635_v47, %s10596_s8 }
 0x448   : > { %v13646_v31 = vpop.permute.xlu0 %9765 }
 0x449   : > { %v13644_v23 = vpop.permute.xlu1 %9760 }
 0x44a   : > { %5234 = vrot.lane.b32.xlu0 %v4934_v0, %s10596_s8  ;;  %v4940_v0 = vld [vmem:[#allocation2 + $0xd9] sm:$0xff] }
 0x44b   : > { %5232 = vrot.lane.b32.xlu1 %v4933_v20, %s10596_s8  ;;  %v4939_v20 = vld [vmem:[#allocation2 + $0xc9] sm:$0xff] }
 0x44c   : > { %v13652_v21 = vpop.permute.xlu0 %9775 }
 0x44d   : > { %v13650_v56 = vpop.permute.xlu1 %9770 }
 0x44e   : > { %5238 = vrot.lane.b32.xlu0 %v4936_v17, %s10596_s8  ;;  %v4941_v17 = vld [vmem:[#allocation2 + $0xe1] sm:$0xff] }
 0x44f   : > { %5236 = vrot.lane.b32.xlu1 %v4935_v53, %s10596_s8  ;;  %v4942_v53 = vld [vmem:[#allocation2 + $0xf1] sm:$0xff] }
 0x450   : > { %v13658_v24 = vpop.permute.xlu0 %9785 }
 0x451   : > { %v13656_v49 = vpop.permute.xlu1 %9780  ;;  %16824 = vst [vmem:[#allocation141_spill] sm:$0xff] %v13658_v24  ;;  %v2786_v24 = vld [vmem:[#allocation3 + $0x8] sm:$0xff] }
 0x452   : > { %5242 = vrot.lane.b32.xlu0 %v4938_v19, %s10596_s8  ;;  %v4943_v19 = vld [vmem:[#allocation2 + $0xf9] sm:$0xff] }
 0x453   : > { %5240 = vrot.lane.b32.xlu1 %v4937_v12, %s10596_s8  ;;  %v4944_v12 = vld [vmem:[#allocation2 + $0x109] sm:$0xff] }
 0x454   : > { %v13664_v48 = vpop.permute.xlu0 %9795 }
 0x455   : > { %v13662_v47 = vpop.permute.xlu1 %9790  ;;  %16826 = vst [vmem:[#allocation36_spill] sm:$0xff] %v13664_v48 }
 0x456   : > { %16825 = vst [vmem:[#allocation27_spill] sm:$0xff] %v13662_v47  ;;  %5246 = vrot.lane.b32.xlu0 %v4940_v0, %s10596_s8  ;;  %v4946_v0 = vld [vmem:[#allocation2 + $0x121] sm:$0xff] }
 0x457   : > { %5244 = vrot.lane.b32.xlu1 %v4939_v20, %s10596_s8  ;;  %v4945_v20 = vld [vmem:[#allocation2 + $0x111] sm:$0xff] }
 0x458   : > { %v13670_v3 = vpop.permute.xlu0 %9805 }
 0x459   : > { %v13668_v34 = vpop.permute.xlu1 %9800  ;;  %16828 = vst [vmem:[#allocation21_spill] sm:$0xff] %v13670_v3 }
 0x45a   : > { %16827 = vst [vmem:[#allocation18_spill] sm:$0xff] %v13668_v34  ;;  %5250 = vrot.lane.b32.xlu0 %v4942_v53, %s10596_s8  ;;  %v4948_v53 = vld [vmem:[#allocation2 + $0x139] sm:$0xff] }
 0x45b   : > { %5248 = vrot.lane.b32.xlu1 %v4941_v17, %s10596_s8  ;;  %v4947_v17 = vld [vmem:[#allocation2 + $0x129] sm:$0xff] }
 0x45c   : > { %v13676_v55 = vpop.permute.xlu0 %9815 }
 0x45d   : > { %v13674_v59 = vpop.permute.xlu1 %9810  ;;  %16830 = vst [vmem:[#allocation85_spill] sm:$0xff] %v13676_v55 }
 0x45e   : > { %16829 = vst [vmem:[#allocation30_spill] sm:$0xff] %v13674_v59  ;;  %5254 = vrot.lane.b32.xlu0 %v4944_v12, %s10596_s8  ;;  %v4950_v12 = vld [vmem:[#allocation2 + $0x151] sm:$0xff] }
 0x45f   : > { %5252 = vrot.lane.b32.xlu1 %v4943_v19, %s10596_s8  ;;  %v4949_v19 = vld [vmem:[#allocation2 + $0x141] sm:$0xff] }
 0x460   : > { %v13682_v34 = vpop.permute.xlu0 %9825 }
 0x461   : > { %v13680_v48 = vpop.permute.xlu1 %9820  ;;  %16832 = vst [vmem:[#allocation117_spill] sm:$0xff] %v13682_v34 }
 0x462   : > { %16831 = vst [vmem:[#allocation82_spill] sm:$0xff] %v13680_v48  ;;  %5258 = vrot.lane.b32.xlu0 %v4946_v0, %s10596_s8  ;;  %v4952_v0 = vld [vmem:[#allocation2 + $0x169] sm:$0xff] }
 0x463   : > { %5256 = vrot.lane.b32.xlu1 %v4945_v20, %s10596_s8  ;;  %v4951_v20 = vld [vmem:[#allocation2 + $0x159] sm:$0xff] }
 0x464   : > { %v13688_v59 = vpop.permute.xlu0 %9835 }
 0x465   : > { %v13686_v3 = vpop.permute.xlu1 %9830 }
 0x466   : > { %16833 = vst [vmem:[#allocation114_spill] sm:$0xff] %v13686_v3  ;;  %5262 = vrot.lane.b32.xlu0 %v4948_v53, %s10596_s8  ;;  %v4954_v53 = vld [vmem:[#allocation2 + $0x2] sm:$0xff] }
 0x467   : > { %5260 = vrot.lane.b32.xlu1 %v4947_v17, %s10596_s8  ;;  %v4953_v17 = vld [vmem:[#allocation2 + $0x171] sm:$0xff] }
 0x468   : > { %v13694_v48 = vpop.permute.xlu0 %9845 }
 0x469   : > { %v13692_v55 = vpop.permute.xlu1 %9840 }
 0x46a   : > { %5266 = vrot.lane.b32.xlu0 %v4950_v12, %s10596_s8  ;;  %v13710_v12 = vld [vmem:[#allocation2 + $0x1a] sm:$0xff] }
 0x46b   : > { %5264 = vrot.lane.b32.xlu1 %v4949_v19, %s10596_s8  ;;  %v4955_v19 = vld [vmem:[#allocation2 + $0xa] sm:$0xff] }
 0x46c   : > { %v13700_v3 = vpop.permute.xlu0 %9855 }
 0x46d   : > { %v13698_v34 = vpop.permute.xlu1 %9850 }
 0x46e   : > { %5270 = vrot.lane.b32.xlu0 %v4952_v0, %s10596_s8  ;;  %v13721_v0 = vld [vmem:[#allocation2 + $0x32] sm:$0xff] }
 0x46f   : > { %5268 = vrot.lane.b32.xlu1 %v4951_v20, %s10596_s8  ;;  %v13719_v20 = vld [vmem:[#allocation2 + $0x22] sm:$0xff] }
 0x470   : > { %v13706_v5 = vpop.permute.xlu0 %9865 }
 0x471   : > { %v13704_v27 = vpop.permute.xlu1 %9860  ;;  %16835 = vst [vmem:[#allocation31_spill] sm:$0xff] %v13706_v5 }
 0x472   : > { %16834 = vst [vmem:[#allocation143_spill] sm:$0xff] %v13704_v27  ;;  %5338 = vrot.lane.b32.xlu0 %v4954_v53, %s10597_s9  ;;  %v13731_v53 = vld [vmem:[#allocation2 + $0x3a] sm:$0xff]  ;;  %v9522_v27 = vunpack.i.l.bf16 %v13393_v36 }
 0x473   : > { %5272 = vrot.lane.b32.xlu1 %v4953_v17, %s10596_s8  ;;  %16840 = vst [vmem:[#allocation87_spill] sm:$0xff] %v13731_v53 }
 0x474   : > { %v13714_v47 = vpop.permute.xlu0 %9875 }
 0x475   : > { %v13712_v58 = vpop.permute.xlu1 %9870  ;;  %16837 = vst [vmem:[#allocation140_spill] sm:$0xff] %v13714_v47 }
 0x476   : > { %16836 = vst [vmem:[#allocation40_spill] sm:$0xff] %v13712_v58  ;;  %5342 = vrot.lane.b32.xlu0 %v13710_v12, %s10597_s9 }
 0x477   : > { %5340 = vrot.lane.b32.xlu1 %v4955_v19, %s10597_s9  ;;  %v13733_v19 = vld [vmem:[#allocation2 + $0x4a] sm:$0xff] }
 0x478   : > { %v13725_v17 = vpop.permute.xlu0 %9885  ;;  %16841 = vst [vmem:[#allocation84_spill] sm:$0xff] %v13733_v19 }
 0x479   : > { %v13723_v4 = vpop.permute.xlu1 %9880  ;;  %16839 = vst [vmem:[#allocation34_spill] sm:$0xff] %v13725_v17  ;;  %v9597_v17 = vunpack.i.l.bf16 %v13491_v26 }
 0x47a   : > { %16838 = vst [vmem:[#allocation25_spill] sm:$0xff] %v13723_v4  ;;  %5346 = vrot.lane.b32.xlu0 %v13721_v0, %s10597_s9  ;;  %v9517_v4 = vunpack.i.l.bf16 %v13381_v43 }
 0x47b   : > { %5344 = vrot.lane.b32.xlu1 %v13719_v20, %s10597_s9 }
 0x47c   : > { %v13737_v58 = vpop.permute.xlu0 %9895  ;;  %v4003_v35 = vsel %vm4002_vm14, %v3970_v61, %v9517_v4  ;;  %v9678_v61 = vunpack.i.h.bf16 %v13570_v51 }
 0x47d   : > { %v13735_v47 = vpop.permute.xlu1 %9890  ;;  %16843 = vst [vmem:[#allocation116_spill] sm:$0xff] %v13737_v58  ;;  %v9438_v58 = vunpack.i.h.bf16 %v13311_v50  ;;  %v9837_v50 = vunpack.i.l.bf16 %v13688_v59  ;;  %v4036_v22 = vsel %vm4035_vm15, %v4003_v35, %v9597_v17 }
 0x47e   : > { %16842 = vst [vmem:[#allocation119_spill] sm:$0xff] %v13735_v47  ;;  %5350 = vrot.lane.b32.xlu0 %v13733_v19, %s10597_s9  ;;  %v9677_v47 = vunpack.i.l.bf16 %v13570_v51  ;;  %v9757_v19 = vunpack.i.l.bf16 %v13639_v60  ;;  %v9602_v51 = vunpack.i.l.bf16 %v13504_v29 }
 0x47f   : > { %5348 = vrot.lane.b32.xlu1 %v13731_v53, %s10597_s9  ;;  %v3971_v43 = vsel %vm333_vm13, %v2786_v24, %v9438_v58  ;;  %v9838_v58 = vunpack.i.h.bf16 %v13688_v59  ;;  %v9682_v59 = vunpack.i.l.bf16 %v13574_v40 }
 0x480   : > { %v13754_v5 = vpop.permute.xlu0 %9905  ;;  %v4069_v4 = vsel %vm16313_vm1, %v4036_v22, %v9677_v47  ;;  %v4004_v53 = vsel %vm4002_vm14, %v3971_v43, %v9518_v10  ;;  %v4986_v22 = vld [vmem:[#allocation2 + $0x18] sm:$0xff]  ;;  %v4987_v10 = vld [vmem:[#allocation2 + $0x20] sm:$0xff] }
 0x481   : > { %v13752_v63 = vpop.permute.xlu1 %9900  ;;  %16847 = vst [vmem:[#allocation142_spill] sm:$0xff] %v13754_v5  ;;  %v9598_v5 = vunpack.i.h.bf16 %v13491_v26  ;;  %v9758_v26 = vunpack.i.h.bf16 %v13639_v60  ;;  %v4102_v35 = vsel %vm16312_vm4, %v4069_v4, %v9757_v19 }
 0x482   : > { %16846 = vst [vmem:[#allocation44_spill] sm:$0xff] %v13752_v63  ;;  %5354 = vrot.lane.b32.xlu0 %v13748_v8, %s10597_s9  ;;  %v4964_v63 = vld [vmem:[#allocation2 + $0x7a] sm:$0xff]  ;;  %v9442_v8 = vunpack.i.l.bf16 %v13321_v32  ;;  %v4135_v24 = vsel %vm16311_vm2, %v4102_v35, %v9837_v50  ;;  %v9443_v50 = vunpack.i.h.bf16 %v13321_v32 }
 0x483   : > { %5352 = vrot.lane.b32.xlu1 %v13746_v37, %s10597_s9  ;;  %v4037_v47 = vsel %vm4035_vm15, %v4004_v53, %v9598_v5 }
 0x484   : > { %v9916_v37 = vpop.permute.xlu0 %9915  ;;  %v4070_v43 = vsel %vm16313_vm1, %v4037_v47, %v9678_v61  ;;  %v3972_v5 = vsel %vm333_vm13, %v13219_v42, %v9442_v8  ;;  %v9523_v61 = vunpack.i.h.bf16 %v13393_v36  ;;  %v9603_v42 = vunpack.i.h.bf16 %v13504_v29 }
 0x485   : > { %v13772_v25 = vpop.permute.xlu1 %9910  ;;  %v9917_v17 = vunpack.i.l.bf16 %v9916_v37  ;;  %v9918_v60 = vunpack.i.h.bf16 %v9916_v37  ;;  %v9762_v37 = vunpack.i.l.bf16 %v13644_v23  ;;  %v4103_v53 = vsel %vm16312_vm4, %v4070_v43, %v9758_v26 }
 0x486   : > { %16848 = vst [vmem:[#allocation29_spill] sm:$0xff] %v13772_v25  ;;  %5358 = vrot.lane.b32.xlu0 %v4964_v63, %s10597_s9  ;;  %v3043_v63 = vld [vmem:[#allocation3 + $0x3a] sm:$0xff]  ;;  %v4005_v35 = vsel %vm4002_vm14, %v3972_v5, %v9522_v27  ;;  %v4136_v32 = vsel %vm16311_vm2, %v4103_v53, %v9838_v58  ;;  %v9683_v26 = vunpack.i.h.bf16 %v13574_v40  ;;  %v3973_v58 = vsel %vm333_vm13, %v13221_v46, %v9443_v50 }
 0x487   : > { %5356 = vrot.lane.b32.xlu1 %v13767_v1, %s10597_s9  ;;  %v4168_v19 = vsel %vm16310_vm12, %v4135_v24, %v9917_v17  ;;  %v9842_v17 = vunpack.i.l.bf16 %v13692_v55  ;;  %v4038_v8 = vsel %vm4035_vm15, %v4005_v35, %v9602_v51  ;;  %v4169_v47 = vsel %vm16310_vm12, %v4136_v32, %v9918_v60 }
 0x488   : > { %v13789_v25 = vpop.permute.xlu0 %9925  ;;  %4386 = vmatmul.mubr.f32.vlgmr.msra.gmra.mxu1 %v4168_v19  ;;  %v4071_v36 = vsel %vm16313_vm1, %v4038_v8, %v9682_v59  ;;  %v9447_v29 = vunpack.i.l.bf16 %v13323_v2  ;;  %v9763_v51 = vunpack.i.h.bf16 %v13644_v23  ;;  %v4006_v40 = vsel %vm4002_vm14, %v3973_v58, %v9523_v61  ;;  %v10539_v58 = vld [vmem:[#allocation3 + $0x38] sm:$0xff] }
 0x489   : > { %v9921_v4 = vpop.permute.xlu1 %9920  ;;  %9074 = vmatprep.mubr.msk.f32.mxu1 %vm333_vm13, %v3043_v63  ;;  %v4104_v60 = vsel %vm16312_vm4, %v4071_v36, %v9762_v37  ;;  %v9843_v43 = vunpack.i.h.bf16 %v13692_v55  ;;  %v4039_v23 = vsel %vm4035_vm15, %v4006_v40, %v9603_v42  ;;  %v9607_v59 = vunpack.i.l.bf16 %v13506_v16 }
 0x48a   : > { %5468 = vrot.lane.b32.xlu0 %v4987_v10, %s10598_s10  ;;  %v9922_v24 = vunpack.i.l.bf16 %v9921_v4  ;;  %v9527_v10 = vunpack.i.l.bf16 %v13395_v15  ;;  %v4137_v46 = vsel %vm16311_vm2, %v4104_v60, %v9842_v17  ;;  %v9923_v63 = vunpack.i.h.bf16 %v9921_v4 }
 0x48b   : > { %5466 = vrot.lane.b32.xlu1 %v4986_v22, %s10598_s10  ;;  %v3044_v22 = vld [vmem:[#allocation3 + $0x4a] sm:$0xff]  ;;  %v4072_v5 = vsel %vm16313_vm1, %v4039_v23, %v9683_v26  ;;  %v9687_v37 = vunpack.i.l.bf16 %v13576_v14  ;;  %v3974_v61 = vsel %vm333_vm13, %v13231_v30, %v9447_v29  ;;  %v9767_v35 = vunpack.i.l.bf16 %v13646_v31 }
 0x48c   : > { %v13810_v19 = vpop.permute.xlu0 %9935  ;;  %4391 = vmatmul.mubr.f32.gmra.mxu1 %v4169_v47  ;;  %v4170_v50 = vsel %vm16310_vm12, %v4137_v46, %v9922_v24  ;;  %v4105_v4 = vsel %vm16312_vm4, %v4072_v5, %v9763_v51  ;;  %v9528_v17 = vunpack.i.h.bf16 %v13395_v15  ;;  %v4007_v32 = vsel %vm4002_vm14, %v3974_v61, %v9527_v10  ;;  %v5082_v47 = vld [vmem:[#allocation2 + $0x30] sm:$0xff]  ;;  %v3047_v61 = vld [vmem:[#allocation3 + $0x6a] sm:$0xff] }
 0x48d   : > { %v13808_v27 = vpop.permute.xlu1 %9930  ;;  %9075 = vmatprep.mubr.msk.f32.mxu1 %vm333_vm13, %v3044_v22  ;;  %v9847_v42 = vunpack.i.l.bf16 %v13694_v48  ;;  %v4138_v30 = vsel %vm16311_vm2, %v4105_v4, %v9843_v43  ;;  %v4040_v8 = vsel %vm4035_vm15, %v4007_v32, %v9607_v59  ;;  %v9927_v24 = vunpack.i.l.bf16 %v13789_v25 }
 0x48e   : > { %5596 = vrot.lane.b32.xlu0 %v13602_v54, %s10599_s11  ;;  %v9448_v54 = vunpack.i.h.bf16 %v13323_v2  ;;  %v9608_v2 = vunpack.i.h.bf16 %v13506_v16  ;;  %v4171_v15 = vsel %vm16310_vm12, %v4138_v30, %v9923_v63  ;;  %v9688_v26 = vunpack.i.h.bf16 %v13576_v14  ;;  %v6461_v14 = vld [vmem:[%s16161_s1 + $0x18] sm:$0x7] }
 0x48f   : > { %5594 = vrot.lane.b32.xlu1 %v13593_v62, %s10599_s11  ;;  %v3045_v62 = vld [vmem:[#allocation3 + $0x52] sm:$0xff]  ;;  %v4073_v36 = vsel %vm16313_vm1, %v4040_v8, %v9687_v37  ;;  %v9452_v29 = vunpack.i.l.bf16 %v13329_v38  ;;  %v9768_v51 = vunpack.i.h.bf16 %v13646_v31  ;;  %v9532_v10 = vunpack.i.l.bf16 %v13406_v11  ;;  %9342 = vmatprep.subr.msk.mxu0 %vm2315_vm3, %v6461_v14 }
 0x490   : > { %v13833_v53 = vpop.permute.xlu0 %9945  ;;  %4396 = vmatmul.mubr.f32.gmra.mxu1 %v4170_v50  ;;  %v3975_v16 = vsel %vm333_vm13, %v10539_v58, %v9448_v54  ;;  %v4106_v60 = vsel %vm16312_vm4, %v4073_v36, %v9767_v35  ;;  %v9848_v43 = vunpack.i.h.bf16 %v13694_v48  ;;  %v9612_v23 = vunpack.i.l.bf16 %v13517_v57  ;;  %v5083_v50 = vld [vmem:[#allocation2 + $0x38] sm:$0xff]  ;;  %v6460_v48 = vld [vmem:[%s16161_s1 + $0x10] sm:$0xff]  ;;  %9343 = vmatpush3.msk.msra.mxu0 %vm2315_vm3, %v6461_v14 }
 0x491   : > { %v13831_v55 = vpop.permute.xlu1 %9940  ;;  %9076 = vmatprep.mubr.msk.f32.mxu1 %vm333_vm13, %v3045_v62  ;;  %v4008_v40 = vsel %vm4002_vm14, %v3975_v16, %v9528_v17  ;;  %v4139_v31 = vsel %vm16311_vm2, %v4106_v60, %v9847_v42  ;;  %v9928_v59 = vunpack.i.h.bf16 %v13789_v25  ;;  %v9692_v37 = vunpack.i.l.bf16 %v13580_v45  ;;  %v10540_v35 = vld [vmem:[#allocation3 + $0x48] sm:$0xff]  ;;  %9344 = vmatprep.subr.mxu0 %v6460_v48  ;;  %v6459_v42 = vld [vmem:[%s16161_s1 + $0x8] sm:$0xff] }
 0x492   : > { %5724 = vrot.lane.b32.xlu0 %v13719_v20, %s10600_s12  ;;  %v3046_v20 = vld [vmem:[#allocation3 + $0x62] sm:$0xff]  ;;  %v4041_v46 = vsel %vm4035_vm15, %v4008_v40, %v9608_v2  ;;  %v4172_v63 = vsel %vm16310_vm12, %v4139_v31, %v9927_v24  ;;  %v9453_v25 = vunpack.i.h.bf16 %v13329_v38  ;;  %v3976_v4 = vsel %vm333_vm13, %v10540_v35, %v9452_v29  ;;  %9345 = vmatpush3.msra.mxu0 %v6460_v48  ;;  %v3048_v16 = vld [vmem:[#allocation3 + $0x7a] sm:$0xff]  ;;  %v10541_v29 = vld [vmem:[#allocation3 + $0x50] sm:$0xff] }
 0x493   : > { %5722 = vrot.lane.b32.xlu1 %v13710_v12, %s10600_s12  ;;  %v4074_v5 = vsel %vm16313_vm1, %v4041_v46, %v9688_v26  ;;  %v9772_v17 = vunpack.i.l.bf16 %v13650_v56  ;;  %v9533_v30 = vunpack.i.h.bf16 %v13406_v11  ;;  %v4009_v2 = vsel %vm4002_vm14, %v3976_v4, %v9532_v10  ;;  %9346 = vmatprep.subr.mxu0 %v6459_v42 }
 0x494   : > { %v13857_v12 = vpop.permute.xlu0 %9955  ;;  %4401 = vmatmul.mubr.f32.gmra.mxu1 %v4171_v15  ;;  %v4107_v32 = vsel %vm16312_vm4, %v4074_v5, %v9768_v51  ;;  %v9852_v38 = vunpack.i.l.bf16 %v13698_v34  ;;  %v9613_v24 = vunpack.i.h.bf16 %v13517_v57  ;;  %v4042_v15 = vsel %vm4035_vm15, %v4009_v2, %v9612_v23  ;;  %v6458_v57 = vld [vmem:[%s16161_s1] sm:$0xff]  ;;  %9347 = vmatpush3.msra.mxu0 %v6459_v42 }
 0x495   : > { %v13855_v22 = vpop.permute.xlu1 %9950  ;;  %9077 = vmatprep.mubr.msk.f32.mxu1 %vm333_vm13, %v3046_v20  ;;  %v4140_v8 = vsel %vm16311_vm2, %v4107_v32, %v9848_v43  ;;  %v9693_v11 = vunpack.i.h.bf16 %v13580_v45  ;;  %v4075_v36 = vsel %vm16313_vm1, %v4042_v15, %v9692_v37  ;;  %v3977_v51 = vsel %vm333_vm13, %v10541_v29, %v9453_v25  ;;  %9348 = vmatprep.subr.mxu0 %v6458_v57  ;;  %v10542_v37 = vld [vmem:[#allocation3 + $0x60] sm:$0xff]  ;;  %v3050_v15 = vld [vmem:[#allocation3 + $0x92] sm:$0xff] }
 0x496   : > { %5470 = vrot.lane.b32.xlu0 %v5082_v47, %s10598_s10  ;;  %v4173_v26 = vsel %vm16310_vm12, %v4140_v8, %v9928_v59  ;;  %v9457_v60 = vunpack.i.l.bf16 %v13331_v28  ;;  %v9773_v45 = vunpack.i.h.bf16 %v13650_v56  ;;  %v4108_v14 = vsel %vm16312_vm4, %v4075_v36, %v9772_v17  ;;  %9349 = vmatpush3.msra.mxu0 %v6458_v57 }
 0x497   : > { %5850 = vrot.lane.b32.xlu1 %v5082_v47, %s10601_s13  ;;  %v9932_v47 = vunpack.i.l.bf16 %v13808_v27  ;;  %v4010_v40 = vsel %vm4002_vm14, %v3977_v51, %v9533_v30  ;;  %v9537_v10 = vunpack.i.l.bf16 %v13408_v6  ;;  %v9853_v43 = vunpack.i.h.bf16 %v13698_v34  ;;  %8562 = vmatprep.subr.mxu0 %v16780_v44 }
 0x498   : > { %v13885_v54 = vpop.permute.xlu0 %9965  ;;  %4406 = vmatmul.mubr.f32.gmra.mxu1 %v4172_v63  ;;  %v4141_v31 = vsel %vm16311_vm2, %v4108_v14, %v9852_v38  ;;  %v4043_v56 = vsel %vm4035_vm15, %v4010_v40, %v9613_v24  ;;  %v9617_v46 = vunpack.i.l.bf16 %v13519_v52  ;;  %v9933_v23 = vunpack.i.h.bf16 %v13808_v27 }
 0x499   : > { %v13883_v62 = vpop.permute.xlu1 %9960  ;;  %9078 = vmatprep.mubr.msk.f32.mxu1 %vm333_vm13, %v3047_v61  ;;  %v4174_v59 = vsel %vm16310_vm12, %v4141_v31, %v9932_v47  ;;  %v4076_v63 = vsel %vm16313_vm1, %v4043_v56, %v9693_v11  ;;  %v9697_v34 = vunpack.i.l.bf16 %v13582_v18  ;;  %v9458_v5 = vunpack.i.h.bf16 %v13331_v28  ;;  %v10543_v47 = vld [vmem:[#allocation3 + $0x68] sm:$0xff] }
 0x49a   : > { %5978 = vrot.lane.b32.xlu0 %v13604_v13, %s10602_s14  ;;  %v3978_v61 = vsel %vm333_vm13, %v10542_v37, %v9457_v60  ;;  %v9777_v27 = vunpack.i.l.bf16 %v13652_v21  ;;  %v4109_v25 = vsel %vm16312_vm4, %v4076_v63, %v9773_v45  ;;  %v9538_v35 = vunpack.i.h.bf16 %v13408_v6 }
 0x49b   : > { %5852 = vrot.lane.b32.xlu1 %v5083_v50, %s10601_s13  ;;  %v4011_v4 = vsel %vm4002_vm14, %v3978_v61, %v9537_v10  ;;  %v9857_v17 = vunpack.i.l.bf16 %v13700_v3  ;;  %v4142_v28 = vsel %vm16311_vm2, %v4109_v25, %v9853_v43  ;;  %v9618_v32 = vunpack.i.h.bf16 %v13519_v52  ;;  %v10544_v43 = vld [vmem:[#allocation3 + $0x78] sm:$0xff] }
 0x49c   : > { %v13911_v58 = vpop.permute.xlu0 %9975  ;;  %4411 = vmatmul.mubr.f32.gmra.mxu1 %v4173_v26  ;;  %v4044_v42 = vsel %vm4035_vm15, %v4011_v4, %v9617_v46  ;;  %v9937_v30 = vunpack.i.l.bf16 %v13810_v19  ;;  %v4175_v6 = vsel %vm16310_vm12, %v4142_v28, %v9933_v23  ;;  %v9698_v2 = vunpack.i.h.bf16 %v13582_v18  ;;  %v14002_v61 = vld [vmem:[#allocation2 + $0x48] sm:$0xff]  ;;  %v10545_v28 = vld [vmem:[#allocation3 + $0x80] sm:$0xff] }
 0x49d   : > { %v13909_v20 = vpop.permute.xlu1 %9970  ;;  %9079 = vmatprep.mubr.msk.f32.mxu1 %vm333_vm13, %v3048_v16  ;;  %v4077_v38 = vsel %vm16313_vm1, %v4044_v42, %v9697_v34  ;;  %v3979_v26 = vsel %vm333_vm13, %v10543_v47, %v9458_v5  ;;  %v9462_v52 = vunpack.i.l.bf16 %v13337_v33  ;;  %v9778_v11 = vunpack.i.h.bf16 %v13652_v21  ;;  %v16850_v34 = vld [vmem:[#allocation87_spill] sm:$0xff]  ;;  %v16851_v42 = vld [vmem:[#allocation162_spill] sm:$0xff] }
 0x49e   : > { %5598 = vrot.lane.b32.xlu0 %v13604_v13, %s10599_s11  ;;  %v3049_v13 = vld [vmem:[#allocation3 + $0x82] sm:$0xff]  ;;  %v4110_v36 = vsel %vm16312_vm4, %v4077_v38, %v9777_v27  ;;  %v4012_v18 = vsel %vm4002_vm14, %v3979_v26, %v9538_v35  ;;  %v9542_v16 = vunpack.i.l.bf16 %v13421_v41  ;;  %v9858_v57 = vunpack.i.h.bf16 %v13700_v3  ;;  %v16852_v38 = vld [vmem:[#allocation24_spill] sm:$0xff] }
 0x49f   : > { %5472 = vrot.lane.b32.xlu1 %v5083_v50, %s10598_s10  ;;  %v4143_v29 = vsel %vm16311_vm2, %v4110_v36, %v9857_v17  ;;  %v4045_v21 = vsel %vm4035_vm15, %v4012_v18, %v9618_v32  ;;  %v9622_v51 = vunpack.i.l.bf16 %v13532_v9  ;;  %v9938_v60 = vunpack.i.h.bf16 %v13810_v19  ;;  %v14004_v27 = vld [vmem:[#allocation2 + $0x50] sm:$0xff] }
 0x4a0   : > { %v13936_v50 = vpop.permute.xlu0 %9985  ;;  %4416 = vmatmul.mubr.f32.gmra.mxu1 %v4174_v59  ;;  %v4176_v45 = vsel %vm16310_vm12, %v4143_v29, %v9937_v30  ;;  %v4078_v14 = vsel %vm16313_vm1, %v4045_v21, %v9698_v2  ;;  %v9702_v3 = vunpack.i.l.bf16 %v13587_v7  ;;  %v9463_v10 = vunpack.i.h.bf16 %v13337_v33  ;;  %v16849_v59 = vld [vmem:[#allocation143_spill] sm:$0xff] }
 0x4a1   : > { %v13934_v48 = vpop.permute.xlu1 %9980  ;;  %9080 = vmatprep.mubr.msk.f32.mxu1 %vm333_vm13, %v3049_v13  ;;  %v3980_v31 = vsel %vm333_vm13, %v10544_v43, %v9462_v52  ;;  %v9782_v56 = vunpack.i.l.bf16 %v13656_v49  ;;  %v4111_v19 = vsel %vm16312_vm4, %v4078_v14, %v9778_v11  ;;  %v9543_v46 = vunpack.i.h.bf16 %v13421_v41  ;;  %v16853_v52 = vld [vmem:[#allocation138_spill] sm:$0xff]  ;;  %v10546_v14 = vld [vmem:[#allocation3 + $0x90] sm:$0xff] }
 0x4a2   : > { %6106 = vrot.lane.b32.xlu0 %v13721_v0, %s10603_s23  ;;  %v4013_v23 = vsel %vm4002_vm14, %v3980_v31, %v9542_v16  ;;  %v9862_v63 = vunpack.i.l.bf16 %v16849_v59  ;;  %v4144_v33 = vsel %vm16311_vm2, %v4111_v19, %v9858_v57  ;;  %v9623_v13 = vunpack.i.h.bf16 %v13532_v9  ;;  %v3052_v9 = vld [vmem:[#allocation3 + $0xaa] sm:$0xff]  ;;  %v16854_v57 = vld [vmem:[#allocation113_spill] sm:$0xff] }
 0x4a3   : > { %5980 = vrot.lane.b32.xlu1 %v13614_v39, %s10602_s14  ;;  %v4046_v5 = vsel %vm4035_vm15, %v4013_v23, %v9622_v51  ;;  %v9942_v37 = vunpack.i.l.bf16 %v13831_v55  ;;  %v4177_v41 = vsel %vm16310_vm12, %v4144_v33, %v9938_v60  ;;  %v9703_v25 = vunpack.i.h.bf16 %v13587_v7  ;;  %v3053_v60 = vld [vmem:[#allocation3 + $0xb2] sm:$0xff]  ;;  %v16858_v23 = vld [vmem:[#allocation83_spill] sm:$0xff] }
 0x4a4   : > { %v13960_v24 = vpop.permute.xlu0 %5210  ;;  %4421 = vmatmul.mubr.f32.gmra.mxu1 %v4175_v6  ;;  %v4079_v35 = vsel %vm16313_vm1, %v4046_v5, %v9702_v3  ;;  %v3981_v32 = vsel %vm333_vm13, %v10545_v28, %v9463_v10  ;;  %v9467_v30 = vunpack.i.l.bf16 %v16851_v42  ;;  %v9783_v6 = vunpack.i.h.bf16 %v13656_v49 }
 0x4a5   : > { %v13958_v8 = vpop.permute.xlu1 %9990  ;;  %9081 = vmatprep.mubr.msk.f32.mxu1 %vm333_vm13, %v3050_v15  ;;  %v4112_v2 = vsel %vm16312_vm4, %v4079_v35, %v9782_v56  ;;  %v4014_v7 = vsel %vm4002_vm14, %v3981_v32, %v9543_v46  ;;  %v9547_v15 = vunpack.i.l.bf16 %v16852_v38  ;;  %v9863_v47 = vunpack.i.h.bf16 %v16849_v59  ;;  %v16856_v56 = vld [vmem:[#allocation31_spill] sm:$0xff]  ;;  %v16857_v46 = vld [vmem:[#allocation14_spill] sm:$0xff] }
 0x4a6   : > { %5726 = vrot.lane.b32.xlu0 %v13721_v0, %s10600_s12  ;;  %v3051_v0 = vld [vmem:[#allocation3 + $0x9a] sm:$0xff]  ;;  %v4145_v26 = vsel %vm16311_vm2, %v4112_v2, %v9862_v63  ;;  %v4047_v49 = vsel %vm4035_vm15, %v4014_v7, %v9623_v13  ;;  %v9627_v11 = vunpack.i.l.bf16 %v16853_v52  ;;  %v9943_v36 = vunpack.i.h.bf16 %v13831_v55  ;;  %v3054_v35 = vld [vmem:[#allocation3 + $0xc2] sm:$0xff] }
 0x4a7   : > { %5600 = vrot.lane.b32.xlu1 %v13614_v39, %s10599_s11  ;;  %v4178_v18 = vsel %vm16310_vm12, %v4145_v26, %v9942_v37  ;;  %v4080_v16 = vsel %vm16313_vm1, %v4047_v49, %v9703_v25  ;;  %v9707_v29 = vunpack.i.l.bf16 %v16854_v57  ;;  %v3982_v3 = vsel %vm333_vm13, %v10546_v14, %v9467_v30  ;;  %v16859_v32 = vld [vmem:[#allocation6_spill] sm:$0xff]  ;;  %v16860_v7 = vld [vmem:[#allocation7_spill] sm:$0xff]  ;;  %v16862_v26 = vld [vmem:[#allocation145_spill] sm:$0xff] }
 0x4a8   : > { %v13983_v39 = vpop.permute.xlu0 %5214  ;;  %4426 = vmatmul.mubr.f32.gmra.mxu1 %v4176_v45  ;;  %v9468_v45 = vunpack.i.h.bf16 %v16851_v42  ;;  %v4113_v55 = vsel %vm16312_vm4, %v4080_v16, %v9783_v6  ;;  %v9548_v43 = vunpack.i.h.bf16 %v16852_v38  ;;  %v4015_v31 = vsel %vm4002_vm14, %v3982_v3, %v9547_v15  ;;  %v3055_v3 = vld [vmem:[#allocation3 + $0xca] sm:$0xff] }
 0x4a9   : > { %v13981_v40 = vpop.permute.xlu1 %5212  ;;  %9082 = vmatprep.mubr.msk.f32.mxu1 %vm333_vm13, %v3051_v0  ;;  %v16855_v0 = vld [vmem:[#allocation141_spill] sm:$0xff]  ;;  %v9867_v19 = vunpack.i.l.bf16 %v16856_v56  ;;  %v4146_v59 = vsel %vm16311_vm2, %v4113_v55, %v9863_v47  ;;  %v9628_v63 = vunpack.i.h.bf16 %v16853_v52  ;;  %v9947_v33 = vunpack.i.l.bf16 %v13833_v53  ;;  %v16861_v47 = vld [vmem:[#allocation84_spill] sm:$0xff] }
 0x4aa   : > { %5728 = vrot.lane.b32.xlu0 %v16850_v34, %s10600_s12  ;;  %v9787_v10 = vunpack.i.l.bf16 %v16855_v0  ;;  %v4179_v13 = vsel %vm16310_vm12, %v4146_v59, %v9943_v36  ;;  %v9708_v5 = vunpack.i.h.bf16 %v16854_v57  ;;  %v9472_v42 = vunpack.i.l.bf16 %v16859_v32  ;;  %v16866_v59 = vld [vmem:[#allocation40_spill] sm:$0xff] }
 0x4ab   : > { %6108 = vrot.lane.b32.xlu1 %v16850_v34, %s10603_s23  ;;  %v4048_v34 = vsel %vm4035_vm15, %v4015_v31, %v9627_v11  ;;  %v9788_v30 = vunpack.i.h.bf16 %v16855_v0  ;;  %v9552_v38 = vunpack.i.l.bf16 %v16860_v7  ;;  %v9868_v15 = vunpack.i.h.bf16 %v16856_v56  ;;  %v16863_v11 = vld [vmem:[#allocation20_spill] sm:$0xff] }
 0x4ac   : > { %v14010_v17 = vpop.permute.xlu0 %5218  ;;  %4431 = vmatmul.mubr.f32.gmra.mxu1 %v4177_v41  ;;  %v4081_v37 = vsel %vm16313_vm1, %v4048_v34, %v9707_v29  ;;  %v9632_v36 = vunpack.i.l.bf16 %v16863_v11  ;;  %v16864_v29 = vld [vmem:[#allocation110_spill] sm:$0xff]  ;;  %v9473_v0 = vunpack.i.h.bf16 %v16859_v32  ;;  %v9553_v56 = vunpack.i.h.bf16 %v16860_v7  ;;  %v10549_v32 = vld [vmem:[#allocation3 + $0xb0] sm:$0xff] }
 0x4ad   : > { %v14008_v4 = vpop.permute.xlu1 %5216  ;;  %9083 = vmatprep.mubr.msk.f32.mxu1 %vm333_vm13, %v3052_v9  ;;  %v10547_v9 = vld [vmem:[#allocation3 + $0x98] sm:$0xff]  ;;  %v4114_v6 = vsel %vm16312_vm4, %v4081_v37, %v9787_v10  ;;  %v10548_v10 = vld [vmem:[#allocation3 + $0xa8] sm:$0xff]  ;;  %vm16928_vm3 = vcmask 220160  }
 0x4ae   : > { %5856 = vrot.lane.b32.xlu0 %v14004_v27, %s10601_s13  ;;  %v3983_v28 = vsel %vm333_vm13, %v10547_v9, %v9468_v45  ;;  %v4147_v49 = vsel %vm16311_vm2, %v4114_v6, %v9867_v19  ;;  %v3984_v55 = vsel %vm333_vm13, %v10548_v10, %v9472_v42  ;;  %v3985_v42 = vsel %vm333_vm13, %v10549_v32, %v9473_v0 }
 0x4af   : > { %5854 = vrot.lane.b32.xlu1 %v14002_v61, %s10601_s13  ;;  %v4016_v2 = vsel %vm4002_vm14, %v3983_v28, %v9548_v43  ;;  %v4180_v16 = vsel %vm16310_vm12, %v4147_v49, %v9947_v33  ;;  %v16865_v43 = vld [vmem:[#allocation27_spill] sm:$0xff]  ;;  %v4017_v19 = vsel %vm4002_vm14, %v3984_v55, %v9552_v38  ;;  %v9633_v33 = vunpack.i.h.bf16 %v16863_v11 }
 0x4b0   : > { %v14033_v51 = vpop.permute.xlu0 %5222  ;;  %4436 = vmatmul.mubr.f32.gmra.mxu1 %v4178_v18  ;;  %v4049_v52 = vsel %vm4035_vm15, %v4016_v2, %v9628_v63  ;;  %v9948_v18 = vunpack.i.h.bf16 %v13833_v53  ;;  %v9792_v31 = vunpack.i.l.bf16 %v16865_v43  ;;  %v9872_v63 = vunpack.i.l.bf16 %v16866_v59 }
 0x4b1   : > { %v14031_v21 = vpop.permute.xlu1 %5220  ;;  %9084 = vmatprep.mubr.msk.f32.mxu1 %vm333_vm13, %v3053_v60  ;;  %v4082_v57 = vsel %vm16313_vm1, %v4049_v52, %v9708_v5  ;;  %v9712_v60 = vunpack.i.l.bf16 %v16864_v29  ;;  %v9952_v5 = vunpack.i.l.bf16 %v13855_v22  ;;  %v9793_v2 = vunpack.i.h.bf16 %v16865_v43  ;;  %v10550_v43 = vld [vmem:[#allocation3 + $0xc0] sm:$0xff] }
 0x4b2   : > { %5984 = vrot.lane.b32.xlu0 %v16858_v23, %s10602_s14  ;;  %v4115_v53 = vsel %vm16312_vm4, %v4082_v57, %v9788_v30  ;;  %v16867_v30 = vld [vmem:[#allocation12_spill] sm:$0xff]  ;;  %v4018_v38 = vsel %vm4002_vm14, %v3985_v42, %v9553_v56  ;;  %v9873_v52 = vunpack.i.h.bf16 %v16866_v59  ;;  %v9953_v57 = vunpack.i.h.bf16 %v13855_v22  ;;  %v10551_v42 = vld [vmem:[#allocation3 + $0xc8] sm:$0xff] }
 0x4b3   : > { %5982 = vrot.lane.b32.xlu1 %v16857_v46, %s10602_s14  ;;  %v4148_v34 = vsel %vm16311_vm2, %v4115_v53, %v9868_v15  ;;  %v9477_v6 = vunpack.i.l.bf16 %v16867_v30  ;;  %v16868_v15 = vld [vmem:[#allocation168_spill] sm:$0xff]  ;;  %v9478_v55 = vunpack.i.h.bf16 %v16867_v30 }
 0x4b4   : > { %v14056_v25 = vpop.permute.xlu0 %5226  ;;  %4441 = vmatmul.mubr.f32.gmra.mxu1 %v4179_v13  ;;  %v4050_v13 = vsel %vm4035_vm15, %v4017_v19, %v9632_v36  ;;  %v4181_v37 = vsel %vm16310_vm12, %v4148_v34, %v9948_v18  ;;  %v9557_v49 = vunpack.i.l.bf16 %v16868_v15  ;;  %v4051_v36 = vsel %vm4035_vm15, %v4018_v38, %v9633_v33  ;;  %v16869_v18 = vld [vmem:[#allocation28_spill] sm:$0xff] }
 0x4b5   : > { %v14054_v41 = vpop.permute.xlu1 %5224  ;;  %9085 = vmatprep.mubr.msk.f32.mxu1 %vm333_vm13, %v3054_v35  ;;  %v9713_v35 = vunpack.i.h.bf16 %v16864_v29  ;;  %v4083_v9 = vsel %vm16313_vm1, %v4050_v13, %v9712_v60  ;;  %v16871_v53 = vld [vmem:[#allocation36_spill] sm:$0xff]  ;;  %v9558_v19 = vunpack.i.h.bf16 %v16868_v15  ;;  %v9638_v13 = vunpack.i.h.bf16 %v16869_v18  ;;  %v14155_v15 = vld [vmem:[#allocation2 + $0x68] sm:$0xff] }
 0x4b6   : > { %6112 = vrot.lane.b32.xlu0 %v16862_v26, %s10603_s23  ;;  %v4116_v7 = vsel %vm16312_vm4, %v4083_v9, %v9792_v31  ;;  %v3986_v31 = vsel %vm333_vm13, %v10550_v43, %v9477_v6  ;;  %v9797_v56 = vunpack.i.l.bf16 %v16871_v53  ;;  %v3987_v30 = vsel %vm333_vm13, %v10551_v42, %v9478_v55  ;;  %v16873_v6 = vld [vmem:[#allocation15_spill] sm:$0xff]  ;;  %v14153_v38 = vld [vmem:[#allocation2 + $0x60] sm:$0xff] }
 0x4b7   : > { %6110 = vrot.lane.b32.xlu1 %v16861_v47, %s10603_s23  ;;  %v4149_v11 = vsel %vm16311_vm2, %v4116_v7, %v9872_v63  ;;  %v4084_v60 = vsel %vm16313_vm1, %v4051_v36, %v9713_v35  ;;  %v4019_v59 = vsel %vm4002_vm14, %v3986_v31, %v9557_v49  ;;  %v16872_v63 = vld [vmem:[#allocation140_spill] sm:$0xff]  ;;  %v9798_v7 = vunpack.i.h.bf16 %v16871_v53  ;;  %v16876_v55 = vld [vmem:[#allocation23_spill] sm:$0xff] }
 0x4b8   : > { %v14079_v14 = vpop.permute.xlu0 %5230  ;;  %4446 = vmatmul.mubr.f32.gmra.mxu1 %v4180_v16  ;;  %v9637_v16 = vunpack.i.l.bf16 %v16869_v18  ;;  %v4182_v29 = vsel %vm16310_vm12, %v4149_v11, %v9952_v5  ;;  %v4117_v22 = vsel %vm16312_vm4, %v4084_v60, %v9793_v2  ;;  %v9877_v34 = vunpack.i.l.bf16 %v16872_v63  ;;  %v16874_v11 = vld [vmem:[#allocation10_spill] sm:$0xff] }
 0x4b9   : > { %v14077_v45 = vpop.permute.xlu1 %5228  ;;  %9086 = vmatprep.mubr.msk.f32.mxu1 %vm333_vm13, %v3055_v3  ;;  %v16870_v3 = vld [vmem:[#allocation139_spill] sm:$0xff]  ;;  %v4150_v33 = vsel %vm16311_vm2, %v4117_v22, %v9873_v52  ;;  %v9482_v2 = vunpack.i.l.bf16 %v16873_v6  ;;  %v4020_v52 = vsel %vm4002_vm14, %v3987_v30, %v9558_v19  ;;  %v9562_v36 = vunpack.i.l.bf16 %v16874_v11  ;;  %v10552_v19 = vld [vmem:[#allocation3 + $0xd8] sm:$0xff] }
 0x4ba   : > { %5476 = vrot.lane.b32.xlu0 %v14004_v27, %s10598_s10  ;;  %v3056_v27 = vld [vmem:[#allocation3 + $0xda] sm:$0xff]  ;;  %v9717_v0 = vunpack.i.l.bf16 %v16870_v3  ;;  %v4052_v5 = vsel %vm4035_vm15, %v4019_v59, %v9637_v16  ;;  %v4183_v35 = vsel %vm16310_vm12, %v4150_v33, %v9953_v57  ;;  %v9718_v9 = vunpack.i.h.bf16 %v16870_v3 }
 0x4bb   : > { %5474 = vrot.lane.b32.xlu1 %v14002_v61, %s10598_s10  ;;  %v9878_v18 = vunpack.i.h.bf16 %v16872_v63  ;;  %v4053_v57 = vsel %vm4035_vm15, %v4020_v52, %v9638_v13  ;;  %v9958_v3 = vunpack.i.h.bf16 %v13857_v12  ;;  %v9722_v43 = vunpack.i.l.bf16 %v16876_v55  ;;  %v16877_v63 = vld [vmem:[#allocation18_spill] sm:$0xff] }
 0x4bc   : > { %v14102_v61 = vpop.permute.xlu0 %5234  ;;  %4451 = vmatmul.mubr.f32.gmra.mxu1 %v4181_v37  ;;  %v9957_v37 = vunpack.i.l.bf16 %v13857_v12  ;;  %v9483_v22 = vunpack.i.h.bf16 %v16873_v6  ;;  %v3988_v59 = vsel %vm333_vm13, %v10552_v19, %v9482_v2  ;;  %v9563_v33 = vunpack.i.h.bf16 %v16874_v11  ;;  %v3060_v11 = vld [vmem:[#allocation3 + $0x10a] sm:$0xff] }
 0x4bd   : > { %v14100_v28 = vpop.permute.xlu1 %5232  ;;  %9087 = vmatprep.mubr.msk.f32.mxu1 %vm333_vm13, %v3056_v27  ;;  %v4085_v27 = vsel %vm16313_vm1, %v4052_v5, %v9717_v0  ;;  %v4021_v13 = vsel %vm4002_vm14, %v3988_v59, %v9562_v36  ;;  %v16878_v5 = vld [vmem:[#allocation25_spill] sm:$0xff]  ;;  %v9962_v30 = vunpack.i.l.bf16 %v13883_v62  ;;  %v9723_v2 = vunpack.i.h.bf16 %v16876_v55  ;;  %v10554_v36 = vld [vmem:[#allocation3 + $0xe0] sm:$0xff]  ;;  %v16883_v19 = vld [vmem:[#allocation172_spill] sm:$0xff] }
 0x4be   : > { %5604 = vrot.lane.b32.xlu0 %v16858_v23, %s10599_s11  ;;  %v3057_v23 = vld [vmem:[#allocation3 + $0xe2] sm:$0xff]  ;;  %v4118_v49 = vsel %vm16312_vm4, %v4085_v27, %v9797_v56  ;;  %v3059_v56 = vld [vmem:[#allocation3 + $0xfa] sm:$0xff]  ;;  %v9883_v55 = vunpack.i.h.bf16 %v16878_v5  ;;  %v9647_v59 = vunpack.i.l.bf16 %v16883_v19 }
 0x4bf   : > { %5602 = vrot.lane.b32.xlu1 %v16857_v46, %s10599_s11  ;;  %v4151_v16 = vsel %vm16311_vm2, %v4118_v49, %v9877_v34  ;;  %v9802_v34 = vunpack.i.l.bf16 %v16877_v63 }
 0x4c0   : > { %v14125_v46 = vpop.permute.xlu0 %5238  ;;  %4456 = vmatmul.mubr.f32.gmra.mxu1 %v4182_v29  ;;  %v16875_v29 = vld [vmem:[#allocation11_spill] sm:$0xff]  ;;  %v4184_v0 = vsel %vm16310_vm12, %v4151_v16, %v9957_v37  ;;  %v9882_v37 = vunpack.i.l.bf16 %v16878_v5 }
 0x4c1   : > { %v14123_v10 = vpop.permute.xlu1 %5236  ;;  %9088 = vmatprep.mubr.msk.f32.mxu1 %vm333_vm13, %v3057_v23  ;;  %v9642_v60 = vunpack.i.l.bf16 %v16875_v29  ;;  %v4086_v23 = vsel %vm16313_vm1, %v4053_v57, %v9718_v9  ;;  %v16879_v9 = vld [vmem:[#allocation115_spill] sm:$0xff] }
 0x4c2   : > { %5732 = vrot.lane.b32.xlu0 %v16862_v26, %s10600_s12  ;;  %v3058_v26 = vld [vmem:[#allocation3 + $0xf2] sm:$0xff]  ;;  %v4119_v12 = vsel %vm16312_vm4, %v4086_v23, %v9798_v7  ;;  %v16880_v16 = vld [vmem:[#allocation75_spill] sm:$0xff] }
 0x4c3   : > { %5730 = vrot.lane.b32.xlu1 %v16861_v47, %s10600_s12  ;;  %v4152_v27 = vsel %vm16311_vm2, %v4119_v12, %v9878_v18  ;;  %v4054_v42 = vsel %vm4035_vm15, %v4021_v13, %v9642_v60  ;;  %v3989_v18 = vsel %vm333_vm13, %v10554_v36, %v9483_v22  ;;  %v9487_v57 = vunpack.i.l.bf16 %v16880_v16 }
 0x4c4   : > { %v14148_v47 = vpop.permute.xlu0 %5242  ;;  %4461 = vmatmul.mubr.f32.gmra.mxu1 %v4183_v35  ;;  %v10553_v35 = vld [vmem:[#allocation2 + $0x61] sm:$0xff]  ;;  %v4185_v6 = vsel %vm16310_vm12, %v4152_v27, %v9958_v3  ;;  %v4087_v7 = vsel %vm16313_vm1, %v4054_v42, %v9722_v43  ;;  %v4022_v3 = vsel %vm4002_vm14, %v3989_v18, %v9563_v33  ;;  %v16882_v43 = vld [vmem:[#allocation35_spill] sm:$0xff]  ;;  %v9648_v18 = vunpack.i.h.bf16 %v16883_v19 }
 0x4c5   : > { %v14146_v32 = vpop.permute.xlu1 %5240  ;;  %9089 = vmatprep.mubr.msk.f32.mxu1 %vm333_vm13, %v3058_v26  ;;  %v9643_v26 = vunpack.i.h.bf16 %v16875_v29  ;;  %v9803_v29 = vunpack.i.h.bf16 %v16877_v63  ;;  %v4120_v60 = vsel %vm16312_vm4, %v4087_v7, %v9802_v34  ;;  %v9963_v63 = vunpack.i.h.bf16 %v13883_v62  ;;  %v16884_v33 = vld [vmem:[#allocation32_spill] sm:$0xff]  ;;  %v16887_v42 = vld [vmem:[#allocation21_spill] sm:$0xff]  ;;  %v16888_v7 = vld [vmem:[#allocation34_spill] sm:$0xff] }
 0x4c6   : > { %5860 = vrot.lane.b32.xlu0 %v14155_v15, %s10601_s13  ;;  %v9727_v13 = vunpack.i.l.bf16 %v16884_v33  ;;  %v10555_v27 = vld [vmem:[#allocation3 + $0xf0] sm:$0xff]  ;;  %v16891_v19 = vld [vmem:[#allocation69_spill] sm:$0xff] }
 0x4c7   : > { %5858 = vrot.lane.b32.xlu1 %v14153_v38, %s10601_s13  ;;  %v4055_v22 = vsel %vm4035_vm15, %v4022_v3, %v9643_v26  ;;  %v3990_v26 = vsel %vm333_vm13, %v10555_v27, %v9487_v57  ;;  %v9967_v57 = vunpack.i.l.bf16 %v13885_v54  ;;  %v5025_v3 = vld [vmem:[#allocation2 + $0x69] sm:$0xff] }
 0x4c8   : > { %v14175_v53 = vpop.permute.xlu0 %5246  ;;  %4466 = vmatmul.mubr.f32.gmra.mxu1 %v4184_v0  ;;  %v16881_v0 = vld [vmem:[#allocation19_spill] sm:$0xff]  ;;  %v4088_v12 = vsel %vm16313_vm1, %v4055_v22, %v9723_v2 }
 0x4c9   : > { %v14173_v31 = vpop.permute.xlu1 %5244  ;;  %9090 = vmatprep.mubr.msk.f32.mxu1 %vm333_vm13, %v3059_v56  ;;  %v9567_v23 = vunpack.i.l.bf16 %v16881_v0  ;;  %v4153_v56 = vsel %vm16311_vm2, %v4120_v60, %v9882_v37  ;;  %v9488_v37 = vunpack.i.h.bf16 %v16880_v16  ;;  %v4121_v62 = vsel %vm16312_vm4, %v4088_v12, %v9803_v29  ;;  %v5024_v60 = vld [vmem:[#allocation2 + $0x61] sm:$0xff] }
 0x4ca   : > { %5988 = vrot.lane.b32.xlu0 %v16879_v9, %s10602_s14  ;;  %v4186_v34 = vsel %vm16310_vm12, %v4153_v56, %v9962_v30  ;;  %v3061_v9 = vld [vmem:[#allocation3 + $0x112] sm:$0xff]  ;;  %v9568_v30 = vunpack.i.h.bf16 %v16881_v0  ;;  %v4154_v36 = vsel %vm16311_vm2, %v4121_v62, %v9883_v55  ;;  %v9728_v0 = vunpack.i.h.bf16 %v16884_v33  ;;  %v16892_v33 = vld [vmem:[#allocation78_spill] sm:$0xff] }
 0x4cb   : > { %5986 = vrot.lane.b32.xlu1 %v10553_v35, %s10602_s14  ;;  %v4023_v2 = vsel %vm4002_vm14, %v3990_v26, %v9567_v23  ;;  %v4187_v29 = vsel %vm16310_vm12, %v4154_v36, %v9963_v63  ;;  %v10556_v55 = vld [vmem:[#allocation3 + $0xf8] sm:$0xff]  ;;  %v9968_v62 = vunpack.i.h.bf16 %v13885_v54 }
 0x4cc   : > { %v14197_v52 = vpop.permute.xlu0 %5250  ;;  %4471 = vmatmul.mubr.f32.gmra.mxu1 %v4185_v6  ;;  %v9807_v6 = vunpack.i.l.bf16 %v16887_v42  ;;  %v4056_v16 = vsel %vm4035_vm15, %v4023_v2, %v9647_v59  ;;  %v3991_v22 = vsel %vm333_vm13, %v10556_v55, %v9488_v37  ;;  %v9492_v59 = vunpack.i.l.bf16 %v16891_v19  ;;  %v16893_v26 = vld [vmem:[#allocation13_spill] sm:$0xff] }
 0x4cd   : > { %v14195_v49 = vpop.permute.xlu1 %5248  ;;  %9091 = vmatprep.mubr.msk.f32.mxu1 %vm333_vm13, %v3060_v11  ;;  %v9887_v11 = vunpack.i.l.bf16 %v16888_v7  ;;  %v4089_v23 = vsel %vm16313_vm1, %v4056_v16, %v9727_v13  ;;  %v4024_v12 = vsel %vm4002_vm14, %v3991_v22, %v9568_v30  ;;  %v9572_v13 = vunpack.i.l.bf16 %v16892_v33  ;;  %v16894_v2 = vld [vmem:[#allocation17_spill] sm:$0xff] }
 0x4ce   : > { %6116 = vrot.lane.b32.xlu0 %v13767_v1, %s10603_s23  ;;  %v4122_v63 = vsel %vm16312_vm4, %v4089_v23, %v9807_v6  ;;  %v4057_v27 = vsel %vm4035_vm15, %v4024_v12, %v9648_v18  ;;  %v9732_v36 = vunpack.i.l.bf16 %v16894_v2  ;;  %v9733_v12 = vunpack.i.h.bf16 %v16894_v2 }
 0x4cf   : > { %6114 = vrot.lane.b32.xlu1 %v16882_v43, %s10603_s23  ;;  %v4155_v37 = vsel %vm16311_vm2, %v4122_v63, %v9887_v11  ;;  %v4090_v30 = vsel %vm16313_vm1, %v4057_v27, %v9728_v0  ;;  %v9493_v11 = vunpack.i.h.bf16 %v16891_v19  ;;  %v9653_v19 = vunpack.i.h.bf16 %v16893_v26  ;;  %v16901_v27 = vld [vmem:[#allocation109_spill] sm:$0xff] }
 0x4d0   : > { %v14220_v35 = vpop.permute.xlu0 %5254  ;;  %4476 = vmatmul.mubr.f32.gmra.mxu1 %v4186_v34  ;;  %v9808_v34 = vunpack.i.h.bf16 %v16887_v42  ;;  %v9652_v42 = vunpack.i.l.bf16 %v16893_v26  ;;  %v4188_v6 = vsel %vm16310_vm12, %v4155_v37, %v9967_v57  ;;  %v9573_v57 = vunpack.i.h.bf16 %v16892_v33  ;;  %v10558_v37 = vld [vmem:[#allocation3 + $0x110] sm:$0xff] }
 0x4d1   : > { %v14218_v5 = vpop.permute.xlu1 %5252  ;;  %16886 = vst [vmem:[#allocation89_spill] sm:$0xff] %v14220_v35  ;;  %9092 = vmatprep.mubr.msk.f32.mxu1 %vm333_vm13, %v3061_v9  ;;  %v9888_v9 = vunpack.i.h.bf16 %v16888_v7  ;;  %v9497_v26 = vunpack.i.l.bf16 %v16901_v27 }
 0x4d2   : > { %16885 = vst [vmem:[#allocation38_spill] sm:$0xff] %v14218_v5  ;;  %5480 = vrot.lane.b32.xlu0 %v14155_v15, %s10598_s10  ;;  %v3062_v15 = vld [vmem:[#allocation3 + $0x122] sm:$0xff]  ;;  %v4123_v54 = vsel %vm16312_vm4, %v4090_v30, %v9808_v34  ;;  %v9972_v34 = vunpack.i.l.bf16 %v13909_v20 }
 0x4d3   : > { %5478 = vrot.lane.b32.xlu1 %v14153_v38, %s10598_s10  ;;  %v4156_v22 = vsel %vm16311_vm2, %v4123_v54, %v9888_v9  ;;  %v3993_v9 = vsel %vm333_vm13, %v10558_v37, %v9493_v11  ;;  %v10559_v37 = vld [vmem:[#allocation3 + $0x120] sm:$0xff] }
 0x4d4   : > { %v14243_v56 = vpop.permute.xlu0 %5258  ;;  %4481 = vmatmul.mubr.f32.gmra.mxu1 %v4187_v29  ;;  %v3063_v29 = vld [vmem:[#allocation3 + $0x12a] sm:$0xff]  ;;  %v4189_v63 = vsel %vm16310_vm12, %v4156_v22, %v9968_v62  ;;  %v4026_v2 = vsel %vm4002_vm14, %v3993_v9, %v9573_v57 }
 0x4d5   : > { %v14241_v38 = vpop.permute.xlu1 %5256  ;;  %16890 = vst [vmem:[#allocation121_spill] sm:$0xff] %v14243_v56  ;;  %9093 = vmatprep.mubr.msk.f32.mxu1 %vm333_vm13, %v3062_v15  ;;  %v16898_v15 = vld [vmem:[#allocation119_spill] sm:$0xff]  ;;  %v14294_v62 = vld [vmem:[#allocation2 + $0x80] sm:$0xff] }
 0x4d6   : > { %16889 = vst [vmem:[#allocation86_spill] sm:$0xff] %v14241_v38  ;;  %5608 = vrot.lane.b32.xlu0 %v5025_v3, %s10599_s11  ;;  %v16897_v3 = vld [vmem:[#allocation30_spill] sm:$0xff]  ;;  %v9892_v55 = vunpack.i.l.bf16 %v16898_v15  ;;  %v14312_v22 = vld [vmem:[#allocation2 + $0x81] sm:$0xff] }
 0x4d7   : > { %5606 = vrot.lane.b32.xlu1 %v5024_v60, %s10599_s11  ;;  %v10557_v60 = vld [vmem:[#allocation3 + $0x108] sm:$0xff]  ;;  %v9812_v23 = vunpack.i.l.bf16 %v16897_v3 }
 0x4d8   : > { %v14264_v7 = vpop.permute.xlu0 %5262  ;;  %4486 = vmatmul.mubr.f32.gmra.mxu1 %v4188_v6  ;;  %v3992_v18 = vsel %vm333_vm13, %v10557_v60, %v9492_v59  ;;  %v14292_v6 = vld [vmem:[#allocation2 + $0x78] sm:$0xff]  ;;  %v9893_v60 = vunpack.i.h.bf16 %v16898_v15 }
 0x4d9   : > { %v14262_v16 = vpop.permute.xlu1 %5260  ;;  %16896 = vst [vmem:[#allocation147_spill] sm:$0xff] %v14264_v7  ;;  %9094 = vmatprep.mubr.msk.f32.mxu1 %vm333_vm13, %v3063_v29  ;;  %v4025_v0 = vsel %vm4002_vm14, %v3992_v18, %v9572_v13  ;;  %v4059_v18 = vsel %vm4035_vm15, %v4026_v2, %v9653_v19  ;;  %v9498_v19 = vunpack.i.h.bf16 %v16901_v27 }
 0x4da   : > { %16895 = vst [vmem:[#allocation118_spill] sm:$0xff] %v14262_v16  ;;  %5736 = vrot.lane.b32.xlu0 %v13767_v1, %s10600_s12  ;;  %v4058_v59 = vsel %vm4035_vm15, %v4025_v0, %v9652_v42  ;;  %v3064_v1 = vld [vmem:[#allocation3 + $0x13a] sm:$0xff]  ;;  %v9813_v42 = vunpack.i.h.bf16 %v16897_v3  ;;  %v14310_v0 = vld [vmem:[#allocation2 + $0x79] sm:$0xff]  ;;  %v4092_v15 = vsel %vm16313_vm1, %v4059_v18, %v9733_v12 }
 0x4db   : > { %5734 = vrot.lane.b32.xlu1 %v16882_v43, %s10600_s12  ;;  %v4091_v33 = vsel %vm16313_vm1, %v4058_v59, %v9732_v36  ;;  %v16902_v36 = vld [vmem:[#allocation165_spill] sm:$0xff]  ;;  %v16903_v3 = vld [vmem:[#allocation22_spill] sm:$0xff] }
 0x4dc   : > { %v14287_v43 = vpop.permute.xlu0 %5266  ;;  %4491 = vmatmul.mubr.f32.gmra.mxu1 %v4189_v63  ;;  %v4124_v30 = vsel %vm16312_vm4, %v4091_v33, %v9812_v23  ;;  %v9577_v29 = vunpack.i.l.bf16 %v16902_v36  ;;  %v9657_v54 = vunpack.i.l.bf16 %v16903_v3  ;;  %v9973_v23 = vunpack.i.h.bf16 %v13909_v20  ;;  %v16904_v59 = vld [vmem:[#allocation26_spill] sm:$0xff] }
 0x4dd   : > { %v14285_v13 = vpop.permute.xlu1 %5264  ;;  %16900 = vst [vmem:[#allocation48_spill] sm:$0xff] %v14287_v43  ;;  %9095 = vmatprep.mubr.msk.f32.mxu1 %vm333_vm13, %v3064_v1  ;;  %v4157_v11 = vsel %vm16311_vm2, %v4124_v30, %v9892_v55  ;;  %v9737_v63 = vunpack.i.l.bf16 %v16904_v59  ;;  %v3065_v55 = vld [vmem:[#allocation3 + $0x142] sm:$0xff]  ;;  %v3994_v20 = vsel %vm333_vm13, %v10559_v37, %v9497_v26  ;;  %v4125_v30 = vsel %vm16312_vm4, %v4092_v15, %v9813_v42  ;;  %v14337_v15 = vld [vmem:[#allocation2 + $0x82] sm:$0xff]  ;;  %v3067_v43 = vld [vmem:[#allocation3 + $0x15a] sm:$0xff] }
 0x4de   : > { %16899 = vst [vmem:[#allocation39_spill] sm:$0xff] %v14285_v13  ;;  %5864 = vrot.lane.b32.xlu0 %v14294_v62, %s10601_s13  ;;  %v4190_v57 = vsel %vm16310_vm12, %v4157_v11, %v9972_v34  ;;  %v16907_v34 = vld [vmem:[#allocation85_spill] sm:$0xff]  ;;  %v9578_v12 = vunpack.i.h.bf16 %v16902_v36  ;;  %v4027_v2 = vsel %vm4002_vm14, %v3994_v20, %v9577_v29  ;;  %v16908_v11 = vld [vmem:[#allocation116_spill] sm:$0xff]  ;;  %v4158_v27 = vsel %vm16311_vm2, %v4125_v30, %v9893_v60  ;;  %v10560_v30 = vld [vmem:[#allocation3 + $0x128] sm:$0xff] }
 0x4df   : > { %5862 = vrot.lane.b32.xlu1 %v14292_v6, %s10601_s13  ;;  %v9817_v9 = vunpack.i.l.bf16 %v16907_v34  ;;  %v9897_v18 = vunpack.i.l.bf16 %v16908_v11  ;;  %v9658_v26 = vunpack.i.h.bf16 %v16903_v3  ;;  %v9977_v42 = vunpack.i.l.bf16 %v13911_v58  ;;  %v3066_v60 = vld [vmem:[#allocation3 + $0x152] sm:$0xff] }
 0x4e0   : > { %v14318_v1 = vpop.permute.xlu0 %5270  ;;  %4496 = vmatmul.mubr.f32.gmra.mxu1 %v4190_v57  ;;  %v4060_v57 = vsel %vm4035_vm15, %v4027_v2, %v9657_v54  ;;  %v4191_v36 = vsel %vm16310_vm12, %v4158_v27, %v9973_v23  ;;  %v9738_v29 = vunpack.i.h.bf16 %v16904_v59  ;;  %v3995_v3 = vsel %vm333_vm13, %v10560_v30, %v9498_v19  ;;  %v16910_v54 = vld [vmem:[#allocation106_spill] sm:$0xff] }
 0x4e1   : > { %v14316_v33 = vpop.permute.xlu1 %5268  ;;  %16906 = vst [vmem:[#allocation33_spill] sm:$0xff] %v14318_v1  ;;  %9096 = vmatprep.mubr.msk.f32.mxu1 %vm333_vm13, %v3065_v55  ;;  %v4093_v55 = vsel %vm16313_vm1, %v4060_v57, %v9737_v63  ;;  %v9502_v2 = vunpack.i.l.bf16 %v16910_v54  ;;  %v9818_v1 = vunpack.i.h.bf16 %v16907_v34  ;;  %v4028_v59 = vsel %vm4002_vm14, %v3995_v3, %v9578_v12  ;;  %v16911_v63 = vld [vmem:[#allocation74_spill] sm:$0xff] }
 0x4e2   : > { %16905 = vst [vmem:[#allocation144_spill] sm:$0xff] %v14316_v33  ;;  %5992 = vrot.lane.b32.xlu0 %v14312_v22, %s10602_s14  ;;  %v4126_v23 = vsel %vm16312_vm4, %v4093_v55, %v9817_v9  ;;  %v9582_v27 = vunpack.i.l.bf16 %v16911_v63  ;;  %v9898_v57 = vunpack.i.h.bf16 %v16908_v11  ;;  %v4061_v34 = vsel %vm4035_vm15, %v4028_v59, %v9658_v26  ;;  %v16914_v59 = vld [vmem:[#allocation82_spill] sm:$0xff] }
 0x4e3   : > { %5990 = vrot.lane.b32.xlu1 %v14310_v0, %s10602_s14  ;;  %v4159_v19 = vsel %vm16311_vm2, %v4126_v23, %v9897_v18  ;;  %v9978_v12 = vunpack.i.h.bf16 %v13911_v58  ;;  %v4094_v11 = vsel %vm16313_vm1, %v4061_v34, %v9738_v29  ;;  %v9503_v18 = vunpack.i.h.bf16 %v16910_v54  ;;  %v10562_v23 = vld [vmem:[#allocation3 + $0x138] sm:$0xff] }
 0x4e4   : > { %v14343_v20 = vpop.permute.xlu0 %5338  ;;  %4501 = vmatmul.mubr.f32.gmra.mxu1 %v4191_v36  ;;  %v16912_v36 = vld [vmem:[#allocation81_spill] sm:$0xff]  ;;  %v4192_v55 = vsel %vm16310_vm12, %v4159_v19, %v9977_v42  ;;  %v3996_v26 = vsel %vm333_vm13, %v10562_v23, %v9502_v2  ;;  %v9822_v13 = vunpack.i.l.bf16 %v16914_v59  ;;  %v4127_v58 = vsel %vm16312_vm4, %v4094_v11, %v9818_v1  ;;  %v16915_v19 = vld [vmem:[#allocation44_spill] sm:$0xff]  ;;  %v10563_v23 = vld [vmem:[#allocation3 + $0x140] sm:$0xff] }
 0x4e5   : > { %v14341_v37 = vpop.permute.xlu1 %5272  ;;  %9097 = vmatprep.mubr.msk.f32.mxu1 %vm333_vm13, %v3066_v60  ;;  %v9662_v9 = vunpack.i.l.bf16 %v16912_v36  ;;  %v16913_v60 = vld [vmem:[#allocation171_spill] sm:$0xff]  ;;  %v9583_v42 = vunpack.i.h.bf16 %v16911_v63  ;;  %v4029_v29 = vsel %vm4002_vm14, %v3996_v26, %v9582_v27  ;;  %v9902_v34 = vunpack.i.l.bf16 %v16915_v19 }
 0x4e6   : > { %16909 = vst [vmem:[#allocation42_spill] sm:$0xff] %v14341_v37  ;;  %v14353_v37 = vld [vmem:[#allocation2 + $0x7a] sm:$0xff]  ;;  %6120 = vrot.lane.b32.xlu0 %v14337_v15, %s10603_s23  ;;  %v9742_v30 = vunpack.i.l.bf16 %v16913_v60  ;;  %v4160_v54 = vsel %vm16311_vm2, %v4127_v58, %v9898_v57  ;;  %v9663_v2 = vunpack.i.h.bf16 %v16912_v36  ;;  %v9982_v1 = vunpack.i.l.bf16 %v13934_v48  ;;  %v16916_v36 = vld [vmem:[#allocation137_spill] sm:$0xff] }
 0x4e7   : > { %6118 = vrot.lane.b32.xlu1 %v14353_v37, %s10603_s23  ;;  %v4193_v63 = vsel %vm16310_vm12, %v4160_v54, %v9978_v12  ;;  %v9743_v27 = vunpack.i.h.bf16 %v16913_v60  ;;  %v3997_v57 = vsel %vm333_vm13, %v10563_v23, %v9503_v18  ;;  %v9507_v26 = vunpack.i.l.bf16 %v16916_v36  ;;  %v16918_v54 = vld [vmem:[#allocation167_spill] sm:$0xff]  ;;  %v10564_v23 = vld [vmem:[#allocation3 + $0x150] sm:$0xff] }
 0x4e8   : > { %v14368_v33 = vpop.permute.xlu0 %5342  ;;  %4506 = vmatmul.mubr.f32.gmra.mxu1 %v4192_v55  ;;  %v4030_v60 = vsel %vm4002_vm14, %v3997_v57, %v9583_v42  ;;  %v16920_v57 = vld [vmem:[#allocation117_spill] sm:$0xff] }
 0x4e9   : > { %v14366_v3 = vpop.permute.xlu1 %5340  ;;  %9098 = vmatprep.mubr.msk.f32.mxu1 %vm333_vm13, %v3067_v43  ;;  %v4062_v43 = vsel %vm4035_vm15, %v4029_v29, %v9662_v9  ;;  %v9823_v9 = vunpack.i.h.bf16 %v16914_v59  ;;  %v9903_v29 = vunpack.i.h.bf16 %v16915_v19  ;;  %v4063_v59 = vsel %vm4035_vm15, %v4030_v60, %v9663_v2  ;;  %v16921_v60 = vld [vmem:[#allocation142_spill] sm:$0xff] }
 0x4ea   : > { %5484 = vrot.lane.b32.xlu0 %v14294_v62, %s10598_s10  ;;  %v4095_v55 = vsel %vm16313_vm1, %v4062_v43, %v9742_v30  ;;  %v3068_v62 = vld [vmem:[#allocation3 + $0x16a] sm:$0xff]  ;;  %v9667_v43 = vunpack.i.l.bf16 %v16918_v54  ;;  %v3998_v2 = vsel %vm333_vm13, %v10564_v23, %v9507_v26  ;;  %v9668_v26 = vunpack.i.h.bf16 %v16918_v54  ;;  %v10565_v23 = vld [vmem:[#allocation3 + $0x158] sm:$0xff] }
 0x4eb   : > { %5482 = vrot.lane.b32.xlu1 %v14292_v6, %s10598_s10  ;;  %v4128_v12 = vsel %vm16312_vm4, %v4095_v55, %v9822_v13  ;;  %v16917_v30 = vld [vmem:[#allocation111_spill] sm:$0xff]  ;;  %v9983_v13 = vunpack.i.h.bf16 %v13934_v48  ;;  %v16919_v55 = vld [vmem:[#allocation80_spill] sm:$0xff] }
 0x4ec   : > { %v14391_v6 = vpop.permute.xlu0 %5346  ;;  %4511 = vmatmul.mubr.f32.gmra.mxu1 %v4193_v63  ;;  %v9587_v58 = vunpack.i.l.bf16 %v16917_v30  ;;  %v4161_v18 = vsel %vm16311_vm2, %v4128_v12, %v9902_v34  ;;  %v4096_v63 = vsel %vm16313_vm1, %v4063_v59, %v9743_v27  ;;  %v9747_v19 = vunpack.i.l.bf16 %v16919_v55  ;;  %v16922_v54 = vld [vmem:[#allocation16_spill] sm:$0xff] }
 0x4ed   : > { %v14389_v11 = vpop.permute.xlu1 %5344  ;;  %9099 = vmatprep.mubr.msk.f32.mxu1 %vm333_vm13, %v3068_v62  ;;  %v4194_v42 = vsel %vm16310_vm12, %v4161_v18, %v9982_v1  ;;  %v9508_v34 = vunpack.i.h.bf16 %v16916_v36  ;;  %v9827_v12 = vunpack.i.l.bf16 %v16920_v57  ;;  %v4129_v48 = vsel %vm16312_vm4, %v4096_v63, %v9823_v9 }
 0x4ee   : > { %5612 = vrot.lane.b32.xlu0 %v14312_v22, %s10599_s11  ;;  %v3069_v22 = vld [vmem:[#allocation3 + $0x172] sm:$0xff]  ;;  %v9588_v1 = vunpack.i.h.bf16 %v16917_v30  ;;  %v4031_v27 = vsel %vm4002_vm14, %v3998_v2, %v9587_v58  ;;  %v9907_v18 = vunpack.i.l.bf16 %v16921_v60  ;;  %v4162_v36 = vsel %vm16311_vm2, %v4129_v48, %v9903_v29  ;;  %v14442_v48 = vld [vmem:[#allocation2 + $0x90] sm:$0xff] }
 0x4ef   : > { %5610 = vrot.lane.b32.xlu1 %v14310_v0, %s10599_s11  ;;  %v4064_v59 = vsel %vm4035_vm15, %v4031_v27, %v9667_v43  ;;  %v9987_v9 = vunpack.i.l.bf16 %v13936_v50  ;;  %v4195_v30 = vsel %vm16310_vm12, %v4162_v36, %v9983_v13  ;;  %v9748_v58 = vunpack.i.h.bf16 %v16919_v55  ;;  %v14444_v13 = vld [vmem:[#allocation2 + $0x98] sm:$0xff]  ;;  %v16923_v27 = vld [vmem:[#allocation108_spill] sm:$0xff] }
 0x4f0   : > { %v14414_v0 = vpop.permute.xlu0 %5350  ;;  %4516 = vmatmul.mubr.f32.gmra.mxu1 %v4194_v42  ;;  %v4097_v42 = vsel %vm16313_vm1, %v4064_v59, %v9747_v19  ;;  %v3999_v29 = vsel %vm333_vm13, %v10565_v23, %v9508_v34  ;;  %v9512_v2 = vunpack.i.l.bf16 %v16922_v54  ;;  %v9828_v43 = vunpack.i.h.bf16 %v16920_v57  ;;  %v5123_v23 = vld [vmem:[#allocation2 + $0x99] sm:$0xff] }
 0x4f1   : > { %v14412_v62 = vpop.permute.xlu1 %5348  ;;  %9100 = vmatprep.mubr.msk.f32.mxu1 %vm333_vm13, %v3069_v22  ;;  %v3070_v22 = vld [vmem:[#allocation3 + $0x182] sm:$0xff]  ;;  %v4130_v55 = vsel %vm16312_vm4, %v4097_v42, %v9827_v12  ;;  %v4032_v19 = vsel %vm4002_vm14, %v3999_v29, %v9588_v1  ;;  %v9592_v36 = vunpack.i.l.bf16 %v16923_v27  ;;  %v9908_v59 = vunpack.i.h.bf16 %v16921_v60  ;;  %v16925_v29 = vld [vmem:[#allocation112_spill] sm:$0xff] }
 0x4f2   : > { %5740 = vrot.lane.b32.xlu0 %v14337_v15, %s10600_s12  ;;  %v4163_v34 = vsel %vm16311_vm2, %v4130_v55, %v9907_v18  ;;  %v4065_v57 = vsel %vm4035_vm15, %v4032_v19, %v9668_v26  ;;  %v9988_v12 = vunpack.i.h.bf16 %v13936_v50  ;;  %v5122_v42 = vld [vmem:[#allocation2 + $0x91] sm:$0xff]  ;;  %v9752_v7 = vunpack.i.l.bf16 %v16925_v29  ;;  %v3071_v18 = vld [vmem:[#allocation3 + $0x18a] sm:$0xff] }
 0x4f3   : > { %5738 = vrot.lane.b32.xlu1 %v14353_v37, %s10600_s12  ;;  %v4196_v1 = vsel %vm16310_vm12, %v4163_v34, %v9987_v9  ;;  %v4098_v60 = vsel %vm16313_vm1, %v4065_v57, %v9748_v58  ;;  %v9513_v26 = vunpack.i.h.bf16 %v16922_v54  ;;  %v10566_v55 = vld [vmem:[#allocation3 + $0x168] sm:$0xff]  ;;  %v16926_v50 = vld [vmem:[#allocation114_spill] sm:$0xff]  ;;  %v9593_v58 = vunpack.i.h.bf16 %v16923_v27  ;;  %v16927_v57 = vld [vmem:[#allocation29_spill] sm:$0xff] }
 0x4f4   : > { %v14437_v37 = vpop.permute.xlu0 %5354  ;;  %4521 = vmatmul.mubr.f32.gmra.mxu1 %v4195_v30  ;;  %v16924_v30 = vld [vmem:[#allocation77_spill] sm:$0xff]  ;;  %v4000_v19 = vsel %vm333_vm13, %v10566_v55, %v9512_v2  ;;  %v9832_v38 = vunpack.i.l.bf16 %v16926_v50  ;;  %v4131_v9 = vsel %vm16312_vm4, %v4098_v60, %v9828_v43  ;;  %v9912_v35 = vunpack.i.l.bf16 %v16927_v57  ;;  %v14481_v27 = vld [vmem:[#allocation2 + $0x92] sm:$0xff] }
 0x4f5   : > { %v14435_v63 = vpop.permute.xlu1 %5352  ;;  %9101 = vmatprep.mubr.msk.f32.mxu1 %vm333_vm13, %v3070_v22  ;;  %v9672_v22 = vunpack.i.l.bf16 %v16924_v30  ;;  %v4033_v34 = vsel %vm4002_vm14, %v4000_v19, %v9592_v36  ;;  %v4164_v54 = vsel %vm16311_vm2, %v4131_v9, %v9908_v59  ;;  %v9673_v2 = vunpack.i.h.bf16 %v16924_v30  ;;  %v14483_v36 = vld [vmem:[#allocation2 + $0x9a] sm:$0xff] }
 0x4f6   : > { %5868 = vrot.lane.b32.xlu0 %v14444_v13, %s10601_s13  ;;  %v4197_v43 = vsel %vm16310_vm12, %v4164_v54, %v9988_v12  ;;  %v9753_v60 = vunpack.i.h.bf16 %v16925_v29  ;;  %v10567_v59 = vld [vmem:[#allocation3 + $0x170] sm:$0xff]  ;;  %v3073_v29 = vld [vmem:[#allocation3 + $0x1a2] sm:$0xff] }
 0x4f7   : > { %5866 = vrot.lane.b32.xlu1 %v14442_v48, %s10601_s13  ;;  %v4066_v55 = vsel %vm4035_vm15, %v4033_v34, %v9672_v22  ;;  %v4001_v30 = vsel %vm333_vm13, %v10567_v59, %v9513_v26  ;;  %v9833_v22 = vunpack.i.h.bf16 %v16926_v50  ;;  %v9913_v34 = vunpack.i.h.bf16 %v16927_v57  ;;  %v14518_v59 = vld [vmem:[#allocation2 + $0xa8] sm:$0xff] }
 0x4f8   : > { %v14464_v56 = vpop.permute.xlu0 %5358  ;;  %4526 = vmatmul.mubr.f32.gmra.mxu1 %v4196_v1  ;;  %v3072_v1 = vld [vmem:[#allocation3 + $0x19a] sm:$0xff]  ;;  %v4099_v19 = vsel %vm16313_vm1, %v4066_v55, %v9752_v7  ;;  %v4034_v9 = vsel %vm4002_vm14, %v4001_v30, %v9593_v58  ;;  %v9993_v50 = vunpack.i.h.bf16 %v13958_v8 }
 0x4f9   : > { %v14462_v16 = vpop.permute.xlu1 %5356  ;;  %9102 = vmatprep.mubr.msk.f32.mxu1 %vm333_vm13, %v3071_v18  ;;  %v9992_v18 = vunpack.i.l.bf16 %v13958_v8  ;;  %v4132_v12 = vsel %vm16312_vm4, %v4099_v19, %v9832_v38  ;;  %v4067_v26 = vsel %vm4035_vm15, %v4034_v9, %v9673_v2 }
 0x4fa   : > { %5996 = vrot.lane.b32.xlu0 %v5123_v23, %s10602_s14  ;;  %v4165_v7 = vsel %vm16311_vm2, %v4132_v12, %v9912_v35  ;;  %v4100_v38 = vsel %vm16313_vm1, %v4067_v26, %v9753_v60 }
 0x4fb   : > { %5994 = vrot.lane.b32.xlu1 %v5122_v42, %s10602_s14  ;;  %v4198_v54 = vsel %vm16310_vm12, %v4165_v7, %v9992_v18  ;;  %v4133_v57 = vsel %vm16312_vm4, %v4100_v38, %v9833_v22 }
 0x4fc   : > { %v14487_v5 = vpop.permute.xlu0 %5468  ;;  %4531 = vmatmul.mubr.f32.gmra.mxu1 %v4197_v43  ;;  %v4166_v35 = vsel %vm16311_vm2, %v4133_v57, %v9913_v34  ;;  %v4905_v34 = vld [vmem:[#allocation2 + $0xb0] sm:$0xff]  ;;  %vm16938_vm2 = vcmask 123904  }
 0x4fd   : > { %v5467_v44 = vpop.permute.xlu1 %5466  ;;  %9103 = vmatprep.mubr.msk.f32.mxu1 %vm333_vm13, %v3072_v1  ;;  %v4199_v8 = vsel %vm16310_vm12, %v4166_v35, %v9993_v50  ;;  %v5125_v50 = vld [vmem:[#allocation2 + $0xb1] sm:$0xff]  ;;  %vm16929_vm12 = vmmov %vm16928_vm3 }
 0x4fe   : > { %6124 = vrot.lane.b32.xlu0 %v14483_v36, %s10603_s23 }
 0x4ff   : > { %6122 = vrot.lane.b32.xlu1 %v14481_v27, %s10603_s23 }
 0x500   : > { %v5597_v1 = vpop.permute.xlu0 %5596  ;;  %4536 = vmatmul.mubr.f32.gmra.mxu1 %v4198_v54  ;;  %v14534_v54 = vld [vmem:[#allocation2 + $0xaa] sm:$0xff] }
 0x501   : > { %v5595_v58 = vpop.permute.xlu1 %5594  ;;  %9104 = vmatprep.mubr.msk.f32.mxu1 %vm333_vm13, %v3073_v29 }
 0x502   : > { %5486 = vrot.lane.b32.xlu0 %v14442_v48, %s10598_s10 }
 0x503   : > { %5360 = vrot.lane.b32.xlu1 %v14337_v15, %s10597_s9  ;;  %v4890_v15 = vld [vmem:[#allocation2] sm:$0xff] }
 0x504   : > { %v5725_v55 = vpop.permute.xlu0 %5724  ;;  %4541 = vmatmul.mubr.f32.gmra.mxu1 %v4199_v8  ;;  %v6202_v30 = vsel %vm277_vm0, %v4890_v15, %v13960_v24  ;;  %v4891_v24 = vld [vmem:[#allocation2 + $0x8] sm:$0xff]  ;;  %v14546_v8 = vld [vmem:[#allocation2 + $0xb2] sm:$0xff] }
 0x505   : > { %v5723_v2 = vpop.permute.xlu1 %5722 }
 0x506   : > { %5614 = vrot.lane.b32.xlu0 %v5122_v42, %s10599_s11  ;;  %v6234_v42 = vsel %vm1976_vm5, %v6202_v30, %v14343_v20 }
 0x507   : > { %5488 = vrot.lane.b32.xlu1 %v14444_v13, %s10598_s10  ;;  %v6266_v22 = vsel %vm2009_vm6, %v6234_v42, %v5467_v44 }
 0x508   : > { %v5471_v43 = vpop.permute.xlu0 %5470  ;;  %v6298_v7 = vsel %vm2042_vm7, %v6266_v22, %v5595_v58  ;;  %v6203_v58 = vsel %vm277_vm0, %v4891_v24, %v13981_v40 }
 0x509   : > { %v5851_v18 = vpop.permute.xlu1 %5850  ;;  %v6330_v29 = vsel %vm2075_vm8, %v6298_v7, %v5723_v2  ;;  %v6235_v35 = vsel %vm1976_vm5, %v6203_v58, %v14366_v3  ;;  %v10568_v7 = vld [vmem:[#allocation2 + $0x18] sm:$0xff]  ;;  %v4906_v58 = vld [vmem:[#allocation2 + $0xc0] sm:$0xff] }
 0x50a   : > { %5742 = vrot.lane.b32.xlu0 %v14481_v27, %s10600_s12  ;;  %v6362_v26 = vsel %vm2108_vm9, %v6330_v29, %v5851_v18  ;;  %v6267_v2 = vsel %vm2009_vm6, %v6235_v35, %v14487_v5 }
 0x50b   : > { %5616 = vrot.lane.b32.xlu1 %v5123_v23, %s10599_s11  ;;  %v5124_v23 = vld [vmem:[#allocation2 + $0xa9] sm:$0xff] }
 0x50c   : > { %v5979_v19 = vpop.permute.xlu0 %5978 }
 0x50d   : > { %v5853_v60 = vpop.permute.xlu1 %5852  ;;  %v6394_v20 = vsel %vm2141_vm10, %v6362_v26, %v5979_v19  ;;  %v6299_v19 = vsel %vm2042_vm7, %v6267_v2, %v5597_v1 }
 0x50e   : > { %5870 = vrot.lane.b32.xlu0 %v14518_v59, %s10601_s13  ;;  %v6331_v40 = vsel %vm2075_vm8, %v6299_v19, %v5725_v55  ;;  %v4907_v19 = vld [vmem:[#allocation2 + $0xc8] sm:$0xff] }
 0x50f   : > { %5744 = vrot.lane.b32.xlu1 %v14483_v36, %s10600_s12  ;;  %v6363_v3 = vsel %vm2108_vm9, %v6331_v40, %v5853_v60  ;;  %v10569_v60 = vld [vmem:[#allocation2 + $0x20] sm:$0xff]  ;;  %v5127_v40 = vld [vmem:[#allocation2 + $0xc9] sm:$0xff] }
 0x510   : > { %v5599_v9 = vpop.permute.xlu0 %5598  ;;  %v6205_v29 = vsel %vm277_vm0, %v10569_v60, %v14008_v4 }
 0x511   : > { %v5473_v12 = vpop.permute.xlu1 %5472  ;;  %v6237_v24 = vsel %vm1976_vm5, %v6205_v29, %v14389_v11  ;;  %v10571_v29 = vld [vmem:[#allocation2 + $0x38] sm:$0xff] }
 0x512   : > { %5998 = vrot.lane.b32.xlu0 %v5124_v23, %s10602_s14 }
 0x513   : > { %5872 = vrot.lane.b32.xlu1 %v4905_v34, %s10601_s13 }
 0x514   : > { %v6107_v38 = vpop.permute.xlu0 %6106 }
 0x515   : > { %v5981_v44 = vpop.permute.xlu1 %5980  ;;  %v6426_v57 = vsel %vm2174_vm11, %v6394_v20, %v6107_v38  ;;  %v6269_v20 = vsel %vm2009_vm6, %v6237_v24, %v5473_v12 }
 0x516   : > { %6126 = vrot.lane.b32.xlu0 %v14534_v54, %s10603_s23  ;;  %9350 = vmatprep.mubr.msk.f32.mxu0 %vm16928_vm3, %v6426_v57  ;;  %v6395_v30 = vsel %vm2141_vm10, %v6363_v3, %v5981_v44  ;;  %v14596_v3 = vld [vmem:[#allocation2 + $0xc2] sm:$0xff] }
 0x517   : > { %6000 = vrot.lane.b32.xlu1 %v5125_v50, %s10602_s14 }
 0x518   : > { %v5727_v15 = vpop.permute.xlu0 %5726 }
 0x519   : > { %v5601_v18 = vpop.permute.xlu1 %5600 }
 0x51a   : > { %5362 = vrot.lane.b32.xlu0 %v14481_v27, %s10597_s9  ;;  %v6204_v27 = vsel %vm277_vm0, %v10568_v7, %v13983_v39  ;;  %v6301_v4 = vsel %vm2042_vm7, %v6269_v20, %v5601_v18 }
 0x51b   : > { %6128 = vrot.lane.b32.xlu1 %v14546_v8, %s10603_s23 }
 0x51c   : > { %v5729_v22 = vpop.permute.xlu0 %5728 }
 0x51d   : > { %v6109_v42 = vpop.permute.xlu1 %6108 }
 0x51e   : > { %v6427_v5 = vsel %vm2174_vm11, %v6395_v30, %v6109_v42  ;;  %5490 = vrot.lane.b32.xlu0 %v14518_v59, %s10598_s10 }
 0x51f   : > { %5364 = vrot.lane.b32.xlu1 %v14483_v36, %s10597_s9  ;;  %9351 = vmatmul.mubr.msk.f32.vlgmr.msra.gmra.mxu0 %vm16928_vm3, %v6427_v5  ;;  %v6236_v36 = vsel %vm1976_vm5, %v6204_v27, %v14368_v33  ;;  %v10570_v27 = vld [vmem:[#allocation2 + $0x30] sm:$0xff] }
 0x520   : > { %v5857_v55 = vpop.permute.xlu0 %5856  ;;  %v6268_v26 = vsel %vm2009_vm6, %v6236_v36, %v5471_v43  ;;  %v6206_v60 = vsel %vm277_vm0, %v10570_v27, %v14010_v17  ;;  %v6207_v36 = vsel %vm277_vm0, %v10571_v29, %v14031_v21  ;;  %v14660_v29 = vld [vmem:[#allocation2 + $0xe2] sm:$0xff] }
 0x521   : > { %v5855_v1 = vpop.permute.xlu1 %5854  ;;  %v6300_v38 = vsel %vm2042_vm7, %v6268_v26, %v5599_v9  ;;  %v6238_v24 = vsel %vm1976_vm5, %v6206_v60, %v14391_v6 }
 0x522   : > { %5618 = vrot.lane.b32.xlu0 %v5124_v23, %s10599_s11  ;;  %v6333_v23 = vsel %vm2075_vm8, %v6301_v4, %v5729_v22  ;;  %v14601_v22 = vld [vmem:[#allocation2 + $0xca] sm:$0xff] }
 0x523   : > { %5492 = vrot.lane.b32.xlu1 %v4905_v34, %s10598_s10  ;;  %v6332_v34 = vsel %vm2075_vm8, %v6300_v38, %v5727_v15  ;;  %v6365_v11 = vsel %vm2108_vm9, %v6333_v23, %v5857_v55 }
 0x524   : > { %v5985_v39 = vpop.permute.xlu0 %5984  ;;  %v6364_v33 = vsel %vm2108_vm9, %v6332_v34, %v5855_v1 }
 0x525   : > { %v5983_v44 = vpop.permute.xlu1 %5982  ;;  %v6397_v12 = vsel %vm2141_vm10, %v6365_v11, %v5985_v39 }
 0x526   : > { %5746 = vrot.lane.b32.xlu0 %v14534_v54, %s10600_s12  ;;  %v6396_v43 = vsel %vm2141_vm10, %v6364_v33, %v5983_v44 }
 0x527   : > { %5620 = vrot.lane.b32.xlu1 %v5125_v50, %s10599_s11  ;;  %v5126_v50 = vld [vmem:[#allocation2 + $0xc1] sm:$0xff] }
 0x528   : > { %v6113_v57 = vpop.permute.xlu0 %6112 }
 0x529   : > { %v6111_v9 = vpop.permute.xlu1 %6110  ;;  %v6429_v2 = vsel %vm2174_vm11, %v6397_v12, %v6113_v57  ;;  %v4908_v57 = vld [vmem:[#allocation2 + $0xd8] sm:$0xff] }
 0x52a   : > { %v6428_v35 = vsel %vm2174_vm11, %v6396_v43, %v6111_v9  ;;  %5874 = vrot.lane.b32.xlu0 %v4906_v58, %s10601_s13 }
 0x52b   : > { %5748 = vrot.lane.b32.xlu1 %v14546_v8, %s10600_s12  ;;  %9353 = vmatprep.mubr.msk.f32.mxu0 %vm16928_vm3, %v6428_v35  ;;  %v14645_v35 = vld [vmem:[#allocation2 + $0xd9] sm:$0xff] }
 0x52c   : > { %9354 = vmatmul.mubr.msk.f32.gmra.mxu0 %vm16929_vm12, %v6429_v2  ;;  %v5477_v15 = vpop.permute.xlu0 %5476  ;;  %vm16930_vm12 = vmmov %vm16928_vm3 }
 0x52d   : > { %v5475_v18 = vpop.permute.xlu1 %5474 }
 0x52e   : > { %6002 = vrot.lane.b32.xlu0 %v5126_v50, %s10602_s14  ;;  %v6270_v26 = vsel %vm2009_vm6, %v6238_v24, %v5475_v18  ;;  %v4909_v18 = vld [vmem:[#allocation2 + $0xe0] sm:$0xff] }
 0x52f   : > { %5876 = vrot.lane.b32.xlu1 %v4907_v19, %s10601_s13 }
 0x530   : > { %v5605_v42 = vpop.permute.xlu0 %5604 }
 0x531   : > { %v5603_v30 = vpop.permute.xlu1 %5602 }
 0x532   : > { %6130 = vrot.lane.b32.xlu0 %v14596_v3, %s10603_s23  ;;  %v6302_v39 = vsel %vm2042_vm7, %v6270_v26, %v5603_v30  ;;  %v14651_v30 = vld [vmem:[#allocation2 + $0xe1] sm:$0xff] }
 0x533   : > { %6004 = vrot.lane.b32.xlu1 %v5127_v40, %s10602_s14  ;;  %v10572_v26 = vld [vmem:[#allocation2 + $0x48] sm:$0xff] }
 0x534   : > { %v5733_v1 = vpop.permute.xlu0 %5732 }
 0x535   : > { %v5731_v5 = vpop.permute.xlu1 %5730 }
 0x536   : > { %5366 = vrot.lane.b32.xlu0 %v14534_v54, %s10597_s9  ;;  %v6239_v54 = vsel %vm1976_vm5, %v6207_v36, %v14412_v62 }
 0x537   : > { %6132 = vrot.lane.b32.xlu1 %v14601_v22, %s10603_s23  ;;  %v6271_v20 = vsel %vm2009_vm6, %v6239_v54, %v5477_v15 }
 0x538   : > { %v5861_v7 = vpop.permute.xlu0 %5860  ;;  %v6303_v21 = vsel %vm2042_vm7, %v6271_v20, %v5605_v42  ;;  %v14653_v42 = vld [vmem:[#allocation2 + $0xda] sm:$0xff]  ;;  %v6208_v20 = vsel %vm277_vm0, %v10572_v26, %v14033_v51 }
 0x539   : > { %v5859_v55 = vpop.permute.xlu1 %5858  ;;  %v6335_v38 = vsel %vm2075_vm8, %v6303_v21, %v5733_v1  ;;  %v6240_v51 = vsel %vm1976_vm5, %v6208_v20, %v14414_v0 }
 0x53a   : > { %5494 = vrot.lane.b32.xlu0 %v4906_v58, %s10598_s10  ;;  %v6367_v62 = vsel %vm2108_vm9, %v6335_v38, %v5861_v7  ;;  %v14643_v58 = vld [vmem:[%s16164_s4] ss:$0 sm:$0xff] }
 0x53b   : > { %5368 = vrot.lane.b32.xlu1 %v14546_v8, %s10597_s9  ;;  %v6334_v8 = vsel %vm2075_vm8, %v6302_v39, %v5731_v5 }
 0x53c   : > { %v5989_v44 = vpop.permute.xlu0 %5988  ;;  %v6366_v6 = vsel %vm2108_vm9, %v6334_v8, %v5859_v55 }
 0x53d   : > { %v5987_v17 = vpop.permute.xlu1 %5986  ;;  %v6399_v34 = vsel %vm2141_vm10, %v6367_v62, %v5989_v44  ;;  %v10573_v44 = vld [vmem:[#allocation2 + $0x50] sm:$0xff] }
 0x53e   : > { %5622 = vrot.lane.b32.xlu0 %v5126_v50, %s10599_s11  ;;  %v6398_v4 = vsel %vm2141_vm10, %v6366_v6, %v5987_v17  ;;  %v6209_v39 = vsel %vm277_vm0, %v10573_v44, %v14054_v41 }
 0x53f   : > { %5496 = vrot.lane.b32.xlu1 %v4907_v19, %s10598_s10  ;;  %v6241_v6 = vsel %vm1976_vm5, %v6209_v39, %v14435_v63 }
 0x540   : > { %v6117_v33 = vpop.permute.xlu0 %6116 }
 0x541   : > { %v6115_v23 = vpop.permute.xlu1 %6114  ;;  %v6431_v43 = vsel %vm2174_vm11, %v6399_v34, %v6117_v33 }
 0x542   : > { %v6430_v11 = vsel %vm2174_vm11, %v6398_v4, %v6115_v23  ;;  %5750 = vrot.lane.b32.xlu0 %v14596_v3, %s10600_s12 }
 0x543   : > { %5624 = vrot.lane.b32.xlu1 %v5127_v40, %s10599_s11  ;;  %9356 = vmatprep.mubr.msk.f32.mxu0 %vm16930_vm12, %v6430_v11  ;;  %vm16931_vm12 = vmmov %vm16928_vm3 }
 0x544   : > { %9357 = vmatmul.mubr.msk.f32.gmra.mxu0 %vm16928_vm3, %v6431_v43  ;;  %v5481_v9 = vpop.permute.xlu0 %5480 }
 0x545   : > { %v5479_v12 = vpop.permute.xlu1 %5478  ;;  %v6273_v34 = vsel %vm2009_vm6, %v6241_v6, %v5481_v9 }
 0x546   : > { %5878 = vrot.lane.b32.xlu0 %v4908_v57, %s10601_s13  ;;  %v6272_v4 = vsel %vm2009_vm6, %v6240_v51, %v5479_v12 }
 0x547   : > { %5752 = vrot.lane.b32.xlu1 %v14601_v22, %s10600_s12 }
 0x548   : > { %v5609_v50 = vpop.permute.xlu0 %5608  ;;  %v4387_v15 = vpop.f32.mrf.mxu1 }
 0x549   : > { %v5607_v2 = vpop.permute.xlu1 %5606  ;;  %v4388_v19 = vadd.f32 %v14643_v58, %v4387_v15  ;;  %v6305_v15 = vsel %vm2042_vm7, %v6273_v34, %v5609_v50 }
 0x54a   : > { %6006 = vrot.lane.b32.xlu0 %v14645_v35, %s10602_s14  ;;  %v4389_v40 = vpop.f32.mrf.mxu1  ;;  %v6304_v43 = vsel %vm2042_vm7, %v6272_v4, %v5607_v2 }
 0x54b   : > { %5880 = vrot.lane.b32.xlu1 %v4909_v18, %s10601_s13  ;;  %v4546_v7 = vmax.f32 %v4388_v19, 0.0 }
 0x54c   : > { %v5737_v1 = vpop.permute.xlu0 %5736  ;;  %v4392_v55 = vpop.f32.mrf.mxu1 }
 0x54d   : > { %v5735_v5 = vpop.permute.xlu1 %5734  ;;  %v4393_v27 = vadd.f32 %v14643_v58, %v4392_v55  ;;  %v4578_v21 = vsel %vm4002_vm14, %v4546_v7, 0.0  ;;  %v6337_v0 = vsel %vm2075_vm8, %v6305_v15, %v5737_v1 }
 0x54e   : > { %6134 = vrot.lane.b32.xlu0 %v14653_v42, %s10603_s23  ;;  %v4394_v60 = vpop.f32.mrf.mxu1  ;;  %v6336_v19 = vsel %vm2075_vm8, %v6304_v43, %v5735_v5 }
 0x54f   : > { %6008 = vrot.lane.b32.xlu1 %v14651_v30, %s10602_s14  ;;  %v4547_v36 = vmax.f32 %v4393_v27, 0.0 }
 0x550   : > { %v5865_v54 = vpop.permute.xlu0 %5864  ;;  %v4397_v17 = vpop.f32.mrf.mxu1 }
 0x551   : > { %v5863_v24 = vpop.permute.xlu1 %5862  ;;  %v4579_v8 = vsel %vm4002_vm14, %v4547_v36, 0.0  ;;  %v4398_v38 = vadd.f32 %v14643_v58, %v4397_v17  ;;  %v6369_v9 = vsel %vm2108_vm9, %v6337_v0, %v5865_v54 }
 0x552   : > { %5370 = vrot.lane.b32.xlu0 %v14596_v3, %s10597_s9  ;;  %v4580_v62 = vadd.f32 %v4579_v8, %v4578_v21  ;;  %v4399_v41 = vpop.f32.mrf.mxu1  ;;  %v6368_v12 = vsel %vm2108_vm9, %v6336_v19, %v5863_v24 }
 0x553   : > { %6136 = vrot.lane.b32.xlu1 %v14660_v29, %s10603_s23  ;;  %v4548_v23 = vmax.f32 %v4398_v38, 0.0 }
 0x554   : > { %v5993_v11 = vpop.permute.xlu0 %5992  ;;  %v4402_v3 = vpop.f32.mrf.mxu1 }
 0x555   : > { %v5991_v33 = vpop.permute.xlu1 %5990  ;;  %v4581_v63 = vsel %vm4002_vm14, %v4548_v23, 0.0  ;;  %v4403_v40 = vadd.f32 %v14643_v58, %v4402_v3  ;;  %v6401_v5 = vsel %vm2141_vm10, %v6369_v9, %v5993_v11  ;;  %v4911_v3 = vld [vmem:[#allocation2 + $0xf8] sm:$0xff] }
 0x556   : > { %5498 = vrot.lane.b32.xlu0 %v4908_v57, %s10598_s10  ;;  %v4582_v2 = vadd.f32 %v4581_v63, %v4580_v62  ;;  %v4404_v50 = vpop.f32.mrf.mxu1  ;;  %v6400_v55 = vsel %vm2141_vm10, %v6368_v12, %v5991_v33  ;;  %v4910_v62 = vld [vmem:[#allocation2 + $0xf0] sm:$0xff]  ;;  %v14719_v9 = vld [vmem:[#allocation2 + $0xf9] sm:$0xff] }
 0x557   : > { %5372 = vrot.lane.b32.xlu1 %v14601_v22, %s10597_s9  ;;  %v4549_v1 = vmax.f32 %v4403_v40, 0.0  ;;  %v14712_v33 = vld [vmem:[#allocation2 + $0xf1] sm:$0xff] }
 0x558   : > { %v6121_v27 = vpop.permute.xlu0 %6120  ;;  %v4407_v22 = vpop.f32.mrf.mxu1 }
 0x559   : > { %v6119_v7 = vpop.permute.xlu1 %6118  ;;  %v6433_v36 = vsel %vm2174_vm11, %v6401_v5, %v6121_v27  ;;  %v4583_v57 = vsel %vm4002_vm14, %v4549_v1, 0.0  ;;  %v4408_v24 = vadd.f32 %v14643_v58, %v4407_v22 }
 0x55a   : > { %v6432_v60 = vsel %vm2174_vm11, %v6400_v55, %v6119_v7  ;;  %5626 = vrot.lane.b32.xlu0 %v14645_v35, %s10599_s11  ;;  %v4584_v54 = vadd.f32 %v4583_v57, %v4582_v2  ;;  %v4409_v26 = vpop.f32.mrf.mxu1  ;;  %v14721_v2 = vld [vmem:[#allocation2 + $0xf2] sm:$0xff]  ;;  %v10574_v7 = vld [vmem:[#allocation2 + $0x60] sm:$0xff] }
 0x55b   : > { %5500 = vrot.lane.b32.xlu1 %v4909_v18, %s10598_s10  ;;  %9359 = vmatprep.mubr.msk.f32.mxu0 %vm16931_vm12, %v6432_v60  ;;  %v4550_v20 = vmax.f32 %v4408_v24, 0.0  ;;  %v6210_v27 = vsel %vm277_vm0, %v10574_v7, %v14056_v25  ;;  %v10575_v60 = vld [vmem:[#allocation2 + $0x68] sm:$0xff]  ;;  %vm16932_vm12 = vmmov %vm16928_vm3 }
 0x55c   : > { %9360 = vmatmul.mubr.msk.f32.gmra.mxu0 %vm16928_vm3, %v6433_v36  ;;  %v5485_v44 = vpop.permute.xlu0 %5484  ;;  %v4412_v39 = vpop.f32.mrf.mxu1  ;;  %v6211_v36 = vsel %vm277_vm0, %v10575_v60, %v14077_v45  ;;  %v6242_v24 = vsel %vm1976_vm5, %v6210_v27, %v14437_v37 }
 0x55d   : > { %v5483_v17 = vpop.permute.xlu1 %5482  ;;  %v4585_v21 = vsel %vm4002_vm14, %v4550_v20, 0.0  ;;  %v4413_v8 = vadd.f32 %v14643_v58, %v4412_v39  ;;  %v6243_v25 = vsel %vm1976_vm5, %v6211_v36, %v14462_v16  ;;  %v14737_v20 = vld [vmem:[#allocation2 + $0xfa] sm:$0xff] }
 0x55e   : > { %5754 = vrot.lane.b32.xlu0 %v14653_v42, %s10600_s12  ;;  %v4586_v35 = vadd.f32 %v4585_v21, %v4584_v54  ;;  %v4414_v18 = vpop.f32.mrf.mxu1  ;;  %v6274_v45 = vsel %vm2009_vm6, %v6242_v24, %v5483_v17  ;;  %v6275_v39 = vsel %vm2009_vm6, %v6243_v25, %v5485_v44 }
 0x55f   : > { %5628 = vrot.lane.b32.xlu1 %v14651_v30, %s10599_s11  ;;  %v4551_v38 = vmax.f32 %v4413_v8, 0.0 }
 0x560   : > { %v5613_v6 = vpop.permute.xlu0 %5612  ;;  %v4417_v41 = vpop.f32.mrf.mxu1 }
 0x561   : > { %v5611_v51 = vpop.permute.xlu1 %5610  ;;  %v4587_v4 = vsel %vm4002_vm14, %v4551_v38, 0.0  ;;  %v4418_v34 = vadd.f32 %v14643_v58, %v4417_v41  ;;  %v6307_v38 = vsel %vm2042_vm7, %v6275_v39, %v5613_v6 }
 0x562   : > { %5882 = vrot.lane.b32.xlu0 %v4910_v62, %s10601_s13  ;;  %v4588_v30 = vadd.f32 %v4587_v4, %v4586_v35  ;;  %v4419_v23 = vpop.f32.mrf.mxu1  ;;  %v6306_v18 = vsel %vm2042_vm7, %v6274_v45, %v5611_v51 }
 0x563   : > { %5756 = vrot.lane.b32.xlu1 %v14660_v29, %s10600_s12  ;;  %v4552_v11 = vmax.f32 %v4418_v34, 0.0  ;;  %v5004_v34 = vld [vmem:[#allocation2 + $0xf0] sm:$0xff] }
 0x564   : > { %v5741_v15 = vpop.permute.xlu0 %5740  ;;  %v4422_v19 = vpop.f32.mrf.mxu1 }
 0x565   : > { %v5739_v43 = vpop.permute.xlu1 %5738  ;;  %v4589_v0 = vsel %vm4002_vm14, %v4552_v11, 0.0  ;;  %v4423_v63 = vadd.f32 %v14643_v58, %v4422_v19  ;;  %v6339_v16 = vsel %vm2075_vm8, %v6307_v38, %v5741_v15 }
 0x566   : > { %6010 = vrot.lane.b32.xlu0 %v14712_v33, %s10602_s14  ;;  %v4590_v40 = vadd.f32 %v4589_v0, %v4588_v30  ;;  %v4424_v12 = vpop.f32.mrf.mxu1  ;;  %v6338_v37 = vsel %vm2075_vm8, %v6306_v18, %v5739_v43 }
 0x567   : > { %5884 = vrot.lane.b32.xlu1 %v4911_v3, %s10601_s13  ;;  %v4553_v50 = vmax.f32 %v4423_v63, 0.0 }
 0x568   : > { %v5869_v5 = vpop.permute.xlu0 %5868  ;;  %v4427_v1 = vpop.f32.mrf.mxu1 }
 0x569   : > { %v5867_v55 = vpop.permute.xlu1 %5866  ;;  %v4591_v22 = vsel %vm4002_vm14, %v4553_v50, 0.0  ;;  %v4428_v57 = vadd.f32 %v14643_v58, %v4427_v1  ;;  %v6371_v44 = vsel %vm2108_vm9, %v6339_v16, %v5869_v5  ;;  %v5005_v50 = vld [vmem:[#allocation2 + $0xf8] sm:$0xff]  ;;  %v14783_v16 = vld [vmem:[#allocation2 + $0x110] sm:$0xff] }
 0x56a   : > { %6138 = vrot.lane.b32.xlu0 %v14721_v2, %s10603_s23  ;;  %v4592_v54 = vadd.f32 %v4591_v22, %v4590_v40  ;;  %v4429_v26 = vpop.f32.mrf.mxu1  ;;  %v6370_v17 = vsel %vm2108_vm9, %v6338_v37, %v5867_v55 }
 0x56b   : > { %6012 = vrot.lane.b32.xlu1 %v14719_v9, %s10602_s14  ;;  %v4554_v21 = vmax.f32 %v4428_v57, 0.0 }
 0x56c   : > { %v5997_v35 = vpop.permute.xlu0 %5996  ;;  %v4432_v62 = vpop.f32.mrf.mxu1 }
 0x56d   : > { %v5995_v8 = vpop.permute.xlu1 %5994  ;;  %v4593_v41 = vsel %vm4002_vm14, %v4554_v21, 0.0  ;;  %v4433_v4 = vadd.f32 %v14643_v58, %v4432_v62  ;;  %v6403_v23 = vsel %vm2141_vm10, %v6371_v44, %v5997_v35  ;;  %v14775_v21 = vld [vmem:[#allocation2 + $0x108] sm:$0xff] }
 0x56e   : > { %5374 = vrot.lane.b32.xlu0 %v14653_v42, %s10597_s9  ;;  %v4594_v51 = vadd.f32 %v4593_v41, %v4592_v54  ;;  %v4434_v6 = vpop.f32.mrf.mxu1  ;;  %v6402_v30 = vsel %vm2141_vm10, %v6370_v17, %v5995_v8  ;;  %v14785_v41 = vld [vmem:[#allocation2 + $0x109] sm:$0xff] }
 0x56f   : > { %6140 = vrot.lane.b32.xlu1 %v14737_v20, %s10603_s23  ;;  %v4555_v11 = vmax.f32 %v4433_v4, 0.0  ;;  %v10576_v6 = vld [vmem:[#allocation2 + $0x78] sm:$0xff] }
 0x570   : > { %v6125_v15 = vpop.permute.xlu0 %6124  ;;  %v4437_v0 = vpop.f32.mrf.mxu1 }
 0x571   : > { %v6123_v43 = vpop.permute.xlu1 %6122  ;;  %v6435_v19 = vsel %vm2174_vm11, %v6403_v23, %v6125_v15  ;;  %v4595_v42 = vsel %vm4002_vm14, %v4555_v11, 0.0  ;;  %v4438_v63 = vadd.f32 %v14643_v58, %v4437_v0 }
 0x572   : > { %v6434_v3 = vsel %vm2174_vm11, %v6402_v30, %v6123_v43  ;;  %5502 = vrot.lane.b32.xlu0 %v5004_v34, %s10598_s10  ;;  %v4596_v40 = vadd.f32 %v4595_v42, %v4594_v51  ;;  %v4439_v12 = vpop.f32.mrf.mxu1  ;;  %v6212_v34 = vsel %vm277_vm0, %v10576_v6, %v14079_v14 }
 0x573   : > { %5376 = vrot.lane.b32.xlu1 %v14660_v29, %s10597_s9  ;;  %9362 = vmatprep.mubr.msk.f32.mxu0 %vm16932_vm12, %v6434_v3  ;;  %v4556_v55 = vmax.f32 %v4438_v63, 0.0  ;;  %v6244_v11 = vsel %vm1976_vm5, %v6212_v34, %v14464_v56  ;;  %v14797_v3 = vld [vmem:[#allocation2 + $0x111] sm:$0xff]  ;;  %vm16933_vm12 = vmmov %vm16928_vm3 }
 0x574   : > { %9363 = vmatmul.mubr.msk.f32.gmra.mxu0 %vm16928_vm3, %v6435_v19  ;;  %v5487_v1 = vpop.permute.xlu0 %5486  ;;  %v4442_v7 = vpop.f32.mrf.mxu1  ;;  %v14799_v19 = vld [vmem:[#allocation2 + $0x10a] sm:$0xff] }
 0x575   : > { %v5361_v5 = vpop.permute.xlu1 %5360  ;;  %v4597_v27 = vsel %vm4002_vm14, %v4556_v55, 0.0  ;;  %v4443_v60 = vadd.f32 %v14643_v58, %v4442_v7  ;;  %v6276_v14 = vsel %vm2009_vm6, %v6244_v11, %v5487_v1 }
 0x576   : > { %5630 = vrot.lane.b32.xlu0 %v14712_v33, %s10599_s11  ;;  %v4598_v29 = vadd.f32 %v4597_v27, %v4596_v40  ;;  %v4444_v36 = vpop.f32.mrf.mxu1 }
 0x577   : > { %5504 = vrot.lane.b32.xlu1 %v5005_v50, %s10598_s10  ;;  %v4557_v22 = vmax.f32 %v4443_v60, 0.0  ;;  %v10577_v50 = vld [vmem:[#allocation2 + $0x80] sm:$0xff] }
 0x578   : > { %v5615_v24 = vpop.permute.xlu0 %5614  ;;  %v4447_v25 = vpop.f32.mrf.mxu1  ;;  %v6213_v55 = vsel %vm277_vm0, %v10577_v50, %v14100_v28 }
 0x579   : > { %v5489_v57 = vpop.permute.xlu1 %5488  ;;  %v4599_v54 = vsel %vm4002_vm14, %v4557_v22, 0.0  ;;  %v4448_v26 = vadd.f32 %v14643_v58, %v4447_v25  ;;  %v6308_v40 = vsel %vm2042_vm7, %v6276_v14, %v5615_v24  ;;  %v6245_v1 = vsel %vm1976_vm5, %v6213_v55, %v5361_v5  ;;  %v14814_v22 = vld [vmem:[#allocation2 + $0x112] sm:$0xff] }
 0x57a   : > { %5758 = vrot.lane.b32.xlu0 %v14721_v2, %s10600_s12  ;;  %v4600_v45 = vadd.f32 %v4599_v54, %v4598_v29  ;;  %v4449_v39 = vpop.f32.mrf.mxu1  ;;  %v6277_v28 = vsel %vm2009_vm6, %v6245_v1, %v5489_v57 }
 0x57b   : > { %5632 = vrot.lane.b32.xlu1 %v14719_v9, %s10599_s11  ;;  %v4558_v33 = vmax.f32 %v4448_v26, 0.0 }
 0x57c   : > { %v5743_v35 = vpop.permute.xlu0 %5742  ;;  %v4452_v18 = vpop.f32.mrf.mxu1 }
 0x57d   : > { %v5617_v8 = vpop.permute.xlu1 %5616  ;;  %v4601_v38 = vsel %vm4002_vm14, %v4558_v33, 0.0  ;;  %v4453_v62 = vadd.f32 %v14643_v58, %v4452_v18  ;;  %v6340_v56 = vsel %vm2075_vm8, %v6308_v40, %v5743_v35 }
 0x57e   : > { %5886 = vrot.lane.b32.xlu0 %v14775_v21, %s10601_s13  ;;  %v4602_v9 = vadd.f32 %v4601_v38, %v4600_v45  ;;  %v4454_v37 = vpop.f32.mrf.mxu1  ;;  %v6309_v45 = vsel %vm2042_vm7, %v6277_v28, %v5617_v8  ;;  %v14858_v28 = vld [vmem:[#allocation2 + $0x128] sm:$0xff] }
 0x57f   : > { %5760 = vrot.lane.b32.xlu1 %v14737_v20, %s10600_s12  ;;  %v4559_v4 = vmax.f32 %v4453_v62, 0.0 }
 0x580   : > { %v5871_v44 = vpop.permute.xlu0 %5870  ;;  %v4457_v51 = vpop.f32.mrf.mxu1 }
 0x581   : > { %v5745_v17 = vpop.permute.xlu1 %5744  ;;  %v4603_v30 = vsel %vm4002_vm14, %v4559_v4, 0.0  ;;  %v4458_v23 = vadd.f32 %v14643_v58, %v4457_v51  ;;  %v6372_v60 = vsel %vm2108_vm9, %v6340_v56, %v5871_v44  ;;  %v14850_v56 = vld [vmem:[#allocation2 + $0x120] sm:$0xff] }
 0x582   : > { %6014 = vrot.lane.b32.xlu0 %v14785_v41, %s10602_s14  ;;  %v4604_v43 = vadd.f32 %v4603_v30, %v4602_v9  ;;  %v4459_v15 = vpop.f32.mrf.mxu1  ;;  %v6341_v5 = vsel %vm2075_vm8, %v6309_v45, %v5745_v17 }
 0x583   : > { %5888 = vrot.lane.b32.xlu1 %v14783_v16, %s10601_s13  ;;  %v4560_v0 = vmax.f32 %v4458_v23, 0.0 }
 0x584   : > { %v5999_v63 = vpop.permute.xlu0 %5998  ;;  %v4462_v12 = vpop.f32.mrf.mxu1 }
 0x585   : > { %v5873_v42 = vpop.permute.xlu1 %5872  ;;  %v4605_v7 = vsel %vm4002_vm14, %v4560_v0, 0.0  ;;  %v4463_v27 = vadd.f32 %v14643_v58, %v4462_v12  ;;  %v6404_v24 = vsel %vm2141_vm10, %v6372_v60, %v5999_v63 }
 0x586   : > { %6142 = vrot.lane.b32.xlu0 %v14799_v19, %s10603_s23  ;;  %v4606_v29 = vadd.f32 %v4605_v7, %v4604_v43  ;;  %v4464_v36 = vpop.f32.mrf.mxu1  ;;  %v6373_v57 = vsel %vm2108_vm9, %v6341_v5, %v5873_v42 }
 0x587   : > { %6016 = vrot.lane.b32.xlu1 %v14797_v3, %s10602_s14  ;;  %v4561_v25 = vmax.f32 %v4463_v27, 0.0 }
 0x588   : > { %v6127_v26 = vpop.permute.xlu0 %6126  ;;  %v4467_v33 = vpop.f32.mrf.mxu1 }
 0x589   : > { %v6001_v54 = vpop.permute.xlu1 %6000  ;;  %v6436_v39 = vsel %vm2174_vm11, %v6404_v24, %v6127_v26  ;;  %v4607_v35 = vsel %vm4002_vm14, %v4561_v25, 0.0  ;;  %v4468_v18 = vadd.f32 %v14643_v58, %v4467_v33  ;;  %v14860_v24 = vld [vmem:[#allocation2 + $0x121] sm:$0xff] }
 0x58a   : > { %5378 = vrot.lane.b32.xlu0 %v14721_v2, %s10597_s9  ;;  %v4608_v38 = vadd.f32 %v4607_v35, %v4606_v29  ;;  %v4469_v62 = vpop.f32.mrf.mxu1  ;;  %9365 = vmatprep.mubr.msk.f32.mxu0 %vm16933_vm12, %v6436_v39  ;;  %v6405_v8 = vsel %vm2141_vm10, %v6373_v57, %v6001_v54  ;;  %v6214_v39 = vsel %vm277_vm0, %v14442_v48, %v14102_v61  ;;  %vm16934_vm12 = vmmov %vm16928_vm3 }
 0x58b   : > { %6144 = vrot.lane.b32.xlu1 %v14814_v22, %s10603_s23  ;;  %v4562_v9 = vmax.f32 %v4468_v18, 0.0  ;;  %v14874_v62 = vld [vmem:[#allocation2 + $0x122] sm:$0xff] }
 0x58c   : > { %v5363_v4 = vpop.permute.xlu0 %5362  ;;  %v4472_v44 = vpop.f32.mrf.mxu1 }
 0x58d   : > { %v6129_v37 = vpop.permute.xlu1 %6128  ;;  %v4609_v51 = vsel %vm4002_vm14, %v4562_v9, 0.0  ;;  %v4473_v6 = vadd.f32 %v14643_v58, %v4472_v44  ;;  %v6246_v35 = vsel %vm1976_vm5, %v6214_v39, %v5363_v4  ;;  %v6215_v44 = vsel %vm277_vm0, %v14444_v13, %v14123_v10 }
 0x58e   : > { %v6437_v17 = vsel %vm2174_vm11, %v6405_v8, %v6129_v37  ;;  %5506 = vrot.lane.b32.xlu0 %v14775_v21, %s10598_s10  ;;  %v4610_v2 = vadd.f32 %v4609_v51, %v4608_v38  ;;  %v4474_v34 = vpop.f32.mrf.mxu1  ;;  %v14872_v38 = vld [vmem:[#allocation2 + $0x129] sm:$0xff] }
 0x58f   : > { %5380 = vrot.lane.b32.xlu1 %v14737_v20, %s10597_s9  ;;  %9366 = vmatmul.mubr.msk.f32.gmra.mxu0 %vm16928_vm3, %v6437_v17  ;;  %v4563_v30 = vmax.f32 %v4473_v6, 0.0 }
 0x590   : > { %v5491_v11 = vpop.permute.xlu0 %5490  ;;  %v4477_v43 = vpop.f32.mrf.mxu1 }
 0x591   : > { %v5365_v23 = vpop.permute.xlu1 %5364  ;;  %v4611_v15 = vsel %vm4002_vm14, %v4563_v30, 0.0  ;;  %v4478_v14 = vadd.f32 %v14643_v58, %v4477_v43  ;;  %v6278_v61 = vsel %vm2009_vm6, %v6246_v35, %v5491_v11  ;;  %v14890_v43 = vld [vmem:[#allocation2 + $0x12a] sm:$0xff] }
 0x592   : > { %5634 = vrot.lane.b32.xlu0 %v14785_v41, %s10599_s11  ;;  %v4612_v20 = vadd.f32 %v4611_v15, %v4610_v2  ;;  %v4479_v21 = vpop.f32.mrf.mxu1  ;;  %v6247_v2 = vsel %vm1976_vm5, %v6215_v44, %v5365_v23 }
 0x593   : > { %5508 = vrot.lane.b32.xlu1 %v14783_v16, %s10598_s10  ;;  %v4564_v0 = vmax.f32 %v4478_v14, 0.0 }
 0x594   : > { %v5619_v63 = vpop.permute.xlu0 %5618  ;;  %v4482_v40 = vpop.f32.mrf.mxu1 }
 0x595   : > { %v5493_v42 = vpop.permute.xlu1 %5492  ;;  %v4613_v12 = vsel %vm4002_vm14, %v4564_v0, 0.0  ;;  %v4483_v50 = vadd.f32 %v14643_v58, %v4482_v40  ;;  %v6310_v37 = vsel %vm2042_vm7, %v6278_v61, %v5619_v63 }
 0x596   : > { %5762 = vrot.lane.b32.xlu0 %v14799_v19, %s10600_s12  ;;  %v4614_v16 = vadd.f32 %v4613_v12, %v4612_v20  ;;  %v4484_v55 = vpop.f32.mrf.mxu1  ;;  %v6279_v10 = vsel %vm2009_vm6, %v6247_v2, %v5493_v42  ;;  %v14934_v2 = vld [vmem:[#allocation2 + $0x140] sm:$0xff] }
 0x597   : > { %5636 = vrot.lane.b32.xlu1 %v14797_v3, %s10599_s11  ;;  %v4565_v41 = vmax.f32 %v4483_v50, 0.0 }
 0x598   : > { %v5747_v27 = vpop.permute.xlu0 %5746  ;;  %v4487_v1 = vpop.f32.mrf.mxu1 }
 0x599   : > { %v5621_v7 = vpop.permute.xlu1 %5620  ;;  %v4615_v60 = vsel %vm4002_vm14, %v4565_v41, 0.0  ;;  %v4488_v29 = vadd.f32 %v14643_v58, %v4487_v1  ;;  %v6342_v4 = vsel %vm2075_vm8, %v6310_v37, %v5747_v27 }
 0x59a   : > { %5890 = vrot.lane.b32.xlu0 %v14850_v56, %s10601_s13  ;;  %v4616_v3 = vadd.f32 %v4615_v60, %v4614_v16  ;;  %v4489_v36 = vpop.f32.mrf.mxu1  ;;  %v6311_v21 = vsel %vm2042_vm7, %v6279_v10, %v5621_v7 }
 0x59b   : > { %5764 = vrot.lane.b32.xlu1 %v14814_v22, %s10600_s12  ;;  %v4566_v25 = vmax.f32 %v4488_v29, 0.0 }
 0x59c   : > { %v5875_v26 = vpop.permute.xlu0 %5874  ;;  %v4492_v45 = vpop.f32.mrf.mxu1 }
 0x59d   : > { %v5749_v54 = vpop.permute.xlu1 %5748  ;;  %v4617_v33 = vsel %vm4002_vm14, %v4566_v25, 0.0  ;;  %v4493_v5 = vadd.f32 %v14643_v58, %v4492_v45  ;;  %v6374_v34 = vsel %vm2108_vm9, %v6342_v4, %v5875_v26 }
 0x59e   : > { %6018 = vrot.lane.b32.xlu0 %v14860_v24, %s10602_s14  ;;  %v4618_v18 = vadd.f32 %v4617_v33, %v4616_v3  ;;  %v4494_v57 = vpop.f32.mrf.mxu1  ;;  %v6343_v23 = vsel %vm2075_vm8, %v6311_v21, %v5749_v54 }
 0x59f   : > { %5892 = vrot.lane.b32.xlu1 %v14858_v28, %s10601_s13  ;;  %v4567_v48 = vmax.f32 %v4493_v5, 0.0 }
 0x5a0   : > { %v6003_v9 = vpop.permute.xlu0 %6002  ;;  %v4497_v17 = vpop.f32.mrf.mxu1 }
 0x5a1   : > { %v5877_v8 = vpop.permute.xlu1 %5876  ;;  %v4619_v51 = vsel %vm4002_vm14, %v4567_v48, 0.0  ;;  %v4498_v6 = vadd.f32 %v14643_v58, %v4497_v17  ;;  %v6406_v13 = vsel %vm2141_vm10, %v6374_v34, %v6003_v9  ;;  %v14926_v9 = vld [vmem:[#allocation2 + $0x138] sm:$0xff] }
 0x5a2   : > { %6146 = vrot.lane.b32.xlu0 %v14874_v62, %s10603_s23  ;;  %v4620_v30 = vadd.f32 %v4619_v51, %v4618_v18  ;;  %v4499_v11 = vpop.f32.mrf.mxu1  ;;  %v6375_v42 = vsel %vm2108_vm9, %v6343_v23, %v5877_v8  ;;  %v14936_v34 = vld [vmem:[#allocation2 + $0x139] sm:$0xff]  ;;  %v5137_v23 = vld [vmem:[#allocation2 + $0x141] sm:$0xff] }
 0x5a3   : > { %6020 = vrot.lane.b32.xlu1 %v14872_v38, %s10602_s14  ;;  %v4568_v15 = vmax.f32 %v4498_v6, 0.0 }
 0x5a4   : > { %v6131_v20 = vpop.permute.xlu0 %6130  ;;  %v4502_v63 = vpop.f32.mrf.mxu1 }
 0x5a5   : > { %v6005_v14 = vpop.permute.xlu1 %6004  ;;  %v6438_v0 = vsel %vm2174_vm11, %v6406_v13, %v6131_v20  ;;  %v4621_v40 = vsel %vm4002_vm14, %v4568_v15, 0.0  ;;  %v4503_v12 = vadd.f32 %v14643_v58, %v4502_v63  ;;  %v6216_v15 = vsel %vm277_vm0, %v14518_v59, %v14125_v46 }
 0x5a6   : > { %5382 = vrot.lane.b32.xlu0 %v14799_v19, %s10597_s9  ;;  %v4622_v50 = vadd.f32 %v4621_v40, %v4620_v30  ;;  %v4504_v16 = vpop.f32.mrf.mxu1  ;;  %9368 = vmatprep.mubr.msk.f32.mxu0 %vm16934_vm12, %v6438_v0  ;;  %v6407_v55 = vsel %vm2141_vm10, %v6375_v42, %v6005_v14  ;;  %v14948_v40 = vld [vmem:[#allocation2 + $0x13a] sm:$0xff]  ;;  %vm16935_vm12 = vmmov %vm16928_vm3 }
 0x5a7   : > { %6148 = vrot.lane.b32.xlu1 %v14890_v43, %s10603_s23  ;;  %v4569_v41 = vmax.f32 %v4503_v12, 0.0 }
 0x5a8   : > { %v5367_v27 = vpop.permute.xlu0 %5366  ;;  %v4507_v60 = vpop.f32.mrf.mxu1 }
 0x5a9   : > { %v6133_v7 = vpop.permute.xlu1 %6132  ;;  %v4623_v29 = vsel %vm4002_vm14, %v4569_v41, 0.0  ;;  %v4508_v3 = vadd.f32 %v14643_v58, %v4507_v60  ;;  %v6248_v21 = vsel %vm1976_vm5, %v6216_v15, %v5367_v27 }
 0x5aa   : > { %v6439_v1 = vsel %vm2174_vm11, %v6407_v55, %v6133_v7  ;;  %5510 = vrot.lane.b32.xlu0 %v14850_v56, %s10598_s10  ;;  %v4624_v19 = vadd.f32 %v4623_v29, %v4622_v50  ;;  %v4509_v36 = vpop.f32.mrf.mxu1  ;;  %v10578_v55 = vld [vmem:[#allocation2 + $0xb0] sm:$0xff] }
 0x5ab   : > { %5384 = vrot.lane.b32.xlu1 %v14814_v22, %s10597_s9  ;;  %9369 = vmatmul.mubr.msk.f32.gmra.mxu0 %vm16928_vm3, %v6439_v1  ;;  %v4570_v25 = vmax.f32 %v4508_v3, 0.0  ;;  %v6217_v41 = vsel %vm277_vm0, %v10578_v55, %v14146_v32  ;;  %v14962_v36 = vld [vmem:[#allocation2 + $0x142] sm:$0xff] }
 0x5ac   : > { %v5495_v26 = vpop.permute.xlu0 %5494  ;;  %v4512_v45 = vpop.f32.mrf.mxu1 }
 0x5ad   : > { %v5369_v54 = vpop.permute.xlu1 %5368  ;;  %v4625_v39 = vsel %vm4002_vm14, %v4570_v25, 0.0  ;;  %v4513_v33 = vadd.f32 %v14643_v58, %v4512_v45  ;;  %v6280_v12 = vsel %vm2009_vm6, %v6248_v21, %v5495_v26  ;;  %v10579_v21 = vld [vmem:[#allocation2 + $0xc0] sm:$0xff] }
 0x5ae   : > { %5638 = vrot.lane.b32.xlu0 %v14860_v24, %s10599_s11  ;;  %v4626_v22 = vadd.f32 %v4625_v39, %v4624_v19  ;;  %v4514_v56 = vpop.f32.mrf.mxu1  ;;  %v6249_v60 = vsel %vm1976_vm5, %v6217_v41, %v5369_v54 }
 0x5af   : > { %5512 = vrot.lane.b32.xlu1 %v14858_v28, %s10598_s10  ;;  %v4571_v5 = vmax.f32 %v4513_v33, 0.0 }
 0x5b0   : > { %v5623_v18 = vpop.permute.xlu0 %5622  ;;  %v4517_v57 = vpop.f32.mrf.mxu1 }
 0x5b1   : > { %v5497_v35 = vpop.permute.xlu1 %5496  ;;  %v4627_v61 = vsel %vm4002_vm14, %v4571_v5, 0.0  ;;  %v4518_v48 = vadd.f32 %v14643_v58, %v4517_v57  ;;  %v6312_v50 = vsel %vm2042_vm7, %v6280_v12, %v5623_v18  ;;  %v15004_v12 = vld [vmem:[#allocation2 + $0x152] sm:$0xff] }
 0x5b2   : > { %5766 = vrot.lane.b32.xlu0 %v14874_v62, %s10600_s12  ;;  %v4628_v28 = vadd.f32 %v4627_v61, %v4626_v22  ;;  %v4519_v8 = vpop.f32.mrf.mxu1  ;;  %v6281_v32 = vsel %vm2009_vm6, %v6249_v60, %v5497_v35 }
 0x5b3   : > { %5640 = vrot.lane.b32.xlu1 %v14872_v38, %s10599_s11  ;;  %v4572_v24 = vmax.f32 %v4518_v48, 0.0 }
 0x5b4   : > { %v5751_v17 = vpop.permute.xlu0 %5750  ;;  %v4522_v44 = vpop.f32.mrf.mxu1 }
 0x5b5   : > { %v5625_v37 = vpop.permute.xlu1 %5624  ;;  %v4629_v4 = vsel %vm4002_vm14, %v4572_v24, 0.0  ;;  %v4523_v51 = vadd.f32 %v14643_v58, %v4522_v44  ;;  %v6344_v7 = vsel %vm2075_vm8, %v6312_v50, %v5751_v17 }
 0x5b6   : > { %5894 = vrot.lane.b32.xlu0 %v14926_v9, %s10601_s13  ;;  %v4630_v38 = vadd.f32 %v4629_v4, %v4628_v28  ;;  %v4524_v6 = vpop.f32.mrf.mxu1  ;;  %v6313_v33 = vsel %vm2042_vm7, %v6281_v32, %v5625_v37  ;;  %v15025_v32 = vld [vmem:[%s16162_s2] ss:$0 sm:$0xff] }
 0x5b7   : > { %5768 = vrot.lane.b32.xlu1 %v14890_v43, %s10600_s12  ;;  %v4573_v30 = vmax.f32 %v4523_v51, 0.0 }
 0x5b8   : > { %v5879_v10 = vpop.permute.xlu0 %5878  ;;  %v4527_v13 = vpop.f32.mrf.mxu1 }
 0x5b9   : > { %v5753_v11 = vpop.permute.xlu1 %5752  ;;  %v4631_v14 = vsel %vm4002_vm14, %v4573_v30, 0.0  ;;  %v4528_v20 = vadd.f32 %v14643_v58, %v4527_v13  ;;  %v6376_v29 = vsel %vm2108_vm9, %v6344_v7, %v5879_v10 }
 0x5ba   : > { %6022 = vrot.lane.b32.xlu0 %v14936_v34, %s10602_s14  ;;  %v4632_v0 = vadd.f32 %v4631_v14, %v4630_v38  ;;  %v4529_v63 = vpop.f32.mrf.mxu1  ;;  %v6345_v54 = vsel %vm2075_vm8, %v6313_v33, %v5753_v11  ;;  %v5138_v14 = vld [vmem:[#allocation2 + $0x151] sm:$0xff] }
 0x5bb   : > { %5896 = vrot.lane.b32.xlu1 %v14934_v2, %s10601_s13  ;;  %v4574_v46 = vmax.f32 %v4528_v20, 0.0 }
 0x5bc   : > { %v6007_v42 = vpop.permute.xlu0 %6006  ;;  %v4532_v16 = vpop.f32.mrf.mxu1 }
 0x5bd   : > { %v5881_v59 = vpop.permute.xlu1 %5880  ;;  %v4633_v27 = vsel %vm4002_vm14, %v4574_v46, 0.0  ;;  %v4533_v1 = vadd.f32 %v14643_v58, %v4532_v16  ;;  %v6408_v25 = vsel %vm2141_vm10, %v6376_v29, %v6007_v42  ;;  %v10580_v16 = vld [vmem:[#allocation2 + $0xc8] sm:$0xff] }
 0x5be   : > { %6150 = vrot.lane.b32.xlu0 %v14948_v40, %s10603_s23  ;;  %v4634_v3 = vadd.f32 %v4633_v27, %v4632_v0  ;;  %v4534_v19 = vpop.f32.mrf.mxu1  ;;  %v6377_v35 = vsel %vm2108_vm9, %v6345_v54, %v5881_v59  ;;  %v6218_v0 = vsel %vm277_vm0, %v10579_v21, %v14148_v47  ;;  %v6219_v55 = vsel %vm277_vm0, %v10580_v16, %v14173_v31  ;;  %v15016_v27 = vld [vmem:[#allocation2 + $0x15a] sm:$0xff] }
 0x5bf   : > { %6024 = vrot.lane.b32.xlu1 %v5137_v23, %s10602_s14  ;;  %v4575_v26 = vmax.f32 %v4533_v1, 0.0 }
 0x5c0   : > { %v6135_v39 = vpop.permute.xlu0 %6134  ;;  %v4537_v56 = vpop.f32.mrf.mxu1 }
 0x5c1   : > { %v6009_v45 = vpop.permute.xlu1 %6008  ;;  %v6440_v22 = vsel %vm2174_vm11, %v6408_v25, %v6135_v39  ;;  %v4635_v5 = vsel %vm4002_vm14, %v4575_v26, 0.0  ;;  %v4538_v18 = vadd.f32 %v14643_v58, %v4537_v56 }
 0x5c2   : > { %5386 = vrot.lane.b32.xlu0 %v14874_v62, %s10597_s9  ;;  %v4636_v57 = vadd.f32 %v4635_v5, %v4634_v3  ;;  %v4539_v61 = vpop.f32.mrf.mxu1  ;;  %9371 = vmatprep.mubr.msk.f32.mxu0 %vm16935_vm12, %v6440_v22  ;;  %v6409_v48 = vsel %vm2141_vm10, %v6377_v35, %v6009_v45  ;;  %vm16936_vm12 = vmmov %vm16928_vm3 }
 0x5c3   : > { %6152 = vrot.lane.b32.xlu1 %v14962_v36, %s10603_s23  ;;  %v4576_v28 = vmax.f32 %v4538_v18, 0.0 }
 0x5c4   : > { %v5371_v24 = vpop.permute.xlu0 %5370  ;;  %v4542_v17 = vpop.f32.mrf.mxu1 }
 0x5c5   : > { %v6137_v8 = vpop.permute.xlu1 %6136  ;;  %v4637_v44 = vsel %vm4002_vm14, %v4576_v28, 0.0  ;;  %v4543_v4 = vadd.f32 %v14643_v58, %v4542_v17  ;;  %v6250_v63 = vsel %vm1976_vm5, %v6218_v0, %v5371_v24  ;;  %v5141_v0 = vld [vmem:[#allocation2 + $0x171] sm:$0xff] }
 0x5c6   : > { %v6441_v37 = vsel %vm2174_vm11, %v6409_v48, %v6137_v8  ;;  %5514 = vrot.lane.b32.xlu0 %v14926_v9, %s10598_s10  ;;  %v4638_v62 = vadd.f32 %v4637_v44, %v4636_v57  ;;  %v4544_v51 = vpop.f32.mrf.mxu1  ;;  %v5106_v9 = vld [vmem:[#allocation2 + $0x150] sm:$0xff]  ;;  %v5108_v44 = vld [vmem:[#allocation2 + $0x168] sm:$0xff] }
 0x5c7   : > { %5388 = vrot.lane.b32.xlu1 %v14890_v43, %s10597_s9  ;;  %9372 = vmatmul.mubr.msk.f32.gmra.mxu0 %vm16928_vm3, %v6441_v37  ;;  %v4577_v38 = vmax.f32 %v4543_v4, 0.0 }
 0x5c8   : > { %v5499_v30 = vpop.permute.xlu0 %5498 }
 0x5c9   : > { %v5373_v6 = vpop.permute.xlu1 %5372  ;;  %v4639_v11 = vsel %vm4002_vm14, %v4577_v38, 0.0  ;;  %v6282_v46 = vsel %vm2009_vm6, %v6250_v63, %v5499_v30  ;;  %v15063_v63 = vld [vmem:[#allocation2 + $0x16a] sm:$0xff] }
 0x5ca   : > { %5642 = vrot.lane.b32.xlu0 %v14936_v34, %s10599_s11  ;;  %v14991_v58 = vadd.f32 %v4639_v11, %v4638_v62  ;;  %v6251_v41 = vsel %vm1976_vm5, %v6219_v55, %v5373_v6  ;;  %v10582_v55 = vld [vmem:[#allocation2 + $0xe0] sm:$0xff] }
 0x5cb   : > { %5516 = vrot.lane.b32.xlu1 %v14934_v2, %s10598_s10  ;;  %v5107_v2 = vld [vmem:[#allocation2 + $0x158] sm:$0xff] }
 0x5cc   : > { %v5627_v10 = vpop.permute.xlu0 %5626 }
 0x5cd   : > { %v5501_v43 = vpop.permute.xlu1 %5500  ;;  %v6314_v50 = vsel %vm2042_vm7, %v6282_v46, %v5627_v10  ;;  %v5140_v10 = vld [vmem:[#allocation2 + $0x169] sm:$0xff] }
 0x5ce   : > { %5770 = vrot.lane.b32.xlu0 %v14948_v40, %s10600_s12  ;;  %v6283_v1 = vsel %vm2009_vm6, %v6251_v41, %v5501_v43  ;;  %v5109_v43 = vld [vmem:[#allocation2 + $0x170] sm:$0xff] }
 0x5cf   : > { %5644 = vrot.lane.b32.xlu1 %v5137_v23, %s10599_s11  ;;  %v5139_v23 = vld [vmem:[#allocation2 + $0x159] sm:$0xff] }
 0x5d0   : > { %v5755_v15 = vpop.permute.xlu0 %5754 }
 0x5d1   : > { %v5629_v13 = vpop.permute.xlu1 %5628  ;;  %v6346_v47 = vsel %vm2075_vm8, %v6314_v50, %v5755_v15 }
 0x5d2   : > { %5898 = vrot.lane.b32.xlu0 %v5106_v9, %s10601_s13  ;;  %v6315_v31 = vsel %vm2042_vm7, %v6283_v1, %v5629_v13  ;;  %v15080_v1 = vld [vmem:[#allocation2 + $0x172] sm:$0xff] }
 0x5d3   : > { %5772 = vrot.lane.b32.xlu1 %v14962_v36, %s10600_s12 }
 0x5d4   : > { %v5883_v20 = vpop.permute.xlu0 %5882 }
 0x5d5   : > { %v5757_v34 = vpop.permute.xlu1 %5756  ;;  %v6378_v7 = vsel %vm2108_vm9, %v6346_v47, %v5883_v20 }
 0x5d6   : > { %6026 = vrot.lane.b32.xlu0 %v5138_v14, %s10602_s14  ;;  %v6347_v25 = vsel %vm2075_vm8, %v6315_v31, %v5757_v34 }
 0x5d7   : > { %5900 = vrot.lane.b32.xlu1 %v5107_v2, %s10601_s13 }
 0x5d8   : > { %v6011_v42 = vpop.permute.xlu0 %6010 }
 0x5d9   : > { %v5885_v59 = vpop.permute.xlu1 %5884  ;;  %v6410_v60 = vsel %vm2141_vm10, %v6378_v7, %v6011_v42 }
 0x5da   : > { %6154 = vrot.lane.b32.xlu0 %v15004_v12, %s10603_s23  ;;  %v6379_v26 = vsel %vm2108_vm9, %v6347_v25, %v5885_v59 }
 0x5db   : > { %6028 = vrot.lane.b32.xlu1 %v5139_v23, %s10602_s14 }
 0x5dc   : > { %v6139_v3 = vpop.permute.xlu0 %6138 }
 0x5dd   : > { %v6013_v29 = vpop.permute.xlu1 %6012  ;;  %v6442_v19 = vsel %vm2174_vm11, %v6410_v60, %v6139_v3 }
 0x5de   : > { %5390 = vrot.lane.b32.xlu0 %v14948_v40, %s10597_s9  ;;  %9374 = vmatprep.mubr.msk.f32.mxu0 %vm16936_vm12, %v6442_v19  ;;  %v6411_v39 = vsel %vm2141_vm10, %v6379_v26, %v6013_v29  ;;  %vm16937_vm12 = vcmask 1040384  }
 0x5df   : > { %6156 = vrot.lane.b32.xlu1 %v15016_v27, %s10603_s23  ;;  %v9352_v45 = vpop.f32.mrf.mxu0  ;;  %vm16939_vm4 = vmmov %vm16937_vm12 }
 0x5e0   : > { %v6640_v33 = vadd.f32 %v9352_v45, %v15025_v32  ;;  %v5375_v56 = vpop.permute.xlu0 %5374  ;;  %vm16940_vm1 = vmmov %vm16939_vm4 }
 0x5e1   : > { %v6141_v22 = vpop.permute.xlu1 %6140  ;;  %v6634_v5 = vpop.f32.mrf.mxu0 }
 0x5e2   : > { %v6443_v54 = vsel %vm2174_vm11, %v6411_v39, %v6141_v22  ;;  %v6794_v18 = vmax.f32 %v6640_v33, 0.0  ;;  %v6635_v35 = vadd.f32 %v15025_v32, %v6634_v5  ;;  %5518 = vrot.lane.b32.xlu0 %v5106_v9, %s10598_s10 }
 0x5e3   : > { %5392 = vrot.lane.b32.xlu1 %v14962_v36, %s10597_s9  ;;  %9375 = vmatmul.mubr.msk.f32.gmra.mxu0 %vm16928_vm3, %v6443_v54  ;;  %vm16943_vm3 = vmmov %vm16940_vm1 }
 0x5e4   : > { %v6858_v40 = vrot.slane %v6794_v18, 7  ;;  %v6793_v57 = vmax.f32 %v6635_v35, 0.0  ;;  %v5503_v48 = vpop.permute.xlu0 %5502 }
 0x5e5   : > { %v5377_v61 = vpop.permute.xlu1 %5376 }
 0x5e6   : > { %v6969_v28 = vsel %vm16937_vm12, %v6858_v40, 0.0  ;;  %v6857_v8 = vrot.slane %v6793_v57, 7  ;;  %5646 = vrot.lane.b32.xlu0 %v5138_v14, %s10599_s11  ;;  %v10581_v14 = vld [vmem:[#allocation2 + $0xd8] sm:$0xff]  ;;  %vm16944_vm12 = vcmask 220160  }
 0x5e7   : > { %5520 = vrot.lane.b32.xlu1 %v5107_v2, %s10598_s10  ;;  %6987 = vst.msk [vmem:[#allocation3 + $0x28] sm:$0x3] %vm16938_vm2, %v6969_v28  ;;  %v6220_v34 = vsel %vm277_vm0, %v10581_v14, %v14175_v53  ;;  %vm16941_vm2 = vmmov %vm16940_vm1  ;;  %v6221_v53 = vsel %vm277_vm0, %v10582_v55, %v14195_v49  ;;  %v10584_v14 = vld [vmem:[#allocation2 + $0xf8] sm:$0xff] }
 0x5e8   : > { %v6859_v24 = vsel %vm16939_vm4, %v6857_v8, %v6858_v40  ;;  %v6953_v36 = vsel %vm16940_vm1, 0.0, %v6857_v8  ;;  %v5631_v17 = vpop.permute.xlu0 %5630  ;;  %vm16942_vm4 = vcmask 123904   ;;  %v6253_v41 = vsel %vm1976_vm5, %v6221_v53, %v5377_v61 }
 0x5e9   : > { %v5505_v37 = vpop.permute.xlu1 %5504  ;;  %6985 = vst.msk [vmem:[#allocation3 + $0x18] sm:$0xff] %vm333_vm13, %v6953_v36  ;;  %6986 = vst.msk [vmem:[#allocation3 + $0x20] sm:$0xff] %vm333_vm13, %v6859_v24 }
 0x5ea   : > { %5774 = vrot.lane.b32.xlu0 %v15004_v12, %s10600_s12  ;;  %v6285_v60 = vsel %vm2009_vm6, %v6253_v41, %v5505_v37 }
 0x5eb   : > { %5648 = vrot.lane.b32.xlu1 %v5139_v23, %s10599_s11  ;;  %v6252_v23 = vsel %vm1976_vm5, %v6220_v34, %v5375_v56  ;;  %v16949_v34 = vld [vmem:[#allocation38_spill] sm:$0xff] }
 0x5ec   : > { %v9355_v4 = vpop.f32.mrf.mxu0  ;;  %v5759_v38 = vpop.permute.xlu0 %5758  ;;  %v6284_v59 = vsel %vm2009_vm6, %v6252_v23, %v5503_v48  ;;  %v5110_v48 = vld [vmem:[#allocation2 + $0x180] sm:$0xff] }
 0x5ed   : > { %v5633_v62 = vpop.permute.xlu1 %5632  ;;  %v6650_v51 = vadd.f32 %v9355_v4, %v15025_v32  ;;  %v6316_v47 = vsel %vm2042_vm7, %v6284_v59, %v5631_v17  ;;  %v5142_v4 = vld [vmem:[#allocation2 + $0x181] sm:$0xff] }
 0x5ee   : > { %v6644_v6 = vpop.f32.mrf.mxu0  ;;  %5902 = vrot.lane.b32.xlu0 %v5108_v44, %s10601_s13  ;;  %v6348_v7 = vsel %vm2075_vm8, %v6316_v47, %v5759_v38  ;;  %v6317_v3 = vsel %vm2042_vm7, %v6285_v60, %v5633_v62 }
 0x5ef   : > { %5776 = vrot.lane.b32.xlu1 %v15016_v27, %s10600_s12  ;;  %v6796_v30 = vmax.f32 %v6650_v51, 0.0  ;;  %v6645_v11 = vadd.f32 %v15025_v32, %v6644_v6 }
 0x5f0   : > { %v5887_v2 = vpop.permute.xlu0 %5886 }
 0x5f1   : > { %v5761_v9 = vpop.permute.xlu1 %5760  ;;  %v6861_v13 = vrot.slane %v6796_v30, 7  ;;  %v6795_v15 = vmax.f32 %v6645_v11, 0.0  ;;  %v6380_v49 = vsel %vm2108_vm9, %v6348_v7, %v5887_v2  ;;  %v10583_v30 = vld [vmem:[#allocation2 + $0xf0] sm:$0xff] }
 0x5f2   : > { %6030 = vrot.lane.b32.xlu0 %v5140_v10, %s10602_s14  ;;  %v6349_v25 = vsel %vm2075_vm8, %v6317_v3, %v5761_v9  ;;  %v6222_v11 = vsel %vm277_vm0, %v10583_v30, %v14197_v52  ;;  %v8456_v52 = vld [vmem:[%s16163_s3 + $0x78] sm:$0xff]  ;;  %v5145_v30 = vld [vmem:[#allocation2 + $0x1a1] sm:$0xff] }
 0x5f3   : > { %5904 = vrot.lane.b32.xlu1 %v5109_v43, %s10601_s13  ;;  %v6970_v20 = vsel %vm16941_vm2, %v6861_v13, 0.0  ;;  %v6860_v21 = vrot.slane %v6795_v15, 7  ;;  %vm16945_vm2 = vmmov %vm16944_vm12  ;;  %8563 = vmatpush1.msra.mxu0 %v8456_v52 }
 0x5f4   : > { %6990 = vst.msk [vmem:[#allocation3 + $0x40] sm:$0x3] %vm16942_vm4, %v6970_v20  ;;  %v6015_v16 = vpop.permute.xlu0 %6014  ;;  %vm16946_vm4 = vmmov %vm16940_vm1  ;;  %v6223_v20 = vsel %vm277_vm0, %v10584_v14, %v16949_v34  ;;  %v8447_v14 = vld [vmem:[%s16163_s3 + $0x30] sm:$0xff] }
 0x5f5   : > { %v5889_v46 = vpop.permute.xlu1 %5888  ;;  %v6862_v42 = vsel %vm16940_vm1, %v6860_v21, %v6861_v13  ;;  %v6954_v50 = vsel %vm16943_vm3, 0.0, %v6860_v21  ;;  %v6412_v31 = vsel %vm2141_vm10, %v6380_v49, %v6015_v16  ;;  %vm16947_vm1 = vcmask 123904   ;;  %v8455_v49 = vld [vmem:[%s16163_s3 + $0x70] sm:$0xff] }
 0x5f6   : > { %6988 = vst.msk [vmem:[#allocation3 + $0x30] sm:$0xff] %vm333_vm13, %v6954_v50  ;;  %6989 = vst.msk [vmem:[#allocation3 + $0x38] sm:$0xff] %vm333_vm13, %v6862_v42  ;;  %6158 = vrot.lane.b32.xlu0 %v15063_v63, %s10603_s23  ;;  %v6381_v45 = vsel %vm2108_vm9, %v6349_v25, %v5889_v46  ;;  %v15132_v46 = vld [vmem:[#allocation2 + $0x18a] sm:$0xff]  ;;  %v16950_v16 = vmov 0.0  }
 0x5f7   : > { %6032 = vrot.lane.b32.xlu1 %v5141_v0, %s10602_s14  ;;  %8564 = vmatprep.subr.mxu0 %v16950_v16 }
 0x5f8   : > { %v6143_v19 = vpop.permute.xlu0 %6142  ;;  %8565 = vmatpush1.msra.mxu0 %v8455_v49 }
 0x5f9   : > { %v6017_v29 = vpop.permute.xlu1 %6016  ;;  %v6444_v26 = vsel %vm2174_vm11, %v6412_v31, %v6143_v19  ;;  %8566 = vmatprep.subr.mxu0 %v16950_v16 }
 0x5fa   : > { %5394 = vrot.lane.b32.xlu0 %v15004_v12, %s10597_s9  ;;  %9377 = vmatprep.mubr.msk.f32.mxu0 %vm16944_vm12, %v6444_v26  ;;  %v6413_v39 = vsel %vm2141_vm10, %v6381_v45, %v6017_v29  ;;  %vm16948_vm12 = vmmov %vm16943_vm3  ;;  %v8453_v45 = vld [vmem:[%s16163_s3 + $0x60] sm:$0xff] }
 0x5fb   : > { %6160 = vrot.lane.b32.xlu1 %v15080_v1, %s10603_s23 }
 0x5fc   : > { %v5379_v56 = vpop.permute.xlu0 %5378 }
 0x5fd   : > { %v6145_v33 = vpop.permute.xlu1 %6144  ;;  %v6254_v9 = vsel %vm1976_vm5, %v6222_v11, %v5379_v56  ;;  %v16956_v11 = vld [vmem:[#allocation89_spill] sm:$0xff] }
 0x5fe   : > { %v6445_v22 = vsel %vm2174_vm11, %v6413_v39, %v6145_v33  ;;  %5522 = vrot.lane.b32.xlu0 %v5108_v44, %s10598_s10  ;;  %v5111_v44 = vld [vmem:[#allocation2 + $0x188] sm:$0xff] }
 0x5ff   : > { %5396 = vrot.lane.b32.xlu1 %v15016_v27, %s10597_s9  ;;  %9378 = vmatmul.mubr.msk.f32.gmra.mxu0 %vm16945_vm2, %v6445_v22 }
 0x600   : > { %v5507_v5 = vpop.permute.xlu0 %5506 }
 0x601   : > { %v5381_v54 = vpop.permute.xlu1 %5380  ;;  %v6286_v15 = vsel %vm2009_vm6, %v6254_v9, %v5507_v5  ;;  %v7065_v9 = vld [vmem:[#allocation3 + $0x1] sm:$0xff] }
 0x602   : > { %5650 = vrot.lane.b32.xlu0 %v5140_v10, %s10599_s11  ;;  %v5174_v10 = vld [vmem:[#allocation2 + $0x182] sm:$0xff] }
 0x603   : > { %5524 = vrot.lane.b32.xlu1 %v5109_v43, %s10598_s10  ;;  %v5143_v43 = vld [vmem:[#allocation2 + $0x189] sm:$0xff] }
 0x604   : > { %v9358_v12 = vpop.f32.mrf.mxu0  ;;  %v5635_v40 = vpop.permute.xlu0 %5634 }
 0x605   : > { %v5509_v18 = vpop.permute.xlu1 %5508  ;;  %v6660_v35 = vadd.f32 %v9358_v12, %v15025_v32  ;;  %v6318_v21 = vsel %vm2042_vm7, %v6286_v15, %v5635_v40  ;;  %v8451_v40 = vld [vmem:[%s16163_s3 + $0x50] sm:$0xff] }
 0x606   : > { %v6654_v57 = vpop.f32.mrf.mxu0  ;;  %5778 = vrot.lane.b32.xlu0 %v15063_v63, %s10600_s12 }
 0x607   : > { %5652 = vrot.lane.b32.xlu1 %v5141_v0, %s10599_s11  ;;  %v6798_v27 = vmax.f32 %v6660_v35, 0.0  ;;  %v6655_v61 = vadd.f32 %v15025_v32, %v6654_v57  ;;  %v6255_v0 = vsel %vm1976_vm5, %v6223_v20, %v5381_v54 }
 0x608   : > { %v5763_v36 = vpop.permute.xlu0 %5762  ;;  %v6287_v59 = vsel %vm2009_vm6, %v6255_v0, %v5509_v18 }
 0x609   : > { %v5637_v28 = vpop.permute.xlu1 %5636  ;;  %v6864_v8 = vrot.slane %v6798_v27, 7  ;;  %v6797_v24 = vmax.f32 %v6655_v61, 0.0  ;;  %v6350_v23 = vsel %vm2075_vm8, %v6318_v21, %v5763_v36  ;;  %v5112_v61 = vld [vmem:[#allocation2 + $0x198] sm:$0xff]  ;;  %v16957_v21 = vld [vmem:[#allocation86_spill] sm:$0xff] }
 0x60a   : > { %5906 = vrot.lane.b32.xlu0 %v5110_v48, %s10601_s13  ;;  %v6319_v55 = vsel %vm2042_vm7, %v6287_v59, %v5637_v28  ;;  %v8450_v28 = vld [vmem:[%s16163_s3 + $0x48] sm:$0xff] }
 0x60b   : > { %5780 = vrot.lane.b32.xlu1 %v15080_v1, %s10600_s12  ;;  %v6971_v37 = vsel %vm16946_vm4, %v6864_v8, 0.0  ;;  %v6863_v17 = vrot.slane %v6797_v24, 7  ;;  %vm16951_vm4 = vmmov %vm16945_vm2 }
 0x60c   : > { %6993 = vst.msk [vmem:[#allocation3 + $0x58] sm:$0x3] %vm16947_vm1, %v6971_v37  ;;  %v5891_v6 = vpop.permute.xlu0 %5890  ;;  %vm16952_vm1 = vmmov %vm16943_vm3  ;;  %v8449_v37 = vld [vmem:[%s16163_s3 + $0x40] sm:$0xff] }
 0x60d   : > { %v5765_v62 = vpop.permute.xlu1 %5764  ;;  %v6865_v51 = vsel %vm16943_vm3, %v6863_v17, %v6864_v8  ;;  %v6955_v38 = vsel %vm16948_vm12, 0.0, %v6863_v17  ;;  %v6382_v42 = vsel %vm2108_vm9, %v6350_v23, %v5891_v6  ;;  %vm16953_vm3 = vcmask 123904   ;;  %vm16954_vm12 = vmmov %vm16952_vm1  ;;  %v5113_v17 = vld [vmem:[#allocation2 + $0x1a0] sm:$0xff]  ;;  %v4913_v6 = vld [vmem:[#allocation2 + $0x110] sm:$0xff] }
 0x60e   : > { %6991 = vst.msk [vmem:[#allocation3 + $0x48] sm:$0xff] %vm333_vm13, %v6955_v38  ;;  %6992 = vst.msk [vmem:[#allocation3 + $0x50] sm:$0xff] %vm333_vm13, %v6865_v51  ;;  %6034 = vrot.lane.b32.xlu0 %v5142_v4, %s10602_s14  ;;  %v6351_v41 = vsel %vm2075_vm8, %v6319_v55, %v5765_v62  ;;  %v8448_v38 = vld [vmem:[%s16163_s3 + $0x38] sm:$0xff]  ;;  %v6225_v52 = vsel %vm277_vm0, %v4913_v6, %v16957_v21  ;;  %v8442_v6 = vld [vmem:[%s16163_s3 + $0x8] sm:$0xff] }
 0x60f   : > { %5908 = vrot.lane.b32.xlu1 %v5111_v44, %s10601_s13  ;;  %v7097_v55 = vld [vmem:[#allocation3 + $0x2] sm:$0xff] }
 0x610   : > { %v6019_v2 = vpop.permute.xlu0 %6018 }
 0x611   : > { %v5893_v13 = vpop.permute.xlu1 %5892  ;;  %v6414_v53 = vsel %vm2141_vm10, %v6382_v42, %v6019_v2 }
 0x612   : > { %6162 = vrot.lane.b32.xlu0 %v5174_v10, %s10603_s23  ;;  %v6383_v60 = vsel %vm2108_vm9, %v6351_v41, %v5893_v13  ;;  %v7066_v13 = vld [vmem:[#allocation3 + $0x9] sm:$0xff] }
 0x613   : > { %6036 = vrot.lane.b32.xlu1 %v5143_v43, %s10602_s14  ;;  %v9994_v23 = vpack.i.bf16 %v7066_v13, %v7065_v9 }
 0x614   : > { %v6147_v47 = vpop.permute.xlu0 %6146 }
 0x615   : > { %v6021_v50 = vpop.permute.xlu1 %6020  ;;  %v6446_v7 = vsel %vm2174_vm11, %v6414_v53, %v6147_v47  ;;  %v7098_v53 = vld [vmem:[#allocation3 + $0xa] sm:$0xff] }
 0x616   : > { %5398 = vrot.lane.b32.xlu0 %v15063_v63, %s10597_s9  ;;  %9380 = vmatprep.mubr.msk.f32.mxu0 %vm16945_vm2, %v6446_v7  ;;  %v6415_v29 = vsel %vm2141_vm10, %v6383_v60, %v6021_v50  ;;  %v8454_v63 = vld [vmem:[%s16163_s3 + $0x68] sm:$0xff]  ;;  %vm16955_vm2 = vmmov %vm16952_vm1 }
 0x617   : > { %6164 = vrot.lane.b32.xlu1 %v15132_v46, %s10603_s23  ;;  %8567 = vmatpush1.msra.mxu0 %v8454_v63  ;;  %v5177_v50 = vld [vmem:[#allocation2 + $0x1a2] sm:$0xff] }
 0x618   : > { %v15152_v19 = vpop.permute.xlu0 %5382  ;;  %8568 = vmatprep.subr.mxu0 %v16950_v16 }
 0x619   : > { %v6149_v3 = vpop.permute.xlu1 %6148  ;;  %8569 = vmatpush1.msra.mxu0 %v8453_v45 }
 0x61a   : > { %v6447_v31 = vsel %vm2174_vm11, %v6415_v29, %v6149_v3  ;;  %5526 = vrot.lane.b32.xlu0 %v5110_v48, %s10598_s10  ;;  %8570 = vmatprep.subr.mxu0 %v16950_v16  ;;  %v15233_v3 = vld [vmem:[#allocation3 + $0x18] sm:$0xff] }
 0x61b   : > { %5400 = vrot.lane.b32.xlu1 %v15080_v1, %s10597_s9  ;;  %9381 = vmatmul.mubr.msk.f32.gmra.mxu0 %vm16951_vm4, %v6447_v31  ;;  %v8452_v1 = vld [vmem:[%s16163_s3 + $0x58] sm:$0xff]  ;;  %v15235_v31 = vld [vmem:[#allocation3 + $0x20] sm:$0xff] }
 0x61c   : > { %v9361_v25 = vpop.f32.mrf.mxu0  ;;  %v5511_v33 = vpop.permute.xlu0 %5510  ;;  %8571 = vmatpush1.msra.mxu0 %v8452_v1  ;;  %v10004_v1 = vpack.i.bf16 %v15235_v31, %v15233_v3 }
 0x61d   : > { %v15162_v26 = vpop.permute.xlu1 %5384  ;;  %v6670_v39 = vadd.f32 %v9361_v25, %v15025_v32  ;;  %8572 = vmatprep.subr.mxu0 %v16950_v16 }
 0x61e   : > { %v6664_v22 = vpop.f32.mrf.mxu0  ;;  %5654 = vrot.lane.b32.xlu0 %v5142_v4, %s10599_s11  ;;  %8573 = vmatpush1.msra.mxu0 %v8451_v40  ;;  %v4912_v4 = vld [vmem:[#allocation2 + $0x108] sm:$0xff]  ;;  %v6257_v59 = vsel %vm1976_vm5, %v6225_v52, %v15162_v26  ;;  %v9999_v26 = vpack.i.bf16 %v7098_v53, %v7097_v55  ;;  %v7194_v40 = vld [vmem:[#allocation3 + $0x22] sm:$0xff]  ;;  %v8457_v52 = vld [vmem:[%s16163_s3 + $0x80] sm:$0xff] }
 0x61f   : > { %5528 = vrot.lane.b32.xlu1 %v5111_v44, %s10598_s10  ;;  %v6800_v56 = vmax.f32 %v6670_v39, 0.0  ;;  %v6665_v54 = vadd.f32 %v15025_v32, %v6664_v22  ;;  %8574 = vmatprep.subr.mxu0 %v16950_v16  ;;  %v5144_v44 = vld [vmem:[#allocation2 + $0x199] sm:$0xff]  ;;  %v15298_v55 = vld [vmem:[#allocation3 + $0x3a] sm:$0xff] }
 0x620   : > { %v5639_v35 = vpop.permute.xlu0 %5638  ;;  %8575 = vmatpush1.msra.mxu0 %v8450_v28  ;;  %v16962_v53 = vld [vmem:[#allocation121_spill] sm:$0xff] }
 0x621   : > { %v15175_v5 = vpop.permute.xlu1 %5512  ;;  %v6867_v12 = vrot.slane %v6800_v56, 7  ;;  %v6799_v18 = vmax.f32 %v6665_v54, 0.0  ;;  %8576 = vmatprep.subr.mxu0 %v16950_v16  ;;  %v7161_v56 = vld [vmem:[#allocation3 + $0x19] sm:$0xff]  ;;  %v7162_v54 = vld [vmem:[#allocation3 + $0x21] sm:$0xff] }
 0x622   : > { %5782 = vrot.lane.b32.xlu0 %v5174_v10, %s10600_s12  ;;  %8577 = vmatpush1.msra.mxu0 %v8449_v37  ;;  %v5176_v10 = vld [vmem:[#allocation2 + $0x19a] sm:$0xff]  ;;  %v6289_v47 = vsel %vm2009_vm6, %v6257_v59, %v15175_v5  ;;  %v8443_v37 = vld [vmem:[%s16163_s3 + $0x10] sm:$0xff] }
 0x623   : > { %5656 = vrot.lane.b32.xlu1 %v5143_v43, %s10599_s11  ;;  %v6972_v57 = vsel %vm16952_vm1, %v6867_v12, 0.0  ;;  %v6866_v27 = vrot.slane %v6799_v18, 7  ;;  %v6224_v43 = vsel %vm277_vm0, %v4912_v4, %v16956_v11  ;;  %8578 = vmatprep.subr.mxu0 %v16950_v16  ;;  %vm16958_vm1 = vmmov %vm16951_vm4 }
 0x624   : > { %6996 = vst.msk [vmem:[#allocation3 + $0x70] sm:$0x3] %vm16953_vm3, %v6972_v57  ;;  %v5767_v36 = vpop.permute.xlu0 %5766  ;;  %v6256_v15 = vsel %vm1976_vm5, %v6224_v43, %v15152_v19  ;;  %8579 = vmatpush1.msra.mxu0 %v8448_v38  ;;  %v8445_v19 = vld [vmem:[%s16163_s3 + $0x20] sm:$0xff]  ;;  %v8444_v57 = vld [vmem:[%s16163_s3 + $0x18] sm:$0xff]  ;;  %v7226_v38 = vld [vmem:[#allocation3 + $0x38] sm:$0xff] }
 0x625   : > { %v5641_v48 = vpop.permute.xlu1 %5640  ;;  %v6868_v8 = vsel %vm16954_vm12, %v6866_v27, %v6867_v12  ;;  %v6956_v24 = vsel %vm16955_vm2, 0.0, %v6866_v27  ;;  %v6288_v34 = vsel %vm2009_vm6, %v6256_v15, %v5511_v33  ;;  %8580 = vmatprep.subr.mxu0 %v16950_v16  ;;  %vm16959_vm3 = vmmov %vm16955_vm2  ;;  %vm16960_vm12 = vcmask 123904  }
 0x626   : > { %6994 = vst.msk [vmem:[#allocation3 + $0x60] sm:$0xff] %vm333_vm13, %v6956_v24  ;;  %6995 = vst.msk [vmem:[#allocation3 + $0x68] sm:$0xff] %vm333_vm13, %v6868_v8  ;;  %5910 = vrot.lane.b32.xlu0 %v5112_v61, %s10601_s13  ;;  %v6320_v0 = vsel %vm2042_vm7, %v6288_v34, %v5639_v35  ;;  %8581 = vmatpush1.msra.mxu0 %v8447_v14  ;;  %v6321_v60 = vsel %vm2042_vm7, %v6289_v47, %v5641_v48  ;;  %v7193_v35 = vld [vmem:[#allocation3 + $0x1a] sm:$0xff]  ;;  %v8441_v14 = vld [vmem:[%s16163_s3] sm:$0xff] }
 0x627   : > { %5784 = vrot.lane.b32.xlu1 %v15132_v46, %s10600_s12  ;;  %v8446_v46 = vld [vmem:[%s16163_s3 + $0x28] sm:$0xff]  ;;  %v6352_v42 = vsel %vm2075_vm8, %v6320_v0, %v5767_v36  ;;  %8582 = vmatprep.subr.mxu0 %v16950_v16  ;;  %v10009_v8 = vpack.i.bf16 %v7162_v54, %v7161_v56  ;;  %v10014_v24 = vpack.i.bf16 %v7194_v40, %v7193_v35  ;;  %v4914_v0 = vld [vmem:[#allocation2 + $0x120] sm:$0xff] }
 0x628   : > { %v5895_v51 = vpop.permute.xlu0 %5894  ;;  %8583 = vmatpush1.msra.mxu0 %v8446_v46  ;;  %v7257_v36 = vld [vmem:[#allocation3 + $0x31] sm:$0xff]  ;;  %v6226_v47 = vsel %vm277_vm0, %v4914_v0, %v16962_v53 }
 0x629   : > { %v5769_v62 = vpop.permute.xlu1 %5768  ;;  %v6384_v41 = vsel %vm2108_vm9, %v6352_v42, %v5895_v51  ;;  %8584 = vmatprep.subr.mxu0 %v16950_v16  ;;  %v7225_v51 = vld [vmem:[#allocation3 + $0x30] sm:$0xff]  ;;  %v7227_v42 = vld [vmem:[#allocation3 + $0x48] sm:$0xff] }
 0x62a   : > { %6038 = vrot.lane.b32.xlu0 %v5144_v44, %s10602_s14  ;;  %v6353_v63 = vsel %vm2075_vm8, %v6321_v60, %v5769_v62  ;;  %8585 = vmatpush1.msra.mxu0 %v8445_v19  ;;  %v7258_v62 = vld [vmem:[#allocation3 + $0x39] sm:$0xff]  ;;  %v10019_v9 = vpack.i.bf16 %v7226_v38, %v7225_v51 }
 0x62b   : > { %5912 = vrot.lane.b32.xlu1 %v5113_v17, %s10601_s13  ;;  %8586 = vmatprep.subr.mxu0 %v16950_v16  ;;  %v15295_v46 = vld [vmem:[#allocation3 + $0x32] sm:$0xff]  ;;  %s276_s13 = scalar_lea.vmem %s16167_s7, %s9037_s27 }
 0x62c   : > { %v6023_v20 = vpop.permute.xlu0 %6022  ;;  %8587 = vmatpush1.msra.mxu0 %v8444_v57  ;;  %v15335_v51 = vld [vmem:[#allocation3 + $0x52] sm:$0xff] }
 0x62d   : > { %v5897_v2 = vpop.permute.xlu1 %5896  ;;  %v6416_v49 = vsel %vm2141_vm10, %v6384_v41, %v6023_v20  ;;  %8588 = vmatprep.subr.mxu0 %v16950_v16  ;;  %v8458_v20 = vld [vmem:[%s16163_s3 + $0x88] sm:$0xff] }
 0x62e   : > { %6166 = vrot.lane.b32.xlu0 %v5176_v10, %s10603_s23  ;;  %v6385_v45 = vsel %vm2108_vm9, %v6353_v63, %v5897_v2  ;;  %8589 = vmatpush1.msra.mxu0 %v8443_v37  ;;  %v10024_v10 = vpack.i.bf16 %v7258_v62, %v7257_v36  ;;  %v4915_v41 = vld [vmem:[#allocation2 + $0x128] sm:$0xff]  ;;  %v15333_v62 = vld [vmem:[#allocation3 + $0x4a] sm:$0xff] }
 0x62f   : > { %6040 = vrot.lane.b32.xlu1 %v5145_v30, %s10602_s14  ;;  %8590 = vmatprep.subr.mxu0 %v16950_v16 }
 0x630   : > { %v6151_v29 = vpop.permute.xlu0 %6150  ;;  %8591 = vmatpush1.msra.mxu0 %v8442_v6 }
 0x631   : > { %v6025_v7 = vpop.permute.xlu1 %6024  ;;  %v6448_v25 = vsel %vm2174_vm11, %v6416_v49, %v6151_v29  ;;  %8592 = vmatprep.subr.mxu0 %v16950_v16  ;;  %v10049_v29 = vpack.i.bf16 %v15298_v55, %v15295_v46 }
 0x632   : > { %9995 = vrot.lane.b32.xlu0 %v9994_v23, %s10604_s26  ;;  %9383 = vmatprep.mubr.msk.f32.mxu0 %vm16951_vm4, %v6448_v25  ;;  %v6417_v39 = vsel %vm2141_vm10, %v6385_v45, %v6025_v7  ;;  %vm16961_vm4 = vmmov %vm16955_vm2  ;;  %v7259_v25 = vld [vmem:[#allocation3 + $0x49] sm:$0xff]  ;;  %v16963_v45 = vld [vmem:[#allocation118_spill] sm:$0xff] }
 0x633   : > { %6168 = vrot.lane.b32.xlu1 %v5177_v50, %s10603_s23  ;;  %8593 = vmatpush1.msra.mxu0 %v8441_v14  ;;  %v7228_v50 = vld [vmem:[#allocation3 + $0x50] sm:$0xff] }
 0x634   : > { %v9364_v33 = vpop.f32.mrf.mxu0  ;;  %v15252_v18 = vpop.permute.xlu0 %5386  ;;  %8622 = vmatprep.subr.mxu0 %v16950_v16  ;;  %v10054_v49 = vpack.i.bf16 %v7228_v50, %v7227_v42  ;;  %v7262_v14 = vld [vmem:[#allocation3 + $0x69] sm:$0xff] }
 0x635   : > { %v6153_v22 = vpop.permute.xlu1 %6152  ;;  %v6680_v5 = vadd.f32 %v9364_v33, %v15025_v32  ;;  %8623 = vmatpush2.msra.mxu0 %v8458_v20  ;;  %v6258_v7 = vsel %vm1976_vm5, %v6226_v47, %v15252_v18  ;;  %v4916_v50 = vld [vmem:[#allocation2 + $0x138] sm:$0xff] }
 0x636   : > { %v6449_v12 = vsel %vm2174_vm11, %v6417_v39, %v6153_v22  ;;  %v6674_v27 = vpop.f32.mrf.mxu0  ;;  %10005 = vrot.lane.b32.xlu0 %v10004_v1, %s10606_s30  ;;  %8624 = vmatprep.subr.mxu0 %v16950_v16  ;;  %v6227_v39 = vsel %vm277_vm0, %v4915_v41, %v16963_v45  ;;  %v15352_v41 = vld [vmem:[#allocation3 + $0x62] sm:$0xff] }
 0x637   : > { %10000 = vrot.lane.b32.xlu1 %v9999_v26, %s10605_s29  ;;  %v6802_v61 = vmax.f32 %v6680_v5, 0.0  ;;  %v6675_v48 = vadd.f32 %v15025_v32, %v6674_v27  ;;  %9384 = vmatmul.mubr.msk.f32.gmra.mxu0 %vm16958_vm1, %v6449_v12  ;;  %v7260_v26 = vld [vmem:[#allocation3 + $0x51] sm:$0xff] }
 0x638   : > { %v5515_v4 = vpop.permute.xlu0 %5514  ;;  %8625 = vmatpush2.msra.mxu0 %v8457_v52  ;;  %v10059_v12 = vpack.i.bf16 %v7260_v26, %v7259_v25 }
 0x639   : > { %v15262_v28 = vpop.permute.xlu1 %5388  ;;  %v6870_v17 = vrot.slane %v6802_v61, 7  ;;  %v6801_v44 = vmax.f32 %v6675_v48, 0.0  ;;  %v6290_v19 = vsel %vm2009_vm6, %v6258_v7, %v5515_v4  ;;  %v15354_v7 = vld [vmem:[#allocation3 + $0x6a] sm:$0xff] }
 0x63a   : > { %10015 = vrot.lane.b32.xlu0 %v10014_v24, %s10608_s16  ;;  %v6259_v22 = vsel %vm1976_vm5, %v6227_v39, %v15262_v28  ;;  %v10119_v45 = vpack.i.bf16 %v15354_v7, %v15352_v41 }
 0x63b   : > { %10010 = vrot.lane.b32.xlu1 %v10009_v8, %s10607_s15  ;;  %v6973_v30 = vsel %vm16959_vm3, %v6870_v17, 0.0  ;;  %v6869_v11 = vrot.slane %v6801_v44, 7  ;;  %vm16964_vm3 = vmmov %vm16958_vm1 }
 0x63c   : > { %6999 = vst.msk [vmem:[#allocation3 + $0x88] sm:$0x3] %vm16960_vm12, %v6973_v30  ;;  %v5643_v2 = vpop.permute.xlu0 %5642  ;;  %vm16965_vm12 = vmmov %vm16955_vm2 }
 0x63d   : > { %v5517_v43 = vpop.permute.xlu1 %5516  ;;  %v6871_v13 = vsel %vm16955_vm2, %v6869_v11, %v6870_v17  ;;  %v6957_v15 = vsel %vm16961_vm4, 0.0, %v6869_v11  ;;  %v6322_v33 = vsel %vm2042_vm7, %v6290_v19, %v5643_v2  ;;  %v7261_v2 = vld [vmem:[#allocation3 + $0x61] sm:$0xff]  ;;  %vm16966_vm2 = vcmask 123904  }
 0x63e   : > { %6997 = vst.msk [vmem:[#allocation3 + $0x78] sm:$0xff] %vm333_vm13, %v6957_v15  ;;  %6998 = vst.msk [vmem:[#allocation3 + $0x80] sm:$0xff] %vm333_vm13, %v6871_v13  ;;  %10025 = vrot.lane.b32.xlu0 %v10024_v10, %s10610_s17  ;;  %v6291_v56 = vsel %vm2009_vm6, %v6259_v22, %v5517_v43  ;;  %v10084_v43 = vpack.i.bf16 %v15335_v51, %v15333_v62 }
 0x63f   : > { %10020 = vrot.lane.b32.xlu1 %v10019_v9, %s10609_s21 }
 0x640   : > { %v5771_v21 = vpop.permute.xlu0 %5770 }
 0x641   : > { %v5645_v34 = vpop.permute.xlu1 %5644  ;;  %v6354_v1 = vsel %vm2075_vm8, %v6322_v33, %v5771_v21 }
 0x642   : > { %10035 = vrot.lane.b32.xlu0 %v10014_v24, %s10605_s29  ;;  %v6323_v18 = vsel %vm2042_vm7, %v6291_v56, %v5645_v34 }
 0x643   : > { %10030 = vrot.lane.b32.xlu1 %v10009_v8, %s10604_s26 }
 0x644   : > { %v5899_v59 = vpop.permute.xlu0 %5898 }
 0x645   : > { %v5773_v23 = vpop.permute.xlu1 %5772  ;;  %v6386_v54 = vsel %vm2108_vm9, %v6354_v1, %v5899_v59  ;;  %v7263_v1 = vld [vmem:[#allocation3 + $0x79] sm:$0xff]  ;;  %v7264_v56 = vld [vmem:[#allocation3 + $0x81] sm:$0xff] }
 0x646   : > { %10045 = vrot.lane.b32.xlu0 %v10024_v10, %s10607_s15  ;;  %v6355_v57 = vsel %vm2075_vm8, %v6323_v18, %v5773_v23  ;;  %v10094_v23 = vpack.i.bf16 %v7262_v14, %v7261_v2 }
 0x647   : > { %10040 = vrot.lane.b32.xlu1 %v10019_v9, %s10606_s30  ;;  %v7230_v9 = vld [vmem:[#allocation3 + $0x68] sm:$0xff] }
 0x648   : > { %v6027_v63 = vpop.permute.xlu0 %6026 }
 0x649   : > { %v5901_v60 = vpop.permute.xlu1 %5900  ;;  %v6418_v35 = vsel %vm2141_vm10, %v6386_v54, %v6027_v63  ;;  %v4917_v63 = vld [vmem:[#allocation2 + $0x140] sm:$0xff]  ;;  %v16969_v54 = vld [vmem:[#allocation39_spill] sm:$0xff] }
 0x64a   : > { %10055 = vrot.lane.b32.xlu0 %v10054_v49, %s10609_s21  ;;  %v6387_v61 = vsel %vm2108_vm9, %v6355_v57, %v5901_v60  ;;  %v7231_v60 = vld [vmem:[#allocation3 + $0x78] sm:$0xff] }
 0x64b   : > { %10050 = vrot.lane.b32.xlu1 %v10049_v29, %s10608_s16 }
 0x64c   : > { %v6155_v40 = vpop.permute.xlu0 %6154 }
 0x64d   : > { %v6029_v5 = vpop.permute.xlu1 %6028  ;;  %v6450_v27 = vsel %vm2174_vm11, %v6418_v35, %v6155_v40 }
 0x64e   : > { %10065 = vrot.lane.b32.xlu0 %v10024_v10, %s10604_s26  ;;  %9386 = vmatprep.mubr.msk.f32.mxu0 %vm16958_vm1, %v6450_v27  ;;  %v6419_v28 = vsel %vm2141_vm10, %v6387_v61, %v6029_v5  ;;  %v7229_v10 = vld [vmem:[#allocation3 + $0x60] sm:$0xff]  ;;  %vm16967_vm1 = vmmov %vm16961_vm4  ;;  %v6229_v5 = vsel %vm277_vm0, %v4917_v63, %v16969_v54  ;;  %v10129_v61 = vpack.i.bf16 %v7264_v56, %v7263_v1  ;;  %v16974_v1 = vld [vmem:[#allocation48_spill] sm:$0xff] }
 0x64f   : > { %10060 = vrot.lane.b32.xlu1 %v10059_v12, %s10610_s17  ;;  %v9367_v48 = vpop.f32.mrf.mxu0  ;;  %v10089_v52 = vpack.i.bf16 %v7230_v9, %v7229_v10  ;;  %v15387_v9 = vld [vmem:[#allocation3 + $0x7a] sm:$0xff]  ;;  %v4919_v54 = vld [vmem:[#allocation2 + $0x158] sm:$0xff] }
 0x650   : > { %v6690_v8 = vadd.f32 %v9367_v48, %v15025_v32  ;;  %v5391_v17 = vpop.permute.xlu0 %5390  ;;  %v4918_v63 = vld [vmem:[#allocation2 + $0x150] sm:$0xff] }
 0x651   : > { %v6157_v24 = vpop.permute.xlu1 %6156  ;;  %v6684_v37 = vpop.f32.mrf.mxu0  ;;  %v6230_v56 = vsel %vm277_vm0, %v4918_v63, %v16974_v1 }
 0x652   : > { %v6451_v36 = vsel %vm2174_vm11, %v6419_v28, %v6157_v24  ;;  %v6804_v44 = vmax.f32 %v6690_v8, 0.0  ;;  %v6685_v4 = vadd.f32 %v15025_v32, %v6684_v37  ;;  %10075 = vrot.lane.b32.xlu0 %v10054_v49, %s10606_s30  ;;  %v7232_v49 = vld [vmem:[#allocation3 + $0x80] sm:$0xff] }
 0x653   : > { %9387 = vmatmul.mubr.msk.f32.gmra.mxu0 %vm16964_vm3, %v6451_v36  ;;  %10070 = vrot.lane.b32.xlu1 %v10049_v29, %s10605_s29  ;;  %v16968_v29 = vld [vmem:[#allocation147_spill] sm:$0xff]  ;;  %v10124_v22 = vpack.i.bf16 %v7232_v49, %v7231_v60 }
 0x654   : > { %v6873_v38 = vrot.slane %v6804_v44, 7  ;;  %v6803_v6 = vmax.f32 %v6685_v4, 0.0  ;;  %v5519_v11 = vpop.permute.xlu0 %5518  ;;  %v6228_v19 = vsel %vm277_vm0, %v4916_v50, %v16968_v29 }
 0x655   : > { %v5393_v30 = vpop.permute.xlu1 %5392  ;;  %v6260_v25 = vsel %vm1976_vm5, %v6228_v19, %v5391_v17 }
 0x656   : > { %v6974_v13 = vsel %vm16965_vm12, %v6873_v38, 0.0  ;;  %v6872_v15 = vrot.slane %v6803_v6, 7  ;;  %10085 = vrot.lane.b32.xlu0 %v10084_v43, %s10608_s16  ;;  %v6292_v39 = vsel %vm2009_vm6, %v6260_v25, %v5519_v11  ;;  %v6261_v18 = vsel %vm1976_vm5, %v6229_v5, %v5393_v30  ;;  %vm16970_vm12 = vmmov %vm16964_vm3 }
 0x657   : > { %10080 = vrot.lane.b32.xlu1 %v10059_v12, %s10607_s15  ;;  %7002 = vst.msk [vmem:[#allocation3 + $0xa0] sm:$0x3] %vm16966_vm2, %v6974_v13  ;;  %v15389_v13 = vld [vmem:[#allocation3 + $0x82] sm:$0xff]  ;;  %vm16971_vm2 = vmmov %vm16967_vm1 }
 0x658   : > { %v6874_v34 = vsel %vm16961_vm4, %v6872_v15, %v6873_v38  ;;  %v6958_v20 = vsel %vm16967_vm1, 0.0, %v6872_v15  ;;  %v5647_v0 = vpop.permute.xlu0 %5646  ;;  %vm16972_vm4 = vcmask 123904  }
 0x659   : > { %v5521_v21 = vpop.permute.xlu1 %5520  ;;  %7000 = vst.msk [vmem:[#allocation3 + $0x90] sm:$0xff] %vm333_vm13, %v6958_v20  ;;  %7001 = vst.msk [vmem:[#allocation3 + $0x98] sm:$0xff] %vm333_vm13, %v6874_v34  ;;  %v10154_v20 = vpack.i.bf16 %v15389_v13, %v15387_v9 }
 0x65a   : > { %10095 = vrot.lane.b32.xlu0 %v10094_v23, %s10610_s17  ;;  %v6293_v40 = vsel %vm2009_vm6, %v6261_v18, %v5521_v21 }
 0x65b   : > { %10090 = vrot.lane.b32.xlu1 %v10089_v52, %s10609_s21 }
 0x65c   : > { %v5775_v42 = vpop.permute.xlu0 %5774 }
 0x65d   : > { %v5649_v59 = vpop.permute.xlu1 %5648 }
 0x65e   : > { %10105 = vrot.lane.b32.xlu0 %v10084_v43, %s10605_s29  ;;  %v6325_v48 = vsel %vm2042_vm7, %v6293_v40, %v5649_v59 }
 0x65f   : > { %10100 = vrot.lane.b32.xlu1 %v10059_v12, %s10604_s26  ;;  %v6324_v12 = vsel %vm2042_vm7, %v6292_v39, %v5647_v0 }
 0x660   : > { %v5903_v47 = vpop.permute.xlu0 %5902  ;;  %v6356_v35 = vsel %vm2075_vm8, %v6324_v12, %v5775_v42  ;;  %v7233_v21 = vld [vmem:[#allocation3 + $0x90] sm:$0xff]  ;;  %v7266_v59 = vld [vmem:[#allocation3 + $0x99] sm:$0xff] }
 0x661   : > { %v5777_v53 = vpop.permute.xlu1 %5776  ;;  %v6388_v57 = vsel %vm2108_vm9, %v6356_v35, %v5903_v47  ;;  %v15408_v39 = vld [vmem:[#allocation3 + $0x9a] sm:$0xff] }
 0x662   : > { %10115 = vrot.lane.b32.xlu0 %v10094_v23, %s10607_s15  ;;  %v6357_v24 = vsel %vm2075_vm8, %v6325_v48, %v5777_v53  ;;  %v16975_v48 = vld [vmem:[#allocation144_spill] sm:$0xff] }
 0x663   : > { %10110 = vrot.lane.b32.xlu1 %v10089_v52, %s10606_s30  ;;  %v7234_v52 = vld [vmem:[#allocation3 + $0x98] sm:$0xff] }
 0x664   : > { %v6031_v33 = vpop.permute.xlu0 %6030  ;;  %v10159_v47 = vpack.i.bf16 %v7234_v52, %v7233_v21 }
 0x665   : > { %v5905_v26 = vpop.permute.xlu1 %5904  ;;  %v6420_v28 = vsel %vm2141_vm10, %v6388_v57, %v6031_v33 }
 0x666   : > { %10125 = vrot.lane.b32.xlu0 %v10124_v22, %s10609_s21  ;;  %v6389_v37 = vsel %vm2108_vm9, %v6357_v24, %v5905_v26 }
 0x667   : > { %10120 = vrot.lane.b32.xlu1 %v10119_v45, %s10608_s16 }
 0x668   : > { %v6159_v8 = vpop.permute.xlu0 %6158 }
 0x669   : > { %v6033_v27 = vpop.permute.xlu1 %6032  ;;  %v6452_v36 = vsel %vm2174_vm11, %v6420_v28, %v6159_v8  ;;  %v6231_v28 = vsel %vm277_vm0, %v4919_v54, %v16975_v48 }
 0x66a   : > { %9389 = vmatprep.mubr.msk.f32.mxu0 %vm16964_vm3, %v6452_v36  ;;  %10135 = vrot.lane.b32.xlu0 %v10094_v23, %s10604_s26  ;;  %v6421_v44 = vsel %vm2141_vm10, %v6389_v37, %v6033_v27  ;;  %v7265_v23 = vld [vmem:[#allocation3 + $0x91] sm:$0xff]  ;;  %vm16973_vm3 = vmmov %vm16967_vm1 }
 0x66b   : > { %10130 = vrot.lane.b32.xlu1 %v10129_v61, %s10610_s17  ;;  %v9370_v17 = vpop.f32.mrf.mxu0  ;;  %v10164_v49 = vpack.i.bf16 %v7266_v59, %v7265_v23 }
 0x66c   : > { %v6700_v4 = vadd.f32 %v9370_v17, %v15025_v32  ;;  %v5395_v11 = vpop.permute.xlu0 %5394 }
 0x66d   : > { %v6161_v38 = vpop.permute.xlu1 %6160  ;;  %v6694_v30 = vpop.f32.mrf.mxu0  ;;  %v6262_v5 = vsel %vm1976_vm5, %v6230_v56, %v5395_v11  ;;  %v4920_v56 = vld [vmem:[#allocation2 + $0x168] sm:$0xff] }
 0x66e   : > { %v6453_v6 = vsel %vm2174_vm11, %v6421_v44, %v6161_v38  ;;  %v6806_v43 = vmax.f32 %v6700_v4, 0.0  ;;  %v6695_v10 = vadd.f32 %v15025_v32, %v6694_v30  ;;  %10145 = vrot.lane.b32.xlu0 %v10124_v22, %s10606_s30 }
 0x66f   : > { %9390 = vmatmul.mubr.msk.f32.gmra.mxu0 %vm16970_vm12, %v6453_v6  ;;  %10140 = vrot.lane.b32.xlu1 %v10119_v45, %s10605_s29  ;;  %v15406_v45 = vld [vmem:[#allocation3 + $0x92] sm:$0xff] }
 0x670   : > { %v6876_v15 = vrot.slane %v6806_v43, 7  ;;  %v6805_v2 = vmax.f32 %v6695_v10, 0.0  ;;  %v5523_v34 = vpop.permute.xlu0 %5522  ;;  %v10189_v18 = vpack.i.bf16 %v15408_v39, %v15406_v45 }
 0x671   : > { %v5397_v14 = vpop.permute.xlu1 %5396  ;;  %v6294_v35 = vsel %vm2009_vm6, %v6262_v5, %v5523_v34 }
 0x672   : > { %v6975_v32 = vsel %vm16971_vm2, %v6876_v15, 0.0  ;;  %v6875_v0 = vrot.slane %v6805_v2, 7  ;;  %10155 = vrot.lane.b32.xlu0 %v10154_v20, %s10608_s16  ;;  %v6263_v24 = vsel %vm1976_vm5, %v6231_v28, %v5397_v14  ;;  %v15442_v14 = vld [vmem:[%s16162_s2] ss:$0 sm:$0xff]  ;;  %vm16976_vm2 = vmmov %vm16970_vm12  ;;  %v4921_v28 = vld [vmem:[#allocation2 + $0x170] sm:$0xff] }
 0x673   : > { %10150 = vrot.lane.b32.xlu1 %v10129_v61, %s10607_s15  ;;  %7005 = vst.msk [vmem:[#allocation3 + $0xb8] sm:$0x3] %vm16972_vm4, %v6975_v32  ;;  %vm16977_vm4 = vmmov %vm16967_vm1 }
 0x674   : > { %v6877_v42 = vsel %vm16967_vm1, %v6875_v0, %v6876_v15  ;;  %v6959_v50 = vsel %vm16973_vm3, 0.0, %v6875_v0  ;;  %v5651_v60 = vpop.permute.xlu0 %5650  ;;  %vm16978_vm1 = vcmask 123904  }
 0x675   : > { %v5525_v53 = vpop.permute.xlu1 %5524  ;;  %7003 = vst.msk [vmem:[#allocation3 + $0xa8] sm:$0xff] %vm333_vm13, %v6959_v50  ;;  %7004 = vst.msk [vmem:[#allocation3 + $0xb0] sm:$0xff] %vm333_vm13, %v6877_v42  ;;  %v6326_v8 = vsel %vm2042_vm7, %v6294_v35, %v5651_v60 }
 0x676   : > { %10165 = vrot.lane.b32.xlu0 %v10164_v49, %s10610_s17  ;;  %v6295_v37 = vsel %vm2009_vm6, %v6263_v24, %v5525_v53 }
 0x677   : > { %10160 = vrot.lane.b32.xlu1 %v10159_v47, %s10609_s21 }
 0x678   : > { %v5779_v19 = vpop.permute.xlu0 %5778 }
 0x679   : > { %v5653_v29 = vpop.permute.xlu1 %5652  ;;  %v6358_v36 = vsel %vm2075_vm8, %v6326_v8, %v5779_v19 }
 0x67a   : > { %10175 = vrot.lane.b32.xlu0 %v10154_v20, %s10605_s29  ;;  %v6327_v38 = vsel %vm2042_vm7, %v6295_v37, %v5653_v29 }
 0x67b   : > { %10170 = vrot.lane.b32.xlu1 %v10129_v61, %s10604_s26 }
 0x67c   : > { %v5907_v26 = vpop.permute.xlu0 %5906  ;;  %v7235_v33 = vld [vmem:[#allocation3 + $0xa8] sm:$0xff]  ;;  %v7236_v22 = vld [vmem:[#allocation3 + $0xb0] sm:$0xff] }
 0x67d   : > { %v5781_v25 = vpop.permute.xlu1 %5780  ;;  %v10194_v57 = vpack.i.bf16 %v7236_v22, %v7235_v33  ;;  %v7267_v27 = vld [vmem:[#allocation3 + $0xa9] sm:$0xff]  ;;  %v7268_v61 = vld [vmem:[#allocation3 + $0xb1] sm:$0xff]  ;;  %v6390_v17 = vsel %vm2108_vm9, %v6358_v36, %v5907_v26 }
 0x67e   : > { %10185 = vrot.lane.b32.xlu0 %v10164_v49, %s10607_s15  ;;  %v15427_v4 = vpack.i.bf16 %v7268_v61, %v7267_v27  ;;  %v6359_v11 = vsel %vm2075_vm8, %v6327_v38, %v5781_v25  ;;  %v15449_v59 = vld [vmem:[#allocation3 + $0xaa] sm:$0xff]  ;;  %v7206_v42 = vld [vmem:[#allocation3 + $0xb2] sm:$0xff] }
 0x67f   : > { %10180 = vrot.lane.b32.xlu1 %v10159_v47, %s10606_s30  ;;  %v16980_v61 = vld [vmem:[#allocation33_spill] sm:$0xff] }
 0x680   : > { %v6035_v40 = vpop.permute.xlu0 %6034  ;;  %v6232_v48 = vsel %vm277_vm0, %v4920_v56, %v16980_v61 }
 0x681   : > { %v5909_v12 = vpop.permute.xlu1 %5908  ;;  %v6422_v6 = vsel %vm2141_vm10, %v6390_v17, %v6035_v40  ;;  %v16981_v17 = vld [vmem:[#allocation42_spill] sm:$0xff] }
 0x682   : > { %10195 = vrot.lane.b32.xlu0 %v10194_v57, %s10609_s21  ;;  %v6391_v10 = vsel %vm2108_vm9, %v6359_v11, %v5909_v12 }
 0x683   : > { %10190 = vrot.lane.b32.xlu1 %v10189_v18, %s10608_s16 }
 0x684   : > { %v6163_v30 = vpop.permute.xlu0 %6162 }
 0x685   : > { %v6037_v44 = vpop.permute.xlu1 %6036  ;;  %v6454_v43 = vsel %vm2174_vm11, %v6422_v6, %v6163_v30 }
 0x686   : > { %9392 = vmatprep.mubr.msk.f32.mxu0 %vm16970_vm12, %v6454_v43  ;;  %10205 = vrot.lane.b32.xlu0 %v10164_v49, %s10604_s26  ;;  %v6423_v2 = vsel %vm2141_vm10, %v6391_v10, %v6037_v44  ;;  %v10224_v49 = vpack.i.bf16 %v7206_v42, %v15449_v59  ;;  %vm16979_vm12 = vmmov %vm16973_vm3  ;;  %v6233_v44 = vsel %vm277_vm0, %v4921_v28, %v16981_v17 }
 0x687   : > { %10200 = vrot.lane.b32.xlu1 %v15427_v4, %s10610_s17  ;;  %v9373_v15 = vpop.f32.mrf.mxu0  ;;  %vm16982_vm0 = vmmov %vm16976_vm2 }
 0x688   : > { %v6710_v34 = vadd.f32 %v15442_v14, %v9373_v15  ;;  %v5399_v32 = vpop.permute.xlu0 %5398 }
 0x689   : > { %v6165_v20 = vpop.permute.xlu1 %6164  ;;  %v6704_v52 = vpop.f32.mrf.mxu0  ;;  %v6264_v8 = vsel %vm1976_vm5, %v6232_v48, %v5399_v32 }
 0x68a   : > { %v6455_v21 = vsel %vm2174_vm11, %v6423_v2, %v6165_v20  ;;  %v6808_v0 = vmax.f32 %v6710_v34, 0.0  ;;  %v6705_v23 = vadd.f32 %v15442_v14, %v6704_v52  ;;  %10215 = vrot.lane.b32.xlu0 %v10194_v57, %s10606_s30 }
 0x68b   : > { %9393 = vmatmul.mubr.msk.f32.gmra.mxu0 %vm16976_vm2, %v6455_v21  ;;  %10210 = vrot.lane.b32.xlu1 %v10189_v18, %s10605_s29  ;;  %vm16990_vm2 = vcmask 654336  }
 0x68c   : > { %v6879_v50 = vrot.slane %v6808_v0, 7  ;;  %v6807_v53 = vmax.f32 %v6705_v23, 0.0  ;;  %v5527_v60 = vpop.permute.xlu0 %5526 }
 0x68d   : > { %v5401_v47 = vpop.permute.xlu1 %5400  ;;  %v6296_v36 = vsel %vm2009_vm6, %v6264_v8, %v5527_v60  ;;  %v7033_v60 = vld [vmem:[#allocation3] sm:$0xff] }
 0x68e   : > { %v6976_v29 = vsel %vm16977_vm4, %v6879_v50, 0.0  ;;  %v6878_v19 = vrot.slane %v6807_v53, 7  ;;  %10225 = vrot.lane.b32.xlu0 %v10224_v49, %s10608_s16  ;;  %v6265_v6 = vsel %vm1976_vm5, %v6233_v44, %v5401_v47  ;;  %vm16983_vm5 = vmmov %vm16982_vm0  ;;  %vm16991_vm4 = vcmask 785408  }
 0x68f   : > { %10220 = vrot.lane.b32.xlu1 %v15427_v4, %s10607_s15  ;;  %7008 = vst.msk [vmem:[#allocation3 + $0xd0] sm:$0x3] %vm16978_vm1, %v6976_v29 }
 0x690   : > { %v6880_v63 = vsel %vm16973_vm3, %v6878_v19, %v6879_v50  ;;  %v6960_v25 = vsel %vm16979_vm12, 0.0, %v6878_v19  ;;  %v5655_v33 = vpop.permute.xlu0 %5654  ;;  %vm16994_vm12 = vmmov %vm16991_vm4 }
 0x691   : > { %v5529_v26 = vpop.permute.xlu1 %5528  ;;  %7006 = vst.msk [vmem:[#allocation3 + $0xc0] sm:$0xff] %vm333_vm13, %v6960_v25  ;;  %7007 = vst.msk [vmem:[#allocation3 + $0xc8] sm:$0xff] %vm333_vm13, %v6880_v63  ;;  %v6328_v38 = vsel %vm2042_vm7, %v6296_v36, %v5655_v33  ;;  %v7034_v33 = vld [vmem:[#allocation3 + $0x8] sm:$0xff] }
 0x692   : > { %v6297_v11 = vsel %vm2009_vm6, %v6265_v6, %v5529_v26  ;;  %vm16984_vm6 = vmmov %vm16973_vm3 }
 0x694   : > { %v5783_v1 = vpop.permute.xlu0 %5782 }
 0x695   : > { %v5657_v22 = vpop.permute.xlu1 %5656  ;;  %v6360_v30 = vsel %vm2075_vm8, %v6328_v38, %v5783_v1 }
 0x696   : > { %v6329_v15 = vsel %vm2042_vm7, %v6297_v11, %v5657_v22  ;;  %vm16985_vm7 = vmmov %vm16978_vm1  ;;  %vm16992_vm1 = vcmask 916480  }
 0x698   : > { %v7237_v5 = vld [vmem:[#allocation3 + $0xc0] sm:$0xff]  ;;  %v7238_v12 = vld [vmem:[#allocation3 + $0xc8] sm:$0xff]  ;;  %v5911_v35 = vpop.permute.xlu0 %5910 }
 0x699   : > { %v5785_v54 = vpop.permute.xlu1 %5784  ;;  %v7269_v18 = vld [vmem:[#allocation3 + $0xc1] sm:$0xff]  ;;  %v10229_v40 = vpack.i.bf16 %v7238_v12, %v7237_v5  ;;  %v7270_v57 = vld [vmem:[#allocation3 + $0xc9] sm:$0xff]  ;;  %v6392_v43 = vsel %vm2108_vm9, %v6360_v30, %v5911_v35 }
 0x69a   : > { %v15462_v27 = vpack.i.bf16 %v7270_v57, %v7269_v18  ;;  %v6361_v20 = vsel %vm2075_vm8, %v6329_v15, %v5785_v54  ;;  %v15485_v52 = vld [vmem:[#allocation3 + $0xc2] sm:$0xff]  ;;  %v15487_v32 = vld [vmem:[#allocation3 + $0xca] sm:$0xff]  ;;  %vm16986_vm8 = vmmov %vm16973_vm3 }
 0x69b   : > { %10230 = vrot.lane.b32.xlu1 %v10229_v40, %s10609_s21  ;;  %v15499_v29 = vpack.i.bf16 %v15487_v32, %v15485_v52 }
 0x69c   : > { %10235 = vrot.lane.b32.xlu0 %v15462_v27, %s10610_s17  ;;  %v6039_v37 = vpop.permute.xlu0 %6038 }
 0x69d   : > { %v5913_v24 = vpop.permute.xlu1 %5912  ;;  %v6424_v2 = vsel %vm2141_vm10, %v6392_v43, %v6039_v37 }
 0x69f   : > { %10240 = vrot.lane.b32.xlu1 %v15427_v4, %s10604_s26  ;;  %v6393_v4 = vsel %vm2108_vm9, %v6361_v20, %v5913_v24  ;;  %vm16987_vm9 = vmmov %vm16973_vm3 }
 0x6a0   : > { %10245 = vrot.lane.b32.xlu0 %v10224_v49, %s10605_s29  ;;  %v6167_v34 = vpop.permute.xlu0 %6166  ;;  %vm16993_vm3 = vmmov %vm16990_vm2 }
 0x6a1   : > { %v6041_v10 = vpop.permute.xlu1 %6040  ;;  %v6456_v21 = vsel %vm2174_vm11, %v6424_v2, %v6167_v34 }
 0x6a2   : > { %9395 = vmatprep.mubr.msk.f32.mxu0 %vm16982_vm0, %v6456_v21  ;;  %v6425_v23 = vsel %vm2141_vm10, %v6393_v4, %v6041_v10  ;;  %vm16988_vm10 = vcmask 523264   ;;  %vm16995_vm0 = vmmov %vm16992_vm1 }
 0x6a3   : > { %v9376_v0 = vpop.f32.mrf.mxu0  ;;  %10250 = vrot.lane.b32.xlu1 %v10229_v40, %s10606_s30 }
 0x6a4   : > { %v6720_v42 = vadd.f32 %v15442_v14, %v9376_v0  ;;  %10255 = vrot.lane.b32.xlu0 %v15462_v27, %s10607_s15  ;;  %v9996_v49 = vpop.permute.xlu0 %9995 }
 0x6a5   : > { %v6169_v50 = vpop.permute.xlu1 %6168  ;;  %v6714_v47 = vpop.f32.mrf.mxu0  ;;  %v9998_v25 = vunpack.i.h.bf16 %v9996_v49  ;;  %v9997_v26 = vunpack.i.l.bf16 %v9996_v49 }
 0x6a6   : > { %v6457_v53 = vsel %vm2174_vm11, %v6425_v23, %v6169_v50  ;;  %v6810_v19 = vmax.f32 %v6720_v42, 0.0  ;;  %v6715_v63 = vadd.f32 %v15442_v14, %v6714_v47  ;;  %vm16989_vm11 = vmmov %vm16988_vm10 }
 0x6a7   : > { %9396 = vmatmul.mubr.msk.f32.gmra.mxu0 %vm16983_vm5, %v6457_v53  ;;  %10260 = vrot.lane.b32.xlu1 %v15499_v29, %s10608_s16  ;;  %v8217_v56 = vsel %vm333_vm13, %v7033_v60, %v9997_v26  ;;  %v8218_v57 = vsel %vm333_vm13, %v7034_v33, %v9998_v25  ;;  %vm16996_vm5 = vmmov %vm16988_vm10 }
 0x6a8   : > { %9172 = vmatprep.mubr.msk.f32.mxu0 %vm333_vm13, %v15295_v46  ;;  %v6882_v22 = vrot.slane %v6810_v19, 7  ;;  %v6809_v1 = vmax.f32 %v6715_v63, 0.0  ;;  %v10006_v18 = vpop.permute.xlu0 %10005 }
 0x6a9   : > { %v10001_v54 = vpop.permute.xlu1 %10000  ;;  %v10007_v61 = vunpack.i.l.bf16 %v10006_v18  ;;  %v10008_v8 = vunpack.i.h.bf16 %v10006_v18 }
 0x6aa   : > { %v10003_v5 = vunpack.i.h.bf16 %v10001_v54  ;;  %v10002_v12 = vunpack.i.l.bf16 %v10001_v54  ;;  %v6977_v35 = vsel %vm16984_vm6, %v6882_v22, 0.0  ;;  %v6881_v40 = vrot.slane %v6809_v1, 7  ;;  %vm16997_vm6 = vmmov %vm16990_vm2 }
 0x6ab   : > { %7011 = vst.msk [vmem:[#allocation3 + $0xe8] sm:$0x3] %vm16985_vm7, %v6977_v35  ;;  %vm16998_vm7 = vmmov %vm16996_vm5 }
 0x6ac   : > { %v8249_v48 = vsel %vm4002_vm14, %v8217_v56, %v10002_v12  ;;  %v6883_v46 = vsel %vm16986_vm8, %v6881_v40, %v6882_v22  ;;  %v6961_v28 = vsel %vm16987_vm9, 0.0, %v6881_v40  ;;  %v8250_v36 = vsel %vm4002_vm14, %v8218_v57, %v10003_v5  ;;  %v10016_v44 = vpop.permute.xlu0 %10015  ;;  %vm16999_vm8 = vmmov %vm16990_vm2 }
 0x6ad   : > { %v10011_v24 = vpop.permute.xlu1 %10010  ;;  %7009 = vst.msk [vmem:[#allocation3 + $0xd8] sm:$0xff] %vm333_vm13, %v6961_v28  ;;  %7010 = vst.msk [vmem:[#allocation3 + $0xe0] sm:$0xff] %vm333_vm13, %v6883_v46  ;;  %v8281_v38 = vsel %vm4035_vm15, %v8249_v48, %v10007_v61  ;;  %v10017_v6 = vunpack.i.l.bf16 %v10016_v44  ;;  %v8282_v11 = vsel %vm4035_vm15, %v8250_v36, %v10008_v8  ;;  %v10018_v43 = vunpack.i.h.bf16 %v10016_v44 }
 0x6ae   : > { %v10013_v37 = vunpack.i.h.bf16 %v10011_v24  ;;  %v10012_v17 = vunpack.i.l.bf16 %v10011_v24  ;;  %vm17000_vm9 = vmmov %vm16991_vm4 }
 0x6b0   : > { %v8313_v30 = vsel %vm16988_vm10, %v8281_v38, %v10012_v17  ;;  %v8314_v15 = vsel %vm16989_vm11, %v8282_v11, %v10013_v37  ;;  %v10026_v2 = vpop.permute.xlu0 %10025  ;;  %vm17001_vm10 = vmmov %vm16995_vm0 }
 0x6b1   : > { %v10021_v10 = vpop.permute.xlu1 %10020  ;;  %v8345_v21 = vsel %vm16990_vm2, %v8313_v30, %v10017_v6  ;;  %v10027_v4 = vunpack.i.l.bf16 %v10026_v2  ;;  %v10028_v23 = vunpack.i.h.bf16 %v10026_v2  ;;  %v8346_v49 = vsel %vm16993_vm3, %v8314_v15, %v10018_v43  ;;  %vm17002_vm11 = vmmov %vm16991_vm4 }
 0x6b2   : > { %v10023_v34 = vunpack.i.h.bf16 %v10021_v10  ;;  %v10022_v20 = vunpack.i.l.bf16 %v10021_v10  ;;  %vm17003_vm2 = vcmask 1040384  }
 0x6b3   : > { %vm17006_vm3 = vmmov %vm17003_vm2 }
 0x6b4   : > { %v8377_v0 = vsel %vm16991_vm4, %v8345_v21, %v10022_v20  ;;  %v7271_v53 = vld [vmem:[#allocation3 + $0xd9] sm:$0xff]  ;;  %v7272_v47 = vld [vmem:[#allocation3 + $0xe1] sm:$0xff]  ;;  %v10036_v19 = vpop.permute.xlu0 %10035  ;;  %v8378_v22 = vsel %vm16994_vm12, %v8346_v49, %v10023_v34  ;;  %vm17004_vm4 = vcmask 123904   ;;  %vm17007_vm12 = vmmov %vm17003_vm2 }
 0x6b5   : > { %v10031_v42 = vpop.permute.xlu1 %10030  ;;  %v8409_v50 = vsel %vm16992_vm1, %v8377_v0, %v10027_v4  ;;  %v7239_v60 = vld [vmem:[#allocation3 + $0xd8] sm:$0xff]  ;;  %v15525_v26 = vpack.i.bf16 %v7272_v47, %v7271_v53  ;;  %v7240_v33 = vld [vmem:[#allocation3 + $0xe0] sm:$0xff]  ;;  %v10037_v1 = vunpack.i.l.bf16 %v10036_v19  ;;  %v10038_v5 = vunpack.i.h.bf16 %v10036_v19  ;;  %v7037_v19 = vld [vmem:[#allocation3 + $0x30] sm:$0xff] }
 0x6b6   : > { %v10033_v63 = vunpack.i.h.bf16 %v10031_v42  ;;  %v10032_v25 = vunpack.i.l.bf16 %v10031_v42  ;;  %8627 = vmatmul.mubr.f32.vlgmr.msra.gmra.mxu0 %v8409_v50  ;;  %v10264_v56 = vpack.i.bf16 %v7240_v33, %v7239_v60  ;;  %v8410_v18 = vsel %vm16995_vm0, %v8378_v22, %v10028_v23  ;;  %v15548_v44 = vld [vmem:[#allocation3 + $0xda] sm:$0xff]  ;;  %vm17005_vm1 = vmmov %vm16995_vm0 }
 0x6b7   : > { %9173 = vmatprep.mubr.msk.f32.mxu0 %vm333_vm13, %v15298_v55  ;;  %10270 = vrot.lane.b32.xlu1 %v15525_v26, %s10610_s17  ;;  %vm17008_vm0 = vmmov %vm16996_vm5 }
 0x6b8   : > { %v8219_v54 = vsel %vm333_vm13, %v15233_v3, %v10032_v25  ;;  %10265 = vrot.lane.b32.xlu0 %v10264_v56, %s10609_s21  ;;  %v8220_v35 = vsel %vm333_vm13, %v15235_v31, %v10033_v63  ;;  %v10046_v40 = vpop.permute.xlu0 %10045 }
 0x6b9   : > { %v10041_v12 = vpop.permute.xlu1 %10040  ;;  %v10047_v55 = vunpack.i.l.bf16 %v10046_v40  ;;  %v8251_v48 = vsel %vm4002_vm14, %v8219_v54, %v10037_v1  ;;  %v10048_v46 = vunpack.i.h.bf16 %v10046_v40  ;;  %v8252_v28 = vsel %vm4002_vm14, %v8220_v35, %v10038_v5 }
 0x6ba   : > { %v10043_v57 = vunpack.i.h.bf16 %v10041_v12  ;;  %v10042_v61 = vunpack.i.l.bf16 %v10041_v12  ;;  %8632 = vmatmul.mubr.f32.gmra.mxu0 %v8410_v18  ;;  %v7038_v12 = vld [vmem:[#allocation3 + $0x38] sm:$0xff] }
 0x6bb   : > { %9174 = vmatprep.mubr.msk.f32.mxu0 %vm333_vm13, %v15333_v62  ;;  %10280 = vrot.lane.b32.xlu1 %v15499_v29, %s10605_s29  ;;  %v15550_v62 = vld [vmem:[#allocation3 + $0xe2] sm:$0xff] }
 0x6bc   : > { %v8283_v3 = vsel %vm4035_vm15, %v8251_v48, %v10042_v61  ;;  %10275 = vrot.lane.b32.xlu0 %v15462_v27, %s10604_s26  ;;  %v8284_v8 = vsel %vm4035_vm15, %v8252_v28, %v10043_v57  ;;  %v10056_v24 = vpop.permute.xlu0 %10055  ;;  %v15561_v34 = vpack.i.bf16 %v15550_v62, %v15548_v44 }
 0x6bd   : > { %v10051_v31 = vpop.permute.xlu1 %10050  ;;  %v10057_v17 = vunpack.i.l.bf16 %v10056_v24  ;;  %v8315_v38 = vsel %vm16996_vm5, %v8283_v3, %v10047_v55  ;;  %v8316_v11 = vsel %vm16998_vm7, %v8284_v8, %v10048_v46  ;;  %v10058_v43 = vunpack.i.h.bf16 %v10056_v24  ;;  %vm17009_vm5 = vmmov %vm17008_vm0 }
 0x6be   : > { %v10053_v36 = vunpack.i.h.bf16 %v10051_v31  ;;  %v10052_v37 = vunpack.i.l.bf16 %v10051_v31  ;;  %vm17010_vm7 = vmmov %vm17000_vm9 }
 0x6bf   : > { %v9379_v29 = vpop.f32.mrf.mxu0  ;;  %10290 = vrot.lane.b32.xlu1 %v15525_v26, %s10607_s15 }
 0x6c0   : > { %v8347_v6 = vsel %vm16997_vm6, %v8315_v38, %v10052_v37  ;;  %v6730_v27 = vadd.f32 %v15442_v14, %v9379_v29  ;;  %10285 = vrot.lane.b32.xlu0 %v10264_v56, %s10606_s30  ;;  %v10066_v2 = vpop.permute.xlu0 %10065  ;;  %v8348_v20 = vsel %vm16999_vm8, %v8316_v11, %v10053_v36  ;;  %vm17011_vm8 = vmmov %vm17005_vm1 }
 0x6c1   : > { %v10061_v30 = vpop.permute.xlu1 %10060  ;;  %v6724_v10 = vpop.f32.mrf.mxu0  ;;  %v10067_v0 = vunpack.i.l.bf16 %v10066_v2  ;;  %v8379_v23 = vsel %vm17000_vm9, %v8347_v6, %v10057_v17  ;;  %v10068_v60 = vunpack.i.h.bf16 %v10066_v2  ;;  %v8380_v22 = vsel %vm17002_vm11, %v8348_v20, %v10058_v43  ;;  %vm17012_vm9 = vmmov %vm16997_vm6 }
 0x6c2   : > { %v10062_v15 = vunpack.i.l.bf16 %v10061_v30  ;;  %v6812_v21 = vmax.f32 %v6730_v27, 0.0  ;;  %v6725_v4 = vadd.f32 %v15442_v14, %v6724_v10  ;;  %v10063_v42 = vunpack.i.h.bf16 %v10061_v30  ;;  %vm17014_vm11 = vmmov %vm17005_vm1 }
 0x6c3   : > { %v8221_v54 = vsel %vm333_vm13, %v7037_v19, %v10067_v0 }
 0x6c4   : > { %v8411_v50 = vsel %vm17001_vm10, %v8379_v23, %v10062_v15  ;;  %v6885_v53 = vrot.slane %v6812_v21, 7  ;;  %v6811_v47 = vmax.f32 %v6725_v4, 0.0  ;;  %10295 = vrot.lane.b32.xlu0 %v15561_v34, %s10608_s16  ;;  %v10076_v33 = vpop.permute.xlu0 %10075  ;;  %v8412_v35 = vsel %vm17005_vm1, %v8380_v22, %v10063_v42  ;;  %vm17013_vm10 = vmmov %vm17010_vm7 }
 0x6c5   : > { %8637 = vmatmul.mubr.f32.gmra.mxu0 %v8411_v50  ;;  %v10071_v49 = vpop.permute.xlu1 %10070  ;;  %v10077_v5 = vunpack.i.l.bf16 %v10076_v33  ;;  %v10078_v61 = vunpack.i.h.bf16 %v10076_v33  ;;  %vm17017_vm1 = vmmov %vm17008_vm0 }
 0x6c6   : > { %v10073_v63 = vunpack.i.h.bf16 %v10071_v49  ;;  %v10072_v25 = vunpack.i.l.bf16 %v10071_v49  ;;  %9175 = vmatprep.mubr.msk.f32.mxu0 %vm333_vm13, %v15335_v51  ;;  %v6978_v1 = vsel %vm17003_vm2, %v6885_v53, 0.0  ;;  %v6884_v56 = vrot.slane %v6811_v47, 7  ;;  %vm17015_vm2 = vmmov %vm17008_vm0 }
 0x6c7   : > { %7014 = vst.msk [vmem:[#allocation3 + $0x100] sm:$0x3] %vm17004_vm4, %v6978_v1  ;;  %v8222_v51 = vsel %vm333_vm13, %v7038_v12, %v10068_v60  ;;  %v7039_v60 = vld [vmem:[#allocation3 + $0x48] sm:$0xff]  ;;  %vm17016_vm4 = vmmov %vm16997_vm6 }
 0x6c8   : > { %v8253_v18 = vsel %vm4002_vm14, %v8221_v54, %v10072_v25  ;;  %v6886_v40 = vsel %vm17006_vm3, %v6884_v56, %v6885_v53  ;;  %v6962_v57 = vsel %vm17007_vm12, 0.0, %v6884_v56  ;;  %v8254_v48 = vsel %vm4002_vm14, %v8222_v51, %v10073_v63  ;;  %v10086_v28 = vpop.permute.xlu0 %10085  ;;  %v7040_v25 = vld [vmem:[#allocation3 + $0x50] sm:$0xff]  ;;  %vm17018_vm3 = vmmov %vm17016_vm4 }
 0x6c9   : > { %8642 = vmatmul.mubr.f32.gmra.mxu0 %v8412_v35  ;;  %v10081_v55 = vpop.permute.xlu1 %10080  ;;  %7012 = vst.msk [vmem:[#allocation3 + $0xf0] sm:$0xff] %vm333_vm13, %v6962_v57  ;;  %7013 = vst.msk [vmem:[#allocation3 + $0xf8] sm:$0xff] %vm333_vm13, %v6886_v40  ;;  %v8285_v31 = vsel %vm4035_vm15, %v8253_v18, %v10077_v5  ;;  %v10087_v8 = vunpack.i.l.bf16 %v10086_v28  ;;  %v8286_v36 = vsel %vm4035_vm15, %v8254_v48, %v10078_v61  ;;  %v10088_v37 = vunpack.i.h.bf16 %v10086_v28 }
 0x6ca   : > { %v10083_v3 = vunpack.i.h.bf16 %v10081_v55  ;;  %v10082_v46 = vunpack.i.l.bf16 %v10081_v55  ;;  %9176 = vmatprep.mubr.msk.f32.mxu0 %vm333_vm13, %v15352_v41  ;;  %vm17019_vm12 = vmmov %vm17010_vm7 }
 0x6cc   : > { %v8317_v24 = vsel %vm17008_vm0, %v8285_v31, %v10082_v46  ;;  %v8318_v38 = vsel %vm17009_vm5, %v8286_v36, %v10083_v3  ;;  %v10096_v27 = vpop.permute.xlu0 %10095  ;;  %vm17020_vm0 = vmmov %vm17011_vm8 }
 0x6cd   : > { %v10091_v17 = vpop.permute.xlu1 %10090  ;;  %v10097_v30 = vunpack.i.l.bf16 %v10096_v27  ;;  %v8349_v11 = vsel %vm16997_vm6, %v8317_v24, %v10087_v8  ;;  %v10098_v41 = vunpack.i.h.bf16 %v10096_v27  ;;  %v8350_v4 = vsel %vm17012_vm9, %v8318_v38, %v10088_v37  ;;  %vm17021_vm5 = vmmov %vm17010_vm7 }
 0x6ce   : > { %v10093_v29 = vunpack.i.h.bf16 %v10091_v17  ;;  %v10092_v6 = vunpack.i.l.bf16 %v10091_v17  ;;  %vm17022_vm6 = vcmask 1040384  }
 0x6cf   : > { %vm17025_vm9 = vmmov %vm17022_vm6 }
 0x6d0   : > { %v8381_v43 = vsel %vm17010_vm7, %v8349_v11, %v10092_v6  ;;  %v7241_v2 = vld [vmem:[#allocation3 + $0xf0] sm:$0xff]  ;;  %v7242_v20 = vld [vmem:[#allocation3 + $0xf8] sm:$0xff]  ;;  %v10106_v42 = vpop.permute.xlu0 %10105  ;;  %v8382_v47 = vsel %vm17013_vm10, %v8350_v4, %v10093_v29  ;;  %vm17023_vm7 = vcmask 123904   ;;  %vm17026_vm10 = vmmov %vm17022_vm6 }
 0x6d1   : > { %v10101_v10 = vpop.permute.xlu1 %10100  ;;  %v8413_v15 = vsel %vm17011_vm8, %v8381_v43, %v10097_v30  ;;  %v7273_v21 = vld [vmem:[#allocation3 + $0xf1] sm:$0xff]  ;;  %v10299_v50 = vpack.i.bf16 %v7242_v20, %v7241_v2  ;;  %v7274_v53 = vld [vmem:[#allocation3 + $0xf9] sm:$0xff]  ;;  %v10107_v49 = vunpack.i.l.bf16 %v10106_v42  ;;  %v10108_v33 = vunpack.i.h.bf16 %v10106_v42  ;;  %vm17024_vm8 = vmmov %vm17020_vm0 }
 0x6d2   : > { %v10103_v0 = vunpack.i.h.bf16 %v10101_v10  ;;  %v10102_v23 = vunpack.i.l.bf16 %v10101_v10  ;;  %8647 = vmatmul.mubr.f32.gmra.mxu0 %v8413_v15  ;;  %v15594_v19 = vpack.i.bf16 %v7274_v53, %v7273_v21  ;;  %v8414_v1 = vsel %vm17014_vm11, %v8382_v47, %v10098_v41  ;;  %v15615_v28 = vld [vmem:[#allocation3 + $0xf2] sm:$0xff]  ;;  %v15617_v31 = vld [vmem:[#allocation3 + $0xfa] sm:$0xff]  ;;  %vm17027_vm11 = vmmov %vm17017_vm1 }
 0x6d3   : > { %9177 = vmatprep.mubr.msk.f32.mxu0 %vm333_vm13, %v15354_v7  ;;  %10300 = vrot.lane.b32.xlu1 %v10299_v50, %s10609_s21  ;;  %v15627_v6 = vpack.i.bf16 %v15617_v31, %v15615_v28 }
 0x6d4   : > { %v8223_v63 = vsel %vm333_vm13, %v7039_v60, %v10102_v23  ;;  %10305 = vrot.lane.b32.xlu0 %v15594_v19, %s10610_s17  ;;  %v8224_v56 = vsel %vm333_vm13, %v7040_v25, %v10103_v0  ;;  %v10116_v12 = vpop.permute.xlu0 %10115  ;;  %v7041_v0 = vld [vmem:[#allocation3 + $0x60] sm:$0xff]  ;;  %v7042_v25 = vld [vmem:[#allocation3 + $0x68] sm:$0xff] }
 0x6d5   : > { %v10111_v22 = vpop.permute.xlu1 %10110  ;;  %v8255_v7 = vsel %vm4002_vm14, %v8223_v63, %v10107_v49  ;;  %v10117_v18 = vunpack.i.l.bf16 %v10116_v12  ;;  %v8256_v40 = vsel %vm4002_vm14, %v8224_v56, %v10108_v33  ;;  %v10118_v57 = vunpack.i.h.bf16 %v10116_v12 }
 0x6d6   : > { %v10113_v54 = vunpack.i.h.bf16 %v10111_v22  ;;  %v10112_v5 = vunpack.i.l.bf16 %v10111_v22  ;;  %8652 = vmatmul.mubr.f32.gmra.mxu0 %v8414_v1 }
 0x6d7   : > { %9178 = vmatprep.mubr.msk.f32.mxu0 %vm333_vm13, %v15387_v9  ;;  %10310 = vrot.lane.b32.xlu1 %v15525_v26, %s10604_s26 }
 0x6d8   : > { %v8287_v35 = vsel %vm4035_vm15, %v8255_v7, %v10112_v5  ;;  %10315 = vrot.lane.b32.xlu0 %v15561_v34, %s10605_s29  ;;  %v8288_v61 = vsel %vm4035_vm15, %v8256_v40, %v10113_v54  ;;  %v10126_v3 = vpop.permute.xlu0 %10125 }
 0x6d9   : > { %v10121_v51 = vpop.permute.xlu1 %10120  ;;  %v8319_v46 = vsel %vm17015_vm2, %v8287_v35, %v10117_v18  ;;  %v10127_v9 = vunpack.i.l.bf16 %v10126_v3  ;;  %v8320_v34 = vsel %vm17017_vm1, %v8288_v61, %v10118_v57  ;;  %v10128_v37 = vunpack.i.h.bf16 %v10126_v3  ;;  %vm17028_vm2 = vmmov %vm17017_vm1 }
 0x6da   : > { %v10123_v55 = vunpack.i.h.bf16 %v10121_v51  ;;  %v10122_v48 = vunpack.i.l.bf16 %v10121_v51  ;;  %vm17030_vm1 = vmmov %vm17021_vm5 }
 0x6db   : > { %v9382_v26 = vpop.f32.mrf.mxu0  ;;  %10320 = vrot.lane.b32.xlu1 %v10299_v50, %s10606_s30 }
 0x6dc   : > { %v8351_v8 = vsel %vm17016_vm4, %v8319_v46, %v10122_v48  ;;  %v6740_v24 = vadd.f32 %v15442_v14, %v9382_v26  ;;  %10325 = vrot.lane.b32.xlu0 %v15594_v19, %s10607_s15  ;;  %v10136_v29 = vpop.permute.xlu0 %10135  ;;  %v8352_v27 = vsel %vm17018_vm3, %v8320_v34, %v10123_v55  ;;  %vm17029_vm4 = vmmov %vm17018_vm3 }
 0x6dd   : > { %v10131_v36 = vpop.permute.xlu1 %10130  ;;  %v6734_v17 = vpop.f32.mrf.mxu0  ;;  %v10137_v43 = vunpack.i.l.bf16 %v10136_v29  ;;  %v8383_v41 = vsel %vm17019_vm12, %v8351_v8, %v10127_v9  ;;  %v10138_v21 = vunpack.i.h.bf16 %v10136_v29  ;;  %v8384_v53 = vsel %vm17021_vm5, %v8352_v27, %v10128_v37  ;;  %vm17031_vm3 = vmmov %vm17020_vm0 }
 0x6de   : > { %v10132_v38 = vunpack.i.l.bf16 %v10131_v36  ;;  %v6814_v30 = vmax.f32 %v6740_v24, 0.0  ;;  %v6735_v11 = vadd.f32 %v15442_v14, %v6734_v17  ;;  %v10133_v10 = vunpack.i.h.bf16 %v10131_v36  ;;  %vm17032_vm12 = vmmov %vm17029_vm4 }
 0x6df   : > { %10330 = vrot.lane.b32.xlu1 %v15627_v6, %s10608_s16  ;;  %v8225_v49 = vsel %vm333_vm13, %v7041_v0, %v10137_v43  ;;  %vm17034_vm5 = vmmov %vm17031_vm3 }
 0x6e0   : > { %v8415_v15 = vsel %vm17020_vm0, %v8383_v41, %v10132_v38  ;;  %v6888_v2 = vrot.slane %v6814_v30, 7  ;;  %v6813_v20 = vmax.f32 %v6735_v11, 0.0  ;;  %v10146_v50 = vpop.permute.xlu0 %10145  ;;  %v8416_v22 = vsel %vm17024_vm8, %v8384_v53, %v10133_v10  ;;  %vm17033_vm0 = vmmov %vm17030_vm1 }
 0x6e1   : > { %v10141_v4 = vpop.permute.xlu1 %10140  ;;  %8657 = vmatmul.mubr.f32.gmra.mxu0 %v8415_v15  ;;  %v10147_v63 = vunpack.i.l.bf16 %v10146_v50  ;;  %v10148_v54 = vunpack.i.h.bf16 %v10146_v50  ;;  %v7043_v15 = vld [vmem:[#allocation3 + $0x78] sm:$0xff]  ;;  %vm17037_vm8 = vmmov %vm17028_vm2 }
 0x6e2   : > { %v10143_v23 = vunpack.i.h.bf16 %v10141_v4  ;;  %v10142_v42 = vunpack.i.l.bf16 %v10141_v4  ;;  %9179 = vmatprep.mubr.msk.f32.mxu0 %vm333_vm13, %v15389_v13  ;;  %v6979_v47 = vsel %vm17022_vm6, %v6888_v2, 0.0  ;;  %v6887_v60 = vrot.slane %v6813_v20, 7  ;;  %vm17035_vm6 = vmmov %vm17028_vm2 }
 0x6e3   : > { %7017 = vst.msk [vmem:[#allocation3 + $0x118] sm:$0x3] %vm17023_vm7, %v6979_v47  ;;  %v8226_v13 = vsel %vm333_vm13, %v7042_v25, %v10138_v21  ;;  %vm17036_vm7 = vmmov %vm17029_vm4 }
 0x6e4   : > { %v8257_v33 = vsel %vm4002_vm14, %v8225_v49, %v10142_v42  ;;  %v6889_v1 = vsel %vm17025_vm9, %v6887_v60, %v6888_v2  ;;  %v6963_v56 = vsel %vm17026_vm10, 0.0, %v6887_v60  ;;  %v8258_v12 = vsel %vm4002_vm14, %v8226_v13, %v10143_v23  ;;  %v10156_v35 = vpop.permute.xlu0 %10155  ;;  %v7044_v42 = vld [vmem:[#allocation3 + $0x80] sm:$0xff]  ;;  %vm17038_vm9 = vmmov %vm17033_vm0 }
 0x6e5   : > { %v10151_v5 = vpop.permute.xlu1 %10150  ;;  %8662 = vmatmul.mubr.f32.gmra.mxu0 %v8416_v22  ;;  %7015 = vst.msk [vmem:[#allocation3 + $0x108] sm:$0xff] %vm333_vm13, %v6963_v56  ;;  %7016 = vst.msk [vmem:[#allocation3 + $0x110] sm:$0xff] %vm333_vm13, %v6889_v1  ;;  %v8289_v40 = vsel %vm4035_vm15, %v8257_v33, %v10147_v63  ;;  %v10157_v57 = vunpack.i.l.bf16 %v10156_v35  ;;  %v8290_v61 = vsel %vm4035_vm15, %v8258_v12, %v10148_v54  ;;  %v10158_v55 = vunpack.i.h.bf16 %v10156_v35 }
 0x6e6   : > { %v10153_v7 = vunpack.i.h.bf16 %v10151_v5  ;;  %v10152_v18 = vunpack.i.l.bf16 %v10151_v5  ;;  %9180 = vmatprep.mubr.msk.f32.mxu0 %vm333_vm13, %v15406_v45  ;;  %vm17039_vm10 = vmmov %vm17031_vm3 }
 0x6e8   : > { %v8321_v51 = vsel %vm17027_vm11, %v8289_v40, %v10152_v18  ;;  %v8322_v3 = vsel %vm17028_vm2, %v8290_v61, %v10153_v7  ;;  %v10166_v26 = vpop.permute.xlu0 %10165  ;;  %vm17040_vm11 = vmmov %vm17029_vm4  ;;  %vm17041_vm2 = vcmask 1040384  }
 0x6e9   : > { %v10161_v48 = vpop.permute.xlu1 %10160  ;;  %v10167_v8 = vunpack.i.l.bf16 %v10166_v26  ;;  %v8353_v34 = vsel %vm17029_vm4, %v8321_v51, %v10157_v57  ;;  %v10168_v45 = vunpack.i.h.bf16 %v10166_v26  ;;  %v8354_v27 = vsel %vm17032_vm12, %v8322_v3, %v10158_v55  ;;  %vm17042_vm4 = vmmov %vm17033_vm0 }
 0x6ea   : > { %v10163_v46 = vunpack.i.h.bf16 %v10161_v48  ;;  %v10162_v9 = vunpack.i.l.bf16 %v10161_v48  ;;  %vm17044_vm12 = vmmov %vm17041_vm2 }
 0x6ec   : > { %v8385_v24 = vsel %vm17030_vm1, %v8353_v34, %v10162_v9  ;;  %v7275_v17 = vld [vmem:[#allocation3 + $0x109] sm:$0xff]  ;;  %v7276_v38 = vld [vmem:[#allocation3 + $0x111] sm:$0xff]  ;;  %v10176_v11 = vpop.permute.xlu0 %10175  ;;  %v8386_v10 = vsel %vm17033_vm0, %v8354_v27, %v10163_v46  ;;  %vm17043_vm1 = vcmask 123904   ;;  %vm17045_vm0 = vmmov %vm17041_vm2 }
 0x6ed   : > { %v10171_v36 = vpop.permute.xlu1 %10170  ;;  %v8417_v37 = vsel %vm17031_vm3, %v8385_v24, %v10167_v8  ;;  %v15658_v29 = vld [vmem:[#allocation3 + $0x108] sm:$0xff]  ;;  %v15661_v43 = vpack.i.bf16 %v7276_v38, %v7275_v17  ;;  %v15663_v41 = vld [vmem:[#allocation3 + $0x110] sm:$0xff]  ;;  %v10177_v20 = vunpack.i.l.bf16 %v10176_v11  ;;  %v8418_v23 = vsel %vm17034_vm5, %v8386_v10, %v10168_v45  ;;  %vm17046_vm5 = vmmov %vm17035_vm6 }
 0x6ee   : > { %v10172_v30 = vunpack.i.l.bf16 %v10171_v36  ;;  %8667 = vmatmul.mubr.f32.gmra.mxu0 %v8417_v37  ;;  %v10173_v2 = vunpack.i.h.bf16 %v10171_v36  ;;  %v10334_v21 = vpack.i.bf16 %v15663_v41, %v15658_v29  ;;  %v10178_v50 = vunpack.i.h.bf16 %v10176_v11  ;;  %v15689_v7 = vld [vmem:[#allocation3 + $0x112] sm:$0xff] }
 0x6ef   : > { %9181 = vmatprep.mubr.msk.f32.mxu0 %vm333_vm13, %v15408_v39  ;;  %10340 = vrot.lane.b32.xlu1 %v15661_v43, %s10610_s17  ;;  %v7300_v37 = vld [vmem:[#allocation3 + $0xb2] sm:$0xff] }
 0x6f0   : > { %v8227_v4 = vsel %vm333_vm13, %v7043_v15, %v10172_v30  ;;  %10335 = vrot.lane.b32.xlu0 %v10334_v21, %s10609_s21  ;;  %v10186_v47 = vpop.permute.xlu0 %10185  ;;  %v8228_v60 = vsel %vm333_vm13, %v7044_v42, %v10173_v2 }
 0x6f1   : > { %v10181_v0 = vpop.permute.xlu1 %10180  ;;  %v8259_v49 = vsel %vm4002_vm14, %v8227_v4, %v10177_v20  ;;  %v10187_v63 = vunpack.i.l.bf16 %v10186_v47  ;;  %v8260_v22 = vsel %vm4002_vm14, %v8228_v60, %v10178_v50  ;;  %v10188_v1 = vunpack.i.h.bf16 %v10186_v47  ;;  %v7046_v50 = vld [vmem:[#allocation3 + $0x98] sm:$0xff] }
 0x6f2   : > { %v10182_v53 = vunpack.i.l.bf16 %v10181_v0  ;;  %8672 = vmatmul.mubr.f32.gmra.mxu0 %v8418_v23  ;;  %v10183_v39 = vunpack.i.h.bf16 %v10181_v0  ;;  %v7045_v23 = vld [vmem:[#allocation3 + $0x90] sm:$0xff] }
 0x6f3   : > { %9182 = vmatprep.mubr.msk.f32.mxu0 %vm333_vm13, %v15449_v59  ;;  %10350 = vrot.lane.b32.xlu1 %v15627_v6, %s10605_s29  ;;  %v15687_v59 = vld [vmem:[#allocation3 + $0x10a] sm:$0xff] }
 0x6f4   : > { %v8291_v25 = vsel %vm4035_vm15, %v8259_v49, %v10182_v53  ;;  %10345 = vrot.lane.b32.xlu0 %v15594_v19, %s10604_s26  ;;  %v10196_v13 = vpop.permute.xlu0 %10195  ;;  %v8292_v54 = vsel %vm4035_vm15, %v8260_v22, %v10183_v39  ;;  %v15699_v55 = vpack.i.bf16 %v15689_v7, %v15687_v59 }
 0x6f5   : > { %v10191_v33 = vpop.permute.xlu1 %10190  ;;  %v8323_v5 = vsel %vm17035_vm6, %v8291_v25, %v10187_v63  ;;  %v10197_v12 = vunpack.i.l.bf16 %v10196_v13  ;;  %v8324_v57 = vsel %vm17037_vm8, %v8292_v54, %v10188_v1  ;;  %v10198_v48 = vunpack.i.h.bf16 %v10196_v13  ;;  %vm17047_vm6 = vmmov %vm17046_vm5 }
 0x6f6   : > { %v10192_v56 = vunpack.i.l.bf16 %v10191_v33  ;;  %v10193_v18 = vunpack.i.h.bf16 %v10191_v33  ;;  %vm17048_vm8 = vmmov %vm17042_vm4 }
 0x6f7   : > { %v9385_v6 = vpop.f32.mrf.mxu0  ;;  %10360 = vrot.lane.b32.xlu1 %v15661_v43, %s10607_s15 }
 0x6f8   : > { %v8355_v19 = vsel %vm17036_vm7, %v8323_v5, %v10192_v56  ;;  %v6750_v35 = vadd.f32 %v15442_v14, %v9385_v6  ;;  %10355 = vrot.lane.b32.xlu0 %v10334_v21, %s10606_s30  ;;  %v8356_v34 = vsel %vm17040_vm11, %v8324_v57, %v10193_v18  ;;  %v10206_v36 = vpop.permute.xlu0 %10205  ;;  %vm17051_vm11 = vmmov %vm17042_vm4 }
 0x6f9   : > { %v10201_v40 = vpop.permute.xlu1 %10200  ;;  %v6744_v51 = vpop.f32.mrf.mxu0  ;;  %v8387_v9 = vsel %vm17038_vm9, %v8355_v19, %v10197_v12  ;;  %v8388_v27 = vsel %vm17042_vm4, %v8356_v34, %v10198_v48  ;;  %v10207_v20 = vunpack.i.l.bf16 %v10206_v36  ;;  %v10208_v4 = vunpack.i.h.bf16 %v10206_v36  ;;  %vm17049_vm9 = vmmov %vm17031_vm3 }
 0x6fa   : > { %v10202_v61 = vunpack.i.l.bf16 %v10201_v40  ;;  %v6816_v3 = vmax.f32 %v6750_v35, 0.0  ;;  %v6745_v46 = vadd.f32 %v15442_v14, %v6744_v51  ;;  %v10203_v26 = vunpack.i.h.bf16 %v10201_v40  ;;  %vm17053_vm4 = vmmov %vm17045_vm0 }
 0x6fb   : > { %v8229_v53 = vsel %vm333_vm13, %v7045_v23, %v10207_v20  ;;  %v8230_v33 = vsel %vm333_vm13, %v7046_v50, %v10208_v4  ;;  %v7047_v23 = vld [vmem:[#allocation3 + $0xa8] sm:$0xff] }
 0x6fc   : > { %v8419_v8 = vsel %vm17039_vm10, %v8387_v9, %v10202_v61  ;;  %v6891_v24 = vrot.slane %v6816_v3, 7  ;;  %v6815_v45 = vmax.f32 %v6745_v46, 0.0  ;;  %10365 = vrot.lane.b32.xlu0 %v15699_v55, %s10608_s16  ;;  %v8420_v11 = vsel %vm17031_vm3, %v8388_v27, %v10203_v26  ;;  %v10216_v2 = vpop.permute.xlu0 %10215  ;;  %vm17050_vm10 = vmmov %vm17036_vm7 }
 0x6fd   : > { %8677 = vmatmul.mubr.f32.gmra.mxu0 %v8419_v8  ;;  %v10211_v30 = vpop.permute.xlu1 %10210  ;;  %v10217_v47 = vunpack.i.l.bf16 %v10216_v2  ;;  %v10218_v22 = vunpack.i.h.bf16 %v10216_v2 }
 0x6fe   : > { %9183 = vmatprep.mubr.msk.f32.mxu0 %vm333_vm13, %v7300_v37  ;;  %v6980_v17 = vsel %vm17041_vm2, %v6891_v24, 0.0  ;;  %v6890_v38 = vrot.slane %v6815_v45, 7  ;;  %v10212_v21 = vunpack.i.l.bf16 %v10211_v30  ;;  %v10213_v42 = vunpack.i.h.bf16 %v10211_v30  ;;  %vm17052_vm2 = vmmov %vm17031_vm3 }
 0x6ff   : > { %7020 = vst.msk [vmem:[#allocation3 + $0x130] sm:$0x3] %vm17043_vm1, %v6980_v17  ;;  %vm17054_vm3 = vmmov %vm17045_vm0 }
 0x700   : > { %v6892_v10 = vsel %vm17044_vm12, %v6890_v38, %v6891_v24  ;;  %v6964_v15 = vsel %vm17045_vm0, 0.0, %v6890_v38  ;;  %v8261_v60 = vsel %vm4002_vm14, %v8229_v53, %v10212_v21  ;;  %v10226_v39 = vpop.permute.xlu0 %10225  ;;  %v8262_v13 = vsel %vm4002_vm14, %v8230_v33, %v10213_v42  ;;  %vm17055_vm12 = vmmov %vm17045_vm0 }
 0x701   : > { %8682 = vmatmul.mubr.f32.gmra.mxu0 %v8420_v11  ;;  %7018 = vst.msk [vmem:[#allocation3 + $0x120] sm:$0xff] %vm333_vm13, %v6964_v15  ;;  %7019 = vst.msk [vmem:[#allocation3 + $0x128] sm:$0xff] %vm333_vm13, %v6892_v10  ;;  %v10221_v0 = vpop.permute.xlu1 %10220  ;;  %v8293_v12 = vsel %vm4035_vm15, %v8261_v60, %v10217_v47  ;;  %v10227_v18 = vunpack.i.l.bf16 %v10226_v39  ;;  %v8294_v19 = vsel %vm4035_vm15, %v8262_v13, %v10218_v22  ;;  %v10228_v35 = vunpack.i.h.bf16 %v10226_v39  ;;  %v7048_v22 = vld [vmem:[#allocation3 + $0xb0] sm:$0xff] }
 0x702   : > { %9184 = vmatprep.mubr.msk.f32.mxu0 %vm333_vm13, %v15485_v52  ;;  %v10222_v49 = vunpack.i.l.bf16 %v10221_v0  ;;  %v10223_v54 = vunpack.i.h.bf16 %v10221_v0  ;;  %vm17056_vm0 = vmmov %vm17046_vm5 }
 0x704   : > { %v8325_v6 = vsel %vm17046_vm5, %v8293_v12, %v10222_v49  ;;  %v8326_v57 = vsel %vm17047_vm6, %v8294_v19, %v10223_v54  ;;  %vm17057_vm5 = vmmov %vm17036_vm7 }
 0x705   : > { %v8357_v46 = vsel %vm17036_vm7, %v8325_v6, %v10227_v18  ;;  %v8358_v34 = vsel %vm17050_vm10, %v8326_v57, %v10228_v35  ;;  %vm17058_vm6 = vmmov %vm17056_vm0 }
 0x706   : > { %vm17059_vm7 = vmmov %vm17048_vm8 }
 0x707   : > { %vm17062_vm10 = vmmov %vm17059_vm7 }
 0x708   : > { %v15720_v63 = vld [vmem:[#allocation3 + $0x120] sm:$0xff]  ;;  %v15722_v25 = vld [vmem:[#allocation3 + $0x128] sm:$0xff] }
 0x709   : > { %v7277_v52 = vld [vmem:[#allocation3 + $0x121] sm:$0xff]  ;;  %v10369_v1 = vpack.i.bf16 %v15722_v25, %v15720_v63  ;;  %v7278_v56 = vld [vmem:[#allocation3 + $0x129] sm:$0xff] }
 0x70a   : > { %v15728_v5 = vpack.i.bf16 %v7278_v56, %v7277_v52  ;;  %v15746_v36 = vld [vmem:[#allocation3 + $0x122] sm:$0xff]  ;;  %v15748_v37 = vld [vmem:[#allocation3 + $0x12a] sm:$0xff] }
 0x70b   : > { %10370 = vrot.lane.b32.xlu1 %v10369_v1, %s10609_s21  ;;  %v10399_v30 = vpack.i.bf16 %v15748_v37, %v15746_v36 }
 0x70c   : > { %10375 = vrot.lane.b32.xlu0 %v15728_v5, %s10610_s17 }
 0x70d   : > { %v10231_v40 = vpop.permute.xlu1 %10230 }
 0x70e   : > { %v10233_v51 = vunpack.i.h.bf16 %v10231_v40  ;;  %v10232_v61 = vunpack.i.l.bf16 %v10231_v40  ;;  %v10236_v48 = vpop.permute.xlu0 %10235 }
 0x70f   : > { %v10237_v3 = vunpack.i.l.bf16 %v10236_v48  ;;  %10380 = vrot.lane.b32.xlu1 %v15661_v43, %s10604_s26  ;;  %v10238_v26 = vunpack.i.h.bf16 %v10236_v48 }
 0x710   : > { %10385 = vrot.lane.b32.xlu0 %v15699_v55, %s10605_s29  ;;  %v8389_v9 = vsel %vm17048_vm8, %v8357_v46, %v10232_v61  ;;  %v8390_v45 = vsel %vm17051_vm11, %v8358_v34, %v10233_v51  ;;  %vm17060_vm8 = vmmov %vm17052_vm2 }
 0x711   : > { %v8421_v8 = vsel %vm17049_vm9, %v8389_v9, %v10237_v3  ;;  %v8422_v27 = vsel %vm17052_vm2, %v8390_v45, %v10238_v26  ;;  %vm17061_vm9 = vmmov %vm17057_vm5 }
 0x712   : > { %8687 = vmatmul.mubr.f32.gmra.mxu0 %v8421_v8  ;;  %v10246_v21 = vpop.permute.xlu0 %10245  ;;  %vm17063_vm11 = vmmov %vm17052_vm2 }
 0x713   : > { %v9388_v24 = vpop.f32.mrf.mxu0  ;;  %10390 = vrot.lane.b32.xlu1 %v10369_v1, %s10606_s30  ;;  %9185 = vmatprep.mubr.msk.f32.mxu0 %vm333_vm13, %v15487_v32  ;;  %v10241_v32 = vpop.permute.xlu1 %10240  ;;  %v10248_v1 = vunpack.i.h.bf16 %v10246_v21  ;;  %vm17064_vm2 = vmmov %vm17054_vm3 }
 0x714   : > { %v6760_v43 = vadd.f32 %v15442_v14, %v9388_v24  ;;  %10395 = vrot.lane.b32.xlu0 %v15728_v5, %s10607_s15  ;;  %v10242_v0 = vunpack.i.l.bf16 %v10241_v32  ;;  %v10243_v42 = vunpack.i.h.bf16 %v10241_v32 }
 0x715   : > { %v6754_v55 = vpop.f32.mrf.mxu0 }
 0x716   : > { %v6818_v17 = vmax.f32 %v6760_v43, 0.0  ;;  %v6755_v38 = vadd.f32 %v15442_v14, %v6754_v55  ;;  %8692 = vmatmul.mubr.f32.gmra.mxu0 %v8422_v27  ;;  %v8231_v60 = vsel %vm333_vm13, %v7047_v23, %v10242_v0  ;;  %v10256_v39 = vpop.permute.xlu0 %10255  ;;  %v8232_v54 = vsel %vm333_vm13, %v7048_v22, %v10243_v42  ;;  %v7049_v22 = vld [vmem:[#allocation3 + $0xc0] sm:$0xff] }
 0x717   : > { %10400 = vrot.lane.b32.xlu1 %v10399_v30, %s10608_s16  ;;  %9186 = vmatprep.mubr.msk.f32.mxu0 %vm333_vm13, %v15548_v44  ;;  %v10251_v4 = vpop.permute.xlu1 %10250  ;;  %v10247_v44 = vunpack.i.l.bf16 %v10246_v21  ;;  %v10257_v6 = vunpack.i.l.bf16 %v10256_v39  ;;  %v8264_v40 = vsel %vm4002_vm14, %v8232_v54, %v10248_v1  ;;  %v10258_v57 = vunpack.i.h.bf16 %v10256_v39 }
 0x718   : > { %v6894_v11 = vrot.slane %v6818_v17, 7  ;;  %v6817_v10 = vmax.f32 %v6755_v38, 0.0  ;;  %v10252_v49 = vunpack.i.l.bf16 %v10251_v4  ;;  %v10253_v12 = vunpack.i.h.bf16 %v10251_v4 }
 0x719   : > { %v8263_v18 = vsel %vm4002_vm14, %v8231_v60, %v10247_v44 }
 0x71a   : > { %v6981_v15 = vsel %vm17053_vm4, %v6894_v11, 0.0  ;;  %v6893_v2 = vrot.slane %v6817_v10, 7  ;;  %v8295_v19 = vsel %vm4035_vm15, %v8263_v18, %v10252_v49  ;;  %v8296_v61 = vsel %vm4035_vm15, %v8264_v40, %v10253_v12  ;;  %vm17065_vm4 = vmmov %vm17043_vm1 }
 0x71b   : > { %7023 = vst.msk [vmem:[#allocation3 + $0x148] sm:$0x3] %vm17043_vm1, %v6981_v15  ;;  %v10261_v56 = vpop.permute.xlu1 %10260  ;;  %v8327_v9 = vsel %vm17056_vm0, %v8295_v19, %v10257_v6  ;;  %v8328_v24 = vsel %vm17058_vm6, %v8296_v61, %v10258_v57  ;;  %vm17066_vm1 = vmmov %vm17064_vm2  ;;  %v7050_v6 = vld [vmem:[#allocation3 + $0xc8] sm:$0xff] }
 0x71c   : > { %v6895_v14 = vsel %vm17054_vm3, %v6893_v2, %v6894_v11  ;;  %v6965_v20 = vsel %vm17055_vm12, 0.0, %v6893_v2  ;;  %v10262_v35 = vunpack.i.l.bf16 %v10261_v56  ;;  %v10263_v48 = vunpack.i.h.bf16 %v10261_v56  ;;  %vm17067_vm3 = vmmov %vm17066_vm1 }
 0x71d   : > { %7021 = vst.msk [vmem:[#allocation3 + $0x138] sm:$0xff] %vm333_vm13, %v6965_v20  ;;  %7022 = vst.msk [vmem:[#allocation3 + $0x140] sm:$0xff] %vm333_vm13, %v6895_v14 }
 0x71e   : > { %v8359_v34 = vsel %vm17057_vm5, %v8327_v9, %v10262_v35  ;;  %v8360_v38 = vsel %vm17061_vm9, %v8328_v24, %v10263_v48  ;;  %vm17068_vm12 = vmmov %vm17056_vm0 }
 0x71f   : > { %vm17069_vm0 = vmmov %vm17057_vm5 }
 0x720   : > { %vm17070_vm5 = vmmov %vm17059_vm7 }
 0x721   : > { %vm17073_vm9 = vmmov %vm17070_vm5 }
 0x724   : > { %v7279_v50 = vld [vmem:[#allocation3 + $0x139] sm:$0xff]  ;;  %v7280_v53 = vld [vmem:[#allocation3 + $0x141] sm:$0xff] }
 0x725   : > { %v15769_v47 = vld [vmem:[#allocation3 + $0x138] sm:$0xff]  ;;  %v15772_v52 = vpack.i.bf16 %v7280_v53, %v7279_v50  ;;  %v15774_v33 = vld [vmem:[#allocation3 + $0x140] sm:$0xff] }
 0x726   : > { %v10404_v13 = vpack.i.bf16 %v15774_v33, %v15769_v47  ;;  %v15797_v27 = vld [vmem:[#allocation3 + $0x13a] sm:$0xff] }
 0x727   : > { %10410 = vrot.lane.b32.xlu1 %v15772_v52, %s10610_s17 }
 0x728   : > { %10405 = vrot.lane.b32.xlu0 %v10404_v13, %s10609_s21 }
 0x729   : > { %v10271_v51 = vpop.permute.xlu1 %10270 }
 0x72a   : > { %v10272_v3 = vunpack.i.l.bf16 %v10271_v51  ;;  %v10266_v46 = vpop.permute.xlu0 %10265  ;;  %v10273_v43 = vunpack.i.h.bf16 %v10271_v51 }
 0x72b   : > { %10420 = vrot.lane.b32.xlu1 %v10399_v30, %s10605_s29  ;;  %v10268_v26 = vunpack.i.h.bf16 %v10266_v46  ;;  %v10267_v8 = vunpack.i.l.bf16 %v10266_v46  ;;  %v15799_v30 = vld [vmem:[#allocation3 + $0x142] sm:$0xff] }
 0x72c   : > { %10415 = vrot.lane.b32.xlu0 %v15728_v5, %s10604_s26  ;;  %v15804_v5 = vld [vmem:[%s16162_s2] ss:$0 sm:$0xff]  ;;  %v10434_v14 = vpack.i.bf16 %v15799_v30, %v15797_v27 }
 0x72d   : > { %v8391_v45 = vsel %vm17059_vm7, %v8359_v34, %v10267_v8  ;;  %v8392_v10 = vsel %vm17062_vm10, %v8360_v38, %v10268_v26  ;;  %v10281_v50 = vpop.permute.xlu1 %10280  ;;  %vm17071_vm7 = vmmov %vm17060_vm8 }
 0x72e   : > { %v8423_v55 = vsel %vm17060_vm8, %v8391_v45, %v10272_v3  ;;  %v8424_v20 = vsel %vm17063_vm11, %v8392_v10, %v10273_v43  ;;  %v10276_v0 = vpop.permute.xlu0 %10275  ;;  %v10282_v39 = vunpack.i.l.bf16 %v10281_v50  ;;  %v10283_v18 = vunpack.i.h.bf16 %v10281_v50  ;;  %vm17072_vm8 = vmmov %vm17069_vm0 }
 0x72f   : > { %v9391_v17 = vpop.f32.mrf.mxu0  ;;  %10430 = vrot.lane.b32.xlu1 %v15772_v52, %s10607_s15  ;;  %8697 = vmatmul.mubr.f32.gmra.mxu0 %v8423_v55  ;;  %v10277_v60 = vunpack.i.l.bf16 %v10276_v0  ;;  %v10278_v49 = vunpack.i.h.bf16 %v10276_v0  ;;  %vm17074_vm10 = vmmov %vm17071_vm7 }
 0x730   : > { %v6770_v11 = vadd.f32 %v15804_v5, %v9391_v17  ;;  %10425 = vrot.lane.b32.xlu0 %v10404_v13, %s10606_s30  ;;  %9187 = vmatprep.mubr.msk.f32.mxu0 %vm333_vm13, %v15550_v62  ;;  %vm17075_vm11 = vmmov %vm17066_vm1 }
 0x731   : > { %v6764_v32 = vpop.f32.mrf.mxu0  ;;  %v10291_v1 = vpop.permute.xlu1 %10290  ;;  %v8234_v57 = vsel %vm333_vm13, %v7050_v6, %v10278_v49  ;;  %v7051_v6 = vld [vmem:[#allocation3 + $0xd8] sm:$0xff] }
 0x732   : > { %v6820_v15 = vmax.f32 %v6770_v11, 0.0  ;;  %v6765_v2 = vadd.f32 %v15804_v5, %v6764_v32  ;;  %v10286_v53 = vpop.permute.xlu0 %10285  ;;  %v10292_v48 = vunpack.i.l.bf16 %v10291_v1  ;;  %v10293_v26 = vunpack.i.h.bf16 %v10291_v1 }
 0x733   : > { %8702 = vmatmul.mubr.f32.gmra.mxu0 %v8424_v20  ;;  %v10287_v56 = vunpack.i.l.bf16 %v10286_v53  ;;  %v10288_v51 = vunpack.i.h.bf16 %v10286_v53  ;;  %v8266_v8 = vsel %vm4002_vm14, %v8234_v57, %v10283_v18 }
 0x734   : > { %v6897_v21 = vrot.slane %v6820_v15, 7  ;;  %v6819_v4 = vmax.f32 %v6765_v2, 0.0  ;;  %10435 = vrot.lane.b32.xlu0 %v10434_v14, %s10608_s16  ;;  %9188 = vmatprep.mubr.msk.f32.mxu0 %vm333_vm13, %v15615_v28  ;;  %v8233_v28 = vsel %vm333_vm13, %v7049_v22, %v10277_v60 }
 0x735   : > { %v8265_v3 = vsel %vm4002_vm14, %v8233_v28, %v10282_v39  ;;  %v8298_v34 = vsel %vm4035_vm15, %v8266_v8, %v10288_v51 }
 0x736   : > { %v6982_v62 = vsel %vm17064_vm2, %v6897_v21, 0.0  ;;  %v6896_v23 = vrot.slane %v6819_v4, 7  ;;  %v10296_v19 = vpop.permute.xlu0 %10295  ;;  %v8297_v46 = vsel %vm4035_vm15, %v8265_v3, %v10287_v56  ;;  %v8330_v15 = vsel %vm17058_vm6, %v8298_v34, %v10293_v26  ;;  %vm17076_vm2 = vmmov %vm17065_vm4  ;;  %v7052_v26 = vld [vmem:[#allocation3 + $0xe0] sm:$0xff] }
 0x737   : > { %7026 = vst.msk [vmem:[#allocation3 + $0x160] sm:$0x3] %vm17065_vm4, %v6982_v62  ;;  %v10297_v9 = vunpack.i.l.bf16 %v10296_v19  ;;  %v10298_v24 = vunpack.i.h.bf16 %v10296_v19  ;;  %v8329_v38 = vsel %vm17068_vm12, %v8297_v46, %v10292_v48  ;;  %vm17077_vm4 = vmmov %vm17066_vm1 }
 0x738   : > { %v6898_v42 = vsel %vm17066_vm1, %v6896_v23, %v6897_v21  ;;  %v6966_v44 = vsel %vm17067_vm3, 0.0, %v6896_v23  ;;  %vm17078_vm3 = vmmov %vm17058_vm6 }
 0x739   : > { %7024 = vst.msk [vmem:[#allocation3 + $0x150] sm:$0xff] %vm333_vm13, %v6966_v44  ;;  %7025 = vst.msk [vmem:[#allocation3 + $0x158] sm:$0xff] %vm333_vm13, %v6898_v42  ;;  %v8361_v10 = vsel %vm17069_vm0, %v8329_v38, %v10297_v9  ;;  %v8362_v21 = vsel %vm17072_vm8, %v8330_v15, %v10298_v24 }
 0x73a   : > { %vm17079_vm12 = vmmov %vm17069_vm0 }
 0x73b   : > { %vm17080_vm0 = vmmov %vm17078_vm3 }
 0x73c   : > { %vm17081_vm6 = vmmov %vm17071_vm7 }
 0x740   : > { %v15825_v13 = vld [vmem:[#allocation3 + $0x150] sm:$0xff]  ;;  %v15827_v54 = vld [vmem:[#allocation3 + $0x158] sm:$0xff] }
 0x741   : > { %v7281_v12 = vld [vmem:[#allocation3 + $0x151] sm:$0xff]  ;;  %v10439_v35 = vpack.i.bf16 %v15827_v54, %v15825_v13  ;;  %v7282_v40 = vld [vmem:[#allocation3 + $0x159] sm:$0xff] }
 0x742   : > { %v15832_v61 = vpack.i.bf16 %v7282_v40, %v7281_v12  ;;  %v15850_v4 = vld [vmem:[#allocation3 + $0x152] sm:$0xff]  ;;  %v15852_v0 = vld [vmem:[#allocation3 + $0x15a] sm:$0xff] }
 0x743   : > { %10440 = vrot.lane.b32.xlu1 %v10439_v35, %s10609_s21  ;;  %v10469_v42 = vpack.i.bf16 %v15852_v0, %v15850_v4 }
 0x744   : > { %10445 = vrot.lane.b32.xlu0 %v15832_v61, %s10610_s17 }
 0x745   : > { %v10301_v45 = vpop.permute.xlu1 %10300 }
 0x746   : > { %v10303_v43 = vunpack.i.h.bf16 %v10301_v45  ;;  %v10302_v55 = vunpack.i.l.bf16 %v10301_v45  ;;  %v10306_v17 = vpop.permute.xlu0 %10305 }
 0x747   : > { %10450 = vrot.lane.b32.xlu1 %v15772_v52, %s10604_s26  ;;  %v10307_v11 = vunpack.i.l.bf16 %v10306_v17  ;;  %v10308_v2 = vunpack.i.h.bf16 %v10306_v17 }
 0x748   : > { %10455 = vrot.lane.b32.xlu0 %v10434_v14, %s10605_s29  ;;  %v8393_v32 = vsel %vm17070_vm5, %v8361_v10, %v10302_v55  ;;  %v8394_v14 = vsel %vm17073_vm9, %v8362_v21, %v10303_v43  ;;  %vm17084_vm9 = vmmov %vm17081_vm6 }
 0x749   : > { %v8425_v20 = vsel %vm17071_vm7, %v8393_v32, %v10307_v11  ;;  %v8426_v53 = vsel %vm17074_vm10, %v8394_v14, %v10308_v2  ;;  %v10311_v39 = vpop.permute.xlu1 %10310  ;;  %vm17082_vm7 = vmmov %vm17072_vm8 }
 0x74a   : > { %8707 = vmatmul.mubr.f32.gmra.mxu0 %v8425_v20  ;;  %v10316_v56 = vpop.permute.xlu0 %10315  ;;  %v10312_v18 = vunpack.i.l.bf16 %v10311_v39  ;;  %v10313_v19 = vunpack.i.h.bf16 %v10311_v39  ;;  %vm17083_vm8 = vmmov %vm17070_vm5 }
 0x74b   : > { %v9394_v52 = vpop.f32.mrf.mxu0  ;;  %10460 = vrot.lane.b32.xlu1 %v10439_v35, %s10606_s30  ;;  %9189 = vmatprep.mubr.msk.f32.mxu0 %vm333_vm13, %v15617_v31  ;;  %v10318_v8 = vunpack.i.h.bf16 %v10316_v56  ;;  %vm17085_vm10 = vmmov %vm17066_vm1 }
 0x74c   : > { %v6780_v62 = vadd.f32 %v15804_v5, %v9394_v52  ;;  %10465 = vrot.lane.b32.xlu0 %v15832_v61, %s10607_s15  ;;  %v8235_v51 = vsel %vm333_vm13, %v7051_v6, %v10312_v18  ;;  %v8236_v45 = vsel %vm333_vm13, %v7052_v26, %v10313_v19 }
 0x74d   : > { %v6774_v23 = vpop.f32.mrf.mxu0  ;;  %v10321_v12 = vpop.permute.xlu1 %10320  ;;  %v8268_v10 = vsel %vm4002_vm14, %v8236_v45, %v10318_v8 }
 0x74e   : > { %v6822_v44 = vmax.f32 %v6780_v62, 0.0  ;;  %v6775_v50 = vadd.f32 %v15804_v5, %v6774_v23  ;;  %8712 = vmatmul.mubr.f32.gmra.mxu0 %v8426_v53  ;;  %v10322_v48 = vunpack.i.l.bf16 %v10321_v12  ;;  %v10326_v3 = vpop.permute.xlu0 %10325  ;;  %v10323_v43 = vunpack.i.h.bf16 %v10321_v12 }
 0x74f   : > { %10470 = vrot.lane.b32.xlu1 %v10469_v42, %s10608_s16  ;;  %9190 = vmatprep.mubr.msk.f32.mxu0 %vm333_vm13, %v15687_v59  ;;  %v10317_v59 = vunpack.i.l.bf16 %v10316_v56  ;;  %v10327_v17 = vunpack.i.l.bf16 %v10326_v3  ;;  %v10328_v32 = vunpack.i.h.bf16 %v10326_v3 }
 0x750   : > { %v6900_v60 = vrot.slane %v6822_v44, 7  ;;  %v6821_v49 = vmax.f32 %v6775_v50, 0.0  ;;  %v8300_v2 = vsel %vm4035_vm15, %v8268_v10, %v10323_v43  ;;  %v7054_v43 = vld [vmem:[#allocation3 + $0xf8] sm:$0xff] }
 0x751   : > { %v10331_v34 = vpop.permute.xlu1 %10330  ;;  %v8267_v55 = vsel %vm4002_vm14, %v8235_v51, %v10317_v59  ;;  %v8332_v50 = vsel %vm17080_vm0, %v8300_v2, %v10328_v32 }
 0x752   : > { %v6983_v31 = vsel %vm17075_vm11, %v6900_v60, 0.0  ;;  %v6899_v22 = vrot.slane %v6821_v49, 7  ;;  %v8299_v38 = vsel %vm4035_vm15, %v8267_v55, %v10322_v48  ;;  %v10332_v11 = vunpack.i.l.bf16 %v10331_v34  ;;  %vm17086_vm11 = vmmov %vm17076_vm2 }
 0x753   : > { %7029 = vst.msk [vmem:[#allocation3 + $0x178] sm:$0x3] %vm17076_vm2, %v6983_v31  ;;  %v10333_v20 = vunpack.i.h.bf16 %v10331_v34  ;;  %v8331_v14 = vsel %vm17078_vm3, %v8299_v38, %v10327_v17  ;;  %vm17087_vm2 = vmmov %vm17066_vm1 }
 0x754   : > { %v6901_v28 = vsel %vm17077_vm4, %v6899_v22, %v6900_v60  ;;  %v6967_v1 = vsel %vm17066_vm1, 0.0, %v6899_v22  ;;  %v8363_v44 = vsel %vm17079_vm12, %v8331_v14, %v10332_v11  ;;  %vm17088_vm4 = vmmov %vm17066_vm1 }
 0x755   : > { %7027 = vst.msk [vmem:[#allocation3 + $0x168] sm:$0xff] %vm333_vm13, %v6967_v1  ;;  %7028 = vst.msk [vmem:[#allocation3 + $0x170] sm:$0xff] %vm333_vm13, %v6901_v28 }
 0x756   : > { %vm17089_vm1 = vmmov %vm17080_vm0 }
 0x757   : > { %vm17090_vm3 = vmmov %vm17082_vm7 }
 0x758   : > { %vm17091_vm12 = vmmov %vm17070_vm5 }
 0x75c   : > { %v7283_v35 = vld [vmem:[#allocation3 + $0x169] sm:$0xff]  ;;  %v7284_v40 = vld [vmem:[#allocation3 + $0x171] sm:$0xff] }
 0x75d   : > { %v15874_v57 = vld [vmem:[#allocation3 + $0x168] sm:$0xff]  ;;  %v15877_v46 = vpack.i.bf16 %v7284_v40, %v7283_v35  ;;  %v15879_v9 = vld [vmem:[#allocation3 + $0x170] sm:$0xff] }
 0x75e   : > { %v10474_v24 = vpack.i.bf16 %v15879_v9, %v15874_v57  ;;  %v15902_v31 = vld [vmem:[#allocation3 + $0x16a] sm:$0xff]  ;;  %v15904_v22 = vld [vmem:[#allocation3 + $0x172] sm:$0xff] }
 0x75f   : > { %10480 = vrot.lane.b32.xlu1 %v15877_v46, %s10610_s17  ;;  %v15914_v18 = vpack.i.bf16 %v15904_v22, %v15902_v31 }
 0x760   : > { %10475 = vrot.lane.b32.xlu0 %v10474_v24, %s10609_s21 }
 0x761   : > { %v10341_v15 = vpop.permute.xlu1 %10340 }
 0x762   : > { %v10342_v21 = vunpack.i.l.bf16 %v10341_v15  ;;  %v10336_v52 = vpop.permute.xlu0 %10335  ;;  %v10343_v60 = vunpack.i.h.bf16 %v10341_v15 }
 0x763   : > { %10490 = vrot.lane.b32.xlu1 %v10469_v42, %s10605_s29  ;;  %v10338_v62 = vunpack.i.h.bf16 %v10336_v52  ;;  %v10337_v23 = vunpack.i.l.bf16 %v10336_v52  ;;  %v8364_v42 = vsel %vm17082_vm7, %v8332_v50, %v10333_v20  ;;  %vm17094_vm7 = vmmov %vm17083_vm8 }
 0x764   : > { %10485 = vrot.lane.b32.xlu0 %v15832_v61, %s10604_s26 }
 0x765   : > { %v8395_v53 = vsel %vm17070_vm5, %v8363_v44, %v10337_v23  ;;  %v8396_v28 = vsel %vm17083_vm8, %v8364_v42, %v10338_v62  ;;  %v10351_v48 = vpop.permute.xlu1 %10350  ;;  %vm17092_vm5 = vmmov %vm17081_vm6 }
 0x766   : > { %v8427_v49 = vsel %vm17081_vm6, %v8395_v53, %v10342_v21  ;;  %v8428_v6 = vsel %vm17084_vm9, %v8396_v28, %v10343_v60  ;;  %v10346_v35 = vpop.permute.xlu0 %10345  ;;  %v10352_v34 = vunpack.i.l.bf16 %v10351_v48  ;;  %v10353_v20 = vunpack.i.h.bf16 %v10351_v48  ;;  %vm17093_vm6 = vmmov %vm17090_vm3 }
 0x767   : > { %v9397_v39 = vpop.f32.mrf.mxu0  ;;  %10500 = vrot.lane.b32.xlu1 %v15877_v46, %s10607_s15  ;;  %8717 = vmatmul.mubr.f32.gmra.mxu0 %v8427_v49  ;;  %v10347_v3 = vunpack.i.l.bf16 %v10346_v35  ;;  %v10348_v8 = vunpack.i.h.bf16 %v10346_v35  ;;  %vm17095_vm8 = vmmov %vm17092_vm5 }
 0x768   : > { %v6790_v61 = vadd.f32 %v15804_v5, %v9397_v39  ;;  %10495 = vrot.lane.b32.xlu0 %v10474_v24, %s10606_s30  ;;  %9191 = vmatprep.mubr.msk.f32.mxu0 %vm333_vm13, %v15689_v7  ;;  %v7053_v24 = vld [vmem:[#allocation3 + $0xf0] sm:$0xff]  ;;  %vm17096_vm9 = vmmov %vm17080_vm0 }
 0x769   : > { %v6784_v1 = vpop.f32.mrf.mxu0  ;;  %v8237_v55 = vsel %vm333_vm13, %v7053_v24, %v10347_v3  ;;  %v10361_v17 = vpop.permute.xlu1 %10360  ;;  %v8238_v21 = vsel %vm333_vm13, %v7054_v43, %v10348_v8 }
 0x76a   : > { %v6824_v56 = vmax.f32 %v6790_v61, 0.0  ;;  %v6785_v12 = vadd.f32 %v15804_v5, %v6784_v1  ;;  %v10356_v26 = vpop.permute.xlu0 %10355  ;;  %v10362_v23 = vunpack.i.l.bf16 %v10361_v17  ;;  %v8269_v50 = vsel %vm4002_vm14, %v8237_v55, %v10352_v34 }
 0x76b   : > { %8722 = vmatmul.mubr.f32.gmra.mxu0 %v8428_v6  ;;  %v10357_v38 = vunpack.i.l.bf16 %v10356_v26  ;;  %v10358_v44 = vunpack.i.h.bf16 %v10356_v26  ;;  %v10363_v1 = vunpack.i.h.bf16 %v10361_v17  ;;  %v7255_v17 = vld [vmem:[#allocation3 + $0x198] sm:$0xff] }
 0x76c   : > { %v6903_v19 = vrot.slane %v6824_v56, 7  ;;  %v6823_v59 = vmax.f32 %v6785_v12, 0.0  ;;  %10505 = vrot.lane.b32.xlu0 %v15914_v18, %s10608_s16  ;;  %9192 = vmatprep.mubr.msk.f32.mxu0 %vm333_vm13, %v15746_v36  ;;  %v15930_v36 = vld [vmem:[%s16164_s4] ss:$0 sm:$0xff]  ;;  %v8270_v56 = vsel %vm4002_vm14, %v8238_v21, %v10353_v20 }
 0x76d   : > { %v8301_v49 = vsel %vm4035_vm15, %v8269_v50, %v10357_v38  ;;  %v8302_v6 = vsel %vm4035_vm15, %v8270_v56, %v10358_v44  ;;  %v7256_v50 = vld [vmem:[#allocation3 + $0x1a0] sm:$0xff] }
 0x76e   : > { %v6984_v7 = vsel %vm17085_vm10, %v6903_v19, 0.0  ;;  %v6902_v40 = vrot.slane %v6823_v59, 7  ;;  %v10366_v52 = vpop.permute.xlu0 %10365  ;;  %v8333_v35 = vsel %vm17089_vm1, %v8301_v49, %v10362_v23  ;;  %v8334_v24 = vsel %vm17080_vm0, %v8302_v6, %v10363_v1  ;;  %vm17097_vm10 = vmmov %vm17090_vm3 }
 0x76f   : > { %7032 = vst.msk [vmem:[#allocation3 + $0x190] sm:$0x3] %vm17086_vm11, %v6984_v7  ;;  %v10367_v61 = vunpack.i.l.bf16 %v10366_v52  ;;  %vm17098_vm11 = vmmov %vm17080_vm0 }
 0x770   : > { %v6904_v5 = vsel %vm17087_vm2, %v6902_v40, %v6903_v19  ;;  %v6968_v51 = vsel %vm17088_vm4, 0.0, %v6902_v40  ;;  %v10368_v19 = vunpack.i.h.bf16 %v10366_v52  ;;  %vm17099_vm2 = vmmov %vm17094_vm7 }
 0x771   : > { %7030 = vst.msk [vmem:[#allocation3 + $0x180] sm:$0xff] %vm333_vm13, %v6968_v51  ;;  %7031 = vst.msk [vmem:[#allocation3 + $0x188] sm:$0xff] %vm333_vm13, %v6904_v5  ;;  %v8365_v8 = vsel %vm17090_vm3, %v8333_v35, %v10367_v61 }
 0x772   : > { %v8366_v55 = vsel %vm17093_vm6, %v8334_v24, %v10368_v19  ;;  %vm17100_vm4 = vmmov %vm17092_vm5 }
 0x773   : > { %vm17101_vm1 = vmmov %vm17090_vm3 }
 0x774   : > { %vm17102_vm3 = vmmov %vm17099_vm2 }
 0x775   : > { %vm17105_vm6 = vmmov %vm17099_vm2 }
 0x776   : > { %v8628_v45 = vpop.f32.mrf.mxu0 }
 0x777   : > { %v8629_v11 = vadd.f32 %v15930_v36, %v8628_v45 }
 0x778   : > { %v8630_v10 = vpop.f32.mrf.mxu0  ;;  %v7253_v32 = vld [vmem:[#allocation3 + $0x180] sm:$0xff]  ;;  %v7254_v15 = vld [vmem:[#allocation3 + $0x188] sm:$0xff] }
 0x779   : > { %v7285_v2 = vld [vmem:[#allocation3 + $0x181] sm:$0xff]  ;;  %v10509_v14 = vpack.i.bf16 %v7254_v15, %v7253_v32  ;;  %v7286_v62 = vld [vmem:[#allocation3 + $0x189] sm:$0xff]  ;;  %v8787_v39 = vmax.f32 %v8629_v11, 0.0 }
 0x77a   : > { %v8633_v53 = vpop.f32.mrf.mxu0  ;;  %v10514_v60 = vpack.i.bf16 %v7286_v62, %v7285_v2  ;;  %v15961_v10 = vld [vmem:[#allocation3 + $0x182] sm:$0xff]  ;;  %v15971_v23 = vld [vmem:[#allocation3 + $0x18a] sm:$0xff] }
 0x77b   : > { %v8634_v42 = vadd.f32 %v15930_v36, %v8633_v53  ;;  %10510 = vrot.lane.b32.xlu1 %v10509_v14, %s10609_s21  ;;  %v8819_v7 = vsel %vm4002_vm14, %v8787_v39, 0.0  ;;  %v7288_v53 = vld [vmem:[#allocation3 + $0x1a1] sm:$0xff] }
 0x77c   : > { %10515 = vrot.lane.b32.xlu0 %v10514_v60, %s10610_s17  ;;  %v8635_v28 = vpop.f32.mrf.mxu0 }
 0x77d   : > { %v8788_v12 = vmax.f32 %v8634_v42, 0.0  ;;  %v10371_v59 = vpop.permute.xlu1 %10370 }
 0x77e   : > { %v10373_v5 = vunpack.i.h.bf16 %v10371_v59  ;;  %v10372_v51 = vunpack.i.l.bf16 %v10371_v59  ;;  %v10376_v48 = vpop.permute.xlu0 %10375 }
 0x77f   : > { %v8820_v40 = vsel %vm4002_vm14, %v8788_v12, 0.0  ;;  %10520 = vrot.lane.b32.xlu1 %v15877_v46, %s10604_s26  ;;  %v10377_v26 = vunpack.i.l.bf16 %v10376_v48  ;;  %v10378_v45 = vunpack.i.h.bf16 %v10376_v48 }
 0x780   : > { %v8821_v3 = vadd.f32 %v8820_v40, %v8819_v7  ;;  %10525 = vrot.lane.b32.xlu0 %v15914_v18, %s10605_s29  ;;  %v8397_v34 = vsel %vm17091_vm12, %v8365_v8, %v10372_v51  ;;  %v8398_v46 = vsel %vm17094_vm7, %v8366_v55, %v10373_v5  ;;  %vm17103_vm12 = vmmov %vm17100_vm4 }
 0x781   : > { %v8429_v43 = vsel %vm17092_vm5, %v8397_v34, %v10377_v26  ;;  %v8430_v11 = vsel %vm17095_vm8, %v8398_v46, %v10378_v45  ;;  %v10381_v2 = vpop.permute.xlu1 %10380  ;;  %vm17104_vm5 = vmmov %vm17101_vm1 }
 0x782   : > { %8727 = vmatmul.mubr.f32.gmra.mxu0 %v8429_v43  ;;  %v10382_v42 = vunpack.i.l.bf16 %v10381_v2  ;;  %v10383_v61 = vunpack.i.h.bf16 %v10381_v2  ;;  %vm17106_vm7 = vmmov %vm17080_vm0 }
 0x783   : > { %10530 = vrot.lane.b32.xlu1 %v10509_v14, %s10606_s30  ;;  %9193 = vmatprep.mubr.msk.f32.mxu0 %vm333_vm13, %v15748_v37  ;;  %v7287_v37 = vld [vmem:[#allocation3 + $0x199] sm:$0xff]  ;;  %vm17107_vm8 = vmmov %vm17100_vm4 }
 0x784   : > { %10535 = vrot.lane.b32.xlu0 %v10514_v60, %s10607_s15  ;;  %v8239_v12 = vsel %vm333_vm13, %v15658_v29, %v10382_v42  ;;  %v8240_v5 = vsel %vm333_vm13, %v15663_v41, %v10383_v61 }
 0x785   : > { %v8638_v18 = vpop.f32.mrf.mxu0  ;;  %v10391_v49 = vpop.permute.xlu1 %10390 }
 0x786   : > { %v8639_v38 = vadd.f32 %v15930_v36, %v8638_v18  ;;  %8732 = vmatmul.mubr.f32.gmra.mxu0 %v8430_v11  ;;  %v10392_v6 = vunpack.i.l.bf16 %v10391_v49  ;;  %v10393_v51 = vunpack.i.h.bf16 %v10391_v49 }
 0x787   : > { %v8640_v32 = vpop.f32.mrf.mxu0  ;;  %7925 = vrot.lane.b32.xlu1 %v15961_v10, %s10608_s16  ;;  %9194 = vmatprep.mubr.msk.f32.mxu0 %vm333_vm13, %v15797_v27  ;;  %v10386_v27 = vpop.permute.xlu0 %10385 }
 0x788   : > { %v8789_v15 = vmax.f32 %v8639_v38, 0.0  ;;  %8053 = vrot.lane.b32.xlu0 %v7255_v17, %s10609_s21  ;;  %v10387_v1 = vunpack.i.l.bf16 %v10386_v27  ;;  %v10388_v35 = vunpack.i.h.bf16 %v10386_v27 }
 0x789   : > { %v8643_v20 = vpop.f32.mrf.mxu0  ;;  %v10401_v7 = vpop.permute.xlu1 %10400 }
 0x78a   : > { %v8822_v21 = vsel %vm4002_vm14, %v8789_v15, 0.0  ;;  %v8644_v52 = vadd.f32 %v15930_v36, %v8643_v20  ;;  %v10402_v24 = vunpack.i.l.bf16 %v10401_v7  ;;  %v8272_v55 = vsel %vm4002_vm14, %v8240_v5, %v10388_v35 }
 0x78b   : > { %v8823_v14 = vadd.f32 %v8822_v21, %v8821_v3  ;;  %v8645_v62 = vpop.f32.mrf.mxu0  ;;  %8181 = vrot.lane.b32.xlu1 %v7287_v37, %s10610_s17  ;;  %v10396_v19 = vpop.permute.xlu0 %10395  ;;  %v8271_v3 = vsel %vm4002_vm14, %v8239_v12, %v10387_v1  ;;  %v8304_v41 = vsel %vm4035_vm15, %v8272_v55, %v10393_v51  ;;  %v10403_v38 = vunpack.i.h.bf16 %v10401_v7 }
 0x78c   : > { %v8790_v44 = vmax.f32 %v8644_v52, 0.0  ;;  %7927 = vrot.lane.b32.xlu0 %v15971_v23, %s10608_s16  ;;  %v10397_v26 = vunpack.i.l.bf16 %v10396_v19  ;;  %v8303_v29 = vsel %vm4035_vm15, %v8271_v3, %v10392_v6  ;;  %v10398_v46 = vunpack.i.h.bf16 %v10396_v19 }
 0x78e   : > { %v8824_v60 = vsel %vm4002_vm14, %v8790_v44, 0.0  ;;  %v8335_v15 = vsel %vm17096_vm9, %v8303_v29, %v10397_v26  ;;  %vm17108_vm9 = vmmov %vm17101_vm1 }
 0x78f   : > { %v8825_v39 = vadd.f32 %v8824_v60, %v8823_v14  ;;  %8055 = vrot.lane.b32.xlu1 %v7256_v50, %s10609_s21  ;;  %v8367_v52 = vsel %vm17097_vm10, %v8335_v15, %v10402_v24  ;;  %v8336_v14 = vsel %vm17098_vm11, %v8304_v41, %v10398_v46  ;;  %vm17109_vm10 = vmmov %vm17099_vm2 }
 0x790   : > { %8183 = vrot.lane.b32.xlu0 %v7288_v53, %s10610_s17  ;;  %v8368_v53 = vsel %vm17101_vm1, %v8336_v14, %v10403_v38  ;;  %vm17110_vm11 = vmmov %vm17100_vm4 }
 0x792   : > { %v8648_v28 = vpop.f32.mrf.mxu0 }
 0x793   : > { %v8649_v56 = vadd.f32 %v15930_v36, %v8648_v28 }
 0x794   : > { %v8650_v59 = vpop.f32.mrf.mxu0 }
 0x795   : > { %v8791_v40 = vmax.f32 %v8649_v56, 0.0 }
 0x796   : > { %v8653_v48 = vpop.f32.mrf.mxu0 }
 0x797   : > { %v8826_v8 = vsel %vm4002_vm14, %v8791_v40, 0.0  ;;  %v8654_v34 = vadd.f32 %v15930_v36, %v8653_v48 }
 0x798   : > { %v8827_v45 = vadd.f32 %v8826_v8, %v8825_v39  ;;  %v8655_v43 = vpop.f32.mrf.mxu0 }
 0x799   : > { %v8792_v18 = vmax.f32 %v8654_v34, 0.0  ;;  %v10411_v17 = vpop.permute.xlu1 %10410 }
 0x79a   : > { %v10412_v11 = vunpack.i.l.bf16 %v10411_v17  ;;  %v10406_v32 = vpop.permute.xlu0 %10405  ;;  %v10413_v44 = vunpack.i.h.bf16 %v10411_v17 }
 0x79b   : > { %v8828_v37 = vsel %vm4002_vm14, %v8792_v18, 0.0  ;;  %v10408_v2 = vunpack.i.h.bf16 %v10406_v32  ;;  %v10407_v20 = vunpack.i.l.bf16 %v10406_v32 }
 0x79c   : > { %v8829_v21 = vadd.f32 %v8828_v37, %v8827_v45 }
 0x79d   : > { %v8399_v62 = vsel %vm17099_vm2, %v8367_v52, %v10407_v20  ;;  %v8400_v27 = vsel %vm17102_vm3, %v8368_v53, %v10408_v2  ;;  %v10421_v59 = vpop.permute.xlu1 %10420  ;;  %vm17111_vm2 = vmmov %vm17080_vm0 }
 0x79e   : > { %v8431_v50 = vsel %vm17100_vm4, %v8399_v62, %v10412_v11  ;;  %v8432_v49 = vsel %vm17103_vm12, %v8400_v27, %v10413_v44  ;;  %v10416_v61 = vpop.permute.xlu0 %10415  ;;  %v10422_v48 = vunpack.i.l.bf16 %v10421_v59  ;;  %v10423_v29 = vunpack.i.h.bf16 %v10421_v59  ;;  %vm17112_vm4 = vmmov %vm17101_vm1 }
 0x79f   : > { %8737 = vmatmul.mubr.f32.gmra.mxu0 %v8431_v50  ;;  %v10417_v40 = vunpack.i.l.bf16 %v10416_v61  ;;  %v10418_v51 = vunpack.i.h.bf16 %v10416_v61  ;;  %vm17113_vm1 = vmmov %vm17080_vm0 }
 0x7a0   : > { %9195 = vmatprep.mubr.msk.f32.mxu0 %vm333_vm13, %v15799_v30  ;;  %vm17114_vm12 = vmmov %vm17107_vm8 }
 0x7a1   : > { %v8658_v60 = vpop.f32.mrf.mxu0  ;;  %v10431_v26 = vpop.permute.xlu1 %10430  ;;  %v8242_v43 = vsel %vm333_vm13, %v15722_v25, %v10418_v51 }
 0x7a2   : > { %v8659_v39 = vadd.f32 %v15930_v36, %v8658_v60  ;;  %v10426_v35 = vpop.permute.xlu0 %10425  ;;  %v10432_v18 = vunpack.i.l.bf16 %v10431_v26  ;;  %v10433_v15 = vunpack.i.h.bf16 %v10431_v26  ;;  %v8274_v37 = vsel %vm4002_vm14, %v8242_v43, %v10423_v29 }
 0x7a3   : > { %8742 = vmatmul.mubr.f32.gmra.mxu0 %v8432_v49  ;;  %v8660_v42 = vpop.f32.mrf.mxu0  ;;  %v10427_v8 = vunpack.i.l.bf16 %v10426_v35  ;;  %v10428_v55 = vunpack.i.h.bf16 %v10426_v35 }
 0x7a4   : > { %9196 = vmatprep.mubr.msk.f32.mxu0 %vm333_vm13, %v15850_v4  ;;  %v8793_v28 = vmax.f32 %v8659_v39, 0.0  ;;  %v8241_v4 = vsel %vm333_vm13, %v15720_v63, %v10417_v40 }
 0x7a5   : > { %v8663_v1 = vpop.f32.mrf.mxu0  ;;  %v8273_v17 = vsel %vm4002_vm14, %v8241_v4, %v10422_v48  ;;  %v8306_v25 = vsel %vm4035_vm15, %v8274_v37, %v10428_v55 }
 0x7a6   : > { %v8664_v56 = vadd.f32 %v15930_v36, %v8663_v1  ;;  %v8830_v12 = vsel %vm4002_vm14, %v8793_v28, 0.0  ;;  %v10436_v24 = vpop.permute.xlu0 %10435  ;;  %v8305_v38 = vsel %vm4035_vm15, %v8273_v17, %v10427_v8  ;;  %v8338_v61 = vsel %vm17106_vm7, %v8306_v25, %v10433_v15  ;;  %v8893_v17 = vld [vmem:[%s16165_s5 + $0x18] sm:$0xff]  ;;  %vm17118_vm7 = vmmov %vm17113_vm1 }
 0x7a7   : > { %v8665_v6 = vpop.f32.mrf.mxu0  ;;  %v8831_v19 = vadd.f32 %v8830_v12, %v8829_v21  ;;  %v10437_v11 = vunpack.i.l.bf16 %v10436_v24  ;;  %v10438_v21 = vunpack.i.h.bf16 %v10436_v24  ;;  %v8337_v53 = vsel %vm17080_vm0, %v8305_v38, %v10432_v18  ;;  %9399 = vmatpush3.msra.mxu1 %v8893_v17  ;;  %vm17115_vm0 = vmmov %vm17112_vm4 }
 0x7a8   : > { %v8794_v30 = vmax.f32 %v8664_v56, 0.0  ;;  %9400 = vmatprep.subr.mxu1 %v16950_v16 }
 0x7a9   : > { %v8369_v49 = vsel %vm17104_vm5, %v8337_v53, %v10437_v11  ;;  %v8370_v56 = vsel %vm17108_vm9, %v8338_v61, %v10438_v21  ;;  %vm17116_vm5 = vmmov %vm17102_vm3 }
 0x7aa   : > { %v8832_v7 = vsel %vm4002_vm14, %v8794_v30, 0.0  ;;  %vm17120_vm9 = vmmov %vm17102_vm3 }
 0x7ab   : > { %v8833_v5 = vadd.f32 %v8832_v7, %v8831_v19 }
 0x7ae   : > { %v8668_v3 = vpop.f32.mrf.mxu0 }
 0x7af   : > { %v8669_v34 = vadd.f32 %v15930_v36, %v8668_v3 }
 0x7b0   : > { %v8670_v45 = vpop.f32.mrf.mxu0 }
 0x7b1   : > { %v8795_v46 = vmax.f32 %v8669_v34, 0.0 }
 0x7b2   : > { %v8673_v41 = vpop.f32.mrf.mxu0 }
 0x7b3   : > { %v8834_v63 = vsel %vm4002_vm14, %v8795_v46, 0.0  ;;  %v8674_v32 = vadd.f32 %v15930_v36, %v8673_v41 }
 0x7b4   : > { %v8835_v2 = vadd.f32 %v8834_v63, %v8833_v5  ;;  %v8675_v20 = vpop.f32.mrf.mxu0 }
 0x7b5   : > { %v8796_v52 = vmax.f32 %v8674_v32, 0.0  ;;  %v10441_v14 = vpop.permute.xlu1 %10440 }
 0x7b6   : > { %v10443_v62 = vunpack.i.h.bf16 %v10441_v14  ;;  %v10442_v44 = vunpack.i.l.bf16 %v10441_v14  ;;  %v10446_v50 = vpop.permute.xlu0 %10445 }
 0x7b7   : > { %v8836_v27 = vsel %vm4002_vm14, %v8796_v52, 0.0  ;;  %v10447_v60 = vunpack.i.l.bf16 %v10446_v50  ;;  %v10448_v28 = vunpack.i.h.bf16 %v10446_v50 }
 0x7b8   : > { %v8837_v39 = vadd.f32 %v8836_v27, %v8835_v2  ;;  %v8401_v42 = vsel %vm17105_vm6, %v8369_v49, %v10442_v44  ;;  %v8402_v12 = vsel %vm17109_vm10, %v8370_v56, %v10443_v62  ;;  %vm17117_vm6 = vmmov %vm17107_vm8 }
 0x7b9   : > { %v8433_v1 = vsel %vm17107_vm8, %v8401_v42, %v10447_v60  ;;  %v8434_v19 = vsel %vm17110_vm11, %v8402_v12, %v10448_v28  ;;  %v10451_v7 = vpop.permute.xlu1 %10450  ;;  %vm17119_vm8 = vmmov %vm17115_vm0 }
 0x7ba   : > { %8747 = vmatmul.mubr.f32.gmra.mxu0 %v8433_v1  ;;  %v10456_v4 = vpop.permute.xlu0 %10455  ;;  %v10452_v29 = vunpack.i.l.bf16 %v10451_v7  ;;  %v10453_v24 = vunpack.i.h.bf16 %v10451_v7  ;;  %vm17121_vm10 = vmmov %vm17113_vm1 }
 0x7bb   : > { %9197 = vmatprep.mubr.msk.f32.mxu0 %vm333_vm13, %v15852_v0  ;;  %v10457_v45 = vunpack.i.l.bf16 %v10456_v4  ;;  %v10458_v46 = vunpack.i.h.bf16 %v10456_v4  ;;  %vm17122_vm11 = vmmov %vm17117_vm6 }
 0x7bc   : > { %v8244_v41 = vsel %vm333_vm13, %v15774_v33, %v10453_v24 }
 0x7bd   : > { %v8678_v6 = vpop.f32.mrf.mxu0  ;;  %v10461_v8 = vpop.permute.xlu1 %10460  ;;  %v8276_v15 = vsel %vm4002_vm14, %v8244_v41, %v10458_v46 }
 0x7be   : > { %v8679_v30 = vadd.f32 %v15930_v36, %v8678_v6  ;;  %8752 = vmatmul.mubr.f32.gmra.mxu0 %v8434_v19  ;;  %v10462_v43 = vunpack.i.l.bf16 %v10461_v8  ;;  %v10466_v55 = vpop.permute.xlu0 %10465  ;;  %v10463_v38 = vunpack.i.h.bf16 %v10461_v8 }
 0x7bf   : > { %v8680_v59 = vpop.f32.mrf.mxu0  ;;  %9198 = vmatprep.mubr.msk.f32.mxu0 %vm333_vm13, %v15902_v31  ;;  %v8243_v31 = vsel %vm333_vm13, %v15769_v47, %v10452_v29  ;;  %v10467_v63 = vunpack.i.l.bf16 %v10466_v55  ;;  %v10468_v37 = vunpack.i.h.bf16 %v10466_v55 }
 0x7c0   : > { %v8797_v35 = vmax.f32 %v8679_v30, 0.0  ;;  %v8275_v11 = vsel %vm4002_vm14, %v8243_v31, %v10457_v45  ;;  %v8308_v20 = vsel %vm4035_vm15, %v8276_v15, %v10463_v38 }
 0x7c1   : > { %v8683_v40 = vpop.f32.mrf.mxu0  ;;  %v10471_v18 = vpop.permute.xlu1 %10470  ;;  %v8307_v47 = vsel %vm4035_vm15, %v8275_v11, %v10462_v43  ;;  %v8340_v27 = vsel %vm17113_vm1, %v8308_v20, %v10468_v37  ;;  %vm17125_vm1 = vmmov %vm17117_vm6 }
 0x7c2   : > { %v8838_v5 = vsel %vm4002_vm14, %v8797_v35, 0.0  ;;  %v8684_v51 = vadd.f32 %v15930_v36, %v8683_v40  ;;  %v10472_v32 = vunpack.i.l.bf16 %v10471_v18  ;;  %v10473_v25 = vunpack.i.h.bf16 %v10471_v18 }
 0x7c3   : > { %v8839_v48 = vadd.f32 %v8838_v5, %v8837_v39  ;;  %v8685_v3 = vpop.f32.mrf.mxu0  ;;  %v8339_v33 = vsel %vm17111_vm2, %v8307_v47, %v10467_v63  ;;  %vm17123_vm2 = vmmov %vm17115_vm0 }
 0x7c4   : > { %v8798_v0 = vmax.f32 %v8684_v51, 0.0  ;;  %v8371_v53 = vsel %vm17112_vm4, %v8339_v33, %v10472_v32  ;;  %v8372_v28 = vsel %vm17115_vm0, %v8340_v27, %v10473_v25  ;;  %vm17124_vm4 = vmmov %vm17102_vm3 }
 0x7c6   : > { %v8840_v26 = vsel %vm4002_vm14, %v8798_v0, 0.0 }
 0x7c7   : > { %v8841_v34 = vadd.f32 %v8840_v26, %v8839_v48 }
 0x7d1   : > { %v10481_v2 = vpop.permute.xlu1 %10480 }
 0x7d2   : > { %v10482_v21 = vunpack.i.l.bf16 %v10481_v2  ;;  %v10476_v52 = vpop.permute.xlu0 %10475  ;;  %v8688_v44 = vpop.f32.mrf.mxu0  ;;  %v10483_v39 = vunpack.i.h.bf16 %v10481_v2 }
 0x7d3   : > { %v10478_v14 = vunpack.i.h.bf16 %v10476_v52  ;;  %v10477_v62 = vunpack.i.l.bf16 %v10476_v52  ;;  %v8689_v50 = vadd.f32 %v15930_v36, %v8688_v44 }
 0x7d4   : > { %v8690_v60 = vpop.f32.mrf.mxu0 }
 0x7d5   : > { %v8403_v49 = vsel %vm17102_vm3, %v8371_v53, %v10477_v62  ;;  %v8799_v42 = vmax.f32 %v8689_v50, 0.0  ;;  %v8404_v56 = vsel %vm17116_vm5, %v8372_v28, %v10478_v14  ;;  %v10491_v51 = vpop.permute.xlu1 %10490  ;;  %vm17126_vm3 = vmmov %vm17118_vm7 }
 0x7d6   : > { %v8435_v61 = vsel %vm17114_vm12, %v8403_v49, %v10482_v21  ;;  %v8693_v1 = vpop.f32.mrf.mxu0  ;;  %v8436_v35 = vsel %vm17117_vm6, %v8404_v56, %v10483_v39  ;;  %v10486_v7 = vpop.permute.xlu0 %10485  ;;  %v10492_v4 = vunpack.i.l.bf16 %v10491_v51  ;;  %v7319_v39 = vld [vmem:[#allocation3 + $0x19a] sm:$0xff]  ;;  %vm17127_vm12 = vmmov %vm17115_vm0 }
 0x7d7   : > { %8757 = vmatmul.mubr.f32.gmra.mxu0 %v8435_v61  ;;  %v8842_v12 = vsel %vm4002_vm14, %v8799_v42, 0.0  ;;  %v8694_v6 = vadd.f32 %v15930_v36, %v8693_v1  ;;  %v10487_v3 = vunpack.i.l.bf16 %v10486_v7  ;;  %v10488_v0 = vunpack.i.h.bf16 %v10486_v7  ;;  %vm17128_vm0 = vmmov %vm17124_vm4 }
 0x7d8   : > { %9199 = vmatprep.mubr.msk.f32.mxu0 %vm333_vm13, %v15904_v22  ;;  %v8843_v19 = vadd.f32 %v8842_v12, %v8841_v34  ;;  %v8695_v30 = vpop.f32.mrf.mxu0  ;;  %v10493_v34 = vunpack.i.h.bf16 %v10491_v51  ;;  %vm17129_vm5 = vmmov %vm17125_vm1 }
 0x7d9   : > { %v8800_v59 = vmax.f32 %v8694_v6, 0.0  ;;  %v8245_v22 = vsel %vm333_vm13, %v15825_v13, %v10487_v3  ;;  %v10501_v26 = vpop.permute.xlu1 %10500  ;;  %v8246_v24 = vsel %vm333_vm13, %v15827_v54, %v10488_v0  ;;  %vm17130_vm6 = vmmov %vm17126_vm3 }
 0x7da   : > { %v10496_v48 = vpop.permute.xlu0 %10495  ;;  %v10502_v31 = vunpack.i.l.bf16 %v10501_v26  ;;  %v10503_v46 = vunpack.i.h.bf16 %v10501_v26  ;;  %v8278_v18 = vsel %vm4002_vm14, %v8246_v24, %v10493_v34 }
 0x7db   : > { %8762 = vmatmul.mubr.f32.gmra.mxu0 %v8436_v35  ;;  %v8844_v40 = vsel %vm4002_vm14, %v8800_v59, 0.0  ;;  %v10497_v8 = vunpack.i.l.bf16 %v10496_v48  ;;  %v10498_v45 = vunpack.i.h.bf16 %v10496_v48 }
 0x7dc   : > { %9200 = vmatprep.mubr.msk.f32.mxu0 %vm333_vm13, %v15961_v10  ;;  %v8845_v5 = vadd.f32 %v8844_v40, %v8843_v19  ;;  %v8277_v10 = vsel %vm4002_vm14, %v8245_v22, %v10492_v4 }
 0x7dd   : > { %v8309_v43 = vsel %vm4035_vm15, %v8277_v10, %v10497_v8  ;;  %v8310_v17 = vsel %vm4035_vm15, %v8278_v18, %v10498_v45  ;;  %v7320_v45 = vld [vmem:[#allocation3 + $0x1a2] sm:$0xff] }
 0x7de   : > { %v10506_v29 = vpop.permute.xlu0 %10505  ;;  %v8341_v47 = vsel %vm17118_vm7, %v8309_v43, %v10502_v31  ;;  %v8342_v2 = vsel %vm17121_vm10, %v8310_v17, %v10503_v46  ;;  %v8892_v43 = vld [vmem:[%s16165_s5 + $0x10] sm:$0xff]  ;;  %vm17131_vm7 = vmmov %vm17123_vm2  ;;  %vm8975_vm10 = vcmask 254976  }
 0x7df   : > { %v10507_v55 = vunpack.i.l.bf16 %v10506_v29  ;;  %v10508_v13 = vunpack.i.h.bf16 %v10506_v29  ;;  %9401 = vmatpush3.msra.mxu1 %v8892_v43 }
 0x7e0   : > { %9402 = vmatprep.subr.mxu1 %v16950_v16 }
 0x7e1   : > { %v8373_v32 = vsel %vm17119_vm8, %v8341_v47, %v10507_v55  ;;  %v8374_v33 = vsel %vm17123_vm2, %v8342_v2, %v10508_v13  ;;  %vm17132_vm8 = vmmov %vm17128_vm0 }
 0x7ed   : > { %v10511_v41 = vpop.permute.xlu1 %10510 }
 0x7ee   : > { %v10513_v38 = vunpack.i.h.bf16 %v10511_v41  ;;  %v10512_v11 = vunpack.i.l.bf16 %v10511_v41  ;;  %v10516_v63 = vpop.permute.xlu0 %10515 }
 0x7ef   : > { %v10517_v54 = vunpack.i.l.bf16 %v10516_v63  ;;  %v8698_v15 = vpop.f32.mrf.mxu0  ;;  %v10518_v20 = vunpack.i.h.bf16 %v10516_v63 }
 0x7f0   : > { %v8405_v37 = vsel %vm17120_vm9, %v8373_v32, %v10512_v11  ;;  %v8699_v25 = vadd.f32 %v15930_v36, %v8698_v15  ;;  %v8406_v50 = vsel %vm17124_vm4, %v8374_v33, %v10513_v38  ;;  %vm17134_vm9 = vcmask 1040384  }
 0x7f1   : > { %v10521_v21 = vpop.permute.xlu1 %10520  ;;  %v8437_v52 = vsel %vm17122_vm11, %v8405_v37, %v10517_v54  ;;  %v8700_v14 = vpop.f32.mrf.mxu0  ;;  %v8438_v56 = vsel %vm17125_vm1, %v8406_v50, %v10518_v20 }
 0x7f2   : > { %v10522_v62 = vunpack.i.l.bf16 %v10521_v21  ;;  %v10526_v44 = vpop.permute.xlu0 %10525  ;;  %8767 = vmatmul.mubr.f32.gmra.mxu0 %v8437_v52  ;;  %v8801_v53 = vmax.f32 %v8699_v25, 0.0  ;;  %v10523_v61 = vunpack.i.h.bf16 %v10521_v21  ;;  %v8891_v21 = vld [vmem:[%s16165_s5 + $0x8] sm:$0xff] }
 0x7f3   : > { %v10527_v27 = vunpack.i.l.bf16 %v10526_v44  ;;  %9201 = vmatprep.mubr.msk.f32.mxu0 %vm333_vm13, %v15971_v23  ;;  %v8703_v49 = vpop.f32.mrf.mxu0  ;;  %9403 = vmatpush3.msra.mxu1 %v8891_v21 }
 0x7f4   : > { %v8247_v60 = vsel %vm333_vm13, %v15874_v57, %v10522_v62  ;;  %v8846_v42 = vsel %vm4002_vm14, %v8801_v53, 0.0  ;;  %v8704_v28 = vadd.f32 %v15930_v36, %v8703_v49  ;;  %v10528_v57 = vunpack.i.h.bf16 %v10526_v44  ;;  %9404 = vmatprep.subr.mxu1 %v16950_v16 }
 0x7f5   : > { %v10531_v1 = vpop.permute.xlu1 %10530  ;;  %v8847_v12 = vadd.f32 %v8846_v42, %v8845_v5  ;;  %v8705_v6 = vpop.f32.mrf.mxu0  ;;  %v8279_v23 = vsel %vm4002_vm14, %v8247_v60, %v10527_v27  ;;  %v8248_v40 = vsel %vm333_vm13, %v15879_v9, %v10523_v61  ;;  %v8890_v61 = vld [vmem:[%s16165_s5] sm:$0xff] }
 0x7f6   : > { %v10532_v19 = vunpack.i.l.bf16 %v10531_v1  ;;  %v10536_v30 = vpop.permute.xlu0 %10535  ;;  %8772 = vmatmul.mubr.f32.gmra.mxu0 %v8438_v56  ;;  %v8802_v59 = vmax.f32 %v8704_v28, 0.0  ;;  %v10533_v48 = vunpack.i.h.bf16 %v10531_v1  ;;  %v8280_v26 = vsel %vm4002_vm14, %v8248_v40, %v10528_v57  ;;  %9405 = vmatpush3.msra.mxu1 %v8890_v61 }
 0x7f7   : > { %v10537_v35 = vunpack.i.l.bf16 %v10536_v30  ;;  %9202 = vmatprep.mubr.msk.f32.mxu0 %vm333_vm13, %v7319_v39  ;;  %v10538_v8 = vunpack.i.h.bf16 %v10536_v30 }
 0x7f8   : > { %v8311_v7 = vsel %vm4035_vm15, %v8279_v23, %v10532_v19  ;;  %v8848_v51 = vsel %vm4002_vm14, %v8802_v59, 0.0  ;;  %v8312_v24 = vsel %vm4035_vm15, %v8280_v26, %v10533_v48  ;;  %vm17133_vm15 = vmmov %vm17125_vm1 }
 0x7f9   : > { %v7926_v5 = vpop.permute.xlu1 %7925  ;;  %v8343_v3 = vsel %vm17126_vm3, %v8311_v7, %v10537_v35  ;;  %v8849_v0 = vadd.f32 %v8848_v51, %v8847_v12  ;;  %v8344_v10 = vsel %vm17130_vm6, %v8312_v24, %v10538_v8 }
 0x7fa   : > { %v8375_v4 = vsel %vm17127_vm12, %v8343_v3, %v7926_v5  ;;  %v8054_v22 = vpop.permute.xlu0 %8053 }
 0x7fb   : > { %v8407_v34 = vsel %vm17128_vm0, %v8375_v4, %v8054_v22 }
 0x7fd   : > { %v8182_v29 = vpop.permute.xlu1 %8181 }
 0x7fe   : > { %v7928_v9 = vpop.permute.xlu0 %7927  ;;  %v8439_v31 = vsel %vm17129_vm5, %v8407_v34, %v8182_v29 }
 0x7ff   : > { %8777 = vmatmul.mubr.f32.gmra.mxu0 %v8439_v31  ;;  %v8376_v55 = vsel %vm17131_vm7, %v8344_v10, %v7928_v9 }
 0x800   : > { %9203 = vmatprep.mubr.msk.f32.mxu0 %vm333_vm13, %v7320_v45  ;;  %vm10611_vm13 = vmmov 0  }
 0x801   : > { %v8056_v46 = vpop.permute.xlu1 %8055  ;;  %9406 = vmatprep.mubr.msk.f32.mxu1 %vm10611_vm13, %v16950_v16 }
 0x802   : > { %v8408_v18 = vsel %vm17132_vm8, %v8376_v55, %v8056_v46  ;;  %v8184_v17 = vpop.permute.xlu0 %8183 }
 0x803   : > { %v8440_v13 = vsel %vm17133_vm15, %v8408_v18, %v8184_v17 }
 0x804   : > { %8782 = vmatmul.mubr.f32.gmra.mxu0 %v8440_v13 }
 0x80a   : > { %v8708_v41 = vpop.f32.mrf.mxu0 }
 0x80b   : > { %v8709_v38 = vadd.f32 %v15930_v36, %v8708_v41 }
 0x80c   : > { %v8710_v11 = vpop.f32.mrf.mxu0 }
 0x80d   : > { %v8803_v63 = vmax.f32 %v8709_v38, 0.0 }
 0x80e   : > { %v8713_v47 = vpop.f32.mrf.mxu0 }
 0x80f   : > { %v8850_v54 = vsel %vm4002_vm14, %v8803_v63, 0.0  ;;  %v8714_v32 = vadd.f32 %v15930_v36, %v8713_v47 }
 0x810   : > { %v8851_v15 = vadd.f32 %v8850_v54, %v8849_v0  ;;  %v8715_v37 = vpop.f32.mrf.mxu0 }
 0x811   : > { %v8804_v2 = vmax.f32 %v8714_v32, 0.0 }
 0x813   : > { %v8852_v20 = vsel %vm4002_vm14, %v8804_v2, 0.0 }
 0x814   : > { %v8853_v25 = vadd.f32 %v8852_v20, %v8851_v15 }
 0x827   : > { %v8718_v52 = vpop.f32.mrf.mxu0 }
 0x828   : > { %v8719_v33 = vadd.f32 %v15930_v36, %v8718_v52 }
 0x829   : > { %v8720_v14 = vpop.f32.mrf.mxu0 }
 0x82a   : > { %v8805_v62 = vmax.f32 %v8719_v33, 0.0 }
 0x82b   : > { %v8723_v44 = vpop.f32.mrf.mxu0 }
 0x82c   : > { %v8854_v50 = vsel %vm4002_vm14, %v8805_v62, 0.0  ;;  %v8724_v53 = vadd.f32 %v15930_v36, %v8723_v44 }
 0x82d   : > { %v8855_v27 = vadd.f32 %v8854_v50, %v8853_v25  ;;  %v8725_v60 = vpop.f32.mrf.mxu0 }
 0x82e   : > { %v8806_v49 = vmax.f32 %v8724_v53, 0.0  ;;  %v4641_v53 = vrot.slane %v14991_v58, 4 }
 0x830   : > { %v8856_v39 = vsel %vm4002_vm14, %v8806_v49, 0.0 }
 0x831   : > { %v8857_v42 = vadd.f32 %v8856_v39, %v8855_v27 }
 0x842   : > { %v8728_v28 = vpop.f32.mrf.mxu0 }
 0x843   : > { %v8729_v1 = vadd.f32 %v15930_v36, %v8728_v28 }
 0x844   : > { %v8730_v56 = vpop.f32.mrf.mxu0 }
 0x845   : > { %v8807_v12 = vmax.f32 %v8729_v1, 0.0  ;;  %v4642_v1 = vadd.f32 %v4641_v53, %v14991_v58 }
 0x846   : > { %v8733_v6 = vpop.f32.mrf.mxu0 }
 0x847   : > { %v8858_v19 = vsel %vm4002_vm14, %v8807_v12, 0.0  ;;  %v8734_v30 = vadd.f32 %v15930_v36, %v8733_v6 }
 0x848   : > { %v8859_v23 = vadd.f32 %v8858_v19, %v8857_v42  ;;  %v8735_v59 = vpop.f32.mrf.mxu0 }
 0x849   : > { %v8808_v35 = vmax.f32 %v8734_v30, 0.0 }
 0x84b   : > { %v8860_v57 = vsel %vm4002_vm14, %v8808_v35, 0.0  ;;  %v4643_v35 = vrot.slane %v4642_v1, 2 }
 0x84c   : > { %v8861_v7 = vadd.f32 %v8860_v57, %v8859_v23 }
 0x85f   : > { %v8738_v40 = vpop.f32.mrf.mxu0 }
 0x860   : > { %v8739_v51 = vadd.f32 %v15930_v36, %v8738_v40 }
 0x861   : > { %v8740_v48 = vpop.f32.mrf.mxu0 }
 0x862   : > { %v8809_v5 = vmax.f32 %v8739_v51, 0.0  ;;  %v4644_v51 = vadd.f32 %v4643_v35, %v4642_v1 }
 0x863   : > { %v8743_v3 = vpop.f32.mrf.mxu0 }
 0x864   : > { %v8862_v0 = vsel %vm4002_vm14, %v8809_v5, 0.0  ;;  %v8744_v4 = vadd.f32 %v15930_v36, %v8743_v3  ;;  %v4645_v3 = vrot.slane %v4644_v51, 1 }
 0x865   : > { %v8863_v22 = vadd.f32 %v8862_v0, %v8861_v7  ;;  %v8745_v26 = vpop.f32.mrf.mxu0 }
 0x866   : > { %v8810_v8 = vmax.f32 %v8744_v4, 0.0  ;;  %v4646_v4 = vadd.f32 %v4645_v3, %v4644_v51 }
 0x868   : > { %v8864_v34 = vsel %vm4002_vm14, %v8810_v8, 0.0  ;;  %v4648_v8 = vmul.f32 0.00390625, %v4646_v4 }
 0x869   : > { %v8865_v29 = vadd.f32 %v8864_v34, %v8863_v22 }
 0x87a   : > { %v8748_v24 = vpop.f32.mrf.mxu0 }
 0x87b   : > { %v8749_v46 = vadd.f32 %v15930_v36, %v8748_v24 }
 0x87c   : > { %v8750_v45 = vpop.f32.mrf.mxu0 }
 0x87d   : > { %v8811_v41 = vmax.f32 %v8749_v46, 0.0 }
 0x87e   : > { %v8753_v9 = vpop.f32.mrf.mxu0 }
 0x87f   : > { %v8754_v17 = vadd.f32 %v15930_v36, %v8753_v9  ;;  %v8866_v32 = vsel %vm4002_vm14, %v8811_v41, 0.0 }
 0x880   : > { %v8755_v16 = vpop.f32.mrf.mxu0  ;;  %v8867_v21 = vadd.f32 %v8866_v32, %v8865_v29  ;;  %v9204_v29 = vld [vmem:[%s16166_s6] ss:$0 sm:$0xff] }
 0x881   : > { %v8812_v63 = vmax.f32 %v8754_v17, 0.0 }
 0x883   : > { %v8868_v2 = vsel %vm4002_vm14, %v8812_v63, 0.0 }
 0x884   : > { %v8869_v14 = vadd.f32 %v8868_v2, %v8867_v21 }
 0x897   : > { %v8758_v31 = vpop.f32.mrf.mxu0 }
 0x898   : > { %v8759_v38 = vadd.f32 %v15930_v36, %v8758_v31 }
 0x899   : > { %v8760_v10 = vpop.f32.mrf.mxu0 }
 0x89a   : > { %v8813_v15 = vmax.f32 %v8759_v38, 0.0 }
 0x89b   : > { %v8763_v43 = vpop.f32.mrf.mxu0 }
 0x89c   : > { %v8764_v47 = vadd.f32 %v15930_v36, %v8763_v43  ;;  %v8870_v52 = vsel %vm4002_vm14, %v8813_v15, 0.0 }
 0x89d   : > { %v8765_v55 = vpop.f32.mrf.mxu0  ;;  %v8871_v27 = vadd.f32 %v8870_v52, %v8869_v14 }
 0x89e   : > { %v8814_v20 = vmax.f32 %v8764_v47, 0.0 }
 0x8a0   : > { %v8872_v62 = vsel %vm4002_vm14, %v8814_v20, 0.0 }
 0x8a1   : > { %v8873_v42 = vadd.f32 %v8872_v62, %v8871_v27 }
 0x8b2   : > { %v8768_v18 = vpop.f32.mrf.mxu0 }
 0x8b3   : > { %v8769_v37 = vadd.f32 %v15930_v36, %v8768_v18 }
 0x8b4   : > { %v8770_v13 = vpop.f32.mrf.mxu0 }
 0x8b5   : > { %v8815_v33 = vmax.f32 %v8769_v37, 0.0 }
 0x8b6   : > { %v8773_v11 = vpop.f32.mrf.mxu0 }
 0x8b7   : > { %v8774_v25 = vadd.f32 %v15930_v36, %v8773_v11  ;;  %v8874_v49 = vsel %vm4002_vm14, %v8815_v33, 0.0 }
 0x8b8   : > { %v8775_v54 = vpop.f32.mrf.mxu0  ;;  %v8875_v56 = vadd.f32 %v8874_v49, %v8873_v42 }
 0x8b9   : > { %v8816_v44 = vmax.f32 %v8774_v25, 0.0 }
 0x8bb   : > { %v8876_v28 = vsel %vm4002_vm14, %v8816_v44, 0.0 }
 0x8bc   : > { %v8877_v30 = vadd.f32 %v8876_v28, %v8875_v56 }
 0x8bf   : > { %v8778_v50 = vpop.f32.mrf.mxu0 }
 0x8c0   : > { %v8779_v60 = vadd.f32 %v15930_v36, %v8778_v50 }
 0x8c1   : > { %v8780_v39 = vpop.f32.mrf.mxu0 }
 0x8c2   : > { %v8817_v61 = vmax.f32 %v8779_v60, 0.0 }
 0x8c4   : > { %v8783_v12 = vpop.f32.mrf.mxu0  ;;  %v8878_v6 = vsel %vm4002_vm14, %v8817_v61, 0.0 }
 0x8c5   : > { %v8784_v19 = vadd.f32 %v15930_v36, %v8783_v12  ;;  %v8879_v57 = vadd.f32 %v8878_v6, %v8877_v30 }
 0x8c6   : > { %v8785_v23 = vpop.f32.mrf.mxu0 }
 0x8c7   : > { %v8818_v59 = vmax.f32 %v8784_v19, 0.0 }
 0x8c9   : > { %v8880_v7 = vsel %vm4002_vm14, %v8818_v59, 0.0 }
 0x8ca   : > { %v8881_v40 = vadd.f32 %v8880_v7, %v8879_v57 }
 0x8cc   : > { %v8882_v48 = vrot.slane %v8881_v40, 4 }
 0x8ce   : > { %v8883_v5 = vadd.f32 %v8882_v48, %v8881_v40 }
 0x8d0   : > { %v8884_v58 = vrot.slane %v8883_v5, 2 }
 0x8d2   : > { %v8885_v0 = vadd.f32 %v8884_v58, %v8883_v5 }
 0x8d4   : > { %v8886_v22 = vrot.slane %v8885_v0, 1 }
 0x8d6   : > { %v8887_v26 = vadd.f32 %v8886_v22, %v8885_v0 }
 0x8d8   : > { %v8888_v36 = vmul.f32 0.00390625, %v8887_v26 }
 0x8da   : > { %v8889_v34 = vsel %vm17134_vm9, %v4648_v8, %v8888_v36 }
 0x8db   : > { %9407 = vmatmul.mubr.msk.f32.vlgmr.msra.gmra.mxu1 %vm4002_vm14, %v8889_v34 }
 0x99b   : > { %v8970_v24 = vpop.f32.mrf.mxu1 }
 0x99c   : > { %v8971_v45 = vadd.f32 %v9204_v29, %v8970_v24 }
 0x99d   : > { %v9408_v9 = vpop.f32.mrf.mxu1 }
 0x99e   : > { %v8974_v16 = vmax.f32 %v8971_v45, 0.0 }
 0x9a0   : > { %8976 = vst.msk [vmem:[%s276_s13] sm:$0x3] %vm8975_vm10, %v8974_v16 }
 0x9a1 PF: > { %s17_s24 = sadd.s32 1, %s10593_s24  }
 0x9a2   : > { %p14_p4 = scmp.ge.s32.totalorder %s17_s24, 4  }
 0x9a4   :  { %16 = sbr.rel (!%p14_p4) target bundleno = 1 (0x1), region = 83 }

</bundles_post_ra>
